<compile_context>
chip_gen: v6e
topology: v6e:2x2x1
jax: 0.10.0
libtpu: 0.0.40
codegen_flags: <defaults>
</compile_context>

<pallas_src>
import functools
import math

import jax
import jax.numpy as jnp
from jax.experimental import pallas as pl
from jax.experimental.pallas import tpu as pltpu


_PARALLEL_1D = pltpu.CompilerParams(dimension_semantics=("parallel",))
_MXU_DTYPE = jnp.bfloat16    # MXU inputs; accumulation / softmax / LN stay f32
_LN_EPS = 1e-5


def _layernorm(z, g, b, eps):
    mu = jnp.mean(z, axis=-1, keepdims=True)
    zc = z - mu
    var = jnp.mean(zc * zc, axis=-1, keepdims=True)
    return zc * jax.lax.rsqrt(var + eps) * g + b


# ---------------------------------------------------------------------------
# Fused map/agent-aware attention block kernel
# (projections + attention + output projection + residual + LayerNorm, plus
#  optionally the map-token FFN + LayerNorm epilogue) — one grid step per
#  batch element.
# ---------------------------------------------------------------------------

def _fused_attn_kernel(*refs, nhead, scale, eps, has_map_ffn, p_pad):
    if has_map_ffn:
        (xq_ref, xkv_ref, qmap_ref, kvmap_ref, som_ref, am_ref,
         wq_ref, bq_ref, wk_ref, bk_ref, wm_ref, bm_ref,
         wo_ref, bo_ref, wom_ref, bom_ref,
         lng_ref, lnb_ref, lmg_ref, lmb_ref,
         w1_ref, b1_ref, w2_ref, b2_ref, g3_ref, b3_ref,
         to_ref, mo_ref, p_ref,
         qext_ref, acc_ref, pacc_ref) = refs
    else:
        (xq_ref, xkv_ref, qmap_ref, kvmap_ref, som_ref, am_ref,
         wq_ref, bq_ref, wk_ref, bk_ref, wm_ref, bm_ref,
         wo_ref, bo_ref, wom_ref, bom_ref,
         lng_ref, lnb_ref, lmg_ref, lmb_ref,
         to_ref, mo_ref, p_ref,
         qext_ref, acc_ref, pacc_ref) = refs
        w1_ref = b1_ref = w2_ref = b2_ref = g3_ref = b3_ref = None

    Lq = xq_ref.shape[1]
    Lk = xkv_ref.shape[1]
    D = xq_ref.shape[2]
    hd = D // nhead
    Lq1 = Lq + 1
    cd = _MXU_DTYPE

    xq = xq_ref[0]                       # (Lq, D)  f32
    xkv = xkv_ref[0]                     # (Lk, D)
    qmap = qmap_ref[0]                   # (1, D)   map feature on the query side
    kvmap = kvmap_ref[0]                 # (1, D)   map feature on the kv side

    # --- fused projections (bf16 MXU inputs, f32 accumulation) --------------
    # lanes of q_cat: [self-q | other-q | map-q], of k_cat: [self-k | other-k | v]
    q_cat = jnp.dot(xq.astype(cd), wq_ref[...],
                    preferred_element_type=jnp.float32) + bq_ref[...]
    k_cat = jnp.dot(xkv.astype(cd), wk_ref[...],
                    preferred_element_type=jnp.float32) + bk_ref[...]
    mproj_q = jnp.dot(qmap.astype(cd), wm_ref[...],
                      preferred_element_type=jnp.float32) + bm_ref[...]
    mproj_kv = jnp.dot(kvmap.astype(cd), wm_ref[...],
                       preferred_element_type=jnp.float32) + bm_ref[...]
    mq = mproj_q[:, 0:D]                 # (1, D) map query
    mk = mproj_kv[:, D:2 * D]            # (1, D) map key
    mv = mproj_kv[:, 2 * D:3 * D]        # (1, D) map value

    # assemble q_ext = [q_cat ; (mq | mq | mq)] in VMEM scratch — the map-query
    # token is folded in as query row Lq (its appended mask row is all-ones /
    # zero-additive, so it takes the "self" branch).
    qext_ref[0:Lq, :] = q_cat
    qext_ref[Lq:Lq1, 0:D] = mq
    qext_ref[Lq:Lq1, D:2 * D] = mq
    qext_ref[Lq:Lq1, 2 * D:3 * D] = mq
    q_ext = qext_ref[...]                # (Lq+1, 3D)

    sel = som_ref[0] > 0.5               # (Lq+1, Lk)  True = same agent
    am = am_ref[0]                       # (Lq+1, Lk)  additive mask

    paa_sum = jnp.zeros((Lq1, Lk), jnp.float32)
    pam_sum = jnp.zeros((Lq1, 1), jnp.float32)
    dims = (((1,), (1,)), ((), ()))      # contract the head dim: A @ B^T

    for h in range(nhead):               # unrolled — all heads in one launch
        lo = h * hd
        qs = q_ext[:, lo:lo + hd].astype(cd)
        qo = q_ext[:, D + lo:D + lo + hd].astype(cd)
        qm = q_ext[:, 2 * D + lo:2 * D + lo + hd]
        ks = k_cat[:, lo:lo + hd].astype(cd)
        ko = k_cat[:, D + lo:D + lo + hd].astype(cd)
        v = k_cat[:, 2 * D + lo:2 * D + lo + hd].astype(cd)
        mk_h = mk[:, lo:lo + hd]
        mv_h = mv[:, lo:lo + hd]

        # agent-aware self/other score selection (+ additive mask)
        s_self = jax.lax.dot_general(qs, ks, dims,
                                     preferred_element_type=jnp.float32)
        s_other = jax.lax.dot_general(qo, ko, dims,
                                      preferred_element_type=jnp.float32)
        s_aa = jnp.where(sel, s_self, s_other) * scale + am      # (Lq+1, Lk)
        # agent->map score: VPU mul + lane reduce (no degenerate N=1 matmul).
        # TODO(synk): additive mask is not applied to the map-key column
        # (matches the original reconstruction).
        s_am = jnp.sum(qm * mk_h, axis=-1, keepdims=True) * scale  # (Lq+1, 1)

        # joint softmax over (Lk agent keys + 1 map key)
        row_max = jnp.maximum(jnp.max(s_aa, axis=-1, keepdims=True), s_am)
        e_aa = jnp.exp(s_aa - row_max)
        e_am = jnp.exp(s_am - row_max)
        inv = pl.reciprocal(jnp.sum(e_aa, axis=-1, keepdims=True) + e_am,
                            approx=True)
        p_aa = e_aa * inv
        p_am = e_am * inv

        o_h = jnp.dot(p_aa.astype(cd), v,
                      preferred_element_type=jnp.float32) + p_am * mv_h
        acc_ref[:, lo:lo + hd] = o_h     # lane-slice store to VMEM scratch only
        paa_sum = paa_sum + p_aa
        pam_sum = pam_sum + p_am

    o_all = acc_ref[...]                 # (Lq+1, D) dense read — all heads

    # --- agent rows: output projection + residual + LayerNorm (dense store) --
    y = jnp.dot(o_all[0:Lq].astype(cd), wo_ref[...],
                preferred_element_type=jnp.float32) + bo_ref[...]
    to_ref[0] = _layernorm(y + xq, lng_ref[...], lnb_ref[...], eps)

    # --- map token: its own output projection + residual + LayerNorm (+ FFN) -
    ym = jnp.dot(o_all[Lq:Lq1].astype(cd), wom_ref[...],
                 preferred_element_type=jnp.float32) + bom_ref[...]
    m_out = _layernorm(ym + qmap, lmg_ref[...], lmb_ref[...], eps)
    if has_map_ffn:
        hid = jnp.dot(m_out.astype(cd), w1_ref[...],
                      preferred_element_type=jnp.float32) + b1_ref[...]
        hid = jnp.maximum(hid, 0.0)
        y2 = jnp.dot(hid.astype(cd), w2_ref[...],
                     preferred_element_type=jnp.float32) + b2_ref[...]
        m_out = _layernorm(m_out + y2, g3_ref[...], b3_ref[...], eps)
    mo_ref[0] = m_out

    # --- head-averaged attention probabilities (agent rows) -----------------
    # assembled lane-dense (padded to p_pad) in VMEM, emitted with ONE
    # full-width HBM store; padding is sliced off in the wrapper.
    inv_h = 1.0 / nhead
    pacc_ref[:, 0:Lk] = paa_sum[0:Lq] * inv_h
    pacc_ref[:, Lk:Lk + 1] = pam_sum[0:Lq] * inv_h
    if p_pad > Lk + 1:
        pacc_ref[:, Lk + 1:] = jnp.zeros((Lq, p_pad - Lk - 1), jnp.float32)
    p_ref[0] = pacc_ref[...]


def pallas_fused_attention(x_q, x_kv, q_map, kv_map, som_ext, am_ext,
                           ap, ln_g, ln_b, lnm_g, lnm_b, nhead, map_ffn=None):
    """Fused MapAgentAware attention block.

    x_q: (B, Lq, D), x_kv: (B, Lk, D), q_map/kv_map: (B, 1, D),
    som_ext/am_ext: (B or 1, Lq+1, Lk) self/other & additive masks with the
    map-query row appended.  Returns the LayerNorm'ed agent output (B, Lq, D),
    map output (B, 1, D) and head-averaged attention weights (B, Lq, Lk+1).
    """
    B, Lq, D = x_q.shape
    Lk = x_kv.shape[1]
    Lq1 = Lq + 1
    hd = D // nhead
    scale = 1.0 / math.sqrt(hd)
    p_pad = ((Lk + 1 + 127) // 128) * 128       # lane-dense attn-prob width

    def bspec(arr):                              # per-batch 3-D block
        _, a1, a2 = arr.shape
        return pl.BlockSpec((1, a1, a2), lambda b: (b, 0, 0))

    def cspec(arr):                              # grid-invariant (resident) block
        nd = arr.ndim
        return pl.BlockSpec(arr.shape, lambda b: (0,) * nd)

    def mspec(arr):                              # mask (possibly batch-invariant)
        if arr.shape[0] == B:
            return pl.BlockSpec((1, Lq1, Lk), lambda b: (b, 0, 0))
        return pl.BlockSpec((1, Lq1, Lk), lambda b: (0, 0, 0))

    weights = [ap['wq_cat'], ap['bq_cat'], ap['wk_cat'], ap['bk_cat'],
               ap['wm_cat'], ap['bm_cat'], ap['wo'], ap['bo'],
               ap['wo_map'], ap['bo_map'], ln_g, ln_b, lnm_g, lnm_b]
    if map_ffn is not None:
        weights = weights + list(map_ffn)

    inputs = [x_q, x_kv, q_map, kv_map, som_ext, am_ext] + weights
    in_specs = ([bspec(x_q), bspec(x_kv), bspec(q_map), bspec(kv_map),
                 mspec(som_ext), mspec(am_ext)]
                + [cspec(w) for w in weights])

    out_shape = (jax.ShapeDtypeStruct((B, Lq, D), jnp.float32),
                 jax.ShapeDtypeStruct((B, 1, D), jnp.float32),
                 jax.ShapeDtypeStruct((B, Lq, p_pad), jnp.float32))
    out_specs = (pl.BlockSpec((1, Lq, D), lambda b: (b, 0, 0)),
                 pl.BlockSpec((1, 1, D), lambda b: (b, 0, 0)),
                 pl.BlockSpec((1, Lq, p_pad), lambda b: (b, 0, 0)))

    kernel = functools.partial(
        _fused_attn_kernel, nhead=nhead, scale=scale, eps=_LN_EPS,
        has_map_ffn=map_ffn is not None, p_pad=p_pad)

    tgt_new, map_new, attn_pad = pl.pallas_call(
        kernel,
        grid=(B,),
        in_specs=in_specs,
        out_specs=out_specs,
        out_shape=out_shape,
        scratch_shapes=[pltpu.VMEM((Lq1, 3 * D), jnp.float32),   # q_ext
                        pltpu.VMEM((Lq1, D), jnp.float32),       # head outputs
                        pltpu.VMEM((Lq, p_pad), jnp.float32)],   # attn probs
        compiler_params=_PARALLEL_1D,
    )(*inputs)
    return tgt_new, map_new, attn_pad[:, :, :Lk + 1]


# ---------------------------------------------------------------------------
# Fused agent FFN: LayerNorm(x + relu(x@W1 + b1) @ W2 + b2)
# ---------------------------------------------------------------------------

def _ffn_ln_kernel(x_ref, w1_ref, b1_ref, w2_ref, b2_ref, g_ref, bb_ref,
                   o_ref, *, eps):
    x = x_ref[...]
    cd = _MXU_DTYPE
    h = jnp.dot(x.astype(cd), w1_ref[...],
                preferred_element_type=jnp.float32) + b1_ref[...]
    h = jnp.maximum(h, 0.0)
    y = jnp.dot(h.astype(cd), w2_ref[...],
                preferred_element_type=jnp.float32) + b2_ref[...]
    o_ref[...] = _layernorm(x + y, g_ref[...], bb_ref[...], eps)


def pallas_ffn_ln(x, w1, b1, w2, b2, gamma, beta, eps=_LN_EPS):
    M, D = x.shape
    F = w1.shape[1]
    # Hardened row tiling: single block when small, otherwise 256-row tiles
    # with wrapper-side zero padding (padded rows are discarded) — bounded
    # VMEM + effective double-buffering on v5e/v6e/v7x.
    if M <= 512:
        tm, Mp = M, M
    else:
        tm = 256
        Mp = ((M + tm - 1) // tm) * tm
    xp = x if Mp == M else jnp.pad(x, ((0, Mp - M), (0, 0)))
    out = pl.pallas_call(
        functools.partial(_ffn_ln_kernel, eps=eps),
        grid=(Mp // tm,),
        in_specs=[pl.BlockSpec((tm, D), lambda i: (i, 0)),
                  pl.BlockSpec((D, F), lambda i: (0, 0)),
                  pl.BlockSpec((1, F), lambda i: (0, 0)),
                  pl.BlockSpec((F, D), lambda i: (0, 0)),
                  pl.BlockSpec((1, D), lambda i: (0, 0)),
                  pl.BlockSpec((1, D), lambda i: (0, 0)),
                  pl.BlockSpec((1, D), lambda i: (0, 0))],
        out_specs=pl.BlockSpec((tm, D), lambda i: (i, 0)),
        out_shape=jax.ShapeDtypeStruct((Mp, D), jnp.float32),
        compiler_params=_PARALLEL_1D,
    )(xp, w1, b1, w2, b2, gamma, beta)
    return out if Mp == M else out[:M]


# ---------------------------------------------------------------------------
# Decoder layer / stack
# ---------------------------------------------------------------------------

def decoder_layer_forward(tgt, memory, tt_so_e, tm_so_e, tgt_map, mem_map,
                          tt_add_e, tm_add_e, p, nhead):
    """tgt: (B, Lt, D), memory: (B, Lm, D), tgt_map/mem_map: (B, 1, D)."""
    B, Lt, D = tgt.shape

    # --- self attention block (proj + attn + out-proj + LN, agents & map) ---
    tgt, tgt_map, sa_w = pallas_fused_attention(
        tgt, tgt, tgt_map, tgt_map, tt_so_e, tt_add_e,
        p['self_attn'], p['ln1_g'], p['ln1_b'], p['ln1m_g'], p['ln1m_b'], nhead)

    # --- cross attention block + fused map-token FFN/LayerNorm epilogue -----
    tgt, tgt_map, ca_w = pallas_fused_attention(
        tgt, memory, tgt_map, mem_map, tm_so_e, tm_add_e,
        p['cross_attn'], p['ln2_g'], p['ln2_b'], p['ln2m_g'], p['ln2m_b'], nhead,
        map_ffn=(p['ffnm_w1'], p['ffnm_b1'], p['ffnm_w2'], p['ffnm_b2'],
                 p['ln3m_g'], p['ln3m_b']))

    # --- agent FFN over all (B*Lt) rows in one fused kernel ------------------
    tgt = pallas_ffn_ln(tgt.reshape(B * Lt, D), p['ffn_w1'], p['ffn_b1'],
                        p['ffn_w2'], p['ffn_b2'],
                        p['ln3_g'], p['ln3_b']).reshape(B, Lt, D)
    return tgt, tgt_map, sa_w, ca_w


@functools.partial(jax.jit, static_argnames=("nhead",))
def _decoder_forward(layers, tgt, memory, tt_so, tm_so, tgt_map, mem_map,
                     tt_add, tm_add, *, nhead):
    # seq-first -> batch-major once for the whole stack
    tgt_bm = jnp.transpose(tgt, (1, 0, 2))       # (B, Lt, D)
    mem_bm = jnp.transpose(memory, (1, 0, 2))    # (B, Lm, D)
    B = tgt_bm.shape[0]
    tmap = tgt_map.reshape(B, 1, -1)
    mmap = mem_map.reshape(B, 1, -1)

    def ext(mask, fill):
        pad = jnp.full((mask.shape[0], 1, mask.shape[2]), fill, jnp.float32)
        return jnp.concatenate([mask, pad], axis=1)

    # append the map-query row once (layer-invariant, batch-invariant masks
    # stay un-duplicated)
    tt_so_e, tm_so_e = ext(tt_so, 1.0), ext(tm_so, 1.0)
    tt_add_e, tm_add_e = ext(tt_add, 0.0), ext(tm_add, 0.0)

    out, map_out = tgt_bm, tmap
    sa_ws, ca_ws = [], []
    for p in layers:
        out, map_out, sw, cw = decoder_layer_forward(
            out, mem_bm, tt_so_e, tm_so_e, map_out, mmap,
            tt_add_e, tm_add_e, p, nhead)
        sa_ws.append(sw)
        ca_ws.append(cw)
    return (jnp.transpose(out, (1, 0, 2)), map_out.reshape(B, -1),
            sa_ws, ca_ws)


# ---------------------------------------------------------------------------
# Deterministic parameter init (synthetic — no checkpoint loading)
# ---------------------------------------------------------------------------

def _init_attn_params(key, D):
    names = ['q_self', 'q_other', 'q_map', 'k_self', 'k_other', 'v',
             'k_mapk', 'v_mapv', 'q_mapq', 'o', 'o_map']
    raw = {}
    for i, n in enumerate(names):
        kw, kb = jax.random.split(jax.random.fold_in(key, i))
        raw['w' + n] = (jax.random.normal(kw, (D, D), jnp.float32)
                        * (1.0 / math.sqrt(D)))
        raw['b' + n] = jax.random.normal(kb, (D,), jnp.float32) * 0.02

    def wcat(a, b, c):
        return jnp.concatenate([a, b, c], axis=1).astype(_MXU_DTYPE)

    def bcat(a, b, c):
        return jnp.concatenate([a, b, c]).reshape(1, 3 * D)

    # packed/fused weights (lane order documents the in-kernel slot layout)
    return {
        'wq_cat': wcat(raw['wq_self'], raw['wq_other'], raw['wq_map']),
        'bq_cat': bcat(raw['bq_self'], raw['bq_other'], raw['bq_map']),
        'wk_cat': wcat(raw['wk_self'], raw['wk_other'], raw['wv']),
        'bk_cat': bcat(raw['bk_self'], raw['bk_other'], raw['bv']),
        'wm_cat': wcat(raw['wq_mapq'], raw['wk_mapk'], raw['wv_mapv']),
        'bm_cat': bcat(raw['bq_mapq'], raw['bk_mapk'], raw['bv_mapv']),
        'wo': raw['wo'].astype(_MXU_DTYPE), 'bo': raw['bo'].reshape(1, D),
        'wo_map': raw['wo_map'].astype(_MXU_DTYPE),
        'bo_map': raw['bo_map'].reshape(1, D),
    }


def _init_layer_params(key, D, F):
    k_self, k_cross, k_ffn, k_ffnm = jax.random.split(key, 4)
    p = {'self_attn': _init_attn_params(k_self, D),
         'cross_attn': _init_attn_params(k_cross, D)}

    def ffn(k, prefix):
        k1, k2, k3, k4 = jax.random.split(k, 4)
        p[prefix + '_w1'] = (jax.random.normal(k1, (D, F), jnp.float32)
                             / math.sqrt(D)).astype(_MXU_DTYPE)
        p[prefix + '_b1'] = (jax.random.normal(k2, (F,), jnp.float32)
                             * 0.02).reshape(1, F)
        p[prefix + '_w2'] = (jax.random.normal(k3, (F, D), jnp.float32)
                             / math.sqrt(F)).astype(_MXU_DTYPE)
        p[prefix + '_b2'] = (jax.random.normal(k4, (D,), jnp.float32)
                             * 0.02).reshape(1, D)

    ffn(k_ffn, 'ffn')
    ffn(k_ffnm, 'ffnm')
    for n in ['ln1', 'ln2', 'ln3', 'ln1m', 'ln2m', 'ln3m']:
        p[n + '_g'] = jnp.ones((1, D), jnp.float32)
        p[n + '_b'] = jnp.zeros((1, D), jnp.float32)
    return p


def _as_batched_mask(mask):
    mask = jnp.asarray(mask, jnp.float32)
    return mask[None] if mask.ndim == 2 else mask


def _as_additive_mask(mask, Lq, Lk):
    if mask is None:
        return jnp.zeros((1, Lq, Lk), jnp.float32)
    mask = jnp.asarray(mask, jnp.float32)
    return mask[None] if mask.ndim == 2 else mask


class OcclusionFormerDecoderPallas:
    """Mirrors OcclusionFormerDecoder.forward (stack of identical-init layers,
    as produced by torch `_get_clones` deepcopy)."""

    def __init__(self, layer_params, num_layers, key):
        self.layer_params = layer_params
        self.num_layers = num_layers
        self.d_model = layer_params['d_model']
        self.nhead = layer_params.get('n_head', layer_params.get('nhead', 8))
        self.dim_feedforward = layer_params.get('dim_feedforward', 4 * self.d_model)
        assert self.d_model % self.nhead == 0
        shared = _init_layer_params(key, self.d_model, self.dim_feedforward)
        # _get_clones deepcopies one initialized layer -> identical params.
        self.layers = [shared] * num_layers

    def __call__(self, tgt, memory, tgt_tgt_self_other_mask,
                 tgt_mem_self_other_mask, tgt_map, mem_map,
                 tgt_mask=None, memory_mask=None):
        Lt, B, D = tgt.shape
        Lm = memory.shape[0]
        tt_so = _as_batched_mask(tgt_tgt_self_other_mask)
        tm_so = _as_batched_mask(tgt_mem_self_other_mask)
        tt_add = _as_additive_mask(tgt_mask, Lt, Lt)
        tm_add = _as_additive_mask(memory_mask, Lt, Lm)
        out, map_out, sa_ws, ca_ws = _decoder_forward(
            self.layers, tgt, memory, tt_so, tm_so, tgt_map, mem_map,
            tt_add, tm_add, nhead=self.nhead)
        return out, map_out, {'self_attn_weights': list(sa_ws),
                              'cross_attn_weights': list(ca_ws)}


# ---------------------------------------------------------------------------
# Demo
# ---------------------------------------------------------------------------

if __name__ == "__main__":
    key = jax.random.PRNGKey(0)
    D, H, F, NUM_LAYERS = 32, 4, 64, 2
    B, Lt, Lm = 2, 8, 12

    layer_params = dict(d_model=D, n_head=H, dim_feedforward=F, dropout=0.0)

    ks = jax.random.split(key, 6)
    tgt = jax.random.normal(ks[0], (Lt, B, D), jnp.float32)
    memory = jax.random.normal(ks[1], (Lm, B, D), jnp.float32)
    tgt_map = jax.random.normal(ks[2], (B, D), jnp.float32)
    mem_map = jax.random.normal(ks[3], (B, D), jnp.float32)

    # self/other masks: 1.0 where query token and key token belong to the same agent
    agent_ids_t = jnp.arange(Lt) % 4
    agent_ids_m = jnp.arange(Lm) % 4
    tt_so = jnp.broadcast_to(
        (agent_ids_t[:, None] == agent_ids_t[None, :]).astype(jnp.float32),
        (B, Lt, Lt))
    tm_so = jnp.broadcast_to(
        (agent_ids_t[:, None] == agent_ids_m[None, :]).astype(jnp.float32),
        (B, Lt, Lm))

    # additive causal mask on the self-attention block
    tgt_mask = jnp.where(jnp.arange(Lt)[None, :] > jnp.arange(Lt)[:, None],
                         -1e9, 0.0).astype(jnp.float32)

    decoder = OcclusionFormerDecoderPallas(layer_params, NUM_LAYERS, ks[4])
    out, map_out, attn = decoder(tgt, memory, tt_so, tm_so, tgt_map, mem_map,
                                 tgt_mask=tgt_mask, memory_mask=None)

    jax.block_until_ready(out)
    jax.block_until_ready(map_out)
    jax.block_until_ready(attn['self_attn_weights'][0])
    jax.block_until_ready(attn['cross_attn_weights'][-1])

    assert out.shape == (Lt, B, D)
    assert map_out.shape == (B, D)
    assert attn['self_attn_weights'][0].shape == (B, Lt, Lt + 1)
    assert attn['cross_attn_weights'][0].shape == (B, Lt, Lm + 1)
    assert bool(jnp.all(jnp.isfinite(out))) and bool(jnp.all(jnp.isfinite(map_out)))
    print("KERNEL_OK")
</pallas_src>

<mosaic_0001>
module attributes {stable_mosaic.version = 11 : i64} {
  func.func @_fused_attn_kernel(%arg0: i32, %arg1: memref<1x8x32xf32, #tpu.memory_space<vmem>>, %arg2: memref<1x8x32xf32, #tpu.memory_space<vmem>>, %arg3: memref<1x1x32xf32, #tpu.memory_space<vmem>>, %arg4: memref<1x1x32xf32, #tpu.memory_space<vmem>>, %arg5: memref<1x9x8xf32, #tpu.memory_space<vmem>>, %arg6: memref<1x9x8xf32, #tpu.memory_space<vmem>>, %arg7: memref<32x96xbf16, #tpu.memory_space<vmem>>, %arg8: memref<1x96xf32, #tpu.memory_space<vmem>>, %arg9: memref<32x96xbf16, #tpu.memory_space<vmem>>, %arg10: memref<1x96xf32, #tpu.memory_space<vmem>>, %arg11: memref<32x96xbf16, #tpu.memory_space<vmem>>, %arg12: memref<1x96xf32, #tpu.memory_space<vmem>>, %arg13: memref<32x32xbf16, #tpu.memory_space<vmem>>, %arg14: memref<1x32xf32, #tpu.memory_space<vmem>>, %arg15: memref<32x32xbf16, #tpu.memory_space<vmem>>, %arg16: memref<1x32xf32, #tpu.memory_space<vmem>>, %arg17: memref<1x32xf32, #tpu.memory_space<vmem>>, %arg18: memref<1x32xf32, #tpu.memory_space<vmem>>, %arg19: memref<1x32xf32, #tpu.memory_space<vmem>>, %arg20: memref<1x32xf32, #tpu.memory_space<vmem>>, %arg21: memref<1x8x32xf32, #tpu.memory_space<vmem>>, %arg22: memref<1x1x32xf32, #tpu.memory_space<vmem>>, %arg23: memref<1x8x128xf32, #tpu.memory_space<vmem>>, %arg24: memref<9x96xf32, #tpu.memory_space<vmem>>, %arg25: memref<9x32xf32, #tpu.memory_space<vmem>>, %arg26: memref<8x128xf32, #tpu.memory_space<vmem>>) attributes {dimension_semantics = [#tpu.dimension_semantics<parallel>], iteration_bounds = array<i64: 2>, scalar_prefetch = 0 : i64, scratch_operands = 3 : i64, tpu.core_type = #tpu.core_type<tc>, window_params = [{transform_indices = @transform_0, window_bounds = array<i64: 1, 8, 32>}, {transform_indices = @transform_1, window_bounds = array<i64: 1, 8, 32>}, {transform_indices = @transform_2, window_bounds = array<i64: 1, 1, 32>}, {transform_indices = @transform_3, window_bounds = array<i64: 1, 1, 32>}, {transform_indices = @transform_4, window_bounds = array<i64: 1, 9, 8>}, {pipeline_mode = #tpu.pipeline_mode<synchronous>, transform_indices = @transform_5, window_bounds = array<i64: 1, 9, 8>}, {pipeline_mode = #tpu.pipeline_mode<synchronous>, transform_indices = @transform_6, window_bounds = array<i64: 32, 96>}, {pipeline_mode = #tpu.pipeline_mode<synchronous>, transform_indices = @transform_7, window_bounds = array<i64: 1, 96>}, {pipeline_mode = #tpu.pipeline_mode<synchronous>, transform_indices = @transform_8, window_bounds = array<i64: 32, 96>}, {pipeline_mode = #tpu.pipeline_mode<synchronous>, transform_indices = @transform_9, window_bounds = array<i64: 1, 96>}, {pipeline_mode = #tpu.pipeline_mode<synchronous>, transform_indices = @transform_10, window_bounds = array<i64: 32, 96>}, {pipeline_mode = #tpu.pipeline_mode<synchronous>, transform_indices = @transform_11, window_bounds = array<i64: 1, 96>}, {pipeline_mode = #tpu.pipeline_mode<synchronous>, transform_indices = @transform_12, window_bounds = array<i64: 32, 32>}, {pipeline_mode = #tpu.pipeline_mode<synchronous>, transform_indices = @transform_13, window_bounds = array<i64: 1, 32>}, {pipeline_mode = #tpu.pipeline_mode<synchronous>, transform_indices = @transform_14, window_bounds = array<i64: 32, 32>}, {pipeline_mode = #tpu.pipeline_mode<synchronous>, transform_indices = @transform_15, window_bounds = array<i64: 1, 32>}, {pipeline_mode = #tpu.pipeline_mode<synchronous>, transform_indices = @transform_16, window_bounds = array<i64: 1, 32>}, {pipeline_mode = #tpu.pipeline_mode<synchronous>, transform_indices = @transform_17, window_bounds = array<i64: 1, 32>}, {pipeline_mode = #tpu.pipeline_mode<synchronous>, transform_indices = @transform_18, window_bounds = array<i64: 1, 32>}, {pipeline_mode = #tpu.pipeline_mode<synchronous>, transform_indices = @transform_19, window_bounds = array<i64: 1, 32>}, {transform_indices = @transform_20, window_bounds = array<i64: 1, 8, 32>}, {transform_indices = @transform_21, window_bounds = array<i64: 1, 1, 32>}, {transform_indices = @transform_22, window_bounds = array<i64: 1, 8, 128>}]} {
    %c0 = arith.constant 0 : index
    %c0_0 = arith.constant 0 : index
    %c0_1 = arith.constant 0 : index
    %0 = vector.load %arg1[%c0, %c0_0, %c0_1] : memref<1x8x32xf32, #tpu.memory_space<vmem>>, vector<1x8x32xf32>
    %1 = vector.shape_cast %0 : vector<1x8x32xf32> to vector<8x32xf32>
    %c0_2 = arith.constant 0 : index
    %c0_3 = arith.constant 0 : index
    %c0_4 = arith.constant 0 : index
    %2 = vector.load %arg2[%c0_2, %c0_3, %c0_4] : memref<1x8x32xf32, #tpu.memory_space<vmem>>, vector<1x8x32xf32>
    %3 = vector.shape_cast %2 : vector<1x8x32xf32> to vector<8x32xf32>
    %c0_5 = arith.constant 0 : index
    %c0_6 = arith.constant 0 : index
    %c0_7 = arith.constant 0 : index
    %4 = vector.load %arg3[%c0_5, %c0_6, %c0_7] : memref<1x1x32xf32, #tpu.memory_space<vmem>>, vector<1x1x32xf32>
    %5 = vector.shape_cast %4 : vector<1x1x32xf32> to vector<1x32xf32>
    %c0_8 = arith.constant 0 : index
    %c0_9 = arith.constant 0 : index
    %c0_10 = arith.constant 0 : index
    %6 = vector.load %arg4[%c0_8, %c0_9, %c0_10] : memref<1x1x32xf32, #tpu.memory_space<vmem>>, vector<1x1x32xf32>
    %7 = vector.shape_cast %6 : vector<1x1x32xf32> to vector<1x32xf32>
    %8 = arith.truncf %1 : vector<8x32xf32> to vector<8x32xbf16>
    %c0_11 = arith.constant 0 : index
    %c0_12 = arith.constant 0 : index
    %9 = vector.load %arg7[%c0_11, %c0_12] : memref<32x96xbf16, #tpu.memory_space<vmem>>, vector<32x96xbf16>
    %cst = arith.constant dense<0.000000e+00> : vector<8x96xf32>
    %10 = tpu.matmul %8, %9, %cst {dimension_numbers = #tpu.dot_dimension_numbers<[1], [0], [0], [1], [0, 0, 1, 1], [], []>} : vector<8x32xbf16>, vector<32x96xbf16>, vector<8x96xf32> -> vector<8x96xf32>
    %c0_13 = arith.constant 0 : index
    %c0_14 = arith.constant 0 : index
    %11 = vector.load %arg8[%c0_13, %c0_14] : memref<1x96xf32, #tpu.memory_space<vmem>>, vector<1x96xf32>
    %12 = vector.broadcast %11 : vector<1x96xf32> to vector<8x96xf32>
    %13 = arith.addf %10, %12 : vector<8x96xf32>
    %14 = arith.truncf %3 : vector<8x32xf32> to vector<8x32xbf16>
    %c0_15 = arith.constant 0 : index
    %c0_16 = arith.constant 0 : index
    %15 = vector.load %arg9[%c0_15, %c0_16] : memref<32x96xbf16, #tpu.memory_space<vmem>>, vector<32x96xbf16>
    %cst_17 = arith.constant dense<0.000000e+00> : vector<8x96xf32>
    %16 = tpu.matmul %14, %15, %cst_17 {dimension_numbers = #tpu.dot_dimension_numbers<[1], [0], [0], [1], [0, 0, 1, 1], [], []>} : vector<8x32xbf16>, vector<32x96xbf16>, vector<8x96xf32> -> vector<8x96xf32>
    %c0_18 = arith.constant 0 : index
    %c0_19 = arith.constant 0 : index
    %17 = vector.load %arg10[%c0_18, %c0_19] : memref<1x96xf32, #tpu.memory_space<vmem>>, vector<1x96xf32>
    %18 = vector.broadcast %17 : vector<1x96xf32> to vector<8x96xf32>
    %19 = arith.addf %16, %18 : vector<8x96xf32>
    %20 = arith.truncf %5 : vector<1x32xf32> to vector<1x32xbf16>
    %c0_20 = arith.constant 0 : index
    %c0_21 = arith.constant 0 : index
    %21 = vector.load %arg11[%c0_20, %c0_21] : memref<32x96xbf16, #tpu.memory_space<vmem>>, vector<32x96xbf16>
    %cst_22 = arith.constant dense<0.000000e+00> : vector<1x96xf32>
    %22 = tpu.matmul %20, %21, %cst_22 {dimension_numbers = #tpu.dot_dimension_numbers<[1], [0], [0], [1], [0, 0, 1, 1], [], []>} : vector<1x32xbf16>, vector<32x96xbf16>, vector<1x96xf32> -> vector<1x96xf32>
    %c0_23 = arith.constant 0 : index
    %c0_24 = arith.constant 0 : index
    %23 = vector.load %arg12[%c0_23, %c0_24] : memref<1x96xf32, #tpu.memory_space<vmem>>, vector<1x96xf32>
    %24 = arith.addf %22, %23 : vector<1x96xf32>
    %25 = arith.truncf %7 : vector<1x32xf32> to vector<1x32xbf16>
    %c0_25 = arith.constant 0 : index
    %c0_26 = arith.constant 0 : index
    %26 = vector.load %arg11[%c0_25, %c0_26] : memref<32x96xbf16, #tpu.memory_space<vmem>>, vector<32x96xbf16>
    %cst_27 = arith.constant dense<0.000000e+00> : vector<1x96xf32>
    %27 = tpu.matmul %25, %26, %cst_27 {dimension_numbers = #tpu.dot_dimension_numbers<[1], [0], [0], [1], [0, 0, 1, 1], [], []>} : vector<1x32xbf16>, vector<32x96xbf16>, vector<1x96xf32> -> vector<1x96xf32>
    %c0_28 = arith.constant 0 : index
    %c0_29 = arith.constant 0 : index
    %28 = vector.load %arg12[%c0_28, %c0_29] : memref<1x96xf32, #tpu.memory_space<vmem>>, vector<1x96xf32>
    %29 = arith.addf %27, %28 : vector<1x96xf32>
    %30 = vector.extract_strided_slice %24 {offsets = [0, 0], sizes = [1, 32], strides = [1, 1]} : vector<1x96xf32> to vector<1x32xf32>
    %31 = vector.extract_strided_slice %29 {offsets = [0, 32], sizes = [1, 32], strides = [1, 1]} : vector<1x96xf32> to vector<1x32xf32>
    %32 = vector.extract_strided_slice %29 {offsets = [0, 64], sizes = [1, 32], strides = [1, 1]} : vector<1x96xf32> to vector<1x32xf32>
    %c0_30 = arith.constant 0 : index
    %c0_31 = arith.constant 0 : index
    %33 = vector.load %arg24[%c0_30, %c0_31] : memref<9x96xf32, #tpu.memory_space<vmem>>, vector<8x96xf32>
    tpu.vector_store %arg24[%c0_30, %c0_31], %13 {strides = array<i32>} : memref<9x96xf32, #tpu.memory_space<vmem>>, vector<8x96xf32>,
    %c8 = arith.constant 8 : index
    %c0_32 = arith.constant 0 : index
    %34 = vector.load %arg24[%c8, %c0_32] : memref<9x96xf32, #tpu.memory_space<vmem>>, vector<1x32xf32>
    tpu.vector_store %arg24[%c8, %c0_32], %30 {strides = array<i32>} : memref<9x96xf32, #tpu.memory_space<vmem>>, vector<1x32xf32>,
    %c8_33 = arith.constant 8 : index
    %c32 = arith.constant 32 : index
    %35 = vector.load %arg24[%c8_33, %c32] : memref<9x96xf32, #tpu.memory_space<vmem>>, vector<1x32xf32>
    tpu.vector_store %arg24[%c8_33, %c32], %30 {strides = array<i32>} : memref<9x96xf32, #tpu.memory_space<vmem>>, vector<1x32xf32>,
    %c8_34 = arith.constant 8 : index
    %c64 = arith.constant 64 : index
    %36 = vector.load %arg24[%c8_34, %c64] : memref<9x96xf32, #tpu.memory_space<vmem>>, vector<1x32xf32>
    tpu.vector_store %arg24[%c8_34, %c64], %30 {strides = array<i32>} : memref<9x96xf32, #tpu.memory_space<vmem>>, vector<1x32xf32>,
    %c0_35 = arith.constant 0 : index
    %c0_36 = arith.constant 0 : index
    %37 = vector.load %arg24[%c0_35, %c0_36] : memref<9x96xf32, #tpu.memory_space<vmem>>, vector<9x96xf32>
    %c0_37 = arith.constant 0 : index
    %c0_38 = arith.constant 0 : index
    %c0_39 = arith.constant 0 : index
    %38 = vector.load %arg5[%c0_37, %c0_38, %c0_39] : memref<1x9x8xf32, #tpu.memory_space<vmem>>, vector<1x9x8xf32>
    %39 = vector.shape_cast %38 : vector<1x9x8xf32> to vector<9x8xf32>
    %cst_40 = arith.constant 5.000000e-01 : f32
    %40 = vector.broadcast %cst_40 : f32 to vector<9x8xf32>
    %41 = arith.cmpf ogt, %39, %40 : vector<9x8xf32>
    %c0_41 = arith.constant 0 : index
    %c0_42 = arith.constant 0 : index
    %c0_43 = arith.constant 0 : index
    %42 = vector.load %arg6[%c0_41, %c0_42, %c0_43] : memref<1x9x8xf32, #tpu.memory_space<vmem>>, vector<1x9x8xf32>
    %43 = vector.shape_cast %42 : vector<1x9x8xf32> to vector<9x8xf32>
    %cst_44 = arith.constant 0.000000e+00 : f32
    %44 = vector.broadcast %cst_44 : f32 to vector<9x8xf32>
    %cst_45 = arith.constant 0.000000e+00 : f32
    %45 = vector.broadcast %cst_45 : f32 to vector<9x1xf32>
    %46 = vector.extract_strided_slice %37 {offsets = [0, 0], sizes = [9, 8], strides = [1, 1]} : vector<9x96xf32> to vector<9x8xf32>
    %47 = arith.truncf %46 : vector<9x8xf32> to vector<9x8xbf16>
    %48 = vector.extract_strided_slice %37 {offsets = [0, 32], sizes = [9, 8], strides = [1, 1]} : vector<9x96xf32> to vector<9x8xf32>
    %49 = arith.truncf %48 : vector<9x8xf32> to vector<9x8xbf16>
    %50 = vector.extract_strided_slice %37 {offsets = [0, 64], sizes = [9, 8], strides = [1, 1]} : vector<9x96xf32> to vector<9x8xf32>
    %51 = vector.extract_strided_slice %19 {offsets = [0, 0], sizes = [8, 8], strides = [1, 1]} : vector<8x96xf32> to vector<8x8xf32>
    %52 = arith.truncf %51 : vector<8x8xf32> to vector<8x8xbf16>
    %53 = vector.extract_strided_slice %19 {offsets = [0, 32], sizes = [8, 8], strides = [1, 1]} : vector<8x96xf32> to vector<8x8xf32>
    %54 = arith.truncf %53 : vector<8x8xf32> to vector<8x8xbf16>
    %55 = vector.extract_strided_slice %19 {offsets = [0, 64], sizes = [8, 8], strides = [1, 1]} : vector<8x96xf32> to vector<8x8xf32>
    %56 = arith.truncf %55 : vector<8x8xf32> to vector<8x8xbf16>
    %57 = vector.extract_strided_slice %31 {offsets = [0, 0], sizes = [1, 8], strides = [1, 1]} : vector<1x32xf32> to vector<1x8xf32>
    %58 = vector.extract_strided_slice %32 {offsets = [0, 0], sizes = [1, 8], strides = [1, 1]} : vector<1x32xf32> to vector<1x8xf32>
    %cst_46 = arith.constant dense<0.000000e+00> : vector<9x8xf32>
    %59 = tpu.matmul %47, %52, %cst_46 {dimension_numbers = #tpu.dot_dimension_numbers<[1], [1], [0], [0], [0, 0, 1, 0], [], []>} : vector<9x8xbf16>, vector<8x8xbf16>, vector<9x8xf32> -> vector<9x8xf32>
    %cst_47 = arith.constant dense<0.000000e+00> : vector<9x8xf32>
    %60 = tpu.matmul %49, %54, %cst_47 {dimension_numbers = #tpu.dot_dimension_numbers<[1], [1], [0], [0], [0, 0, 1, 0], [], []>} : vector<9x8xbf16>, vector<8x8xbf16>, vector<9x8xf32> -> vector<9x8xf32>
    %61 = arith.select %41, %59, %60 : vector<9x8xi1>, vector<9x8xf32>
    %cst_48 = arith.constant 0.353553385 : f32
    %62 = vector.broadcast %cst_48 : f32 to vector<9x8xf32>
    %63 = arith.mulf %61, %62 : vector<9x8xf32>
    %64 = arith.addf %63, %43 : vector<9x8xf32>
    %65 = vector.broadcast %57 : vector<1x8xf32> to vector<9x8xf32>
    %66 = arith.mulf %50, %65 : vector<9x8xf32>
    %cst_49 = arith.constant dense<0.000000e+00> : vector<9xf32>
    %67 = vector.multi_reduction <add>, %66, %cst_49 [1] : vector<9x8xf32> to vector<9xf32>
    %68 = vector.shape_cast %67 : vector<9xf32> to vector<9x1xf32>
    %cst_50 = arith.constant 0.353553385 : f32
    %69 = vector.broadcast %cst_50 : f32 to vector<9x1xf32>
    %70 = arith.mulf %68, %69 : vector<9x1xf32>
    %cst_51 = arith.constant dense<0xFF800000> : vector<9xf32>
    %71 = vector.multi_reduction <maximumf>, %64, %cst_51 [1] : vector<9x8xf32> to vector<9xf32>
    %72 = vector.shape_cast %71 : vector<9xf32> to vector<9x1xf32>
    %73 = arith.maximumf %72, %70 : vector<9x1xf32>
    %74 = vector.broadcast %73 : vector<9x1xf32> to vector<9x8xf32>
    %75 = arith.subf %64, %74 : vector<9x8xf32>
    %76 = math.exp %75 : vector<9x8xf32>
    %77 = arith.subf %70, %73 : vector<9x1xf32>
    %78 = math.exp %77 : vector<9x1xf32>
    %cst_52 = arith.constant dense<0.000000e+00> : vector<9xf32>
    %79 = vector.multi_reduction <add>, %76, %cst_52 [1] : vector<9x8xf32> to vector<9xf32>
    %80 = vector.shape_cast %79 : vector<9xf32> to vector<9x1xf32>
    %81 = arith.addf %80, %78 : vector<9x1xf32>
    %82 = tpu.reciprocal %81 {approx = true} : vector<9x1xf32> -> vector<9x1xf32>
    %83 = vector.broadcast %82 : vector<9x1xf32> to vector<9x8xf32>
    %84 = arith.mulf %76, %83 : vector<9x8xf32>
    %85 = arith.mulf %78, %82 : vector<9x1xf32>
    %86 = arith.truncf %84 : vector<9x8xf32> to vector<9x8xbf16>
    %cst_53 = arith.constant dense<0.000000e+00> : vector<9x8xf32>
    %87 = tpu.matmul %86, %56, %cst_53 {dimension_numbers = #tpu.dot_dimension_numbers<[1], [0], [0], [1], [0, 0, 1, 1], [], []>} : vector<9x8xbf16>, vector<8x8xbf16>, vector<9x8xf32> -> vector<9x8xf32>
    %88 = vector.broadcast %85 : vector<9x1xf32> to vector<9x8xf32>
    %89 = vector.broadcast %58 : vector<1x8xf32> to vector<9x8xf32>
    %90 = arith.mulf %88, %89 : vector<9x8xf32>
    %91 = arith.addf %87, %90 : vector<9x8xf32>
    %c0_54 = arith.constant 0 : index
    %c0_55 = arith.constant 0 : index
    %92 = vector.load %arg25[%c0_54, %c0_55] : memref<9x32xf32, #tpu.memory_space<vmem>>, vector<9x8xf32>
    tpu.vector_store %arg25[%c0_54, %c0_55], %91 {strides = array<i32>} : memref<9x32xf32, #tpu.memory_space<vmem>>, vector<9x8xf32>,
    %93 = arith.addf %44, %84 : vector<9x8xf32>
    %94 = arith.addf %45, %85 : vector<9x1xf32>
    %95 = vector.extract_strided_slice %37 {offsets = [0, 8], sizes = [9, 8], strides = [1, 1]} : vector<9x96xf32> to vector<9x8xf32>
    %96 = arith.truncf %95 : vector<9x8xf32> to vector<9x8xbf16>
    %97 = vector.extract_strided_slice %37 {offsets = [0, 40], sizes = [9, 8], strides = [1, 1]} : vector<9x96xf32> to vector<9x8xf32>
    %98 = arith.truncf %97 : vector<9x8xf32> to vector<9x8xbf16>
    %99 = vector.extract_strided_slice %37 {offsets = [0, 72], sizes = [9, 8], strides = [1, 1]} : vector<9x96xf32> to vector<9x8xf32>
    %100 = vector.extract_strided_slice %19 {offsets = [0, 8], sizes = [8, 8], strides = [1, 1]} : vector<8x96xf32> to vector<8x8xf32>
    %101 = arith.truncf %100 : vector<8x8xf32> to vector<8x8xbf16>
    %102 = vector.extract_strided_slice %19 {offsets = [0, 40], sizes = [8, 8], strides = [1, 1]} : vector<8x96xf32> to vector<8x8xf32>
    %103 = arith.truncf %102 : vector<8x8xf32> to vector<8x8xbf16>
    %104 = vector.extract_strided_slice %19 {offsets = [0, 72], sizes = [8, 8], strides = [1, 1]} : vector<8x96xf32> to vector<8x8xf32>
    %105 = arith.truncf %104 : vector<8x8xf32> to vector<8x8xbf16>
    %106 = vector.extract_strided_slice %31 {offsets = [0, 8], sizes = [1, 8], strides = [1, 1]} : vector<1x32xf32> to vector<1x8xf32>
    %107 = vector.extract_strided_slice %32 {offsets = [0, 8], sizes = [1, 8], strides = [1, 1]} : vector<1x32xf32> to vector<1x8xf32>
    %cst_56 = arith.constant dense<0.000000e+00> : vector<9x8xf32>
    %108 = tpu.matmul %96, %101, %cst_56 {dimension_numbers = #tpu.dot_dimension_numbers<[1], [1], [0], [0], [0, 0, 1, 0], [], []>} : vector<9x8xbf16>, vector<8x8xbf16>, vector<9x8xf32> -> vector<9x8xf32>
    %cst_57 = arith.constant dense<0.000000e+00> : vector<9x8xf32>
    %109 = tpu.matmul %98, %103, %cst_57 {dimension_numbers = #tpu.dot_dimension_numbers<[1], [1], [0], [0], [0, 0, 1, 0], [], []>} : vector<9x8xbf16>, vector<8x8xbf16>, vector<9x8xf32> -> vector<9x8xf32>
    %110 = arith.select %41, %108, %109 : vector<9x8xi1>, vector<9x8xf32>
    %cst_58 = arith.constant 0.353553385 : f32
    %111 = vector.broadcast %cst_58 : f32 to vector<9x8xf32>
    %112 = arith.mulf %110, %111 : vector<9x8xf32>
    %113 = arith.addf %112, %43 : vector<9x8xf32>
    %114 = vector.broadcast %106 : vector<1x8xf32> to vector<9x8xf32>
    %115 = arith.mulf %99, %114 : vector<9x8xf32>
    %cst_59 = arith.constant dense<0.000000e+00> : vector<9xf32>
    %116 = vector.multi_reduction <add>, %115, %cst_59 [1] : vector<9x8xf32> to vector<9xf32>
    %117 = vector.shape_cast %116 : vector<9xf32> to vector<9x1xf32>
    %cst_60 = arith.constant 0.353553385 : f32
    %118 = vector.broadcast %cst_60 : f32 to vector<9x1xf32>
    %119 = arith.mulf %117, %118 : vector<9x1xf32>
    %cst_61 = arith.constant dense<0xFF800000> : vector<9xf32>
    %120 = vector.multi_reduction <maximumf>, %113, %cst_61 [1] : vector<9x8xf32> to vector<9xf32>
    %121 = vector.shape_cast %120 : vector<9xf32> to vector<9x1xf32>
    %122 = arith.maximumf %121, %119 : vector<9x1xf32>
    %123 = vector.broadcast %122 : vector<9x1xf32> to vector<9x8xf32>
    %124 = arith.subf %113, %123 : vector<9x8xf32>
    %125 = math.exp %124 : vector<9x8xf32>
    %126 = arith.subf %119, %122 : vector<9x1xf32>
    %127 = math.exp %126 : vector<9x1xf32>
    %cst_62 = arith.constant dense<0.000000e+00> : vector<9xf32>
    %128 = vector.multi_reduction <add>, %125, %cst_62 [1] : vector<9x8xf32> to vector<9xf32>
    %129 = vector.shape_cast %128 : vector<9xf32> to vector<9x1xf32>
    %130 = arith.addf %129, %127 : vector<9x1xf32>
    %131 = tpu.reciprocal %130 {approx = true} : vector<9x1xf32> -> vector<9x1xf32>
    %132 = vector.broadcast %131 : vector<9x1xf32> to vector<9x8xf32>
    %133 = arith.mulf %125, %132 : vector<9x8xf32>
    %134 = arith.mulf %127, %131 : vector<9x1xf32>
    %135 = arith.truncf %133 : vector<9x8xf32> to vector<9x8xbf16>
    %cst_63 = arith.constant dense<0.000000e+00> : vector<9x8xf32>
    %136 = tpu.matmul %135, %105, %cst_63 {dimension_numbers = #tpu.dot_dimension_numbers<[1], [0], [0], [1], [0, 0, 1, 1], [], []>} : vector<9x8xbf16>, vector<8x8xbf16>, vector<9x8xf32> -> vector<9x8xf32>
    %137 = vector.broadcast %134 : vector<9x1xf32> to vector<9x8xf32>
    %138 = vector.broadcast %107 : vector<1x8xf32> to vector<9x8xf32>
    %139 = arith.mulf %137, %138 : vector<9x8xf32>
    %140 = arith.addf %136, %139 : vector<9x8xf32>
    %c0_64 = arith.constant 0 : index
    %c8_65 = arith.constant 8 : index
    %141 = vector.load %arg25[%c0_64, %c8_65] : memref<9x32xf32, #tpu.memory_space<vmem>>, vector<9x8xf32>
    tpu.vector_store %arg25[%c0_64, %c8_65], %140 {strides = array<i32>} : memref<9x32xf32, #tpu.memory_space<vmem>>, vector<9x8xf32>,
    %142 = arith.addf %93, %133 : vector<9x8xf32>
    %143 = arith.addf %94, %134 : vector<9x1xf32>
    %144 = vector.extract_strided_slice %37 {offsets = [0, 16], sizes = [9, 8], strides = [1, 1]} : vector<9x96xf32> to vector<9x8xf32>
    %145 = arith.truncf %144 : vector<9x8xf32> to vector<9x8xbf16>
    %146 = vector.extract_strided_slice %37 {offsets = [0, 48], sizes = [9, 8], strides = [1, 1]} : vector<9x96xf32> to vector<9x8xf32>
    %147 = arith.truncf %146 : vector<9x8xf32> to vector<9x8xbf16>
    %148 = vector.extract_strided_slice %37 {offsets = [0, 80], sizes = [9, 8], strides = [1, 1]} : vector<9x96xf32> to vector<9x8xf32>
    %149 = vector.extract_strided_slice %19 {offsets = [0, 16], sizes = [8, 8], strides = [1, 1]} : vector<8x96xf32> to vector<8x8xf32>
    %150 = arith.truncf %149 : vector<8x8xf32> to vector<8x8xbf16>
    %151 = vector.extract_strided_slice %19 {offsets = [0, 48], sizes = [8, 8], strides = [1, 1]} : vector<8x96xf32> to vector<8x8xf32>
    %152 = arith.truncf %151 : vector<8x8xf32> to vector<8x8xbf16>
    %153 = vector.extract_strided_slice %19 {offsets = [0, 80], sizes = [8, 8], strides = [1, 1]} : vector<8x96xf32> to vector<8x8xf32>
    %154 = arith.truncf %153 : vector<8x8xf32> to vector<8x8xbf16>
    %155 = vector.extract_strided_slice %31 {offsets = [0, 16], sizes = [1, 8], strides = [1, 1]} : vector<1x32xf32> to vector<1x8xf32>
    %156 = vector.extract_strided_slice %32 {offsets = [0, 16], sizes = [1, 8], strides = [1, 1]} : vector<1x32xf32> to vector<1x8xf32>
    %cst_66 = arith.constant dense<0.000000e+00> : vector<9x8xf32>
    %157 = tpu.matmul %145, %150, %cst_66 {dimension_numbers = #tpu.dot_dimension_numbers<[1], [1], [0], [0], [0, 0, 1, 0], [], []>} : vector<9x8xbf16>, vector<8x8xbf16>, vector<9x8xf32> -> vector<9x8xf32>
    %cst_67 = arith.constant dense<0.000000e+00> : vector<9x8xf32>
    %158 = tpu.matmul %147, %152, %cst_67 {dimension_numbers = #tpu.dot_dimension_numbers<[1], [1], [0], [0], [0, 0, 1, 0], [], []>} : vector<9x8xbf16>, vector<8x8xbf16>, vector<9x8xf32> -> vector<9x8xf32>
    %159 = arith.select %41, %157, %158 : vector<9x8xi1>, vector<9x8xf32>
    %cst_68 = arith.constant 0.353553385 : f32
    %160 = vector.broadcast %cst_68 : f32 to vector<9x8xf32>
    %161 = arith.mulf %159, %160 : vector<9x8xf32>
    %162 = arith.addf %161, %43 : vector<9x8xf32>
    %163 = vector.broadcast %155 : vector<1x8xf32> to vector<9x8xf32>
    %164 = arith.mulf %148, %163 : vector<9x8xf32>
    %cst_69 = arith.constant dense<0.000000e+00> : vector<9xf32>
    %165 = vector.multi_reduction <add>, %164, %cst_69 [1] : vector<9x8xf32> to vector<9xf32>
    %166 = vector.shape_cast %165 : vector<9xf32> to vector<9x1xf32>
    %cst_70 = arith.constant 0.353553385 : f32
    %167 = vector.broadcast %cst_70 : f32 to vector<9x1xf32>
    %168 = arith.mulf %166, %167 : vector<9x1xf32>
    %cst_71 = arith.constant dense<0xFF800000> : vector<9xf32>
    %169 = vector.multi_reduction <maximumf>, %162, %cst_71 [1] : vector<9x8xf32> to vector<9xf32>
    %170 = vector.shape_cast %169 : vector<9xf32> to vector<9x1xf32>
    %171 = arith.maximumf %170, %168 : vector<9x1xf32>
    %172 = vector.broadcast %171 : vector<9x1xf32> to vector<9x8xf32>
    %173 = arith.subf %162, %172 : vector<9x8xf32>
    %174 = math.exp %173 : vector<9x8xf32>
    %175 = arith.subf %168, %171 : vector<9x1xf32>
    %176 = math.exp %175 : vector<9x1xf32>
    %cst_72 = arith.constant dense<0.000000e+00> : vector<9xf32>
    %177 = vector.multi_reduction <add>, %174, %cst_72 [1] : vector<9x8xf32> to vector<9xf32>
    %178 = vector.shape_cast %177 : vector<9xf32> to vector<9x1xf32>
    %179 = arith.addf %178, %176 : vector<9x1xf32>
    %180 = tpu.reciprocal %179 {approx = true} : vector<9x1xf32> -> vector<9x1xf32>
    %181 = vector.broadcast %180 : vector<9x1xf32> to vector<9x8xf32>
    %182 = arith.mulf %174, %181 : vector<9x8xf32>
    %183 = arith.mulf %176, %180 : vector<9x1xf32>
    %184 = arith.truncf %182 : vector<9x8xf32> to vector<9x8xbf16>
    %cst_73 = arith.constant dense<0.000000e+00> : vector<9x8xf32>
    %185 = tpu.matmul %184, %154, %cst_73 {dimension_numbers = #tpu.dot_dimension_numbers<[1], [0], [0], [1], [0, 0, 1, 1], [], []>} : vector<9x8xbf16>, vector<8x8xbf16>, vector<9x8xf32> -> vector<9x8xf32>
    %186 = vector.broadcast %183 : vector<9x1xf32> to vector<9x8xf32>
    %187 = vector.broadcast %156 : vector<1x8xf32> to vector<9x8xf32>
    %188 = arith.mulf %186, %187 : vector<9x8xf32>
    %189 = arith.addf %185, %188 : vector<9x8xf32>
    %c0_74 = arith.constant 0 : index
    %c16 = arith.constant 16 : index
    %190 = vector.load %arg25[%c0_74, %c16] : memref<9x32xf32, #tpu.memory_space<vmem>>, vector<9x8xf32>
    tpu.vector_store %arg25[%c0_74, %c16], %189 {strides = array<i32>} : memref<9x32xf32, #tpu.memory_space<vmem>>, vector<9x8xf32>,
    %191 = arith.addf %142, %182 : vector<9x8xf32>
    %192 = arith.addf %143, %183 : vector<9x1xf32>
    %193 = vector.extract_strided_slice %37 {offsets = [0, 24], sizes = [9, 8], strides = [1, 1]} : vector<9x96xf32> to vector<9x8xf32>
    %194 = arith.truncf %193 : vector<9x8xf32> to vector<9x8xbf16>
    %195 = vector.extract_strided_slice %37 {offsets = [0, 56], sizes = [9, 8], strides = [1, 1]} : vector<9x96xf32> to vector<9x8xf32>
    %196 = arith.truncf %195 : vector<9x8xf32> to vector<9x8xbf16>
    %197 = vector.extract_strided_slice %37 {offsets = [0, 88], sizes = [9, 8], strides = [1, 1]} : vector<9x96xf32> to vector<9x8xf32>
    %198 = vector.extract_strided_slice %19 {offsets = [0, 24], sizes = [8, 8], strides = [1, 1]} : vector<8x96xf32> to vector<8x8xf32>
    %199 = arith.truncf %198 : vector<8x8xf32> to vector<8x8xbf16>
    %200 = vector.extract_strided_slice %19 {offsets = [0, 56], sizes = [8, 8], strides = [1, 1]} : vector<8x96xf32> to vector<8x8xf32>
    %201 = arith.truncf %200 : vector<8x8xf32> to vector<8x8xbf16>
    %202 = vector.extract_strided_slice %19 {offsets = [0, 88], sizes = [8, 8], strides = [1, 1]} : vector<8x96xf32> to vector<8x8xf32>
    %203 = arith.truncf %202 : vector<8x8xf32> to vector<8x8xbf16>
    %204 = vector.extract_strided_slice %31 {offsets = [0, 24], sizes = [1, 8], strides = [1, 1]} : vector<1x32xf32> to vector<1x8xf32>
    %205 = vector.extract_strided_slice %32 {offsets = [0, 24], sizes = [1, 8], strides = [1, 1]} : vector<1x32xf32> to vector<1x8xf32>
    %cst_75 = arith.constant dense<0.000000e+00> : vector<9x8xf32>
    %206 = tpu.matmul %194, %199, %cst_75 {dimension_numbers = #tpu.dot_dimension_numbers<[1], [1], [0], [0], [0, 0, 1, 0], [], []>} : vector<9x8xbf16>, vector<8x8xbf16>, vector<9x8xf32> -> vector<9x8xf32>
    %cst_76 = arith.constant dense<0.000000e+00> : vector<9x8xf32>
    %207 = tpu.matmul %196, %201, %cst_76 {dimension_numbers = #tpu.dot_dimension_numbers<[1], [1], [0], [0], [0, 0, 1, 0], [], []>} : vector<9x8xbf16>, vector<8x8xbf16>, vector<9x8xf32> -> vector<9x8xf32>
    %208 = arith.select %41, %206, %207 : vector<9x8xi1>, vector<9x8xf32>
    %cst_77 = arith.constant 0.353553385 : f32
    %209 = vector.broadcast %cst_77 : f32 to vector<9x8xf32>
    %210 = arith.mulf %208, %209 : vector<9x8xf32>
    %211 = arith.addf %210, %43 : vector<9x8xf32>
    %212 = vector.broadcast %204 : vector<1x8xf32> to vector<9x8xf32>
    %213 = arith.mulf %197, %212 : vector<9x8xf32>
    %cst_78 = arith.constant dense<0.000000e+00> : vector<9xf32>
    %214 = vector.multi_reduction <add>, %213, %cst_78 [1] : vector<9x8xf32> to vector<9xf32>
    %215 = vector.shape_cast %214 : vector<9xf32> to vector<9x1xf32>
    %cst_79 = arith.constant 0.353553385 : f32
    %216 = vector.broadcast %cst_79 : f32 to vector<9x1xf32>
    %217 = arith.mulf %215, %216 : vector<9x1xf32>
    %cst_80 = arith.constant dense<0xFF800000> : vector<9xf32>
    %218 = vector.multi_reduction <maximumf>, %211, %cst_80 [1] : vector<9x8xf32> to vector<9xf32>
    %219 = vector.shape_cast %218 : vector<9xf32> to vector<9x1xf32>
    %220 = arith.maximumf %219, %217 : vector<9x1xf32>
    %221 = vector.broadcast %220 : vector<9x1xf32> to vector<9x8xf32>
    %222 = arith.subf %211, %221 : vector<9x8xf32>
    %223 = math.exp %222 : vector<9x8xf32>
    %224 = arith.subf %217, %220 : vector<9x1xf32>
    %225 = math.exp %224 : vector<9x1xf32>
    %cst_81 = arith.constant dense<0.000000e+00> : vector<9xf32>
    %226 = vector.multi_reduction <add>, %223, %cst_81 [1] : vector<9x8xf32> to vector<9xf32>
    %227 = vector.shape_cast %226 : vector<9xf32> to vector<9x1xf32>
    %228 = arith.addf %227, %225 : vector<9x1xf32>
    %229 = tpu.reciprocal %228 {approx = true} : vector<9x1xf32> -> vector<9x1xf32>
    %230 = vector.broadcast %229 : vector<9x1xf32> to vector<9x8xf32>
    %231 = arith.mulf %223, %230 : vector<9x8xf32>
    %232 = arith.mulf %225, %229 : vector<9x1xf32>
    %233 = arith.truncf %231 : vector<9x8xf32> to vector<9x8xbf16>
    %cst_82 = arith.constant dense<0.000000e+00> : vector<9x8xf32>
    %234 = tpu.matmul %233, %203, %cst_82 {dimension_numbers = #tpu.dot_dimension_numbers<[1], [0], [0], [1], [0, 0, 1, 1], [], []>} : vector<9x8xbf16>, vector<8x8xbf16>, vector<9x8xf32> -> vector<9x8xf32>
    %235 = vector.broadcast %232 : vector<9x1xf32> to vector<9x8xf32>
    %236 = vector.broadcast %205 : vector<1x8xf32> to vector<9x8xf32>
    %237 = arith.mulf %235, %236 : vector<9x8xf32>
    %238 = arith.addf %234, %237 : vector<9x8xf32>
    %c0_83 = arith.constant 0 : index
    %c24 = arith.constant 24 : index
    %239 = vector.load %arg25[%c0_83, %c24] : memref<9x32xf32, #tpu.memory_space<vmem>>, vector<9x8xf32>
    tpu.vector_store %arg25[%c0_83, %c24], %238 {strides = array<i32>} : memref<9x32xf32, #tpu.memory_space<vmem>>, vector<9x8xf32>,
    %240 = arith.addf %191, %231 : vector<9x8xf32>
    %241 = arith.addf %192, %232 : vector<9x1xf32>
    %c0_84 = arith.constant 0 : index
    %c0_85 = arith.constant 0 : index
    %242 = vector.load %arg25[%c0_84, %c0_85] : memref<9x32xf32, #tpu.memory_space<vmem>>, vector<9x32xf32>
    %243 = vector.extract_strided_slice %242 {offsets = [0, 0], sizes = [8, 32], strides = [1, 1]} : vector<9x32xf32> to vector<8x32xf32>
    %244 = arith.truncf %243 : vector<8x32xf32> to vector<8x32xbf16>
    %c0_86 = arith.constant 0 : index
    %c0_87 = arith.constant 0 : index
    %245 = vector.load %arg13[%c0_86, %c0_87] : memref<32x32xbf16, #tpu.memory_space<vmem>>, vector<32x32xbf16>
    %cst_88 = arith.constant dense<0.000000e+00> : vector<8x32xf32>
    %246 = tpu.matmul %244, %245, %cst_88 {dimension_numbers = #tpu.dot_dimension_numbers<[1], [0], [0], [1], [0, 0, 1, 1], [], []>} : vector<8x32xbf16>, vector<32x32xbf16>, vector<8x32xf32> -> vector<8x32xf32>
    %c0_89 = arith.constant 0 : index
    %c0_90 = arith.constant 0 : index
    %247 = vector.load %arg14[%c0_89, %c0_90] : memref<1x32xf32, #tpu.memory_space<vmem>>, vector<1x32xf32>
    %248 = vector.broadcast %247 : vector<1x32xf32> to vector<8x32xf32>
    %249 = arith.addf %246, %248 : vector<8x32xf32>
    %250 = arith.addf %249, %1 : vector<8x32xf32>
    %c0_91 = arith.constant 0 : index
    %c0_92 = arith.constant 0 : index
    %251 = vector.load %arg17[%c0_91, %c0_92] : memref<1x32xf32, #tpu.memory_space<vmem>>, vector<1x32xf32>
    %c0_93 = arith.constant 0 : index
    %c0_94 = arith.constant 0 : index
    %252 = vector.load %arg18[%c0_93, %c0_94] : memref<1x32xf32, #tpu.memory_space<vmem>>, vector<1x32xf32>
    %cst_95 = arith.constant dense<0.000000e+00> : vector<8xf32>
    %253 = vector.multi_reduction <add>, %250, %cst_95 [1] : vector<8x32xf32> to vector<8xf32>
    %254 = vector.shape_cast %253 : vector<8xf32> to vector<8x1xf32>
    %cst_96 = arith.constant 3.200000e+01 : f32
    %255 = vector.broadcast %cst_96 : f32 to vector<8x1xf32>
    %256 = arith.divf %254, %255 : vector<8x1xf32>
    %257 = vector.broadcast %256 : vector<8x1xf32> to vector<8x32xf32>
    %258 = arith.subf %250, %257 : vector<8x32xf32>
    %259 = arith.mulf %258, %258 : vector<8x32xf32>
    %cst_97 = arith.constant dense<0.000000e+00> : vector<8xf32>
    %260 = vector.multi_reduction <add>, %259, %cst_97 [1] : vector<8x32xf32> to vector<8xf32>
    %261 = vector.shape_cast %260 : vector<8xf32> to vector<8x1xf32>
    %cst_98 = arith.constant 3.200000e+01 : f32
    %262 = vector.broadcast %cst_98 : f32 to vector<8x1xf32>
    %263 = arith.divf %261, %262 : vector<8x1xf32>
    %cst_99 = arith.constant 9.99999974E-6 : f32
    %264 = vector.broadcast %cst_99 : f32 to vector<8x1xf32>
    %265 = arith.addf %263, %264 : vector<8x1xf32>
    %266 = math.rsqrt %265 : vector<8x1xf32>
    %267 = vector.broadcast %266 : vector<8x1xf32> to vector<8x32xf32>
    %268 = arith.mulf %258, %267 : vector<8x32xf32>
    %269 = vector.broadcast %251 : vector<1x32xf32> to vector<8x32xf32>
    %270 = arith.mulf %268, %269 : vector<8x32xf32>
    %271 = vector.broadcast %252 : vector<1x32xf32> to vector<8x32xf32>
    %272 = arith.addf %270, %271 : vector<8x32xf32>
    %c0_100 = arith.constant 0 : index
    %c0_101 = arith.constant 0 : index
    %c0_102 = arith.constant 0 : index
    %273 = vector.load %arg21[%c0_100, %c0_101, %c0_102] : memref<1x8x32xf32, #tpu.memory_space<vmem>>, vector<1x8x32xf32>
    %274 = vector.shape_cast %273 : vector<1x8x32xf32> to vector<8x32xf32>
    %275 = vector.shape_cast %272 : vector<8x32xf32> to vector<1x8x32xf32>
    tpu.vector_store %arg21[%c0_100, %c0_101, %c0_102], %275 {strides = array<i32>} : memref<1x8x32xf32, #tpu.memory_space<vmem>>, vector<1x8x32xf32>,
    %276 = vector.extract_strided_slice %242 {offsets = [8, 0], sizes = [1, 32], strides = [1, 1]} : vector<9x32xf32> to vector<1x32xf32>
    %277 = arith.truncf %276 : vector<1x32xf32> to vector<1x32xbf16>
    %c0_103 = arith.constant 0 : index
    %c0_104 = arith.constant 0 : index
    %278 = vector.load %arg15[%c0_103, %c0_104] : memref<32x32xbf16, #tpu.memory_space<vmem>>, vector<32x32xbf16>
    %cst_105 = arith.constant dense<0.000000e+00> : vector<1x32xf32>
    %279 = tpu.matmul %277, %278, %cst_105 {dimension_numbers = #tpu.dot_dimension_numbers<[1], [0], [0], [1], [0, 0, 1, 1], [], []>} : vector<1x32xbf16>, vector<32x32xbf16>, vector<1x32xf32> -> vector<1x32xf32>
    %c0_106 = arith.constant 0 : index
    %c0_107 = arith.constant 0 : index
    %280 = vector.load %arg16[%c0_106, %c0_107] : memref<1x32xf32, #tpu.memory_space<vmem>>, vector<1x32xf32>
    %281 = arith.addf %279, %280 : vector<1x32xf32>
    %282 = arith.addf %281, %5 : vector<1x32xf32>
    %c0_108 = arith.constant 0 : index
    %c0_109 = arith.constant 0 : index
    %283 = vector.load %arg19[%c0_108, %c0_109] : memref<1x32xf32, #tpu.memory_space<vmem>>, vector<1x32xf32>
    %c0_110 = arith.constant 0 : index
    %c0_111 = arith.constant 0 : index
    %284 = vector.load %arg20[%c0_110, %c0_111] : memref<1x32xf32, #tpu.memory_space<vmem>>, vector<1x32xf32>
    %cst_112 = arith.constant dense<0.000000e+00> : vector<1xf32>
    %285 = vector.multi_reduction <add>, %282, %cst_112 [1] : vector<1x32xf32> to vector<1xf32>
    %286 = vector.shape_cast %285 : vector<1xf32> to vector<1x1xf32>
    %cst_113 = arith.constant 3.200000e+01 : f32
    %287 = vector.broadcast %cst_113 : f32 to vector<1x1xf32>
    %288 = arith.divf %286, %287 : vector<1x1xf32>
    %289 = vector.broadcast %288 : vector<1x1xf32> to vector<1x32xf32>
    %290 = arith.subf %282, %289 : vector<1x32xf32>
    %291 = arith.mulf %290, %290 : vector<1x32xf32>
    %cst_114 = arith.constant dense<0.000000e+00> : vector<1xf32>
    %292 = vector.multi_reduction <add>, %291, %cst_114 [1] : vector<1x32xf32> to vector<1xf32>
    %293 = vector.shape_cast %292 : vector<1xf32> to vector<1x1xf32>
    %cst_115 = arith.constant 3.200000e+01 : f32
    %294 = vector.broadcast %cst_115 : f32 to vector<1x1xf32>
    %295 = arith.divf %293, %294 : vector<1x1xf32>
    %cst_116 = arith.constant 9.99999974E-6 : f32
    %296 = vector.broadcast %cst_116 : f32 to vector<1x1xf32>
    %297 = arith.addf %295, %296 : vector<1x1xf32>
    %298 = math.rsqrt %297 : vector<1x1xf32>
    %299 = vector.broadcast %298 : vector<1x1xf32> to vector<1x32xf32>
    %300 = arith.mulf %290, %299 : vector<1x32xf32>
    %301 = arith.mulf %300, %283 : vector<1x32xf32>
    %302 = arith.addf %301, %284 : vector<1x32xf32>
    %c0_117 = arith.constant 0 : index
    %c0_118 = arith.constant 0 : index
    %c0_119 = arith.constant 0 : index
    %303 = vector.load %arg22[%c0_117, %c0_118, %c0_119] : memref<1x1x32xf32, #tpu.memory_space<vmem>>, vector<1x1x32xf32>
    %304 = vector.shape_cast %303 : vector<1x1x32xf32> to vector<1x32xf32>
    %305 = vector.shape_cast %302 : vector<1x32xf32> to vector<1x1x32xf32>
    tpu.vector_store %arg22[%c0_117, %c0_118, %c0_119], %305 {strides = array<i32>} : memref<1x1x32xf32, #tpu.memory_space<vmem>>, vector<1x1x32xf32>,
    %306 = vector.extract_strided_slice %240 {offsets = [0, 0], sizes = [8, 8], strides = [1, 1]} : vector<9x8xf32> to vector<8x8xf32>
    %cst_120 = arith.constant 2.500000e-01 : f32
    %307 = vector.broadcast %cst_120 : f32 to vector<8x8xf32>
    %308 = arith.mulf %306, %307 : vector<8x8xf32>
    %c0_121 = arith.constant 0 : index
    %c0_122 = arith.constant 0 : index
    %309 = vector.load %arg26[%c0_121, %c0_122] : memref<8x128xf32, #tpu.memory_space<vmem>>, vector<8x8xf32>
    tpu.vector_store %arg26[%c0_121, %c0_122], %308 {strides = array<i32>} : memref<8x128xf32, #tpu.memory_space<vmem>>, vector<8x8xf32>,
    %310 = vector.extract_strided_slice %241 {offsets = [0, 0], sizes = [8, 1], strides = [1, 1]} : vector<9x1xf32> to vector<8x1xf32>
    %cst_123 = arith.constant 2.500000e-01 : f32
    %311 = vector.broadcast %cst_123 : f32 to vector<8x1xf32>
    %312 = arith.mulf %310, %311 : vector<8x1xf32>
    %c0_124 = arith.constant 0 : index
    %c8_125 = arith.constant 8 : index
    %313 = vector.load %arg26[%c0_124, %c8_125] : memref<8x128xf32, #tpu.memory_space<vmem>>, vector<8x1xf32>
    tpu.vector_store %arg26[%c0_124, %c8_125], %312 {strides = array<i32>} : memref<8x128xf32, #tpu.memory_space<vmem>>, vector<8x1xf32>,
    %cst_126 = arith.constant 0.000000e+00 : f32
    %314 = vector.broadcast %cst_126 : f32 to vector<8x119xf32>
    %c0_127 = arith.constant 0 : index
    %c9 = arith.constant 9 : index
    %315 = vector.load %arg26[%c0_127, %c9] : memref<8x128xf32, #tpu.memory_space<vmem>>, vector<8x119xf32>
    tpu.vector_store %arg26[%c0_127, %c9], %314 {strides = array<i32>} : memref<8x128xf32, #tpu.memory_space<vmem>>, vector<8x119xf32>,
    %c0_128 = arith.constant 0 : index
    %c0_129 = arith.constant 0 : index
    %316 = vector.load %arg26[%c0_128, %c0_129] : memref<8x128xf32, #tpu.memory_space<vmem>>, vector<8x128xf32>
    %c0_130 = arith.constant 0 : index
    %c0_131 = arith.constant 0 : index
    %c0_132 = arith.constant 0 : index
    %317 = vector.load %arg23[%c0_130, %c0_131, %c0_132] : memref<1x8x128xf32, #tpu.memory_space<vmem>>, vector<1x8x128xf32>
    %318 = vector.shape_cast %317 : vector<1x8x128xf32> to vector<8x128xf32>
    %319 = vector.shape_cast %316 : vector<8x128xf32> to vector<1x8x128xf32>
    tpu.vector_store %arg23[%c0_130, %c0_131, %c0_132], %319 {strides = array<i32>} : memref<1x8x128xf32, #tpu.memory_space<vmem>>, vector<1x8x128xf32>,
    return
  }
  func.func @transform_0(%arg0: i32) -> (i32, i32, i32) {
    %c0_i32 = arith.constant 0 : i32
    %c0_i32_0 = arith.constant 0 : i32
    %c0_i32_1 = arith.constant 0 : i32
    return %arg0, %c0_i32, %c0_i32_0 : i32, i32, i32
  }
  func.func @transform_1(%arg0: i32) -> (i32, i32, i32) {
    %c0_i32 = arith.constant 0 : i32
    %c0_i32_0 = arith.constant 0 : i32
    %c0_i32_1 = arith.constant 0 : i32
    return %arg0, %c0_i32, %c0_i32_0 : i32, i32, i32
  }
  func.func @transform_2(%arg0: i32) -> (i32, i32, i32) {
    %c0_i32 = arith.constant 0 : i32
    %c0_i32_0 = arith.constant 0 : i32
    %c0_i32_1 = arith.constant 0 : i32
    return %arg0, %c0_i32, %c0_i32_0 : i32, i32, i32
  }
  func.func @transform_3(%arg0: i32) -> (i32, i32, i32) {
    %c0_i32 = arith.constant 0 : i32
    %c0_i32_0 = arith.constant 0 : i32
    %c0_i32_1 = arith.constant 0 : i32
    return %arg0, %c0_i32, %c0_i32_0 : i32, i32, i32
  }
  func.func @transform_4(%arg0: i32) -> (i32, i32, i32) {
    %c0_i32 = arith.constant 0 : i32
    %c0_i32_0 = arith.constant 0 : i32
    %c0_i32_1 = arith.constant 0 : i32
    return %arg0, %c0_i32, %c0_i32_0 : i32, i32, i32
  }
  func.func @transform_5(%arg0: i32) -> (i32, i32, i32) {
    %c0_i32 = arith.constant 0 : i32
    %c0_i32_0 = arith.constant 0 : i32
    %c0_i32_1 = arith.constant 0 : i32
    %c0_i32_2 = arith.constant 0 : i32
    return %c0_i32, %c0_i32_0, %c0_i32_1 : i32, i32, i32
  }
  func.func @transform_6(%arg0: i32) -> (i32, i32) {
    %c0_i32 = arith.constant 0 : i32
    %c0_i32_0 = arith.constant 0 : i32
    %c0_i32_1 = arith.constant 0 : i32
    return %c0_i32, %c0_i32_0 : i32, i32
  }
  func.func @transform_7(%arg0: i32) -> (i32, i32) {
    %c0_i32 = arith.constant 0 : i32
    %c0_i32_0 = arith.constant 0 : i32
    %c0_i32_1 = arith.constant 0 : i32
    return %c0_i32, %c0_i32_0 : i32, i32
  }
  func.func @transform_8(%arg0: i32) -> (i32, i32) {
    %c0_i32 = arith.constant 0 : i32
    %c0_i32_0 = arith.constant 0 : i32
    %c0_i32_1 = arith.constant 0 : i32
    return %c0_i32, %c0_i32_0 : i32, i32
  }
  func.func @transform_9(%arg0: i32) -> (i32, i32) {
    %c0_i32 = arith.constant 0 : i32
    %c0_i32_0 = arith.constant 0 : i32
    %c0_i32_1 = arith.constant 0 : i32
    return %c0_i32, %c0_i32_0 : i32, i32
  }
  func.func @transform_10(%arg0: i32) -> (i32, i32) {
    %c0_i32 = arith.constant 0 : i32
    %c0_i32_0 = arith.constant 0 : i32
    %c0_i32_1 = arith.constant 0 : i32
    return %c0_i32, %c0_i32_0 : i32, i32
  }
  func.func @transform_11(%arg0: i32) -> (i32, i32) {
    %c0_i32 = arith.constant 0 : i32
    %c0_i32_0 = arith.constant 0 : i32
    %c0_i32_1 = arith.constant 0 : i32
    return %c0_i32, %c0_i32_0 : i32, i32
  }
  func.func @transform_12(%arg0: i32) -> (i32, i32) {
    %c0_i32 = arith.constant 0 : i32
    %c0_i32_0 = arith.constant 0 : i32
    %c0_i32_1 = arith.constant 0 : i32
    return %c0_i32, %c0_i32_0 : i32, i32
  }
  func.func @transform_13(%arg0: i32) -> (i32, i32) {
    %c0_i32 = arith.constant 0 : i32
    %c0_i32_0 = arith.constant 0 : i32
    %c0_i32_1 = arith.constant 0 : i32
    return %c0_i32, %c0_i32_0 : i32, i32
  }
  func.func @transform_14(%arg0: i32) -> (i32, i32) {
    %c0_i32 = arith.constant 0 : i32
    %c0_i32_0 = arith.constant 0 : i32
    %c0_i32_1 = arith.constant 0 : i32
    return %c0_i32, %c0_i32_0 : i32, i32
  }
  func.func @transform_15(%arg0: i32) -> (i32, i32) {
    %c0_i32 = arith.constant 0 : i32
    %c0_i32_0 = arith.constant 0 : i32
    %c0_i32_1 = arith.constant 0 : i32
    return %c0_i32, %c0_i32_0 : i32, i32
  }
  func.func @transform_16(%arg0: i32) -> (i32, i32) {
    %c0_i32 = arith.constant 0 : i32
    %c0_i32_0 = arith.constant 0 : i32
    %c0_i32_1 = arith.constant 0 : i32
    return %c0_i32, %c0_i32_0 : i32, i32
  }
  func.func @transform_17(%arg0: i32) -> (i32, i32) {
    %c0_i32 = arith.constant 0 : i32
    %c0_i32_0 = arith.constant 0 : i32
    %c0_i32_1 = arith.constant 0 : i32
    return %c0_i32, %c0_i32_0 : i32, i32
  }
  func.func @transform_18(%arg0: i32) -> (i32, i32) {
    %c0_i32 = arith.constant 0 : i32
    %c0_i32_0 = arith.constant 0 : i32
    %c0_i32_1 = arith.constant 0 : i32
    return %c0_i32, %c0_i32_0 : i32, i32
  }
  func.func @transform_19(%arg0: i32) -> (i32, i32) {
    %c0_i32 = arith.constant 0 : i32
    %c0_i32_0 = arith.constant 0 : i32
    %c0_i32_1 = arith.constant 0 : i32
    return %c0_i32, %c0_i32_0 : i32, i32
  }
  func.func @transform_20(%arg0: i32) -> (i32, i32, i32) {
    %c0_i32 = arith.constant 0 : i32
    %c0_i32_0 = arith.constant 0 : i32
    %c0_i32_1 = arith.constant 0 : i32
    return %arg0, %c0_i32, %c0_i32_0 : i32, i32, i32
  }
  func.func @transform_21(%arg0: i32) -> (i32, i32, i32) {
    %c0_i32 = arith.constant 0 : i32
    %c0_i32_0 = arith.constant 0 : i32
    %c0_i32_1 = arith.constant 0 : i32
    return %arg0, %c0_i32, %c0_i32_0 : i32, i32, i32
  }
  func.func @transform_22(%arg0: i32) -> (i32, i32, i32) {
    %c0_i32 = arith.constant 0 : i32
    %c0_i32_0 = arith.constant 0 : i32
    %c0_i32_1 = arith.constant 0 : i32
    return %arg0, %c0_i32, %c0_i32_0 : i32, i32, i32
  }
}

module attributes {stable_mosaic.version = 11 : i64} {
  func.func @_ffn_ln_kernel(%arg0: i32, %arg1: memref<16x32xf32, #tpu.memory_space<vmem>>, %arg2: memref<32x64xbf16, #tpu.memory_space<vmem>>, %arg3: memref<1x64xf32, #tpu.memory_space<vmem>>, %arg4: memref<64x32xbf16, #tpu.memory_space<vmem>>, %arg5: memref<1x32xf32, #tpu.memory_space<vmem>>, %arg6: memref<1x32xf32, #tpu.memory_space<vmem>>, %arg7: memref<1x32xf32, #tpu.memory_space<vmem>>, %arg8: memref<16x32xf32, #tpu.memory_space<vmem>>) attributes {dimension_semantics = [#tpu.dimension_semantics<parallel>], iteration_bounds = array<i64: 1>, scalar_prefetch = 0 : i64, scratch_operands = 0 : i64, tpu.core_type = #tpu.core_type<tc>, window_params = [{transform_indices = @transform_0, window_bounds = array<i64: 16, 32>}, {pipeline_mode = #tpu.pipeline_mode<synchronous>, transform_indices = @transform_1, window_bounds = array<i64: 32, 64>}, {pipeline_mode = #tpu.pipeline_mode<synchronous>, transform_indices = @transform_2, window_bounds = array<i64: 1, 64>}, {pipeline_mode = #tpu.pipeline_mode<synchronous>, transform_indices = @transform_3, window_bounds = array<i64: 64, 32>}, {pipeline_mode = #tpu.pipeline_mode<synchronous>, transform_indices = @transform_4, window_bounds = array<i64: 1, 32>}, {pipeline_mode = #tpu.pipeline_mode<synchronous>, transform_indices = @transform_5, window_bounds = array<i64: 1, 32>}, {pipeline_mode = #tpu.pipeline_mode<synchronous>, transform_indices = @transform_6, window_bounds = array<i64: 1, 32>}, {transform_indices = @transform_7, window_bounds = array<i64: 16, 32>}]} {
    %c0 = arith.constant 0 : index
    %c0_0 = arith.constant 0 : index
    %0 = vector.load %arg1[%c0, %c0_0] : memref<16x32xf32, #tpu.memory_space<vmem>>, vector<16x32xf32>
    %1 = arith.truncf %0 : vector<16x32xf32> to vector<16x32xbf16>
    %c0_1 = arith.constant 0 : index
    %c0_2 = arith.constant 0 : index
    %2 = vector.load %arg2[%c0_1, %c0_2] : memref<32x64xbf16, #tpu.memory_space<vmem>>, vector<32x64xbf16>
    %cst = arith.constant dense<0.000000e+00> : vector<16x64xf32>
    %3 = tpu.matmul %1, %2, %cst {dimension_numbers = #tpu.dot_dimension_numbers<[1], [0], [0], [1], [0, 0, 1, 1], [], []>} : vector<16x32xbf16>, vector<32x64xbf16>, vector<16x64xf32> -> vector<16x64xf32>
    %c0_3 = arith.constant 0 : index
    %c0_4 = arith.constant 0 : index
    %4 = vector.load %arg3[%c0_3, %c0_4] : memref<1x64xf32, #tpu.memory_space<vmem>>, vector<1x64xf32>
    %5 = vector.broadcast %4 : vector<1x64xf32> to vector<16x64xf32>
    %6 = arith.addf %3, %5 : vector<16x64xf32>
    %cst_5 = arith.constant 0.000000e+00 : f32
    %7 = vector.broadcast %cst_5 : f32 to vector<16x64xf32>
    %8 = arith.maximumf %6, %7 : vector<16x64xf32>
    %9 = arith.truncf %8 : vector<16x64xf32> to vector<16x64xbf16>
    %c0_6 = arith.constant 0 : index
    %c0_7 = arith.constant 0 : index
    %10 = vector.load %arg4[%c0_6, %c0_7] : memref<64x32xbf16, #tpu.memory_space<vmem>>, vector<64x32xbf16>
    %cst_8 = arith.constant dense<0.000000e+00> : vector<16x32xf32>
    %11 = tpu.matmul %9, %10, %cst_8 {dimension_numbers = #tpu.dot_dimension_numbers<[1], [0], [0], [1], [0, 0, 1, 1], [], []>} : vector<16x64xbf16>, vector<64x32xbf16>, vector<16x32xf32> -> vector<16x32xf32>
    %c0_9 = arith.constant 0 : index
    %c0_10 = arith.constant 0 : index
    %12 = vector.load %arg5[%c0_9, %c0_10] : memref<1x32xf32, #tpu.memory_space<vmem>>, vector<1x32xf32>
    %13 = vector.broadcast %12 : vector<1x32xf32> to vector<16x32xf32>
    %14 = arith.addf %11, %13 : vector<16x32xf32>
    %15 = arith.addf %0, %14 : vector<16x32xf32>
    %c0_11 = arith.constant 0 : index
    %c0_12 = arith.constant 0 : index
    %16 = vector.load %arg6[%c0_11, %c0_12] : memref<1x32xf32, #tpu.memory_space<vmem>>, vector<1x32xf32>
    %c0_13 = arith.constant 0 : index
    %c0_14 = arith.constant 0 : index
    %17 = vector.load %arg7[%c0_13, %c0_14] : memref<1x32xf32, #tpu.memory_space<vmem>>, vector<1x32xf32>
    %cst_15 = arith.constant dense<0.000000e+00> : vector<16xf32>
    %18 = vector.multi_reduction <add>, %15, %cst_15 [1] : vector<16x32xf32> to vector<16xf32>
    %19 = vector.shape_cast %18 : vector<16xf32> to vector<16x1xf32>
    %cst_16 = arith.constant 3.200000e+01 : f32
    %20 = vector.broadcast %cst_16 : f32 to vector<16x1xf32>
    %21 = arith.divf %19, %20 : vector<16x1xf32>
    %22 = vector.broadcast %21 : vector<16x1xf32> to vector<16x32xf32>
    %23 = arith.subf %15, %22 : vector<16x32xf32>
    %24 = arith.mulf %23, %23 : vector<16x32xf32>
    %cst_17 = arith.constant dense<0.000000e+00> : vector<16xf32>
    %25 = vector.multi_reduction <add>, %24, %cst_17 [1] : vector<16x32xf32> to vector<16xf32>
    %26 = vector.shape_cast %25 : vector<16xf32> to vector<16x1xf32>
    %cst_18 = arith.constant 3.200000e+01 : f32
    %27 = vector.broadcast %cst_18 : f32 to vector<16x1xf32>
    %28 = arith.divf %26, %27 : vector<16x1xf32>
    %cst_19 = arith.constant 9.99999974E-6 : f32
    %29 = vector.broadcast %cst_19 : f32 to vector<16x1xf32>
    %30 = arith.addf %28, %29 : vector<16x1xf32>
    %31 = math.rsqrt %30 : vector<16x1xf32>
    %32 = vector.broadcast %31 : vector<16x1xf32> to vector<16x32xf32>
    %33 = arith.mulf %23, %32 : vector<16x32xf32>
    %34 = vector.broadcast %16 : vector<1x32xf32> to vector<16x32xf32>
    %35 = arith.mulf %33, %34 : vector<16x32xf32>
    %36 = vector.broadcast %17 : vector<1x32xf32> to vector<16x32xf32>
    %37 = arith.addf %35, %36 : vector<16x32xf32>
    %c0_20 = arith.constant 0 : index
    %c0_21 = arith.constant 0 : index
    %38 = vector.load %arg8[%c0_20, %c0_21] : memref<16x32xf32, #tpu.memory_space<vmem>>, vector<16x32xf32>
    tpu.vector_store %arg8[%c0_20, %c0_21], %37 {strides = array<i32>} : memref<16x32xf32, #tpu.memory_space<vmem>>, vector<16x32xf32>,
    return
  }
  func.func @transform_0(%arg0: i32) -> (i32, i32) {
    %c0_i32 = arith.constant 0 : i32
    %c0_i32_0 = arith.constant 0 : i32
    return %arg0, %c0_i32 : i32, i32
  }
  func.func @transform_1(%arg0: i32) -> (i32, i32) {
    %c0_i32 = arith.constant 0 : i32
    %c0_i32_0 = arith.constant 0 : i32
    %c0_i32_1 = arith.constant 0 : i32
    return %c0_i32, %c0_i32_0 : i32, i32
  }
  func.func @transform_2(%arg0: i32) -> (i32, i32) {
    %c0_i32 = arith.constant 0 : i32
    %c0_i32_0 = arith.constant 0 : i32
    %c0_i32_1 = arith.constant 0 : i32
    return %c0_i32, %c0_i32_0 : i32, i32
  }
  func.func @transform_3(%arg0: i32) -> (i32, i32) {
    %c0_i32 = arith.constant 0 : i32
    %c0_i32_0 = arith.constant 0 : i32
    %c0_i32_1 = arith.constant 0 : i32
    return %c0_i32, %c0_i32_0 : i32, i32
  }
  func.func @transform_4(%arg0: i32) -> (i32, i32) {
    %c0_i32 = arith.constant 0 : i32
    %c0_i32_0 = arith.constant 0 : i32
    %c0_i32_1 = arith.constant 0 : i32
    return %c0_i32, %c0_i32_0 : i32, i32
  }
  func.func @transform_5(%arg0: i32) -> (i32, i32) {
    %c0_i32 = arith.constant 0 : i32
    %c0_i32_0 = arith.constant 0 : i32
    %c0_i32_1 = arith.constant 0 : i32
    return %c0_i32, %c0_i32_0 : i32, i32
  }
  func.func @transform_6(%arg0: i32) -> (i32, i32) {
    %c0_i32 = arith.constant 0 : i32
    %c0_i32_0 = arith.constant 0 : i32
    %c0_i32_1 = arith.constant 0 : i32
    return %c0_i32, %c0_i32_0 : i32, i32
  }
  func.func @transform_7(%arg0: i32) -> (i32, i32) {
    %c0_i32 = arith.constant 0 : i32
    %c0_i32_0 = arith.constant 0 : i32
    return %arg0, %c0_i32 : i32, i32
  }
}

module attributes {stable_mosaic.version = 11 : i64} {
  func.func @_fused_attn_kernel(%arg0: i32, %arg1: memref<1x8x32xf32, #tpu.memory_space<vmem>>, %arg2: memref<1x12x32xf32, #tpu.memory_space<vmem>>, %arg3: memref<1x1x32xf32, #tpu.memory_space<vmem>>, %arg4: memref<1x1x32xf32, #tpu.memory_space<vmem>>, %arg5: memref<1x9x12xf32, #tpu.memory_space<vmem>>, %arg6: memref<1x9x12xf32, #tpu.memory_space<vmem>>, %arg7: memref<32x96xbf16, #tpu.memory_space<vmem>>, %arg8: memref<1x96xf32, #tpu.memory_space<vmem>>, %arg9: memref<32x96xbf16, #tpu.memory_space<vmem>>, %arg10: memref<1x96xf32, #tpu.memory_space<vmem>>, %arg11: memref<32x96xbf16, #tpu.memory_space<vmem>>, %arg12: memref<1x96xf32, #tpu.memory_space<vmem>>, %arg13: memref<32x32xbf16, #tpu.memory_space<vmem>>, %arg14: memref<1x32xf32, #tpu.memory_space<vmem>>, %arg15: memref<32x32xbf16, #tpu.memory_space<vmem>>, %arg16: memref<1x32xf32, #tpu.memory_space<vmem>>, %arg17: memref<1x32xf32, #tpu.memory_space<vmem>>, %arg18: memref<1x32xf32, #tpu.memory_space<vmem>>, %arg19: memref<1x32xf32, #tpu.memory_space<vmem>>, %arg20: memref<1x32xf32, #tpu.memory_space<vmem>>, %arg21: memref<32x64xbf16, #tpu.memory_space<vmem>>, %arg22: memref<1x64xf32, #tpu.memory_space<vmem>>, %arg23: memref<64x32xbf16, #tpu.memory_space<vmem>>, %arg24: memref<1x32xf32, #tpu.memory_space<vmem>>, %arg25: memref<1x32xf32, #tpu.memory_space<vmem>>, %arg26: memref<1x32xf32, #tpu.memory_space<vmem>>, %arg27: memref<1x8x32xf32, #tpu.memory_space<vmem>>, %arg28: memref<1x1x32xf32, #tpu.memory_space<vmem>>, %arg29: memref<1x8x128xf32, #tpu.memory_space<vmem>>, %arg30: memref<9x96xf32, #tpu.memory_space<vmem>>, %arg31: memref<9x32xf32, #tpu.memory_space<vmem>>, %arg32: memref<8x128xf32, #tpu.memory_space<vmem>>) attributes {dimension_semantics = [#tpu.dimension_semantics<parallel>], iteration_bounds = array<i64: 2>, scalar_prefetch = 0 : i64, scratch_operands = 3 : i64, tpu.core_type = #tpu.core_type<tc>, window_params = [{transform_indices = @transform_0, window_bounds = array<i64: 1, 8, 32>}, {transform_indices = @transform_1, window_bounds = array<i64: 1, 12, 32>}, {transform_indices = @transform_2, window_bounds = array<i64: 1, 1, 32>}, {transform_indices = @transform_3, window_bounds = array<i64: 1, 1, 32>}, {transform_indices = @transform_4, window_bounds = array<i64: 1, 9, 12>}, {pipeline_mode = #tpu.pipeline_mode<synchronous>, transform_indices = @transform_5, window_bounds = array<i64: 1, 9, 12>}, {pipeline_mode = #tpu.pipeline_mode<synchronous>, transform_indices = @transform_6, window_bounds = array<i64: 32, 96>}, {pipeline_mode = #tpu.pipeline_mode<synchronous>, transform_indices = @transform_7, window_bounds = array<i64: 1, 96>}, {pipeline_mode = #tpu.pipeline_mode<synchronous>, transform_indices = @transform_8, window_bounds = array<i64: 32, 96>}, {pipeline_mode = #tpu.pipeline_mode<synchronous>, transform_indices = @transform_9, window_bounds = array<i64: 1, 96>}, {pipeline_mode = #tpu.pipeline_mode<synchronous>, transform_indices = @transform_10, window_bounds = array<i64: 32, 96>}, {pipeline_mode = #tpu.pipeline_mode<synchronous>, transform_indices = @transform_11, window_bounds = array<i64: 1, 96>}, {pipeline_mode = #tpu.pipeline_mode<synchronous>, transform_indices = @transform_12, window_bounds = array<i64: 32, 32>}, {pipeline_mode = #tpu.pipeline_mode<synchronous>, transform_indices = @transform_13, window_bounds = array<i64: 1, 32>}, {pipeline_mode = #tpu.pipeline_mode<synchronous>, transform_indices = @transform_14, window_bounds = array<i64: 32, 32>}, {pipeline_mode = #tpu.pipeline_mode<synchronous>, transform_indices = @transform_15, window_bounds = array<i64: 1, 32>}, {pipeline_mode = #tpu.pipeline_mode<synchronous>, transform_indices = @transform_16, window_bounds = array<i64: 1, 32>}, {pipeline_mode = #tpu.pipeline_mode<synchronous>, transform_indices = @transform_17, window_bounds = array<i64: 1, 32>}, {pipeline_mode = #tpu.pipeline_mode<synchronous>, transform_indices = @transform_18, window_bounds = array<i64: 1, 32>}, {pipeline_mode = #tpu.pipeline_mode<synchronous>, transform_indices = @transform_19, window_bounds = array<i64: 1, 32>}, {pipeline_mode = #tpu.pipeline_mode<synchronous>, transform_indices = @transform_20, window_bounds = array<i64: 32, 64>}, {pipeline_mode = #tpu.pipeline_mode<synchronous>, transform_indices = @transform_21, window_bounds = array<i64: 1, 64>}, {pipeline_mode = #tpu.pipeline_mode<synchronous>, transform_indices = @transform_22, window_bounds = array<i64: 64, 32>}, {pipeline_mode = #tpu.pipeline_mode<synchronous>, transform_indices = @transform_23, window_bounds = array<i64: 1, 32>}, {pipeline_mode = #tpu.pipeline_mode<synchronous>, transform_indices = @transform_24, window_bounds = array<i64: 1, 32>}, {pipeline_mode = #tpu.pipeline_mode<synchronous>, transform_indices = @transform_25, window_bounds = array<i64: 1, 32>}, {transform_indices = @transform_26, window_bounds = array<i64: 1, 8, 32>}, {transform_indices = @transform_27, window_bounds = array<i64: 1, 1, 32>}, {transform_indices = @transform_28, window_bounds = array<i64: 1, 8, 128>}]} {
    %c0 = arith.constant 0 : index
    %c0_0 = arith.constant 0 : index
    %c0_1 = arith.constant 0 : index
    %0 = vector.load %arg1[%c0, %c0_0, %c0_1] : memref<1x8x32xf32, #tpu.memory_space<vmem>>, vector<1x8x32xf32>
    %1 = vector.shape_cast %0 : vector<1x8x32xf32> to vector<8x32xf32>
    %c0_2 = arith.constant 0 : index
    %c0_3 = arith.constant 0 : index
    %c0_4 = arith.constant 0 : index
    %2 = vector.load %arg2[%c0_2, %c0_3, %c0_4] : memref<1x12x32xf32, #tpu.memory_space<vmem>>, vector<1x12x32xf32>
    %3 = vector.shape_cast %2 : vector<1x12x32xf32> to vector<12x32xf32>
    %c0_5 = arith.constant 0 : index
    %c0_6 = arith.constant 0 : index
    %c0_7 = arith.constant 0 : index
    %4 = vector.load %arg3[%c0_5, %c0_6, %c0_7] : memref<1x1x32xf32, #tpu.memory_space<vmem>>, vector<1x1x32xf32>
    %5 = vector.shape_cast %4 : vector<1x1x32xf32> to vector<1x32xf32>
    %c0_8 = arith.constant 0 : index
    %c0_9 = arith.constant 0 : index
    %c0_10 = arith.constant 0 : index
    %6 = vector.load %arg4[%c0_8, %c0_9, %c0_10] : memref<1x1x32xf32, #tpu.memory_space<vmem>>, vector<1x1x32xf32>
    %7 = vector.shape_cast %6 : vector<1x1x32xf32> to vector<1x32xf32>
    %8 = arith.truncf %1 : vector<8x32xf32> to vector<8x32xbf16>
    %c0_11 = arith.constant 0 : index
    %c0_12 = arith.constant 0 : index
    %9 = vector.load %arg7[%c0_11, %c0_12] : memref<32x96xbf16, #tpu.memory_space<vmem>>, vector<32x96xbf16>
    %cst = arith.constant dense<0.000000e+00> : vector<8x96xf32>
    %10 = tpu.matmul %8, %9, %cst {dimension_numbers = #tpu.dot_dimension_numbers<[1], [0], [0], [1], [0, 0, 1, 1], [], []>} : vector<8x32xbf16>, vector<32x96xbf16>, vector<8x96xf32> -> vector<8x96xf32>
    %c0_13 = arith.constant 0 : index
    %c0_14 = arith.constant 0 : index
    %11 = vector.load %arg8[%c0_13, %c0_14] : memref<1x96xf32, #tpu.memory_space<vmem>>, vector<1x96xf32>
    %12 = vector.broadcast %11 : vector<1x96xf32> to vector<8x96xf32>
    %13 = arith.addf %10, %12 : vector<8x96xf32>
    %14 = arith.truncf %3 : vector<12x32xf32> to vector<12x32xbf16>
    %c0_15 = arith.constant 0 : index
    %c0_16 = arith.constant 0 : index
    %15 = vector.load %arg9[%c0_15, %c0_16] : memref<32x96xbf16, #tpu.memory_space<vmem>>, vector<32x96xbf16>
    %cst_17 = arith.constant dense<0.000000e+00> : vector<12x96xf32>
    %16 = tpu.matmul %14, %15, %cst_17 {dimension_numbers = #tpu.dot_dimension_numbers<[1], [0], [0], [1], [0, 0, 1, 1], [], []>} : vector<12x32xbf16>, vector<32x96xbf16>, vector<12x96xf32> -> vector<12x96xf32>
    %c0_18 = arith.constant 0 : index
    %c0_19 = arith.constant 0 : index
    %17 = vector.load %arg10[%c0_18, %c0_19] : memref<1x96xf32, #tpu.memory_space<vmem>>, vector<1x96xf32>
    %18 = vector.broadcast %17 : vector<1x96xf32> to vector<12x96xf32>
    %19 = arith.addf %16, %18 : vector<12x96xf32>
    %20 = arith.truncf %5 : vector<1x32xf32> to vector<1x32xbf16>
    %c0_20 = arith.constant 0 : index
    %c0_21 = arith.constant 0 : index
    %21 = vector.load %arg11[%c0_20, %c0_21] : memref<32x96xbf16, #tpu.memory_space<vmem>>, vector<32x96xbf16>
    %cst_22 = arith.constant dense<0.000000e+00> : vector<1x96xf32>
    %22 = tpu.matmul %20, %21, %cst_22 {dimension_numbers = #tpu.dot_dimension_numbers<[1], [0], [0], [1], [0, 0, 1, 1], [], []>} : vector<1x32xbf16>, vector<32x96xbf16>, vector<1x96xf32> -> vector<1x96xf32>
    %c0_23 = arith.constant 0 : index
    %c0_24 = arith.constant 0 : index
    %23 = vector.load %arg12[%c0_23, %c0_24] : memref<1x96xf32, #tpu.memory_space<vmem>>, vector<1x96xf32>
    %24 = arith.addf %22, %23 : vector<1x96xf32>
    %25 = arith.truncf %7 : vector<1x32xf32> to vector<1x32xbf16>
    %c0_25 = arith.constant 0 : index
    %c0_26 = arith.constant 0 : index
    %26 = vector.load %arg11[%c0_25, %c0_26] : memref<32x96xbf16, #tpu.memory_space<vmem>>, vector<32x96xbf16>
    %cst_27 = arith.constant dense<0.000000e+00> : vector<1x96xf32>
    %27 = tpu.matmul %25, %26, %cst_27 {dimension_numbers = #tpu.dot_dimension_numbers<[1], [0], [0], [1], [0, 0, 1, 1], [], []>} : vector<1x32xbf16>, vector<32x96xbf16>, vector<1x96xf32> -> vector<1x96xf32>
    %c0_28 = arith.constant 0 : index
    %c0_29 = arith.constant 0 : index
    %28 = vector.load %arg12[%c0_28, %c0_29] : memref<1x96xf32, #tpu.memory_space<vmem>>, vector<1x96xf32>
    %29 = arith.addf %27, %28 : vector<1x96xf32>
    %30 = vector.extract_strided_slice %24 {offsets = [0, 0], sizes = [1, 32], strides = [1, 1]} : vector<1x96xf32> to vector<1x32xf32>
    %31 = vector.extract_strided_slice %29 {offsets = [0, 32], sizes = [1, 32], strides = [1, 1]} : vector<1x96xf32> to vector<1x32xf32>
    %32 = vector.extract_strided_slice %29 {offsets = [0, 64], sizes = [1, 32], strides = [1, 1]} : vector<1x96xf32> to vector<1x32xf32>
    %c0_30 = arith.constant 0 : index
    %c0_31 = arith.constant 0 : index
    %33 = vector.load %arg30[%c0_30, %c0_31] : memref<9x96xf32, #tpu.memory_space<vmem>>, vector<8x96xf32>
    tpu.vector_store %arg30[%c0_30, %c0_31], %13 {strides = array<i32>} : memref<9x96xf32, #tpu.memory_space<vmem>>, vector<8x96xf32>,
    %c8 = arith.constant 8 : index
    %c0_32 = arith.constant 0 : index
    %34 = vector.load %arg30[%c8, %c0_32] : memref<9x96xf32, #tpu.memory_space<vmem>>, vector<1x32xf32>
    tpu.vector_store %arg30[%c8, %c0_32], %30 {strides = array<i32>} : memref<9x96xf32, #tpu.memory_space<vmem>>, vector<1x32xf32>,
    %c8_33 = arith.constant 8 : index
    %c32 = arith.constant 32 : index
    %35 = vector.load %arg30[%c8_33, %c32] : memref<9x96xf32, #tpu.memory_space<vmem>>, vector<1x32xf32>
    tpu.vector_store %arg30[%c8_33, %c32], %30 {strides = array<i32>} : memref<9x96xf32, #tpu.memory_space<vmem>>, vector<1x32xf32>,
    %c8_34 = arith.constant 8 : index
    %c64 = arith.constant 64 : index
    %36 = vector.load %arg30[%c8_34, %c64] : memref<9x96xf32, #tpu.memory_space<vmem>>, vector<1x32xf32>
    tpu.vector_store %arg30[%c8_34, %c64], %30 {strides = array<i32>} : memref<9x96xf32, #tpu.memory_space<vmem>>, vector<1x32xf32>,
    %c0_35 = arith.constant 0 : index
    %c0_36 = arith.constant 0 : index
    %37 = vector.load %arg30[%c0_35, %c0_36] : memref<9x96xf32, #tpu.memory_space<vmem>>, vector<9x96xf32>
    %c0_37 = arith.constant 0 : index
    %c0_38 = arith.constant 0 : index
    %c0_39 = arith.constant 0 : index
    %38 = vector.load %arg5[%c0_37, %c0_38, %c0_39] : memref<1x9x12xf32, #tpu.memory_space<vmem>>, vector<1x9x12xf32>
    %39 = vector.shape_cast %38 : vector<1x9x12xf32> to vector<9x12xf32>
    %cst_40 = arith.constant 5.000000e-01 : f32
    %40 = vector.broadcast %cst_40 : f32 to vector<9x12xf32>
    %41 = arith.cmpf ogt, %39, %40 : vector<9x12xf32>
    %c0_41 = arith.constant 0 : index
    %c0_42 = arith.constant 0 : index
    %c0_43 = arith.constant 0 : index
    %42 = vector.load %arg6[%c0_41, %c0_42, %c0_43] : memref<1x9x12xf32, #tpu.memory_space<vmem>>, vector<1x9x12xf32>
    %43 = vector.shape_cast %42 : vector<1x9x12xf32> to vector<9x12xf32>
    %cst_44 = arith.constant 0.000000e+00 : f32
    %44 = vector.broadcast %cst_44 : f32 to vector<9x12xf32>
    %cst_45 = arith.constant 0.000000e+00 : f32
    %45 = vector.broadcast %cst_45 : f32 to vector<9x1xf32>
    %46 = vector.extract_strided_slice %37 {offsets = [0, 0], sizes = [9, 8], strides = [1, 1]} : vector<9x96xf32> to vector<9x8xf32>
    %47 = arith.truncf %46 : vector<9x8xf32> to vector<9x8xbf16>
    %48 = vector.extract_strided_slice %37 {offsets = [0, 32], sizes = [9, 8], strides = [1, 1]} : vector<9x96xf32> to vector<9x8xf32>
    %49 = arith.truncf %48 : vector<9x8xf32> to vector<9x8xbf16>
    %50 = vector.extract_strided_slice %37 {offsets = [0, 64], sizes = [9, 8], strides = [1, 1]} : vector<9x96xf32> to vector<9x8xf32>
    %51 = vector.extract_strided_slice %19 {offsets = [0, 0], sizes = [12, 8], strides = [1, 1]} : vector<12x96xf32> to vector<12x8xf32>
    %52 = arith.truncf %51 : vector<12x8xf32> to vector<12x8xbf16>
    %53 = vector.extract_strided_slice %19 {offsets = [0, 32], sizes = [12, 8], strides = [1, 1]} : vector<12x96xf32> to vector<12x8xf32>
    %54 = arith.truncf %53 : vector<12x8xf32> to vector<12x8xbf16>
    %55 = vector.extract_strided_slice %19 {offsets = [0, 64], sizes = [12, 8], strides = [1, 1]} : vector<12x96xf32> to vector<12x8xf32>
    %56 = arith.truncf %55 : vector<12x8xf32> to vector<12x8xbf16>
    %57 = vector.extract_strided_slice %31 {offsets = [0, 0], sizes = [1, 8], strides = [1, 1]} : vector<1x32xf32> to vector<1x8xf32>
    %58 = vector.extract_strided_slice %32 {offsets = [0, 0], sizes = [1, 8], strides = [1, 1]} : vector<1x32xf32> to vector<1x8xf32>
    %cst_46 = arith.constant dense<0.000000e+00> : vector<9x12xf32>
    %59 = tpu.matmul %47, %52, %cst_46 {dimension_numbers = #tpu.dot_dimension_numbers<[1], [1], [0], [0], [0, 0, 1, 0], [], []>} : vector<9x8xbf16>, vector<12x8xbf16>, vector<9x12xf32> -> vector<9x12xf32>
    %cst_47 = arith.constant dense<0.000000e+00> : vector<9x12xf32>
    %60 = tpu.matmul %49, %54, %cst_47 {dimension_numbers = #tpu.dot_dimension_numbers<[1], [1], [0], [0], [0, 0, 1, 0], [], []>} : vector<9x8xbf16>, vector<12x8xbf16>, vector<9x12xf32> -> vector<9x12xf32>
    %61 = arith.select %41, %59, %60 : vector<9x12xi1>, vector<9x12xf32>
    %cst_48 = arith.constant 0.353553385 : f32
    %62 = vector.broadcast %cst_48 : f32 to vector<9x12xf32>
    %63 = arith.mulf %61, %62 : vector<9x12xf32>
    %64 = arith.addf %63, %43 : vector<9x12xf32>
    %65 = vector.broadcast %57 : vector<1x8xf32> to vector<9x8xf32>
    %66 = arith.mulf %50, %65 : vector<9x8xf32>
    %cst_49 = arith.constant dense<0.000000e+00> : vector<9xf32>
    %67 = vector.multi_reduction <add>, %66, %cst_49 [1] : vector<9x8xf32> to vector<9xf32>
    %68 = vector.shape_cast %67 : vector<9xf32> to vector<9x1xf32>
    %cst_50 = arith.constant 0.353553385 : f32
    %69 = vector.broadcast %cst_50 : f32 to vector<9x1xf32>
    %70 = arith.mulf %68, %69 : vector<9x1xf32>
    %cst_51 = arith.constant dense<0xFF800000> : vector<9xf32>
    %71 = vector.multi_reduction <maximumf>, %64, %cst_51 [1] : vector<9x12xf32> to vector<9xf32>
    %72 = vector.shape_cast %71 : vector<9xf32> to vector<9x1xf32>
    %73 = arith.maximumf %72, %70 : vector<9x1xf32>
    %74 = vector.broadcast %73 : vector<9x1xf32> to vector<9x12xf32>
    %75 = arith.subf %64, %74 : vector<9x12xf32>
    %76 = math.exp %75 : vector<9x12xf32>
    %77 = arith.subf %70, %73 : vector<9x1xf32>
    %78 = math.exp %77 : vector<9x1xf32>
    %cst_52 = arith.constant dense<0.000000e+00> : vector<9xf32>
    %79 = vector.multi_reduction <add>, %76, %cst_52 [1] : vector<9x12xf32> to vector<9xf32>
    %80 = vector.shape_cast %79 : vector<9xf32> to vector<9x1xf32>
    %81 = arith.addf %80, %78 : vector<9x1xf32>
    %82 = tpu.reciprocal %81 {approx = true} : vector<9x1xf32> -> vector<9x1xf32>
    %83 = vector.broadcast %82 : vector<9x1xf32> to vector<9x12xf32>
    %84 = arith.mulf %76, %83 : vector<9x12xf32>
    %85 = arith.mulf %78, %82 : vector<9x1xf32>
    %86 = arith.truncf %84 : vector<9x12xf32> to vector<9x12xbf16>
    %cst_53 = arith.constant dense<0.000000e+00> : vector<9x8xf32>
    %87 = tpu.matmul %86, %56, %cst_53 {dimension_numbers = #tpu.dot_dimension_numbers<[1], [0], [0], [1], [0, 0, 1, 1], [], []>} : vector<9x12xbf16>, vector<12x8xbf16>, vector<9x8xf32> -> vector<9x8xf32>
    %88 = vector.broadcast %85 : vector<9x1xf32> to vector<9x8xf32>
    %89 = vector.broadcast %58 : vector<1x8xf32> to vector<9x8xf32>
    %90 = arith.mulf %88, %89 : vector<9x8xf32>
    %91 = arith.addf %87, %90 : vector<9x8xf32>
    %c0_54 = arith.constant 0 : index
    %c0_55 = arith.constant 0 : index
    %92 = vector.load %arg31[%c0_54, %c0_55] : memref<9x32xf32, #tpu.memory_space<vmem>>, vector<9x8xf32>
    tpu.vector_store %arg31[%c0_54, %c0_55], %91 {strides = array<i32>} : memref<9x32xf32, #tpu.memory_space<vmem>>, vector<9x8xf32>,
    %93 = arith.addf %44, %84 : vector<9x12xf32>
    %94 = arith.addf %45, %85 : vector<9x1xf32>
    %95 = vector.extract_strided_slice %37 {offsets = [0, 8], sizes = [9, 8], strides = [1, 1]} : vector<9x96xf32> to vector<9x8xf32>
    %96 = arith.truncf %95 : vector<9x8xf32> to vector<9x8xbf16>
    %97 = vector.extract_strided_slice %37 {offsets = [0, 40], sizes = [9, 8], strides = [1, 1]} : vector<9x96xf32> to vector<9x8xf32>
    %98 = arith.truncf %97 : vector<9x8xf32> to vector<9x8xbf16>
    %99 = vector.extract_strided_slice %37 {offsets = [0, 72], sizes = [9, 8], strides = [1, 1]} : vector<9x96xf32> to vector<9x8xf32>
    %100 = vector.extract_strided_slice %19 {offsets = [0, 8], sizes = [12, 8], strides = [1, 1]} : vector<12x96xf32> to vector<12x8xf32>
    %101 = arith.truncf %100 : vector<12x8xf32> to vector<12x8xbf16>
    %102 = vector.extract_strided_slice %19 {offsets = [0, 40], sizes = [12, 8], strides = [1, 1]} : vector<12x96xf32> to vector<12x8xf32>
    %103 = arith.truncf %102 : vector<12x8xf32> to vector<12x8xbf16>
    %104 = vector.extract_strided_slice %19 {offsets = [0, 72], sizes = [12, 8], strides = [1, 1]} : vector<12x96xf32> to vector<12x8xf32>
    %105 = arith.truncf %104 : vector<12x8xf32> to vector<12x8xbf16>
    %106 = vector.extract_strided_slice %31 {offsets = [0, 8], sizes = [1, 8], strides = [1, 1]} : vector<1x32xf32> to vector<1x8xf32>
    %107 = vector.extract_strided_slice %32 {offsets = [0, 8], sizes = [1, 8], strides = [1, 1]} : vector<1x32xf32> to vector<1x8xf32>
    %cst_56 = arith.constant dense<0.000000e+00> : vector<9x12xf32>
    %108 = tpu.matmul %96, %101, %cst_56 {dimension_numbers = #tpu.dot_dimension_numbers<[1], [1], [0], [0], [0, 0, 1, 0], [], []>} : vector<9x8xbf16>, vector<12x8xbf16>, vector<9x12xf32> -> vector<9x12xf32>
    %cst_57 = arith.constant dense<0.000000e+00> : vector<9x12xf32>
    %109 = tpu.matmul %98, %103, %cst_57 {dimension_numbers = #tpu.dot_dimension_numbers<[1], [1], [0], [0], [0, 0, 1, 0], [], []>} : vector<9x8xbf16>, vector<12x8xbf16>, vector<9x12xf32> -> vector<9x12xf32>
    %110 = arith.select %41, %108, %109 : vector<9x12xi1>, vector<9x12xf32>
    %cst_58 = arith.constant 0.353553385 : f32
    %111 = vector.broadcast %cst_58 : f32 to vector<9x12xf32>
    %112 = arith.mulf %110, %111 : vector<9x12xf32>
    %113 = arith.addf %112, %43 : vector<9x12xf32>
    %114 = vector.broadcast %106 : vector<1x8xf32> to vector<9x8xf32>
    %115 = arith.mulf %99, %114 : vector<9x8xf32>
    %cst_59 = arith.constant dense<0.000000e+00> : vector<9xf32>
    %116 = vector.multi_reduction <add>, %115, %cst_59 [1] : vector<9x8xf32> to vector<9xf32>
    %117 = vector.shape_cast %116 : vector<9xf32> to vector<9x1xf32>
    %cst_60 = arith.constant 0.353553385 : f32
    %118 = vector.broadcast %cst_60 : f32 to vector<9x1xf32>
    %119 = arith.mulf %117, %118 : vector<9x1xf32>
    %cst_61 = arith.constant dense<0xFF800000> : vector<9xf32>
    %120 = vector.multi_reduction <maximumf>, %113, %cst_61 [1] : vector<9x12xf32> to vector<9xf32>
    %121 = vector.shape_cast %120 : vector<9xf32> to vector<9x1xf32>
    %122 = arith.maximumf %121, %119 : vector<9x1xf32>
    %123 = vector.broadcast %122 : vector<9x1xf32> to vector<9x12xf32>
    %124 = arith.subf %113, %123 : vector<9x12xf32>
    %125 = math.exp %124 : vector<9x12xf32>
    %126 = arith.subf %119, %122 : vector<9x1xf32>
    %127 = math.exp %126 : vector<9x1xf32>
    %cst_62 = arith.constant dense<0.000000e+00> : vector<9xf32>
    %128 = vector.multi_reduction <add>, %125, %cst_62 [1] : vector<9x12xf32> to vector<9xf32>
    %129 = vector.shape_cast %128 : vector<9xf32> to vector<9x1xf32>
    %130 = arith.addf %129, %127 : vector<9x1xf32>
    %131 = tpu.reciprocal %130 {approx = true} : vector<9x1xf32> -> vector<9x1xf32>
    %132 = vector.broadcast %131 : vector<9x1xf32> to vector<9x12xf32>
    %133 = arith.mulf %125, %132 : vector<9x12xf32>
    %134 = arith.mulf %127, %131 : vector<9x1xf32>
    %135 = arith.truncf %133 : vector<9x12xf32> to vector<9x12xbf16>
    %cst_63 = arith.constant dense<0.000000e+00> : vector<9x8xf32>
    %136 = tpu.matmul %135, %105, %cst_63 {dimension_numbers = #tpu.dot_dimension_numbers<[1], [0], [0], [1], [0, 0, 1, 1], [], []>} : vector<9x12xbf16>, vector<12x8xbf16>, vector<9x8xf32> -> vector<9x8xf32>
    %137 = vector.broadcast %134 : vector<9x1xf32> to vector<9x8xf32>
    %138 = vector.broadcast %107 : vector<1x8xf32> to vector<9x8xf32>
    %139 = arith.mulf %137, %138 : vector<9x8xf32>
    %140 = arith.addf %136, %139 : vector<9x8xf32>
    %c0_64 = arith.constant 0 : index
    %c8_65 = arith.constant 8 : index
    %141 = vector.load %arg31[%c0_64, %c8_65] : memref<9x32xf32, #tpu.memory_space<vmem>>, vector<9x8xf32>
    tpu.vector_store %arg31[%c0_64, %c8_65], %140 {strides = array<i32>} : memref<9x32xf32, #tpu.memory_space<vmem>>, vector<9x8xf32>,
    %142 = arith.addf %93, %133 : vector<9x12xf32>
    %143 = arith.addf %94, %134 : vector<9x1xf32>
    %144 = vector.extract_strided_slice %37 {offsets = [0, 16], sizes = [9, 8], strides = [1, 1]} : vector<9x96xf32> to vector<9x8xf32>
    %145 = arith.truncf %144 : vector<9x8xf32> to vector<9x8xbf16>
    %146 = vector.extract_strided_slice %37 {offsets = [0, 48], sizes = [9, 8], strides = [1, 1]} : vector<9x96xf32> to vector<9x8xf32>
    %147 = arith.truncf %146 : vector<9x8xf32> to vector<9x8xbf16>
    %148 = vector.extract_strided_slice %37 {offsets = [0, 80], sizes = [9, 8], strides = [1, 1]} : vector<9x96xf32> to vector<9x8xf32>
    %149 = vector.extract_strided_slice %19 {offsets = [0, 16], sizes = [12, 8], strides = [1, 1]} : vector<12x96xf32> to vector<12x8xf32>
    %150 = arith.truncf %149 : vector<12x8xf32> to vector<12x8xbf16>
    %151 = vector.extract_strided_slice %19 {offsets = [0, 48], sizes = [12, 8], strides = [1, 1]} : vector<12x96xf32> to vector<12x8xf32>
    %152 = arith.truncf %151 : vector<12x8xf32> to vector<12x8xbf16>
    %153 = vector.extract_strided_slice %19 {offsets = [0, 80], sizes = [12, 8], strides = [1, 1]} : vector<12x96xf32> to vector<12x8xf32>
    %154 = arith.truncf %153 : vector<12x8xf32> to vector<12x8xbf16>
    %155 = vector.extract_strided_slice %31 {offsets = [0, 16], sizes = [1, 8], strides = [1, 1]} : vector<1x32xf32> to vector<1x8xf32>
    %156 = vector.extract_strided_slice %32 {offsets = [0, 16], sizes = [1, 8], strides = [1, 1]} : vector<1x32xf32> to vector<1x8xf32>
    %cst_66 = arith.constant dense<0.000000e+00> : vector<9x12xf32>
    %157 = tpu.matmul %145, %150, %cst_66 {dimension_numbers = #tpu.dot_dimension_numbers<[1], [1], [0], [0], [0, 0, 1, 0], [], []>} : vector<9x8xbf16>, vector<12x8xbf16>, vector<9x12xf32> -> vector<9x12xf32>
    %cst_67 = arith.constant dense<0.000000e+00> : vector<9x12xf32>
    %158 = tpu.matmul %147, %152, %cst_67 {dimension_numbers = #tpu.dot_dimension_numbers<[1], [1], [0], [0], [0, 0, 1, 0], [], []>} : vector<9x8xbf16>, vector<12x8xbf16>, vector<9x12xf32> -> vector<9x12xf32>
    %159 = arith.select %41, %157, %158 : vector<9x12xi1>, vector<9x12xf32>
    %cst_68 = arith.constant 0.353553385 : f32
    %160 = vector.broadcast %cst_68 : f32 to vector<9x12xf32>
    %161 = arith.mulf %159, %160 : vector<9x12xf32>
    %162 = arith.addf %161, %43 : vector<9x12xf32>
    %163 = vector.broadcast %155 : vector<1x8xf32> to vector<9x8xf32>
    %164 = arith.mulf %148, %163 : vector<9x8xf32>
    %cst_69 = arith.constant dense<0.000000e+00> : vector<9xf32>
    %165 = vector.multi_reduction <add>, %164, %cst_69 [1] : vector<9x8xf32> to vector<9xf32>
    %166 = vector.shape_cast %165 : vector<9xf32> to vector<9x1xf32>
    %cst_70 = arith.constant 0.353553385 : f32
    %167 = vector.broadcast %cst_70 : f32 to vector<9x1xf32>
    %168 = arith.mulf %166, %167 : vector<9x1xf32>
    %cst_71 = arith.constant dense<0xFF800000> : vector<9xf32>
    %169 = vector.multi_reduction <maximumf>, %162, %cst_71 [1] : vector<9x12xf32> to vector<9xf32>
    %170 = vector.shape_cast %169 : vector<9xf32> to vector<9x1xf32>
    %171 = arith.maximumf %170, %168 : vector<9x1xf32>
    %172 = vector.broadcast %171 : vector<9x1xf32> to vector<9x12xf32>
    %173 = arith.subf %162, %172 : vector<9x12xf32>
    %174 = math.exp %173 : vector<9x12xf32>
    %175 = arith.subf %168, %171 : vector<9x1xf32>
    %176 = math.exp %175 : vector<9x1xf32>
    %cst_72 = arith.constant dense<0.000000e+00> : vector<9xf32>
    %177 = vector.multi_reduction <add>, %174, %cst_72 [1] : vector<9x12xf32> to vector<9xf32>
    %178 = vector.shape_cast %177 : vector<9xf32> to vector<9x1xf32>
    %179 = arith.addf %178, %176 : vector<9x1xf32>
    %180 = tpu.reciprocal %179 {approx = true} : vector<9x1xf32> -> vector<9x1xf32>
    %181 = vector.broadcast %180 : vector<9x1xf32> to vector<9x12xf32>
    %182 = arith.mulf %174, %181 : vector<9x12xf32>
    %183 = arith.mulf %176, %180 : vector<9x1xf32>
    %184 = arith.truncf %182 : vector<9x12xf32> to vector<9x12xbf16>
    %cst_73 = arith.constant dense<0.000000e+00> : vector<9x8xf32>
    %185 = tpu.matmul %184, %154, %cst_73 {dimension_numbers = #tpu.dot_dimension_numbers<[1], [0], [0], [1], [0, 0, 1, 1], [], []>} : vector<9x12xbf16>, vector<12x8xbf16>, vector<9x8xf32> -> vector<9x8xf32>
    %186 = vector.broadcast %183 : vector<9x1xf32> to vector<9x8xf32>
    %187 = vector.broadcast %156 : vector<1x8xf32> to vector<9x8xf32>
    %188 = arith.mulf %186, %187 : vector<9x8xf32>
    %189 = arith.addf %185, %188 : vector<9x8xf32>
    %c0_74 = arith.constant 0 : index
    %c16 = arith.constant 16 : index
    %190 = vector.load %arg31[%c0_74, %c16] : memref<9x32xf32, #tpu.memory_space<vmem>>, vector<9x8xf32>
    tpu.vector_store %arg31[%c0_74, %c16], %189 {strides = array<i32>} : memref<9x32xf32, #tpu.memory_space<vmem>>, vector<9x8xf32>,
    %191 = arith.addf %142, %182 : vector<9x12xf32>
    %192 = arith.addf %143, %183 : vector<9x1xf32>
    %193 = vector.extract_strided_slice %37 {offsets = [0, 24], sizes = [9, 8], strides = [1, 1]} : vector<9x96xf32> to vector<9x8xf32>
    %194 = arith.truncf %193 : vector<9x8xf32> to vector<9x8xbf16>
    %195 = vector.extract_strided_slice %37 {offsets = [0, 56], sizes = [9, 8], strides = [1, 1]} : vector<9x96xf32> to vector<9x8xf32>
    %196 = arith.truncf %195 : vector<9x8xf32> to vector<9x8xbf16>
    %197 = vector.extract_strided_slice %37 {offsets = [0, 88], sizes = [9, 8], strides = [1, 1]} : vector<9x96xf32> to vector<9x8xf32>
    %198 = vector.extract_strided_slice %19 {offsets = [0, 24], sizes = [12, 8], strides = [1, 1]} : vector<12x96xf32> to vector<12x8xf32>
    %199 = arith.truncf %198 : vector<12x8xf32> to vector<12x8xbf16>
    %200 = vector.extract_strided_slice %19 {offsets = [0, 56], sizes = [12, 8], strides = [1, 1]} : vector<12x96xf32> to vector<12x8xf32>
    %201 = arith.truncf %200 : vector<12x8xf32> to vector<12x8xbf16>
    %202 = vector.extract_strided_slice %19 {offsets = [0, 88], sizes = [12, 8], strides = [1, 1]} : vector<12x96xf32> to vector<12x8xf32>
    %203 = arith.truncf %202 : vector<12x8xf32> to vector<12x8xbf16>
    %204 = vector.extract_strided_slice %31 {offsets = [0, 24], sizes = [1, 8], strides = [1, 1]} : vector<1x32xf32> to vector<1x8xf32>
    %205 = vector.extract_strided_slice %32 {offsets = [0, 24], sizes = [1, 8], strides = [1, 1]} : vector<1x32xf32> to vector<1x8xf32>
    %cst_75 = arith.constant dense<0.000000e+00> : vector<9x12xf32>
    %206 = tpu.matmul %194, %199, %cst_75 {dimension_numbers = #tpu.dot_dimension_numbers<[1], [1], [0], [0], [0, 0, 1, 0], [], []>} : vector<9x8xbf16>, vector<12x8xbf16>, vector<9x12xf32> -> vector<9x12xf32>
    %cst_76 = arith.constant dense<0.000000e+00> : vector<9x12xf32>
    %207 = tpu.matmul %196, %201, %cst_76 {dimension_numbers = #tpu.dot_dimension_numbers<[1], [1], [0], [0], [0, 0, 1, 0], [], []>} : vector<9x8xbf16>, vector<12x8xbf16>, vector<9x12xf32> -> vector<9x12xf32>
    %208 = arith.select %41, %206, %207 : vector<9x12xi1>, vector<9x12xf32>
    %cst_77 = arith.constant 0.353553385 : f32
    %209 = vector.broadcast %cst_77 : f32 to vector<9x12xf32>
    %210 = arith.mulf %208, %209 : vector<9x12xf32>
    %211 = arith.addf %210, %43 : vector<9x12xf32>
    %212 = vector.broadcast %204 : vector<1x8xf32> to vector<9x8xf32>
    %213 = arith.mulf %197, %212 : vector<9x8xf32>
    %cst_78 = arith.constant dense<0.000000e+00> : vector<9xf32>
    %214 = vector.multi_reduction <add>, %213, %cst_78 [1] : vector<9x8xf32> to vector<9xf32>
    %215 = vector.shape_cast %214 : vector<9xf32> to vector<9x1xf32>
    %cst_79 = arith.constant 0.353553385 : f32
    %216 = vector.broadcast %cst_79 : f32 to vector<9x1xf32>
    %217 = arith.mulf %215, %216 : vector<9x1xf32>
    %cst_80 = arith.constant dense<0xFF800000> : vector<9xf32>
    %218 = vector.multi_reduction <maximumf>, %211, %cst_80 [1] : vector<9x12xf32> to vector<9xf32>
    %219 = vector.shape_cast %218 : vector<9xf32> to vector<9x1xf32>
    %220 = arith.maximumf %219, %217 : vector<9x1xf32>
    %221 = vector.broadcast %220 : vector<9x1xf32> to vector<9x12xf32>
    %222 = arith.subf %211, %221 : vector<9x12xf32>
    %223 = math.exp %222 : vector<9x12xf32>
    %224 = arith.subf %217, %220 : vector<9x1xf32>
    %225 = math.exp %224 : vector<9x1xf32>
    %cst_81 = arith.constant dense<0.000000e+00> : vector<9xf32>
    %226 = vector.multi_reduction <add>, %223, %cst_81 [1] : vector<9x12xf32> to vector<9xf32>
    %227 = vector.shape_cast %226 : vector<9xf32> to vector<9x1xf32>
    %228 = arith.addf %227, %225 : vector<9x1xf32>
    %229 = tpu.reciprocal %228 {approx = true} : vector<9x1xf32> -> vector<9x1xf32>
    %230 = vector.broadcast %229 : vector<9x1xf32> to vector<9x12xf32>
    %231 = arith.mulf %223, %230 : vector<9x12xf32>
    %232 = arith.mulf %225, %229 : vector<9x1xf32>
    %233 = arith.truncf %231 : vector<9x12xf32> to vector<9x12xbf16>
    %cst_82 = arith.constant dense<0.000000e+00> : vector<9x8xf32>
    %234 = tpu.matmul %233, %203, %cst_82 {dimension_numbers = #tpu.dot_dimension_numbers<[1], [0], [0], [1], [0, 0, 1, 1], [], []>} : vector<9x12xbf16>, vector<12x8xbf16>, vector<9x8xf32> -> vector<9x8xf32>
    %235 = vector.broadcast %232 : vector<9x1xf32> to vector<9x8xf32>
    %236 = vector.broadcast %205 : vector<1x8xf32> to vector<9x8xf32>
    %237 = arith.mulf %235, %236 : vector<9x8xf32>
    %238 = arith.addf %234, %237 : vector<9x8xf32>
    %c0_83 = arith.constant 0 : index
    %c24 = arith.constant 24 : index
    %239 = vector.load %arg31[%c0_83, %c24] : memref<9x32xf32, #tpu.memory_space<vmem>>, vector<9x8xf32>
    tpu.vector_store %arg31[%c0_83, %c24], %238 {strides = array<i32>} : memref<9x32xf32, #tpu.memory_space<vmem>>, vector<9x8xf32>,
    %240 = arith.addf %191, %231 : vector<9x12xf32>
    %241 = arith.addf %192, %232 : vector<9x1xf32>
    %c0_84 = arith.constant 0 : index
    %c0_85 = arith.constant 0 : index
    %242 = vector.load %arg31[%c0_84, %c0_85] : memref<9x32xf32, #tpu.memory_space<vmem>>, vector<9x32xf32>
    %243 = vector.extract_strided_slice %242 {offsets = [0, 0], sizes = [8, 32], strides = [1, 1]} : vector<9x32xf32> to vector<8x32xf32>
    %244 = arith.truncf %243 : vector<8x32xf32> to vector<8x32xbf16>
    %c0_86 = arith.constant 0 : index
    %c0_87 = arith.constant 0 : index
    %245 = vector.load %arg13[%c0_86, %c0_87] : memref<32x32xbf16, #tpu.memory_space<vmem>>, vector<32x32xbf16>
    %cst_88 = arith.constant dense<0.000000e+00> : vector<8x32xf32>
    %246 = tpu.matmul %244, %245, %cst_88 {dimension_numbers = #tpu.dot_dimension_numbers<[1], [0], [0], [1], [0, 0, 1, 1], [], []>} : vector<8x32xbf16>, vector<32x32xbf16>, vector<8x32xf32> -> vector<8x32xf32>
    %c0_89 = arith.constant 0 : index
    %c0_90 = arith.constant 0 : index
    %247 = vector.load %arg14[%c0_89, %c0_90] : memref<1x32xf32, #tpu.memory_space<vmem>>, vector<1x32xf32>
    %248 = vector.broadcast %247 : vector<1x32xf32> to vector<8x32xf32>
    %249 = arith.addf %246, %248 : vector<8x32xf32>
    %250 = arith.addf %249, %1 : vector<8x32xf32>
    %c0_91 = arith.constant 0 : index
    %c0_92 = arith.constant 0 : index
    %251 = vector.load %arg17[%c0_91, %c0_92] : memref<1x32xf32, #tpu.memory_space<vmem>>, vector<1x32xf32>
    %c0_93 = arith.constant 0 : index
    %c0_94 = arith.constant 0 : index
    %252 = vector.load %arg18[%c0_93, %c0_94] : memref<1x32xf32, #tpu.memory_space<vmem>>, vector<1x32xf32>
    %cst_95 = arith.constant dense<0.000000e+00> : vector<8xf32>
    %253 = vector.multi_reduction <add>, %250, %cst_95 [1] : vector<8x32xf32> to vector<8xf32>
    %254 = vector.shape_cast %253 : vector<8xf32> to vector<8x1xf32>
    %cst_96 = arith.constant 3.200000e+01 : f32
    %255 = vector.broadcast %cst_96 : f32 to vector<8x1xf32>
    %256 = arith.divf %254, %255 : vector<8x1xf32>
    %257 = vector.broadcast %256 : vector<8x1xf32> to vector<8x32xf32>
    %258 = arith.subf %250, %257 : vector<8x32xf32>
    %259 = arith.mulf %258, %258 : vector<8x32xf32>
    %cst_97 = arith.constant dense<0.000000e+00> : vector<8xf32>
    %260 = vector.multi_reduction <add>, %259, %cst_97 [1] : vector<8x32xf32> to vector<8xf32>
    %261 = vector.shape_cast %260 : vector<8xf32> to vector<8x1xf32>
    %cst_98 = arith.constant 3.200000e+01 : f32
    %262 = vector.broadcast %cst_98 : f32 to vector<8x1xf32>
    %263 = arith.divf %261, %262 : vector<8x1xf32>
    %cst_99 = arith.constant 9.99999974E-6 : f32
    %264 = vector.broadcast %cst_99 : f32 to vector<8x1xf32>
    %265 = arith.addf %263, %264 : vector<8x1xf32>
    %266 = math.rsqrt %265 : vector<8x1xf32>
    %267 = vector.broadcast %266 : vector<8x1xf32> to vector<8x32xf32>
    %268 = arith.mulf %258, %267 : vector<8x32xf32>
    %269 = vector.broadcast %251 : vector<1x32xf32> to vector<8x32xf32>
    %270 = arith.mulf %268, %269 : vector<8x32xf32>
    %271 = vector.broadcast %252 : vector<1x32xf32> to vector<8x32xf32>
    %272 = arith.addf %270, %271 : vector<8x32xf32>
    %c0_100 = arith.constant 0 : index
    %c0_101 = arith.constant 0 : index
    %c0_102 = arith.constant 0 : index
    %273 = vector.load %arg27[%c0_100, %c0_101, %c0_102] : memref<1x8x32xf32, #tpu.memory_space<vmem>>, vector<1x8x32xf32>
    %274 = vector.shape_cast %273 : vector<1x8x32xf32> to vector<8x32xf32>
    %275 = vector.shape_cast %272 : vector<8x32xf32> to vector<1x8x32xf32>
    tpu.vector_store %arg27[%c0_100, %c0_101, %c0_102], %275 {strides = array<i32>} : memref<1x8x32xf32, #tpu.memory_space<vmem>>, vector<1x8x32xf32>,
    %276 = vector.extract_strided_slice %242 {offsets = [8, 0], sizes = [1, 32], strides = [1, 1]} : vector<9x32xf32> to vector<1x32xf32>
    %277 = arith.truncf %276 : vector<1x32xf32> to vector<1x32xbf16>
    %c0_103 = arith.constant 0 : index
    %c0_104 = arith.constant 0 : index
    %278 = vector.load %arg15[%c0_103, %c0_104] : memref<32x32xbf16, #tpu.memory_space<vmem>>, vector<32x32xbf16>
    %cst_105 = arith.constant dense<0.000000e+00> : vector<1x32xf32>
    %279 = tpu.matmul %277, %278, %cst_105 {dimension_numbers = #tpu.dot_dimension_numbers<[1], [0], [0], [1], [0, 0, 1, 1], [], []>} : vector<1x32xbf16>, vector<32x32xbf16>, vector<1x32xf32> -> vector<1x32xf32>
    %c0_106 = arith.constant 0 : index
    %c0_107 = arith.constant 0 : index
    %280 = vector.load %arg16[%c0_106, %c0_107] : memref<1x32xf32, #tpu.memory_space<vmem>>, vector<1x32xf32>
    %281 = arith.addf %279, %280 : vector<1x32xf32>
    %282 = arith.addf %281, %5 : vector<1x32xf32>
    %c0_108 = arith.constant 0 : index
    %c0_109 = arith.constant 0 : index
    %283 = vector.load %arg19[%c0_108, %c0_109] : memref<1x32xf32, #tpu.memory_space<vmem>>, vector<1x32xf32>
    %c0_110 = arith.constant 0 : index
    %c0_111 = arith.constant 0 : index
    %284 = vector.load %arg20[%c0_110, %c0_111] : memref<1x32xf32, #tpu.memory_space<vmem>>, vector<1x32xf32>
    %cst_112 = arith.constant dense<0.000000e+00> : vector<1xf32>
    %285 = vector.multi_reduction <add>, %282, %cst_112 [1] : vector<1x32xf32> to vector<1xf32>
    %286 = vector.shape_cast %285 : vector<1xf32> to vector<1x1xf32>
    %cst_113 = arith.constant 3.200000e+01 : f32
    %287 = vector.broadcast %cst_113 : f32 to vector<1x1xf32>
    %288 = arith.divf %286, %287 : vector<1x1xf32>
    %289 = vector.broadcast %288 : vector<1x1xf32> to vector<1x32xf32>
    %290 = arith.subf %282, %289 : vector<1x32xf32>
    %291 = arith.mulf %290, %290 : vector<1x32xf32>
    %cst_114 = arith.constant dense<0.000000e+00> : vector<1xf32>
    %292 = vector.multi_reduction <add>, %291, %cst_114 [1] : vector<1x32xf32> to vector<1xf32>
    %293 = vector.shape_cast %292 : vector<1xf32> to vector<1x1xf32>
    %cst_115 = arith.constant 3.200000e+01 : f32
    %294 = vector.broadcast %cst_115 : f32 to vector<1x1xf32>
    %295 = arith.divf %293, %294 : vector<1x1xf32>
    %cst_116 = arith.constant 9.99999974E-6 : f32
    %296 = vector.broadcast %cst_116 : f32 to vector<1x1xf32>
    %297 = arith.addf %295, %296 : vector<1x1xf32>
    %298 = math.rsqrt %297 : vector<1x1xf32>
    %299 = vector.broadcast %298 : vector<1x1xf32> to vector<1x32xf32>
    %300 = arith.mulf %290, %299 : vector<1x32xf32>
    %301 = arith.mulf %300, %283 : vector<1x32xf32>
    %302 = arith.addf %301, %284 : vector<1x32xf32>
    %303 = arith.truncf %302 : vector<1x32xf32> to vector<1x32xbf16>
    %c0_117 = arith.constant 0 : index
    %c0_118 = arith.constant 0 : index
    %304 = vector.load %arg21[%c0_117, %c0_118] : memref<32x64xbf16, #tpu.memory_space<vmem>>, vector<32x64xbf16>
    %cst_119 = arith.constant dense<0.000000e+00> : vector<1x64xf32>
    %305 = tpu.matmul %303, %304, %cst_119 {dimension_numbers = #tpu.dot_dimension_numbers<[1], [0], [0], [1], [0, 0, 1, 1], [], []>} : vector<1x32xbf16>, vector<32x64xbf16>, vector<1x64xf32> -> vector<1x64xf32>
    %c0_120 = arith.constant 0 : index
    %c0_121 = arith.constant 0 : index
    %306 = vector.load %arg22[%c0_120, %c0_121] : memref<1x64xf32, #tpu.memory_space<vmem>>, vector<1x64xf32>
    %307 = arith.addf %305, %306 : vector<1x64xf32>
    %cst_122 = arith.constant 0.000000e+00 : f32
    %308 = vector.broadcast %cst_122 : f32 to vector<1x64xf32>
    %309 = arith.maximumf %307, %308 : vector<1x64xf32>
    %310 = arith.truncf %309 : vector<1x64xf32> to vector<1x64xbf16>
    %c0_123 = arith.constant 0 : index
    %c0_124 = arith.constant 0 : index
    %311 = vector.load %arg23[%c0_123, %c0_124] : memref<64x32xbf16, #tpu.memory_space<vmem>>, vector<64x32xbf16>
    %cst_125 = arith.constant dense<0.000000e+00> : vector<1x32xf32>
    %312 = tpu.matmul %310, %311, %cst_125 {dimension_numbers = #tpu.dot_dimension_numbers<[1], [0], [0], [1], [0, 0, 1, 1], [], []>} : vector<1x64xbf16>, vector<64x32xbf16>, vector<1x32xf32> -> vector<1x32xf32>
    %c0_126 = arith.constant 0 : index
    %c0_127 = arith.constant 0 : index
    %313 = vector.load %arg24[%c0_126, %c0_127] : memref<1x32xf32, #tpu.memory_space<vmem>>, vector<1x32xf32>
    %314 = arith.addf %312, %313 : vector<1x32xf32>
    %315 = arith.addf %302, %314 : vector<1x32xf32>
    %c0_128 = arith.constant 0 : index
    %c0_129 = arith.constant 0 : index
    %316 = vector.load %arg25[%c0_128, %c0_129] : memref<1x32xf32, #tpu.memory_space<vmem>>, vector<1x32xf32>
    %c0_130 = arith.constant 0 : index
    %c0_131 = arith.constant 0 : index
    %317 = vector.load %arg26[%c0_130, %c0_131] : memref<1x32xf32, #tpu.memory_space<vmem>>, vector<1x32xf32>
    %cst_132 = arith.constant dense<0.000000e+00> : vector<1xf32>
    %318 = vector.multi_reduction <add>, %315, %cst_132 [1] : vector<1x32xf32> to vector<1xf32>
    %319 = vector.shape_cast %318 : vector<1xf32> to vector<1x1xf32>
    %cst_133 = arith.constant 3.200000e+01 : f32
    %320 = vector.broadcast %cst_133 : f32 to vector<1x1xf32>
    %321 = arith.divf %319, %320 : vector<1x1xf32>
    %322 = vector.broadcast %321 : vector<1x1xf32> to vector<1x32xf32>
    %323 = arith.subf %315, %322 : vector<1x32xf32>
    %324 = arith.mulf %323, %323 : vector<1x32xf32>
    %cst_134 = arith.constant dense<0.000000e+00> : vector<1xf32>
    %325 = vector.multi_reduction <add>, %324, %cst_134 [1] : vector<1x32xf32> to vector<1xf32>
    %326 = vector.shape_cast %325 : vector<1xf32> to vector<1x1xf32>
    %cst_135 = arith.constant 3.200000e+01 : f32
    %327 = vector.broadcast %cst_135 : f32 to vector<1x1xf32>
    %328 = arith.divf %326, %327 : vector<1x1xf32>
    %cst_136 = arith.constant 9.99999974E-6 : f32
    %329 = vector.broadcast %cst_136 : f32 to vector<1x1xf32>
    %330 = arith.addf %328, %329 : vector<1x1xf32>
    %331 = math.rsqrt %330 : vector<1x1xf32>
    %332 = vector.broadcast %331 : vector<1x1xf32> to vector<1x32xf32>
    %333 = arith.mulf %323, %332 : vector<1x32xf32>
    %334 = arith.mulf %333, %316 : vector<1x32xf32>
    %335 = arith.addf %334, %317 : vector<1x32xf32>
    %c0_137 = arith.constant 0 : index
    %c0_138 = arith.constant 0 : index
    %c0_139 = arith.constant 0 : index
    %336 = vector.load %arg28[%c0_137, %c0_138, %c0_139] : memref<1x1x32xf32, #tpu.memory_space<vmem>>, vector<1x1x32xf32>
    %337 = vector.shape_cast %336 : vector<1x1x32xf32> to vector<1x32xf32>
    %338 = vector.shape_cast %335 : vector<1x32xf32> to vector<1x1x32xf32>
    tpu.vector_store %arg28[%c0_137, %c0_138, %c0_139], %338 {strides = array<i32>} : memref<1x1x32xf32, #tpu.memory_space<vmem>>, vector<1x1x32xf32>,
    %339 = vector.extract_strided_slice %240 {offsets = [0, 0], sizes = [8, 12], strides = [1, 1]} : vector<9x12xf32> to vector<8x12xf32>
    %cst_140 = arith.constant 2.500000e-01 : f32
    %340 = vector.broadcast %cst_140 : f32 to vector<8x12xf32>
    %341 = arith.mulf %339, %340 : vector<8x12xf32>
    %c0_141 = arith.constant 0 : index
    %c0_142 = arith.constant 0 : index
    %342 = vector.load %arg32[%c0_141, %c0_142] : memref<8x128xf32, #tpu.memory_space<vmem>>, vector<8x12xf32>
    tpu.vector_store %arg32[%c0_141, %c0_142], %341 {strides = array<i32>} : memref<8x128xf32, #tpu.memory_space<vmem>>, vector<8x12xf32>,
    %343 = vector.extract_strided_slice %241 {offsets = [0, 0], sizes = [8, 1], strides = [1, 1]} : vector<9x1xf32> to vector<8x1xf32>
    %cst_143 = arith.constant 2.500000e-01 : f32
    %344 = vector.broadcast %cst_143 : f32 to vector<8x1xf32>
    %345 = arith.mulf %343, %344 : vector<8x1xf32>
    %c0_144 = arith.constant 0 : index
    %c12 = arith.constant 12 : index
    %346 = vector.load %arg32[%c0_144, %c12] : memref<8x128xf32, #tpu.memory_space<vmem>>, vector<8x1xf32>
    tpu.vector_store %arg32[%c0_144, %c12], %345 {strides = array<i32>} : memref<8x128xf32, #tpu.memory_space<vmem>>, vector<8x1xf32>,
    %cst_145 = arith.constant 0.000000e+00 : f32
    %347 = vector.broadcast %cst_145 : f32 to vector<8x115xf32>
    %c0_146 = arith.constant 0 : index
    %c13 = arith.constant 13 : index
    %348 = vector.load %arg32[%c0_146, %c13] : memref<8x128xf32, #tpu.memory_space<vmem>>, vector<8x115xf32>
    tpu.vector_store %arg32[%c0_146, %c13], %347 {strides = array<i32>} : memref<8x128xf32, #tpu.memory_space<vmem>>, vector<8x115xf32>,
    %c0_147 = arith.constant 0 : index
    %c0_148 = arith.constant 0 : index
    %349 = vector.load %arg32[%c0_147, %c0_148] : memref<8x128xf32, #tpu.memory_space<vmem>>, vector<8x128xf32>
    %c0_149 = arith.constant 0 : index
    %c0_150 = arith.constant 0 : index
    %c0_151 = arith.constant 0 : index
    %350 = vector.load %arg29[%c0_149, %c0_150, %c0_151] : memref<1x8x128xf32, #tpu.memory_space<vmem>>, vector<1x8x128xf32>
    %351 = vector.shape_cast %350 : vector<1x8x128xf32> to vector<8x128xf32>
    %352 = vector.shape_cast %349 : vector<8x128xf32> to vector<1x8x128xf32>
    tpu.vector_store %arg29[%c0_149, %c0_150, %c0_151], %352 {strides = array<i32>} : memref<1x8x128xf32, #tpu.memory_space<vmem>>, vector<1x8x128xf32>,
    return
  }
  func.func @transform_0(%arg0: i32) -> (i32, i32, i32) {
    %c0_i32 = arith.constant 0 : i32
    %c0_i32_0 = arith.constant 0 : i32
    %c0_i32_1 = arith.constant 0 : i32
    return %arg0, %c0_i32, %c0_i32_0 : i32, i32, i32
  }
  func.func @transform_1(%arg0: i32) -> (i32, i32, i32) {
    %c0_i32 = arith.constant 0 : i32
    %c0_i32_0 = arith.constant 0 : i32
    %c0_i32_1 = arith.constant 0 : i32
    return %arg0, %c0_i32, %c0_i32_0 : i32, i32, i32
  }
  func.func @transform_2(%arg0: i32) -> (i32, i32, i32) {
    %c0_i32 = arith.constant 0 : i32
    %c0_i32_0 = arith.constant 0 : i32
    %c0_i32_1 = arith.constant 0 : i32
    return %arg0, %c0_i32, %c0_i32_0 : i32, i32, i32
  }
  func.func @transform_3(%arg0: i32) -> (i32, i32, i32) {
    %c0_i32 = arith.constant 0 : i32
    %c0_i32_0 = arith.constant 0 : i32
    %c0_i32_1 = arith.constant 0 : i32
    return %arg0, %c0_i32, %c0_i32_0 : i32, i32, i32
  }
  func.func @transform_4(%arg0: i32) -> (i32, i32, i32) {
    %c0_i32 = arith.constant 0 : i32
    %c0_i32_0 = arith.constant 0 : i32
    %c0_i32_1 = arith.constant 0 : i32
    return %arg0, %c0_i32, %c0_i32_0 : i32, i32, i32
  }
  func.func @transform_5(%arg0: i32) -> (i32, i32, i32) {
    %c0_i32 = arith.constant 0 : i32
    %c0_i32_0 = arith.constant 0 : i32
    %c0_i32_1 = arith.constant 0 : i32
    %c0_i32_2 = arith.constant 0 : i32
    return %c0_i32, %c0_i32_0, %c0_i32_1 : i32, i32, i32
  }
  func.func @transform_6(%arg0: i32) -> (i32, i32) {
    %c0_i32 = arith.constant 0 : i32
    %c0_i32_0 = arith.constant 0 : i32
    %c0_i32_1 = arith.constant 0 : i32
    return %c0_i32, %c0_i32_0 : i32, i32
  }
  func.func @transform_7(%arg0: i32) -> (i32, i32) {
    %c0_i32 = arith.constant 0 : i32
    %c0_i32_0 = arith.constant 0 : i32
    %c0_i32_1 = arith.constant 0 : i32
    return %c0_i32, %c0_i32_0 : i32, i32
  }
  func.func @transform_8(%arg0: i32) -> (i32, i32) {
    %c0_i32 = arith.constant 0 : i32
    %c0_i32_0 = arith.constant 0 : i32
    %c0_i32_1 = arith.constant 0 : i32
    return %c0_i32, %c0_i32_0 : i32, i32
  }
  func.func @transform_9(%arg0: i32) -> (i32, i32) {
    %c0_i32 = arith.constant 0 : i32
    %c0_i32_0 = arith.constant 0 : i32
    %c0_i32_1 = arith.constant 0 : i32
    return %c0_i32, %c0_i32_0 : i32, i32
  }
  func.func @transform_10(%arg0: i32) -> (i32, i32) {
    %c0_i32 = arith.constant 0 : i32
    %c0_i32_0 = arith.constant 0 : i32
    %c0_i32_1 = arith.constant 0 : i32
    return %c0_i32, %c0_i32_0 : i32, i32
  }
  func.func @transform_11(%arg0: i32) -> (i32, i32) {
    %c0_i32 = arith.constant 0 : i32
    %c0_i32_0 = arith.constant 0 : i32
    %c0_i32_1 = arith.constant 0 : i32
    return %c0_i32, %c0_i32_0 : i32, i32
  }
  func.func @transform_12(%arg0: i32) -> (i32, i32) {
    %c0_i32 = arith.constant 0 : i32
    %c0_i32_0 = arith.constant 0 : i32
    %c0_i32_1 = arith.constant 0 : i32
    return %c0_i32, %c0_i32_0 : i32, i32
  }
  func.func @transform_13(%arg0: i32) -> (i32, i32) {
    %c0_i32 = arith.constant 0 : i32
    %c0_i32_0 = arith.constant 0 : i32
    %c0_i32_1 = arith.constant 0 : i32
    return %c0_i32, %c0_i32_0 : i32, i32
  }
  func.func @transform_14(%arg0: i32) -> (i32, i32) {
    %c0_i32 = arith.constant 0 : i32
    %c0_i32_0 = arith.constant 0 : i32
    %c0_i32_1 = arith.constant 0 : i32
    return %c0_i32, %c0_i32_0 : i32, i32
  }
  func.func @transform_15(%arg0: i32) -> (i32, i32) {
    %c0_i32 = arith.constant 0 : i32
    %c0_i32_0 = arith.constant 0 : i32
    %c0_i32_1 = arith.constant 0 : i32
    return %c0_i32, %c0_i32_0 : i32, i32
  }
  func.func @transform_16(%arg0: i32) -> (i32, i32) {
    %c0_i32 = arith.constant 0 : i32
    %c0_i32_0 = arith.constant 0 : i32
    %c0_i32_1 = arith.constant 0 : i32
    return %c0_i32, %c0_i32_0 : i32, i32
  }
  func.func @transform_17(%arg0: i32) -> (i32, i32) {
    %c0_i32 = arith.constant 0 : i32
    %c0_i32_0 = arith.constant 0 : i32
    %c0_i32_1 = arith.constant 0 : i32
    return %c0_i32, %c0_i32_0 : i32, i32
  }
  func.func @transform_18(%arg0: i32) -> (i32, i32) {
    %c0_i32 = arith.constant 0 : i32
    %c0_i32_0 = arith.constant 0 : i32
    %c0_i32_1 = arith.constant 0 : i32
    return %c0_i32, %c0_i32_0 : i32, i32
  }
  func.func @transform_19(%arg0: i32) -> (i32, i32) {
    %c0_i32 = arith.constant 0 : i32
    %c0_i32_0 = arith.constant 0 : i32
    %c0_i32_1 = arith.constant 0 : i32
    return %c0_i32, %c0_i32_0 : i32, i32
  }
  func.func @transform_20(%arg0: i32) -> (i32, i32) {
    %c0_i32 = arith.constant 0 : i32
    %c0_i32_0 = arith.constant 0 : i32
    %c0_i32_1 = arith.constant 0 : i32
    return %c0_i32, %c0_i32_0 : i32, i32
  }
  func.func @transform_21(%arg0: i32) -> (i32, i32) {
    %c0_i32 = arith.constant 0 : i32
    %c0_i32_0 = arith.constant 0 : i32
    %c0_i32_1 = arith.constant 0 : i32
    return %c0_i32, %c0_i32_0 : i32, i32
  }
  func.func @transform_22(%arg0: i32) -> (i32, i32) {
    %c0_i32 = arith.constant 0 : i32
    %c0_i32_0 = arith.constant 0 : i32
    %c0_i32_1 = arith.constant 0 : i32
    return %c0_i32, %c0_i32_0 : i32, i32
  }
  func.func @transform_23(%arg0: i32) -> (i32, i32) {
    %c0_i32 = arith.constant 0 : i32
    %c0_i32_0 = arith.constant 0 : i32
    %c0_i32_1 = arith.constant 0 : i32
    return %c0_i32, %c0_i32_0 : i32, i32
  }
  func.func @transform_24(%arg0: i32) -> (i32, i32) {
    %c0_i32 = arith.constant 0 : i32
    %c0_i32_0 = arith.constant 0 : i32
    %c0_i32_1 = arith.constant 0 : i32
    return %c0_i32, %c0_i32_0 : i32, i32
  }
  func.func @transform_25(%arg0: i32) -> (i32, i32) {
    %c0_i32 = arith.constant 0 : i32
    %c0_i32_0 = arith.constant 0 : i32
    %c0_i32_1 = arith.constant 0 : i32
    return %c0_i32, %c0_i32_0 : i32, i32
  }
  func.func @transform_26(%arg0: i32) -> (i32, i32, i32) {
    %c0_i32 = arith.constant 0 : i32
    %c0_i32_0 = arith.constant 0 : i32
    %c0_i32_1 = arith.constant 0 : i32
    return %arg0, %c0_i32, %c0_i32_0 : i32, i32, i32
  }
  func.func @transform_27(%arg0: i32) -> (i32, i32, i32) {
    %c0_i32 = arith.constant 0 : i32
    %c0_i32_0 = arith.constant 0 : i32
    %c0_i32_1 = arith.constant 0 : i32
    return %arg0, %c0_i32, %c0_i32_0 : i32, i32, i32
  }
  func.func @transform_28(%arg0: i32) -> (i32, i32, i32) {
    %c0_i32 = arith.constant 0 : i32
    %c0_i32_0 = arith.constant 0 : i32
    %c0_i32_1 = arith.constant 0 : i32
    return %arg0, %c0_i32, %c0_i32_0 : i32, i32, i32
  }
}

module attributes {stable_mosaic.version = 11 : i64} {
  func.func @_fused_attn_kernel(%arg0: i32, %arg1: memref<1x8x32xf32, #tpu.memory_space<vmem>>, %arg2: memref<1x12x32xf32, #tpu.memory_space<vmem>>, %arg3: memref<1x1x32xf32, #tpu.memory_space<vmem>>, %arg4: memref<1x1x32xf32, #tpu.memory_space<vmem>>, %arg5: memref<1x9x12xf32, #tpu.memory_space<vmem>>, %arg6: memref<1x9x12xf32, #tpu.memory_space<vmem>>, %arg7: memref<32x96xbf16, #tpu.memory_space<vmem>>, %arg8: memref<1x96xf32, #tpu.memory_space<vmem>>, %arg9: memref<32x96xbf16, #tpu.memory_space<vmem>>, %arg10: memref<1x96xf32, #tpu.memory_space<vmem>>, %arg11: memref<32x96xbf16, #tpu.memory_space<vmem>>, %arg12: memref<1x96xf32, #tpu.memory_space<vmem>>, %arg13: memref<32x32xbf16, #tpu.memory_space<vmem>>, %arg14: memref<1x32xf32, #tpu.memory_space<vmem>>, %arg15: memref<32x32xbf16, #tpu.memory_space<vmem>>, %arg16: memref<1x32xf32, #tpu.memory_space<vmem>>, %arg17: memref<1x32xf32, #tpu.memory_space<vmem>>, %arg18: memref<1x32xf32, #tpu.memory_space<vmem>>, %arg19: memref<1x32xf32, #tpu.memory_space<vmem>>, %arg20: memref<1x32xf32, #tpu.memory_space<vmem>>, %arg21: memref<32x64xbf16, #tpu.memory_space<vmem>>, %arg22: memref<1x64xf32, #tpu.memory_space<vmem>>, %arg23: memref<64x32xbf16, #tpu.memory_space<vmem>>, %arg24: memref<1x32xf32, #tpu.memory_space<vmem>>, %arg25: memref<1x32xf32, #tpu.memory_space<vmem>>, %arg26: memref<1x32xf32, #tpu.memory_space<vmem>>, %arg27: memref<1x8x32xf32, #tpu.memory_space<vmem>>, %arg28: memref<1x1x32xf32, #tpu.memory_space<vmem>>, %arg29: memref<1x8x128xf32, #tpu.memory_space<vmem>>, %arg30: memref<9x96xf32, #tpu.memory_space<vmem>>, %arg31: memref<9x32xf32, #tpu.memory_space<vmem>>, %arg32: memref<8x128xf32, #tpu.memory_space<vmem>>) attributes {dimension_semantics = [#tpu.dimension_semantics<parallel>], iteration_bounds = array<i64: 2>, scalar_prefetch = 0 : i64, scratch_operands = 3 : i64, tpu.core_type = #tpu.core_type<tc>, window_params = [{transform_indices = @transform_0, window_bounds = array<i64: 1, 8, 32>}, {transform_indices = @transform_1, window_bounds = array<i64: 1, 12, 32>}, {transform_indices = @transform_2, window_bounds = array<i64: 1, 1, 32>}, {transform_indices = @transform_3, window_bounds = array<i64: 1, 1, 32>}, {transform_indices = @transform_4, window_bounds = array<i64: 1, 9, 12>}, {pipeline_mode = #tpu.pipeline_mode<synchronous>, transform_indices = @transform_5, window_bounds = array<i64: 1, 9, 12>}, {pipeline_mode = #tpu.pipeline_mode<synchronous>, transform_indices = @transform_6, window_bounds = array<i64: 32, 96>}, {pipeline_mode = #tpu.pipeline_mode<synchronous>, transform_indices = @transform_7, window_bounds = array<i64: 1, 96>}, {pipeline_mode = #tpu.pipeline_mode<synchronous>, transform_indices = @transform_8, window_bounds = array<i64: 32, 96>}, {pipeline_mode = #tpu.pipeline_mode<synchronous>, transform_indices = @transform_9, window_bounds = array<i64: 1, 96>}, {pipeline_mode = #tpu.pipeline_mode<synchronous>, transform_indices = @transform_10, window_bounds = array<i64: 32, 96>}, {pipeline_mode = #tpu.pipeline_mode<synchronous>, transform_indices = @transform_11, window_bounds = array<i64: 1, 96>}, {pipeline_mode = #tpu.pipeline_mode<synchronous>, transform_indices = @transform_12, window_bounds = array<i64: 32, 32>}, {pipeline_mode = #tpu.pipeline_mode<synchronous>, transform_indices = @transform_13, window_bounds = array<i64: 1, 32>}, {pipeline_mode = #tpu.pipeline_mode<synchronous>, transform_indices = @transform_14, window_bounds = array<i64: 32, 32>}, {pipeline_mode = #tpu.pipeline_mode<synchronous>, transform_indices = @transform_15, window_bounds = array<i64: 1, 32>}, {pipeline_mode = #tpu.pipeline_mode<synchronous>, transform_indices = @transform_16, window_bounds = array<i64: 1, 32>}, {pipeline_mode = #tpu.pipeline_mode<synchronous>, transform_indices = @transform_17, window_bounds = array<i64: 1, 32>}, {pipeline_mode = #tpu.pipeline_mode<synchronous>, transform_indices = @transform_18, window_bounds = array<i64: 1, 32>}, {pipeline_mode = #tpu.pipeline_mode<synchronous>, transform_indices = @transform_19, window_bounds = array<i64: 1, 32>}, {pipeline_mode = #tpu.pipeline_mode<synchronous>, transform_indices = @transform_20, window_bounds = array<i64: 32, 64>}, {pipeline_mode = #tpu.pipeline_mode<synchronous>, transform_indices = @transform_21, window_bounds = array<i64: 1, 64>}, {pipeline_mode = #tpu.pipeline_mode<synchronous>, transform_indices = @transform_22, window_bounds = array<i64: 64, 32>}, {pipeline_mode = #tpu.pipeline_mode<synchronous>, transform_indices = @transform_23, window_bounds = array<i64: 1, 32>}, {pipeline_mode = #tpu.pipeline_mode<synchronous>, transform_indices = @transform_24, window_bounds = array<i64: 1, 32>}, {pipeline_mode = #tpu.pipeline_mode<synchronous>, transform_indices = @transform_25, window_bounds = array<i64: 1, 32>}, {transform_indices = @transform_26, window_bounds = array<i64: 1, 8, 32>}, {transform_indices = @transform_27, window_bounds = array<i64: 1, 1, 32>}, {transform_indices = @transform_28, window_bounds = array<i64: 1, 8, 128>}]} {
    %c0 = arith.constant 0 : index
    %c0_0 = arith.constant 0 : index
    %c0_1 = arith.constant 0 : index
    %0 = vector.load %arg1[%c0, %c0_0, %c0_1] : memref<1x8x32xf32, #tpu.memory_space<vmem>>, vector<1x8x32xf32>
    %1 = vector.shape_cast %0 : vector<1x8x32xf32> to vector<8x32xf32>
    %c0_2 = arith.constant 0 : index
    %c0_3 = arith.constant 0 : index
    %c0_4 = arith.constant 0 : index
    %2 = vector.load %arg2[%c0_2, %c0_3, %c0_4] : memref<1x12x32xf32, #tpu.memory_space<vmem>>, vector<1x12x32xf32>
    %3 = vector.shape_cast %2 : vector<1x12x32xf32> to vector<12x32xf32>
    %c0_5 = arith.constant 0 : index
    %c0_6 = arith.constant 0 : index
    %c0_7 = arith.constant 0 : index
    %4 = vector.load %arg3[%c0_5, %c0_6, %c0_7] : memref<1x1x32xf32, #tpu.memory_space<vmem>>, vector<1x1x32xf32>
    %5 = vector.shape_cast %4 : vector<1x1x32xf32> to vector<1x32xf32>
    %c0_8 = arith.constant 0 : index
    %c0_9 = arith.constant 0 : index
    %c0_10 = arith.constant 0 : index
    %6 = vector.load %arg4[%c0_8, %c0_9, %c0_10] : memref<1x1x32xf32, #tpu.memory_space<vmem>>, vector<1x1x32xf32>
    %7 = vector.shape_cast %6 : vector<1x1x32xf32> to vector<1x32xf32>
    %8 = arith.truncf %1 : vector<8x32xf32> to vector<8x32xbf16>
    %c0_11 = arith.constant 0 : index
    %c0_12 = arith.constant 0 : index
    %9 = vector.load %arg7[%c0_11, %c0_12] : memref<32x96xbf16, #tpu.memory_space<vmem>>, vector<32x96xbf16>
    %cst = arith.constant dense<0.000000e+00> : vector<8x96xf32>
    %10 = tpu.matmul %8, %9, %cst {dimension_numbers = #tpu.dot_dimension_numbers<[1], [0], [0], [1], [0, 0, 1, 1], [], []>} : vector<8x32xbf16>, vector<32x96xbf16>, vector<8x96xf32> -> vector<8x96xf32>
    %c0_13 = arith.constant 0 : index
    %c0_14 = arith.constant 0 : index
    %11 = vector.load %arg8[%c0_13, %c0_14] : memref<1x96xf32, #tpu.memory_space<vmem>>, vector<1x96xf32>
    %12 = vector.broadcast %11 : vector<1x96xf32> to vector<8x96xf32>
    %13 = arith.addf %10, %12 : vector<8x96xf32>
    %14 = arith.truncf %3 : vector<12x32xf32> to vector<12x32xbf16>
    %c0_15 = arith.constant 0 : index
    %c0_16 = arith.constant 0 : index
    %15 = vector.load %arg9[%c0_15, %c0_16] : memref<32x96xbf16, #tpu.memory_space<vmem>>, vector<32x96xbf16>
    %cst_17 = arith.constant dense<0.000000e+00> : vector<12x96xf32>
    %16 = tpu.matmul %14, %15, %cst_17 {dimension_numbers = #tpu.dot_dimension_numbers<[1], [0], [0], [1], [0, 0, 1, 1], [], []>} : vector<12x32xbf16>, vector<32x96xbf16>, vector<12x96xf32> -> vector<12x96xf32>
    %c0_18 = arith.constant 0 : index
    %c0_19 = arith.constant 0 : index
    %17 = vector.load %arg10[%c0_18, %c0_19] : memref<1x96xf32, #tpu.memory_space<vmem>>, vector<1x96xf32>
    %18 = vector.broadcast %17 : vector<1x96xf32> to vector<12x96xf32>
    %19 = arith.addf %16, %18 : vector<12x96xf32>
    %20 = arith.truncf %5 : vector<1x32xf32> to vector<1x32xbf16>
    %c0_20 = arith.constant 0 : index
    %c0_21 = arith.constant 0 : index
    %21 = vector.load %arg11[%c0_20, %c0_21] : memref<32x96xbf16, #tpu.memory_space<vmem>>, vector<32x96xbf16>
    %cst_22 = arith.constant dense<0.000000e+00> : vector<1x96xf32>
    %22 = tpu.matmul %20, %21, %cst_22 {dimension_numbers = #tpu.dot_dimension_numbers<[1], [0], [0], [1], [0, 0, 1, 1], [], []>} : vector<1x32xbf16>, vector<32x96xbf16>, vector<1x96xf32> -> vector<1x96xf32>
    %c0_23 = arith.constant 0 : index
    %c0_24 = arith.constant 0 : index
    %23 = vector.load %arg12[%c0_23, %c0_24] : memref<1x96xf32, #tpu.memory_space<vmem>>, vector<1x96xf32>
    %24 = arith.addf %22, %23 : vector<1x96xf32>
    %25 = arith.truncf %7 : vector<1x32xf32> to vector<1x32xbf16>
    %c0_25 = arith.constant 0 : index
    %c0_26 = arith.constant 0 : index
    %26 = vector.load %arg11[%c0_25, %c0_26] : memref<32x96xbf16, #tpu.memory_space<vmem>>, vector<32x96xbf16>
    %cst_27 = arith.constant dense<0.000000e+00> : vector<1x96xf32>
    %27 = tpu.matmul %25, %26, %cst_27 {dimension_numbers = #tpu.dot_dimension_numbers<[1], [0], [0], [1], [0, 0, 1, 1], [], []>} : vector<1x32xbf16>, vector<32x96xbf16>, vector<1x96xf32> -> vector<1x96xf32>
    %c0_28 = arith.constant 0 : index
    %c0_29 = arith.constant 0 : index
    %28 = vector.load %arg12[%c0_28, %c0_29] : memref<1x96xf32, #tpu.memory_space<vmem>>, vector<1x96xf32>
    %29 = arith.addf %27, %28 : vector<1x96xf32>
    %30 = vector.extract_strided_slice %24 {offsets = [0, 0], sizes = [1, 32], strides = [1, 1]} : vector<1x96xf32> to vector<1x32xf32>
    %31 = vector.extract_strided_slice %29 {offsets = [0, 32], sizes = [1, 32], strides = [1, 1]} : vector<1x96xf32> to vector<1x32xf32>
    %32 = vector.extract_strided_slice %29 {offsets = [0, 64], sizes = [1, 32], strides = [1, 1]} : vector<1x96xf32> to vector<1x32xf32>
    %c0_30 = arith.constant 0 : index
    %c0_31 = arith.constant 0 : index
    %33 = vector.load %arg30[%c0_30, %c0_31] : memref<9x96xf32, #tpu.memory_space<vmem>>, vector<8x96xf32>
    tpu.vector_store %arg30[%c0_30, %c0_31], %13 {strides = array<i32>} : memref<9x96xf32, #tpu.memory_space<vmem>>, vector<8x96xf32>,
    %c8 = arith.constant 8 : index
    %c0_32 = arith.constant 0 : index
    %34 = vector.load %arg30[%c8, %c0_32] : memref<9x96xf32, #tpu.memory_space<vmem>>, vector<1x32xf32>
    tpu.vector_store %arg30[%c8, %c0_32], %30 {strides = array<i32>} : memref<9x96xf32, #tpu.memory_space<vmem>>, vector<1x32xf32>,
    %c8_33 = arith.constant 8 : index
    %c32 = arith.constant 32 : index
    %35 = vector.load %arg30[%c8_33, %c32] : memref<9x96xf32, #tpu.memory_space<vmem>>, vector<1x32xf32>
    tpu.vector_store %arg30[%c8_33, %c32], %30 {strides = array<i32>} : memref<9x96xf32, #tpu.memory_space<vmem>>, vector<1x32xf32>,
    %c8_34 = arith.constant 8 : index
    %c64 = arith.constant 64 : index
    %36 = vector.load %arg30[%c8_34, %c64] : memref<9x96xf32, #tpu.memory_space<vmem>>, vector<1x32xf32>
    tpu.vector_store %arg30[%c8_34, %c64], %30 {strides = array<i32>} : memref<9x96xf32, #tpu.memory_space<vmem>>, vector<1x32xf32>,
    %c0_35 = arith.constant 0 : index
    %c0_36 = arith.constant 0 : index
    %37 = vector.load %arg30[%c0_35, %c0_36] : memref<9x96xf32, #tpu.memory_space<vmem>>, vector<9x96xf32>
    %c0_37 = arith.constant 0 : index
    %c0_38 = arith.constant 0 : index
    %c0_39 = arith.constant 0 : index
    %38 = vector.load %arg5[%c0_37, %c0_38, %c0_39] : memref<1x9x12xf32, #tpu.memory_space<vmem>>, vector<1x9x12xf32>
    %39 = vector.shape_cast %38 : vector<1x9x12xf32> to vector<9x12xf32>
    %cst_40 = arith.constant 5.000000e-01 : f32
    %40 = vector.broadcast %cst_40 : f32 to vector<9x12xf32>
    %41 = arith.cmpf ogt, %39, %40 : vector<9x12xf32>
    %c0_41 = arith.constant 0 : index
    %c0_42 = arith.constant 0 : index
    %c0_43 = arith.constant 0 : index
    %42 = vector.load %arg6[%c0_41, %c0_42, %c0_43] : memref<1x9x12xf32, #tpu.memory_space<vmem>>, vector<1x9x12xf32>
    %43 = vector.shape_cast %42 : vector<1x9x12xf32> to vector<9x12xf32>
    %cst_44 = arith.constant 0.000000e+00 : f32
    %44 = vector.broadcast %cst_44 : f32 to vector<9x12xf32>
    %cst_45 = arith.constant 0.000000e+00 : f32
    %45 = vector.broadcast %cst_45 : f32 to vector<9x1xf32>
    %46 = vector.extract_strided_slice %37 {offsets = [0, 0], sizes = [9, 8], strides = [1, 1]} : vector<9x96xf32> to vector<9x8xf32>
    %47 = arith.truncf %46 : vector<9x8xf32> to vector<9x8xbf16>
    %48 = vector.extract_strided_slice %37 {offsets = [0, 32], sizes = [9, 8], strides = [1, 1]} : vector<9x96xf32> to vector<9x8xf32>
    %49 = arith.truncf %48 : vector<9x8xf32> to vector<9x8xbf16>
    %50 = vector.extract_strided_slice %37 {offsets = [0, 64], sizes = [9, 8], strides = [1, 1]} : vector<9x96xf32> to vector<9x8xf32>
    %51 = vector.extract_strided_slice %19 {offsets = [0, 0], sizes = [12, 8], strides = [1, 1]} : vector<12x96xf32> to vector<12x8xf32>
    %52 = arith.truncf %51 : vector<12x8xf32> to vector<12x8xbf16>
    %53 = vector.extract_strided_slice %19 {offsets = [0, 32], sizes = [12, 8], strides = [1, 1]} : vector<12x96xf32> to vector<12x8xf32>
    %54 = arith.truncf %53 : vector<12x8xf32> to vector<12x8xbf16>
    %55 = vector.extract_strided_slice %19 {offsets = [0, 64], sizes = [12, 8], strides = [1, 1]} : vector<12x96xf32> to vector<12x8xf32>
    %56 = arith.truncf %55 : vector<12x8xf32> to vector<12x8xbf16>
    %57 = vector.extract_strided_slice %31 {offsets = [0, 0], sizes = [1, 8], strides = [1, 1]} : vector<1x32xf32> to vector<1x8xf32>
    %58 = vector.extract_strided_slice %32 {offsets = [0, 0], sizes = [1, 8], strides = [1, 1]} : vector<1x32xf32> to vector<1x8xf32>
    %cst_46 = arith.constant dense<0.000000e+00> : vector<9x12xf32>
    %59 = tpu.matmul %47, %52, %cst_46 {dimension_numbers = #tpu.dot_dimension_numbers<[1], [1], [0], [0], [0, 0, 1, 0], [], []>} : vector<9x8xbf16>, vector<12x8xbf16>, vector<9x12xf32> -> vector<9x12xf32>
    %cst_47 = arith.constant dense<0.000000e+00> : vector<9x12xf32>
    %60 = tpu.matmul %49, %54, %cst_47 {dimension_numbers = #tpu.dot_dimension_numbers<[1], [1], [0], [0], [0, 0, 1, 0], [], []>} : vector<9x8xbf16>, vector<12x8xbf16>, vector<9x12xf32> -> vector<9x12xf32>
    %61 = arith.select %41, %59, %60 : vector<9x12xi1>, vector<9x12xf32>
    %cst_48 = arith.constant 0.353553385 : f32
    %62 = vector.broadcast %cst_48 : f32 to vector<9x12xf32>
    %63 = arith.mulf %61, %62 : vector<9x12xf32>
    %64 = arith.addf %63, %43 : vector<9x12xf32>
    %65 = vector.broadcast %57 : vector<1x8xf32> to vector<9x8xf32>
    %66 = arith.mulf %50, %65 : vector<9x8xf32>
    %cst_49 = arith.constant dense<0.000000e+00> : vector<9xf32>
    %67 = vector.multi_reduction <add>, %66, %cst_49 [1] : vector<9x8xf32> to vector<9xf32>
    %68 = vector.shape_cast %67 : vector<9xf32> to vector<9x1xf32>
    %cst_50 = arith.constant 0.353553385 : f32
    %69 = vector.broadcast %cst_50 : f32 to vector<9x1xf32>
    %70 = arith.mulf %68, %69 : vector<9x1xf32>
    %cst_51 = arith.constant dense<0xFF800000> : vector<9xf32>
    %71 = vector.multi_reduction <maximumf>, %64, %cst_51 [1] : vector<9x12xf32> to vector<9xf32>
    %72 = vector.shape_cast %71 : vector<9xf32> to vector<9x1xf32>
    %73 = arith.maximumf %72, %70 : vector<9x1xf32>
    %74 = vector.broadcast %73 : vector<9x1xf32> to vector<9x12xf32>
    %75 = arith.subf %64, %74 : vector<9x12xf32>
    %76 = math.exp %75 : vector<9x12xf32>
    %77 = arith.subf %70, %73 : vector<9x1xf32>
    %78 = math.exp %77 : vector<9x1xf32>
    %cst_52 = arith.constant dense<0.000000e+00> : vector<9xf32>
    %79 = vector.multi_reduction <add>, %76, %cst_52 [1] : vector<9x12xf32> to vector<9xf32>
    %80 = vector.shape_cast %79 : vector<9xf32> to vector<9x1xf32>
    %81 = arith.addf %80, %78 : vector<9x1xf32>
    %82 = tpu.reciprocal %81 {approx = true} : vector<9x1xf32> -> vector<9x1xf32>
    %83 = vector.broadcast %82 : vector<9x1xf32> to vector<9x12xf32>
    %84 = arith.mulf %76, %83 : vector<9x12xf32>
    %85 = arith.mulf %78, %82 : vector<9x1xf32>
    %86 = arith.truncf %84 : vector<9x12xf32> to vector<9x12xbf16>
    %cst_53 = arith.constant dense<0.000000e+00> : vector<9x8xf32>
    %87 = tpu.matmul %86, %56, %cst_53 {dimension_numbers = #tpu.dot_dimension_numbers<[1], [0], [0], [1], [0, 0, 1, 1], [], []>} : vector<9x12xbf16>, vector<12x8xbf16>, vector<9x8xf32> -> vector<9x8xf32>
    %88 = vector.broadcast %85 : vector<9x1xf32> to vector<9x8xf32>
    %89 = vector.broadcast %58 : vector<1x8xf32> to vector<9x8xf32>
    %90 = arith.mulf %88, %89 : vector<9x8xf32>
    %91 = arith.addf %87, %90 : vector<9x8xf32>
    %c0_54 = arith.constant 0 : index
    %c0_55 = arith.constant 0 : index
    %92 = vector.load %arg31[%c0_54, %c0_55] : memref<9x32xf32, #tpu.memory_space<vmem>>, vector<9x8xf32>
    tpu.vector_store %arg31[%c0_54, %c0_55], %91 {strides = array<i32>} : memref<9x32xf32, #tpu.memory_space<vmem>>, vector<9x8xf32>,
    %93 = arith.addf %44, %84 : vector<9x12xf32>
    %94 = arith.addf %45, %85 : vector<9x1xf32>
    %95 = vector.extract_strided_slice %37 {offsets = [0, 8], sizes = [9, 8], strides = [1, 1]} : vector<9x96xf32> to vector<9x8xf32>
    %96 = arith.truncf %95 : vector<9x8xf32> to vector<9x8xbf16>
    %97 = vector.extract_strided_slice %37 {offsets = [0, 40], sizes = [9, 8], strides = [1, 1]} : vector<9x96xf32> to vector<9x8xf32>
    %98 = arith.truncf %97 : vector<9x8xf32> to vector<9x8xbf16>
    %99 = vector.extract_strided_slice %37 {offsets = [0, 72], sizes = [9, 8], strides = [1, 1]} : vector<9x96xf32> to vector<9x8xf32>
    %100 = vector.extract_strided_slice %19 {offsets = [0, 8], sizes = [12, 8], strides = [1, 1]} : vector<12x96xf32> to vector<12x8xf32>
    %101 = arith.truncf %100 : vector<12x8xf32> to vector<12x8xbf16>
    %102 = vector.extract_strided_slice %19 {offsets = [0, 40], sizes = [12, 8], strides = [1, 1]} : vector<12x96xf32> to vector<12x8xf32>
    %103 = arith.truncf %102 : vector<12x8xf32> to vector<12x8xbf16>
    %104 = vector.extract_strided_slice %19 {offsets = [0, 72], sizes = [12, 8], strides = [1, 1]} : vector<12x96xf32> to vector<12x8xf32>
    %105 = arith.truncf %104 : vector<12x8xf32> to vector<12x8xbf16>
    %106 = vector.extract_strided_slice %31 {offsets = [0, 8], sizes = [1, 8], strides = [1, 1]} : vector<1x32xf32> to vector<1x8xf32>
    %107 = vector.extract_strided_slice %32 {offsets = [0, 8], sizes = [1, 8], strides = [1, 1]} : vector<1x32xf32> to vector<1x8xf32>
    %cst_56 = arith.constant dense<0.000000e+00> : vector<9x12xf32>
    %108 = tpu.matmul %96, %101, %cst_56 {dimension_numbers = #tpu.dot_dimension_numbers<[1], [1], [0], [0], [0, 0, 1, 0], [], []>} : vector<9x8xbf16>, vector<12x8xbf16>, vector<9x12xf32> -> vector<9x12xf32>
    %cst_57 = arith.constant dense<0.000000e+00> : vector<9x12xf32>
    %109 = tpu.matmul %98, %103, %cst_57 {dimension_numbers = #tpu.dot_dimension_numbers<[1], [1], [0], [0], [0, 0, 1, 0], [], []>} : vector<9x8xbf16>, vector<12x8xbf16>, vector<9x12xf32> -> vector<9x12xf32>
    %110 = arith.select %41, %108, %109 : vector<9x12xi1>, vector<9x12xf32>
    %cst_58 = arith.constant 0.353553385 : f32
    %111 = vector.broadcast %cst_58 : f32 to vector<9x12xf32>
    %112 = arith.mulf %110, %111 : vector<9x12xf32>
    %113 = arith.addf %112, %43 : vector<9x12xf32>
    %114 = vector.broadcast %106 : vector<1x8xf32> to vector<9x8xf32>
    %115 = arith.mulf %99, %114 : vector<9x8xf32>
    %cst_59 = arith.constant dense<0.000000e+00> : vector<9xf32>
    %116 = vector.multi_reduction <add>, %115, %cst_59 [1] : vector<9x8xf32> to vector<9xf32>
    %117 = vector.shape_cast %116 : vector<9xf32> to vector<9x1xf32>
    %cst_60 = arith.constant 0.353553385 : f32
    %118 = vector.broadcast %cst_60 : f32 to vector<9x1xf32>
    %119 = arith.mulf %117, %118 : vector<9x1xf32>
    %cst_61 = arith.constant dense<0xFF800000> : vector<9xf32>
    %120 = vector.multi_reduction <maximumf>, %113, %cst_61 [1] : vector<9x12xf32> to vector<9xf32>
    %121 = vector.shape_cast %120 : vector<9xf32> to vector<9x1xf32>
    %122 = arith.maximumf %121, %119 : vector<9x1xf32>
    %123 = vector.broadcast %122 : vector<9x1xf32> to vector<9x12xf32>
    %124 = arith.subf %113, %123 : vector<9x12xf32>
    %125 = math.exp %124 : vector<9x12xf32>
    %126 = arith.subf %119, %122 : vector<9x1xf32>
    %127 = math.exp %126 : vector<9x1xf32>
    %cst_62 = arith.constant dense<0.000000e+00> : vector<9xf32>
    %128 = vector.multi_reduction <add>, %125, %cst_62 [1] : vector<9x12xf32> to vector<9xf32>
    %129 = vector.shape_cast %128 : vector<9xf32> to vector<9x1xf32>
    %130 = arith.addf %129, %127 : vector<9x1xf32>
    %131 = tpu.reciprocal %130 {approx = true} : vector<9x1xf32> -> vector<9x1xf32>
    %132 = vector.broadcast %131 : vector<9x1xf32> to vector<9x12xf32>
    %133 = arith.mulf %125, %132 : vector<9x12xf32>
    %134 = arith.mulf %127, %131 : vector<9x1xf32>
    %135 = arith.truncf %133 : vector<9x12xf32> to vector<9x12xbf16>
    %cst_63 = arith.constant dense<0.000000e+00> : vector<9x8xf32>
    %136 = tpu.matmul %135, %105, %cst_63 {dimension_numbers = #tpu.dot_dimension_numbers<[1], [0], [0], [1], [0, 0, 1, 1], [], []>} : vector<9x12xbf16>, vector<12x8xbf16>, vector<9x8xf32> -> vector<9x8xf32>
    %137 = vector.broadcast %134 : vector<9x1xf32> to vector<9x8xf32>
    %138 = vector.broadcast %107 : vector<1x8xf32> to vector<9x8xf32>
    %139 = arith.mulf %137, %138 : vector<9x8xf32>
    %140 = arith.addf %136, %139 : vector<9x8xf32>
    %c0_64 = arith.constant 0 : index
    %c8_65 = arith.constant 8 : index
    %141 = vector.load %arg31[%c0_64, %c8_65] : memref<9x32xf32, #tpu.memory_space<vmem>>, vector<9x8xf32>
    tpu.vector_store %arg31[%c0_64, %c8_65], %140 {strides = array<i32>} : memref<9x32xf32, #tpu.memory_space<vmem>>, vector<9x8xf32>,
    %142 = arith.addf %93, %133 : vector<9x12xf32>
    %143 = arith.addf %94, %134 : vector<9x1xf32>
    %144 = vector.extract_strided_slice %37 {offsets = [0, 16], sizes = [9, 8], strides = [1, 1]} : vector<9x96xf32> to vector<9x8xf32>
    %145 = arith.truncf %144 : vector<9x8xf32> to vector<9x8xbf16>
    %146 = vector.extract_strided_slice %37 {offsets = [0, 48], sizes = [9, 8], strides = [1, 1]} : vector<9x96xf32> to vector<9x8xf32>
    %147 = arith.truncf %146 : vector<9x8xf32> to vector<9x8xbf16>
    %148 = vector.extract_strided_slice %37 {offsets = [0, 80], sizes = [9, 8], strides = [1, 1]} : vector<9x96xf32> to vector<9x8xf32>
    %149 = vector.extract_strided_slice %19 {offsets = [0, 16], sizes = [12, 8], strides = [1, 1]} : vector<12x96xf32> to vector<12x8xf32>
    %150 = arith.truncf %149 : vector<12x8xf32> to vector<12x8xbf16>
    %151 = vector.extract_strided_slice %19 {offsets = [0, 48], sizes = [12, 8], strides = [1, 1]} : vector<12x96xf32> to vector<12x8xf32>
    %152 = arith.truncf %151 : vector<12x8xf32> to vector<12x8xbf16>
    %153 = vector.extract_strided_slice %19 {offsets = [0, 80], sizes = [12, 8], strides = [1, 1]} : vector<12x96xf32> to vector<12x8xf32>
    %154 = arith.truncf %153 : vector<12x8xf32> to vector<12x8xbf16>
    %155 = vector.extract_strided_slice %31 {offsets = [0, 16], sizes = [1, 8], strides = [1, 1]} : vector<1x32xf32> to vector<1x8xf32>
    %156 = vector.extract_strided_slice %32 {offsets = [0, 16], sizes = [1, 8], strides = [1, 1]} : vector<1x32xf32> to vector<1x8xf32>
    %cst_66 = arith.constant dense<0.000000e+00> : vector<9x12xf32>
    %157 = tpu.matmul %145, %150, %cst_66 {dimension_numbers = #tpu.dot_dimension_numbers<[1], [1], [0], [0], [0, 0, 1, 0], [], []>} : vector<9x8xbf16>, vector<12x8xbf16>, vector<9x12xf32> -> vector<9x12xf32>
    %cst_67 = arith.constant dense<0.000000e+00> : vector<9x12xf32>
    %158 = tpu.matmul %147, %152, %cst_67 {dimension_numbers = #tpu.dot_dimension_numbers<[1], [1], [0], [0], [0, 0, 1, 0], [], []>} : vector<9x8xbf16>, vector<12x8xbf16>, vector<9x12xf32> -> vector<9x12xf32>
    %159 = arith.select %41, %157, %158 : vector<9x12xi1>, vector<9x12xf32>
    %cst_68 = arith.constant 0.353553385 : f32
    %160 = vector.broadcast %cst_68 : f32 to vector<9x12xf32>
    %161 = arith.mulf %159, %160 : vector<9x12xf32>
    %162 = arith.addf %161, %43 : vector<9x12xf32>
    %163 = vector.broadcast %155 : vector<1x8xf32> to vector<9x8xf32>
    %164 = arith.mulf %148, %163 : vector<9x8xf32>
    %cst_69 = arith.constant dense<0.000000e+00> : vector<9xf32>
    %165 = vector.multi_reduction <add>, %164, %cst_69 [1] : vector<9x8xf32> to vector<9xf32>
    %166 = vector.shape_cast %165 : vector<9xf32> to vector<9x1xf32>
    %cst_70 = arith.constant 0.353553385 : f32
    %167 = vector.broadcast %cst_70 : f32 to vector<9x1xf32>
    %168 = arith.mulf %166, %167 : vector<9x1xf32>
    %cst_71 = arith.constant dense<0xFF800000> : vector<9xf32>
    %169 = vector.multi_reduction <maximumf>, %162, %cst_71 [1] : vector<9x12xf32> to vector<9xf32>
    %170 = vector.shape_cast %169 : vector<9xf32> to vector<9x1xf32>
    %171 = arith.maximumf %170, %168 : vector<9x1xf32>
    %172 = vector.broadcast %171 : vector<9x1xf32> to vector<9x12xf32>
    %173 = arith.subf %162, %172 : vector<9x12xf32>
    %174 = math.exp %173 : vector<9x12xf32>
    %175 = arith.subf %168, %171 : vector<9x1xf32>
    %176 = math.exp %175 : vector<9x1xf32>
    %cst_72 = arith.constant dense<0.000000e+00> : vector<9xf32>
    %177 = vector.multi_reduction <add>, %174, %cst_72 [1] : vector<9x12xf32> to vector<9xf32>
    %178 = vector.shape_cast %177 : vector<9xf32> to vector<9x1xf32>
    %179 = arith.addf %178, %176 : vector<9x1xf32>
    %180 = tpu.reciprocal %179 {approx = true} : vector<9x1xf32> -> vector<9x1xf32>
    %181 = vector.broadcast %180 : vector<9x1xf32> to vector<9x12xf32>
    %182 = arith.mulf %174, %181 : vector<9x12xf32>
    %183 = arith.mulf %176, %180 : vector<9x1xf32>
    %184 = arith.truncf %182 : vector<9x12xf32> to vector<9x12xbf16>
    %cst_73 = arith.constant dense<0.000000e+00> : vector<9x8xf32>
    %185 = tpu.matmul %184, %154, %cst_73 {dimension_numbers = #tpu.dot_dimension_numbers<[1], [0], [0], [1], [0, 0, 1, 1], [], []>} : vector<9x12xbf16>, vector<12x8xbf16>, vector<9x8xf32> -> vector<9x8xf32>
    %186 = vector.broadcast %183 : vector<9x1xf32> to vector<9x8xf32>
    %187 = vector.broadcast %156 : vector<1x8xf32> to vector<9x8xf32>
    %188 = arith.mulf %186, %187 : vector<9x8xf32>
    %189 = arith.addf %185, %188 : vector<9x8xf32>
    %c0_74 = arith.constant 0 : index
    %c16 = arith.constant 16 : index
    %190 = vector.load %arg31[%c0_74, %c16] : memref<9x32xf32, #tpu.memory_space<vmem>>, vector<9x8xf32>
    tpu.vector_store %arg31[%c0_74, %c16], %189 {strides = array<i32>} : memref<9x32xf32, #tpu.memory_space<vmem>>, vector<9x8xf32>,
    %191 = arith.addf %142, %182 : vector<9x12xf32>
    %192 = arith.addf %143, %183 : vector<9x1xf32>
    %193 = vector.extract_strided_slice %37 {offsets = [0, 24], sizes = [9, 8], strides = [1, 1]} : vector<9x96xf32> to vector<9x8xf32>
    %194 = arith.truncf %193 : vector<9x8xf32> to vector<9x8xbf16>
    %195 = vector.extract_strided_slice %37 {offsets = [0, 56], sizes = [9, 8], strides = [1, 1]} : vector<9x96xf32> to vector<9x8xf32>
    %196 = arith.truncf %195 : vector<9x8xf32> to vector<9x8xbf16>
    %197 = vector.extract_strided_slice %37 {offsets = [0, 88], sizes = [9, 8], strides = [1, 1]} : vector<9x96xf32> to vector<9x8xf32>
    %198 = vector.extract_strided_slice %19 {offsets = [0, 24], sizes = [12, 8], strides = [1, 1]} : vector<12x96xf32> to vector<12x8xf32>
    %199 = arith.truncf %198 : vector<12x8xf32> to vector<12x8xbf16>
    %200 = vector.extract_strided_slice %19 {offsets = [0, 56], sizes = [12, 8], strides = [1, 1]} : vector<12x96xf32> to vector<12x8xf32>
    %201 = arith.truncf %200 : vector<12x8xf32> to vector<12x8xbf16>
    %202 = vector.extract_strided_slice %19 {offsets = [0, 88], sizes = [12, 8], strides = [1, 1]} : vector<12x96xf32> to vector<12x8xf32>
    %203 = arith.truncf %202 : vector<12x8xf32> to vector<12x8xbf16>
    %204 = vector.extract_strided_slice %31 {offsets = [0, 24], sizes = [1, 8], strides = [1, 1]} : vector<1x32xf32> to vector<1x8xf32>
    %205 = vector.extract_strided_slice %32 {offsets = [0, 24], sizes = [1, 8], strides = [1, 1]} : vector<1x32xf32> to vector<1x8xf32>
    %cst_75 = arith.constant dense<0.000000e+00> : vector<9x12xf32>
    %206 = tpu.matmul %194, %199, %cst_75 {dimension_numbers = #tpu.dot_dimension_numbers<[1], [1], [0], [0], [0, 0, 1, 0], [], []>} : vector<9x8xbf16>, vector<12x8xbf16>, vector<9x12xf32> -> vector<9x12xf32>
    %cst_76 = arith.constant dense<0.000000e+00> : vector<9x12xf32>
    %207 = tpu.matmul %196, %201, %cst_76 {dimension_numbers = #tpu.dot_dimension_numbers<[1], [1], [0], [0], [0, 0, 1, 0], [], []>} : vector<9x8xbf16>, vector<12x8xbf16>, vector<9x12xf32> -> vector<9x12xf32>
    %208 = arith.select %41, %206, %207 : vector<9x12xi1>, vector<9x12xf32>
    %cst_77 = arith.constant 0.353553385 : f32
    %209 = vector.broadcast %cst_77 : f32 to vector<9x12xf32>
    %210 = arith.mulf %208, %209 : vector<9x12xf32>
    %211 = arith.addf %210, %43 : vector<9x12xf32>
    %212 = vector.broadcast %204 : vector<1x8xf32> to vector<9x8xf32>
    %213 = arith.mulf %197, %212 : vector<9x8xf32>
    %cst_78 = arith.constant dense<0.000000e+00> : vector<9xf32>
    %214 = vector.multi_reduction <add>, %213, %cst_78 [1] : vector<9x8xf32> to vector<9xf32>
    %215 = vector.shape_cast %214 : vector<9xf32> to vector<9x1xf32>
    %cst_79 = arith.constant 0.353553385 : f32
    %216 = vector.broadcast %cst_79 : f32 to vector<9x1xf32>
    %217 = arith.mulf %215, %216 : vector<9x1xf32>
    %cst_80 = arith.constant dense<0xFF800000> : vector<9xf32>
    %218 = vector.multi_reduction <maximumf>, %211, %cst_80 [1] : vector<9x12xf32> to vector<9xf32>
    %219 = vector.shape_cast %218 : vector<9xf32> to vector<9x1xf32>
    %220 = arith.maximumf %219, %217 : vector<9x1xf32>
    %221 = vector.broadcast %220 : vector<9x1xf32> to vector<9x12xf32>
    %222 = arith.subf %211, %221 : vector<9x12xf32>
    %223 = math.exp %222 : vector<9x12xf32>
    %224 = arith.subf %217, %220 : vector<9x1xf32>
    %225 = math.exp %224 : vector<9x1xf32>
    %cst_81 = arith.constant dense<0.000000e+00> : vector<9xf32>
    %226 = vector.multi_reduction <add>, %223, %cst_81 [1] : vector<9x12xf32> to vector<9xf32>
    %227 = vector.shape_cast %226 : vector<9xf32> to vector<9x1xf32>
    %228 = arith.addf %227, %225 : vector<9x1xf32>
    %229 = tpu.reciprocal %228 {approx = true} : vector<9x1xf32> -> vector<9x1xf32>
    %230 = vector.broadcast %229 : vector<9x1xf32> to vector<9x12xf32>
    %231 = arith.mulf %223, %230 : vector<9x12xf32>
    %232 = arith.mulf %225, %229 : vector<9x1xf32>
    %233 = arith.truncf %231 : vector<9x12xf32> to vector<9x12xbf16>
    %cst_82 = arith.constant dense<0.000000e+00> : vector<9x8xf32>
    %234 = tpu.matmul %233, %203, %cst_82 {dimension_numbers = #tpu.dot_dimension_numbers<[1], [0], [0], [1], [0, 0, 1, 1], [], []>} : vector<9x12xbf16>, vector<12x8xbf16>, vector<9x8xf32> -> vector<9x8xf32>
    %235 = vector.broadcast %232 : vector<9x1xf32> to vector<9x8xf32>
    %236 = vector.broadcast %205 : vector<1x8xf32> to vector<9x8xf32>
    %237 = arith.mulf %235, %236 : vector<9x8xf32>
    %238 = arith.addf %234, %237 : vector<9x8xf32>
    %c0_83 = arith.constant 0 : index
    %c24 = arith.constant 24 : index
    %239 = vector.load %arg31[%c0_83, %c24] : memref<9x32xf32, #tpu.memory_space<vmem>>, vector<9x8xf32>
    tpu.vector_store %arg31[%c0_83, %c24], %238 {strides = array<i32>} : memref<9x32xf32, #tpu.memory_space<vmem>>, vector<9x8xf32>,
    %240 = arith.addf %191, %231 : vector<9x12xf32>
    %241 = arith.addf %192, %232 : vector<9x1xf32>
    %c0_84 = arith.constant 0 : index
    %c0_85 = arith.constant 0 : index
    %242 = vector.load %arg31[%c0_84, %c0_85] : memref<9x32xf32, #tpu.memory_space<vmem>>, vector<9x32xf32>
    %243 = vector.extract_strided_slice %242 {offsets = [0, 0], sizes = [8, 32], strides = [1, 1]} : vector<9x32xf32> to vector<8x32xf32>
    %244 = arith.truncf %243 : vector<8x32xf32> to vector<8x32xbf16>
    %c0_86 = arith.constant 0 : index
    %c0_87 = arith.constant 0 : index
    %245 = vector.load %arg13[%c0_86, %c0_87] : memref<32x32xbf16, #tpu.memory_space<vmem>>, vector<32x32xbf16>
    %cst_88 = arith.constant dense<0.000000e+00> : vector<8x32xf32>
    %246 = tpu.matmul %244, %245, %cst_88 {dimension_numbers = #tpu.dot_dimension_numbers<[1], [0], [0], [1], [0, 0, 1, 1], [], []>} : vector<8x32xbf16>, vector<32x32xbf16>, vector<8x32xf32> -> vector<8x32xf32>
    %c0_89 = arith.constant 0 : index
    %c0_90 = arith.constant 0 : index
    %247 = vector.load %arg14[%c0_89, %c0_90] : memref<1x32xf32, #tpu.memory_space<vmem>>, vector<1x32xf32>
    %248 = vector.broadcast %247 : vector<1x32xf32> to vector<8x32xf32>
    %249 = arith.addf %246, %248 : vector<8x32xf32>
    %250 = arith.addf %249, %1 : vector<8x32xf32>
    %c0_91 = arith.constant 0 : index
    %c0_92 = arith.constant 0 : index
    %251 = vector.load %arg17[%c0_91, %c0_92] : memref<1x32xf32, #tpu.memory_space<vmem>>, vector<1x32xf32>
    %c0_93 = arith.constant 0 : index
    %c0_94 = arith.constant 0 : index
    %252 = vector.load %arg18[%c0_93, %c0_94] : memref<1x32xf32, #tpu.memory_space<vmem>>, vector<1x32xf32>
    %cst_95 = arith.constant dense<0.000000e+00> : vector<8xf32>
    %253 = vector.multi_reduction <add>, %250, %cst_95 [1] : vector<8x32xf32> to vector<8xf32>
    %254 = vector.shape_cast %253 : vector<8xf32> to vector<8x1xf32>
    %cst_96 = arith.constant 3.200000e+01 : f32
    %255 = vector.broadcast %cst_96 : f32 to vector<8x1xf32>
    %256 = arith.divf %254, %255 : vector<8x1xf32>
    %257 = vector.broadcast %256 : vector<8x1xf32> to vector<8x32xf32>
    %258 = arith.subf %250, %257 : vector<8x32xf32>
    %259 = arith.mulf %258, %258 : vector<8x32xf32>
    %cst_97 = arith.constant dense<0.000000e+00> : vector<8xf32>
    %260 = vector.multi_reduction <add>, %259, %cst_97 [1] : vector<8x32xf32> to vector<8xf32>
    %261 = vector.shape_cast %260 : vector<8xf32> to vector<8x1xf32>
    %cst_98 = arith.constant 3.200000e+01 : f32
    %262 = vector.broadcast %cst_98 : f32 to vector<8x1xf32>
    %263 = arith.divf %261, %262 : vector<8x1xf32>
    %cst_99 = arith.constant 9.99999974E-6 : f32
    %264 = vector.broadcast %cst_99 : f32 to vector<8x1xf32>
    %265 = arith.addf %263, %264 : vector<8x1xf32>
    %266 = math.rsqrt %265 : vector<8x1xf32>
    %267 = vector.broadcast %266 : vector<8x1xf32> to vector<8x32xf32>
    %268 = arith.mulf %258, %267 : vector<8x32xf32>
    %269 = vector.broadcast %251 : vector<1x32xf32> to vector<8x32xf32>
    %270 = arith.mulf %268, %269 : vector<8x32xf32>
    %271 = vector.broadcast %252 : vector<1x32xf32> to vector<8x32xf32>
    %272 = arith.addf %270, %271 : vector<8x32xf32>
    %c0_100 = arith.constant 0 : index
    %c0_101 = arith.constant 0 : index
    %c0_102 = arith.constant 0 : index
    %273 = vector.load %arg27[%c0_100, %c0_101, %c0_102] : memref<1x8x32xf32, #tpu.memory_space<vmem>>, vector<1x8x32xf32>
    %274 = vector.shape_cast %273 : vector<1x8x32xf32> to vector<8x32xf32>
    %275 = vector.shape_cast %272 : vector<8x32xf32> to vector<1x8x32xf32>
    tpu.vector_store %arg27[%c0_100, %c0_101, %c0_102], %275 {strides = array<i32>} : memref<1x8x32xf32, #tpu.memory_space<vmem>>, vector<1x8x32xf32>,
    %276 = vector.extract_strided_slice %242 {offsets = [8, 0], sizes = [1, 32], strides = [1, 1]} : vector<9x32xf32> to vector<1x32xf32>
    %277 = arith.truncf %276 : vector<1x32xf32> to vector<1x32xbf16>
    %c0_103 = arith.constant 0 : index
    %c0_104 = arith.constant 0 : index
    %278 = vector.load %arg15[%c0_103, %c0_104] : memref<32x32xbf16, #tpu.memory_space<vmem>>, vector<32x32xbf16>
    %cst_105 = arith.constant dense<0.000000e+00> : vector<1x32xf32>
    %279 = tpu.matmul %277, %278, %cst_105 {dimension_numbers = #tpu.dot_dimension_numbers<[1], [0], [0], [1], [0, 0, 1, 1], [], []>} : vector<1x32xbf16>, vector<32x32xbf16>, vector<1x32xf32> -> vector<1x32xf32>
    %c0_106 = arith.constant 0 : index
    %c0_107 = arith.constant 0 : index
    %280 = vector.load %arg16[%c0_106, %c0_107] : memref<1x32xf32, #tpu.memory_space<vmem>>, vector<1x32xf32>
    %281 = arith.addf %279, %280 : vector<1x32xf32>
    %282 = arith.addf %281, %5 : vector<1x32xf32>
    %c0_108 = arith.constant 0 : index
    %c0_109 = arith.constant 0 : index
    %283 = vector.load %arg19[%c0_108, %c0_109] : memref<1x32xf32, #tpu.memory_space<vmem>>, vector<1x32xf32>
    %c0_110 = arith.constant 0 : index
    %c0_111 = arith.constant 0 : index
    %284 = vector.load %arg20[%c0_110, %c0_111] : memref<1x32xf32, #tpu.memory_space<vmem>>, vector<1x32xf32>
    %cst_112 = arith.constant dense<0.000000e+00> : vector<1xf32>
    %285 = vector.multi_reduction <add>, %282, %cst_112 [1] : vector<1x32xf32> to vector<1xf32>
    %286 = vector.shape_cast %285 : vector<1xf32> to vector<1x1xf32>
    %cst_113 = arith.constant 3.200000e+01 : f32
    %287 = vector.broadcast %cst_113 : f32 to vector<1x1xf32>
    %288 = arith.divf %286, %287 : vector<1x1xf32>
    %289 = vector.broadcast %288 : vector<1x1xf32> to vector<1x32xf32>
    %290 = arith.subf %282, %289 : vector<1x32xf32>
    %291 = arith.mulf %290, %290 : vector<1x32xf32>
    %cst_114 = arith.constant dense<0.000000e+00> : vector<1xf32>
    %292 = vector.multi_reduction <add>, %291, %cst_114 [1] : vector<1x32xf32> to vector<1xf32>
    %293 = vector.shape_cast %292 : vector<1xf32> to vector<1x1xf32>
    %cst_115 = arith.constant 3.200000e+01 : f32
    %294 = vector.broadcast %cst_115 : f32 to vector<1x1xf32>
    %295 = arith.divf %293, %294 : vector<1x1xf32>
    %cst_116 = arith.constant 9.99999974E-6 : f32
    %296 = vector.broadcast %cst_116 : f32 to vector<1x1xf32>
    %297 = arith.addf %295, %296 : vector<1x1xf32>
    %298 = math.rsqrt %297 : vector<1x1xf32>
    %299 = vector.broadcast %298 : vector<1x1xf32> to vector<1x32xf32>
    %300 = arith.mulf %290, %299 : vector<1x32xf32>
    %301 = arith.mulf %300, %283 : vector<1x32xf32>
    %302 = arith.addf %301, %284 : vector<1x32xf32>
    %303 = arith.truncf %302 : vector<1x32xf32> to vector<1x32xbf16>
    %c0_117 = arith.constant 0 : index
    %c0_118 = arith.constant 0 : index
    %304 = vector.load %arg21[%c0_117, %c0_118] : memref<32x64xbf16, #tpu.memory_space<vmem>>, vector<32x64xbf16>
    %cst_119 = arith.constant dense<0.000000e+00> : vector<1x64xf32>
    %305 = tpu.matmul %303, %304, %cst_119 {dimension_numbers = #tpu.dot_dimension_numbers<[1], [0], [0], [1], [0, 0, 1, 1], [], []>} : vector<1x32xbf16>, vector<32x64xbf16>, vector<1x64xf32> -> vector<1x64xf32>
    %c0_120 = arith.constant 0 : index
    %c0_121 = arith.constant 0 : index
    %306 = vector.load %arg22[%c0_120, %c0_121] : memref<1x64xf32, #tpu.memory_space<vmem>>, vector<1x64xf32>
    %307 = arith.addf %305, %306 : vector<1x64xf32>
    %cst_122 = arith.constant 0.000000e+00 : f32
    %308 = vector.broadcast %cst_122 : f32 to vector<1x64xf32>
    %309 = arith.maximumf %307, %308 : vector<1x64xf32>
    %310 = arith.truncf %309 : vector<1x64xf32> to vector<1x64xbf16>
    %c0_123 = arith.constant 0 : index
    %c0_124 = arith.constant 0 : index
    %311 = vector.load %arg23[%c0_123, %c0_124] : memref<64x32xbf16, #tpu.memory_space<vmem>>, vector<64x32xbf16>
    %cst_125 = arith.constant dense<0.000000e+00> : vector<1x32xf32>
    %312 = tpu.matmul %310, %311, %cst_125 {dimension_numbers = #tpu.dot_dimension_numbers<[1], [0], [0], [1], [0, 0, 1, 1], [], []>} : vector<1x64xbf16>, vector<64x32xbf16>, vector<1x32xf32> -> vector<1x32xf32>
    %c0_126 = arith.constant 0 : index
    %c0_127 = arith.constant 0 : index
    %313 = vector.load %arg24[%c0_126, %c0_127] : memref<1x32xf32, #tpu.memory_space<vmem>>, vector<1x32xf32>
    %314 = arith.addf %312, %313 : vector<1x32xf32>
    %315 = arith.addf %302, %314 : vector<1x32xf32>
    %c0_128 = arith.constant 0 : index
    %c0_129 = arith.constant 0 : index
    %316 = vector.load %arg25[%c0_128, %c0_129] : memref<1x32xf32, #tpu.memory_space<vmem>>, vector<1x32xf32>
    %c0_130 = arith.constant 0 : index
    %c0_131 = arith.constant 0 : index
    %317 = vector.load %arg26[%c0_130, %c0_131] : memref<1x32xf32, #tpu.memory_space<vmem>>, vector<1x32xf32>
    %cst_132 = arith.constant dense<0.000000e+00> : vector<1xf32>
    %318 = vector.multi_reduction <add>, %315, %cst_132 [1] : vector<1x32xf32> to vector<1xf32>
    %319 = vector.shape_cast %318 : vector<1xf32> to vector<1x1xf32>
    %cst_133 = arith.constant 3.200000e+01 : f32
    %320 = vector.broadcast %cst_133 : f32 to vector<1x1xf32>
    %321 = arith.divf %319, %320 : vector<1x1xf32>
    %322 = vector.broadcast %321 : vector<1x1xf32> to vector<1x32xf32>
    %323 = arith.subf %315, %322 : vector<1x32xf32>
    %324 = arith.mulf %323, %323 : vector<1x32xf32>
    %cst_134 = arith.constant dense<0.000000e+00> : vector<1xf32>
    %325 = vector.multi_reduction <add>, %324, %cst_134 [1] : vector<1x32xf32> to vector<1xf32>
    %326 = vector.shape_cast %325 : vector<1xf32> to vector<1x1xf32>
    %cst_135 = arith.constant 3.200000e+01 : f32
    %327 = vector.broadcast %cst_135 : f32 to vector<1x1xf32>
    %328 = arith.divf %326, %327 : vector<1x1xf32>
    %cst_136 = arith.constant 9.99999974E-6 : f32
    %329 = vector.broadcast %cst_136 : f32 to vector<1x1xf32>
    %330 = arith.addf %328, %329 : vector<1x1xf32>
    %331 = math.rsqrt %330 : vector<1x1xf32>
    %332 = vector.broadcast %331 : vector<1x1xf32> to vector<1x32xf32>
    %333 = arith.mulf %323, %332 : vector<1x32xf32>
    %334 = arith.mulf %333, %316 : vector<1x32xf32>
    %335 = arith.addf %334, %317 : vector<1x32xf32>
    %c0_137 = arith.constant 0 : index
    %c0_138 = arith.constant 0 : index
    %c0_139 = arith.constant 0 : index
    %336 = vector.load %arg28[%c0_137, %c0_138, %c0_139] : memref<1x1x32xf32, #tpu.memory_space<vmem>>, vector<1x1x32xf32>
    %337 = vector.shape_cast %336 : vector<1x1x32xf32> to vector<1x32xf32>
    %338 = vector.shape_cast %335 : vector<1x32xf32> to vector<1x1x32xf32>
    tpu.vector_store %arg28[%c0_137, %c0_138, %c0_139], %338 {strides = array<i32>} : memref<1x1x32xf32, #tpu.memory_space<vmem>>, vector<1x1x32xf32>,
    %339 = vector.extract_strided_slice %240 {offsets = [0, 0], sizes = [8, 12], strides = [1, 1]} : vector<9x12xf32> to vector<8x12xf32>
    %cst_140 = arith.constant 2.500000e-01 : f32
    %340 = vector.broadcast %cst_140 : f32 to vector<8x12xf32>
    %341 = arith.mulf %339, %340 : vector<8x12xf32>
    %c0_141 = arith.constant 0 : index
    %c0_142 = arith.constant 0 : index
    %342 = vector.load %arg32[%c0_141, %c0_142] : memref<8x128xf32, #tpu.memory_space<vmem>>, vector<8x12xf32>
    tpu.vector_store %arg32[%c0_141, %c0_142], %341 {strides = array<i32>} : memref<8x128xf32, #tpu.memory_space<vmem>>, vector<8x12xf32>,
    %343 = vector.extract_strided_slice %241 {offsets = [0, 0], sizes = [8, 1], strides = [1, 1]} : vector<9x1xf32> to vector<8x1xf32>
    %cst_143 = arith.constant 2.500000e-01 : f32
    %344 = vector.broadcast %cst_143 : f32 to vector<8x1xf32>
    %345 = arith.mulf %343, %344 : vector<8x1xf32>
    %c0_144 = arith.constant 0 : index
    %c12 = arith.constant 12 : index
    %346 = vector.load %arg32[%c0_144, %c12] : memref<8x128xf32, #tpu.memory_space<vmem>>, vector<8x1xf32>
    tpu.vector_store %arg32[%c0_144, %c12], %345 {strides = array<i32>} : memref<8x128xf32, #tpu.memory_space<vmem>>, vector<8x1xf32>,
    %cst_145 = arith.constant 0.000000e+00 : f32
    %347 = vector.broadcast %cst_145 : f32 to vector<8x115xf32>
    %c0_146 = arith.constant 0 : index
    %c13 = arith.constant 13 : index
    %348 = vector.load %arg32[%c0_146, %c13] : memref<8x128xf32, #tpu.memory_space<vmem>>, vector<8x115xf32>
    tpu.vector_store %arg32[%c0_146, %c13], %347 {strides = array<i32>} : memref<8x128xf32, #tpu.memory_space<vmem>>, vector<8x115xf32>,
    %c0_147 = arith.constant 0 : index
    %c0_148 = arith.constant 0 : index
    %349 = vector.load %arg32[%c0_147, %c0_148] : memref<8x128xf32, #tpu.memory_space<vmem>>, vector<8x128xf32>
    %c0_149 = arith.constant 0 : index
    %c0_150 = arith.constant 0 : index
    %c0_151 = arith.constant 0 : index
    %350 = vector.load %arg29[%c0_149, %c0_150, %c0_151] : memref<1x8x128xf32, #tpu.memory_space<vmem>>, vector<1x8x128xf32>
    %351 = vector.shape_cast %350 : vector<1x8x128xf32> to vector<8x128xf32>
    %352 = vector.shape_cast %349 : vector<8x128xf32> to vector<1x8x128xf32>
    tpu.vector_store %arg29[%c0_149, %c0_150, %c0_151], %352 {strides = array<i32>} : memref<1x8x128xf32, #tpu.memory_space<vmem>>, vector<1x8x128xf32>,
    return
  }
  func.func @transform_0(%arg0: i32) -> (i32, i32, i32) {
    %c0_i32 = arith.constant 0 : i32
    %c0_i32_0 = arith.constant 0 : i32
    %c0_i32_1 = arith.constant 0 : i32
    return %arg0, %c0_i32, %c0_i32_0 : i32, i32, i32
  }
  func.func @transform_1(%arg0: i32) -> (i32, i32, i32) {
    %c0_i32 = arith.constant 0 : i32
    %c0_i32_0 = arith.constant 0 : i32
    %c0_i32_1 = arith.constant 0 : i32
    return %arg0, %c0_i32, %c0_i32_0 : i32, i32, i32
  }
  func.func @transform_2(%arg0: i32) -> (i32, i32, i32) {
    %c0_i32 = arith.constant 0 : i32
    %c0_i32_0 = arith.constant 0 : i32
    %c0_i32_1 = arith.constant 0 : i32
    return %arg0, %c0_i32, %c0_i32_0 : i32, i32, i32
  }
  func.func @transform_3(%arg0: i32) -> (i32, i32, i32) {
    %c0_i32 = arith.constant 0 : i32
    %c0_i32_0 = arith.constant 0 : i32
    %c0_i32_1 = arith.constant 0 : i32
    return %arg0, %c0_i32, %c0_i32_0 : i32, i32, i32
  }
  func.func @transform_4(%arg0: i32) -> (i32, i32, i32) {
    %c0_i32 = arith.constant 0 : i32
    %c0_i32_0 = arith.constant 0 : i32
    %c0_i32_1 = arith.constant 0 : i32
    return %arg0, %c0_i32, %c0_i32_0 : i32, i32, i32
  }
  func.func @transform_5(%arg0: i32) -> (i32, i32, i32) {
    %c0_i32 = arith.constant 0 : i32
    %c0_i32_0 = arith.constant 0 : i32
    %c0_i32_1 = arith.constant 0 : i32
    %c0_i32_2 = arith.constant 0 : i32
    return %c0_i32, %c0_i32_0, %c0_i32_1 : i32, i32, i32
  }
  func.func @transform_6(%arg0: i32) -> (i32, i32) {
    %c0_i32 = arith.constant 0 : i32
    %c0_i32_0 = arith.constant 0 : i32
    %c0_i32_1 = arith.constant 0 : i32
    return %c0_i32, %c0_i32_0 : i32, i32
  }
  func.func @transform_7(%arg0: i32) -> (i32, i32) {
    %c0_i32 = arith.constant 0 : i32
    %c0_i32_0 = arith.constant 0 : i32
    %c0_i32_1 = arith.constant 0 : i32
    return %c0_i32, %c0_i32_0 : i32, i32
  }
  func.func @transform_8(%arg0: i32) -> (i32, i32) {
    %c0_i32 = arith.constant 0 : i32
    %c0_i32_0 = arith.constant 0 : i32
    %c0_i32_1 = arith.constant 0 : i32
    return %c0_i32, %c0_i32_0 : i32, i32
  }
  func.func @transform_9(%arg0: i32) -> (i32, i32) {
    %c0_i32 = arith.constant 0 : i32
    %c0_i32_0 = arith.constant 0 : i32
    %c0_i32_1 = arith.constant 0 : i32
    return %c0_i32, %c0_i32_0 : i32, i32
  }
  func.func @transform_10(%arg0: i32) -> (i32, i32) {
    %c0_i32 = arith.constant 0 : i32
    %c0_i32_0 = arith.constant 0 : i32
    %c0_i32_1 = arith.constant 0 : i32
    return %c0_i32, %c0_i32_0 : i32, i32
  }
  func.func @transform_11(%arg0: i32) -> (i32, i32) {
    %c0_i32 = arith.constant 0 : i32
    %c0_i32_0 = arith.constant 0 : i32
    %c0_i32_1 = arith.constant 0 : i32
    return %c0_i32, %c0_i32_0 : i32, i32
  }
  func.func @transform_12(%arg0: i32) -> (i32, i32) {
    %c0_i32 = arith.constant 0 : i32
    %c0_i32_0 = arith.constant 0 : i32
    %c0_i32_1 = arith.constant 0 : i32
    return %c0_i32, %c0_i32_0 : i32, i32
  }
  func.func @transform_13(%arg0: i32) -> (i32, i32) {
    %c0_i32 = arith.constant 0 : i32
    %c0_i32_0 = arith.constant 0 : i32
    %c0_i32_1 = arith.constant 0 : i32
    return %c0_i32, %c0_i32_0 : i32, i32
  }
  func.func @transform_14(%arg0: i32) -> (i32, i32) {
    %c0_i32 = arith.constant 0 : i32
    %c0_i32_0 = arith.constant 0 : i32
    %c0_i32_1 = arith.constant 0 : i32
    return %c0_i32, %c0_i32_0 : i32, i32
  }
  func.func @transform_15(%arg0: i32) -> (i32, i32) {
    %c0_i32 = arith.constant 0 : i32
    %c0_i32_0 = arith.constant 0 : i32
    %c0_i32_1 = arith.constant 0 : i32
    return %c0_i32, %c0_i32_0 : i32, i32
  }
  func.func @transform_16(%arg0: i32) -> (i32, i32) {
    %c0_i32 = arith.constant 0 : i32
    %c0_i32_0 = arith.constant 0 : i32
    %c0_i32_1 = arith.constant 0 : i32
    return %c0_i32, %c0_i32_0 : i32, i32
  }
  func.func @transform_17(%arg0: i32) -> (i32, i32) {
    %c0_i32 = arith.constant 0 : i32
    %c0_i32_0 = arith.constant 0 : i32
    %c0_i32_1 = arith.constant 0 : i32
    return %c0_i32, %c0_i32_0 : i32, i32
  }
  func.func @transform_18(%arg0: i32) -> (i32, i32) {
    %c0_i32 = arith.constant 0 : i32
    %c0_i32_0 = arith.constant 0 : i32
    %c0_i32_1 = arith.constant 0 : i32
    return %c0_i32, %c0_i32_0 : i32, i32
  }
  func.func @transform_19(%arg0: i32) -> (i32, i32) {
    %c0_i32 = arith.constant 0 : i32
    %c0_i32_0 = arith.constant 0 : i32
    %c0_i32_1 = arith.constant 0 : i32
    return %c0_i32, %c0_i32_0 : i32, i32
  }
  func.func @transform_20(%arg0: i32) -> (i32, i32) {
    %c0_i32 = arith.constant 0 : i32
    %c0_i32_0 = arith.constant 0 : i32
    %c0_i32_1 = arith.constant 0 : i32
    return %c0_i32, %c0_i32_0 : i32, i32
  }
  func.func @transform_21(%arg0: i32) -> (i32, i32) {
    %c0_i32 = arith.constant 0 : i32
    %c0_i32_0 = arith.constant 0 : i32
    %c0_i32_1 = arith.constant 0 : i32
    return %c0_i32, %c0_i32_0 : i32, i32
  }
  func.func @transform_22(%arg0: i32) -> (i32, i32) {
    %c0_i32 = arith.constant 0 : i32
    %c0_i32_0 = arith.constant 0 : i32
    %c0_i32_1 = arith.constant 0 : i32
    return %c0_i32, %c0_i32_0 : i32, i32
  }
  func.func @transform_23(%arg0: i32) -> (i32, i32) {
    %c0_i32 = arith.constant 0 : i32
    %c0_i32_0 = arith.constant 0 : i32
    %c0_i32_1 = arith.constant 0 : i32
    return %c0_i32, %c0_i32_0 : i32, i32
  }
  func.func @transform_24(%arg0: i32) -> (i32, i32) {
    %c0_i32 = arith.constant 0 : i32
    %c0_i32_0 = arith.constant 0 : i32
    %c0_i32_1 = arith.constant 0 : i32
    return %c0_i32, %c0_i32_0 : i32, i32
  }
  func.func @transform_25(%arg0: i32) -> (i32, i32) {
    %c0_i32 = arith.constant 0 : i32
    %c0_i32_0 = arith.constant 0 : i32
    %c0_i32_1 = arith.constant 0 : i32
    return %c0_i32, %c0_i32_0 : i32, i32
  }
  func.func @transform_26(%arg0: i32) -> (i32, i32, i32) {
    %c0_i32 = arith.constant 0 : i32
    %c0_i32_0 = arith.constant 0 : i32
    %c0_i32_1 = arith.constant 0 : i32
    return %arg0, %c0_i32, %c0_i32_0 : i32, i32, i32
  }
  func.func @transform_27(%arg0: i32) -> (i32, i32, i32) {
    %c0_i32 = arith.constant 0 : i32
    %c0_i32_0 = arith.constant 0 : i32
    %c0_i32_1 = arith.constant 0 : i32
    return %arg0, %c0_i32, %c0_i32_0 : i32, i32, i32
  }
  func.func @transform_28(%arg0: i32) -> (i32, i32, i32) {
    %c0_i32 = arith.constant 0 : i32
    %c0_i32_0 = arith.constant 0 : i32
    %c0_i32_1 = arith.constant 0 : i32
    return %arg0, %c0_i32, %c0_i32_0 : i32, i32, i32
  }
}

</mosaic_0001>

<bundles_post_ra>
// kernel: _decoder_forward.8
= control target key start
LH: loop header
LB: loop body
LE: loop exit
PB: predicated region body
PF: predicated region fallthrough
CT: control target
= control target key end

     0   :  { %v290_v0 = vmov 0.0   ;;  %vm291_vm0 = vmmov 0   ;;  %vm53_vm1 = vcmask 261120   ;;  %vm140_vm2 = vcmask 523264   ;;  %s381_s1 = inlined_call_operand.vmem [shape: bf16[32,64], index: 1, kind: input, shape index: {}]   ;;  %s382_s0 = inlined_call_operand.vmem [shape: f32[16,32], index: 0, kind: input, shape index: {}]   ;;  %s383_s3 = inlined_call_operand.vmem [shape: bf16[64,32], index: 3, kind: input, shape index: {}]   ;;  %s384_s2 = inlined_call_operand.vmem [shape: f32[1,64], index: 2, kind: input, shape index: {}]   ;;  %s385_s4 = inlined_call_operand.vmem [shape: f32[1,32], index: 4, kind: input, shape index: {}]   ;;  %s386_s5 = inlined_call_operand.vmem [shape: f32[1,32], index: 5, kind: input, shape index: {}]   ;;  %s387_s6 = inlined_call_operand.vmem [shape: f32[1,32], index: 6, kind: input, shape index: {}]   ;;  %s388_s7 = inlined_call_operand.vmem [shape: f32[16,32], index: 7, kind: output, shape index: {}]  }
   0x1   :  { %258 = vmatprep.subr.bf16.mxu0 %v290_v0  ;;  %v280_v1 = vld [vmem:[%s381_s1 + $0x8] sm:$0xff]   ;;  %262 = vmatprep.mubr.msk.bf16.mxu0 %vm291_vm0, %v290_v0  ;;  %v281_v2 = vld [vmem:[%s381_s1] sm:$0xff]   ;;  %v282_v5 = vld [vmem:[%s383_s3 + $0x18] sm:$0xff]  }
   0x2   :  { %266 = vmatprep.subr.bf16.mxu1 %v290_v0  ;;  %274 = vmatprep.mubr.msk.bf16.mxu1 %vm291_vm0, %v290_v0  ;;  %v27_v3 = vld [vmem:[%s382_s0] sm:$0xff]  ;;  %v28_v4 = vld [vmem:[%s382_s0 + $0x8] sm:$0xff]  ;;  %v283_v7 = vld [vmem:[%s383_s3 + $0x10] sm:$0xff]  }
   0x3   :  { %259 = vmatpush3.bf16.msra.mxu0 %v280_v1  ;;  %v29_v6 = vpack.c.bf16 %v28_v4, %v27_v3  ;;  %267 = vmatpush3.bf16.msra.mxu1 %v282_v5  ;;  %v284_v8 = vld [vmem:[%s383_s3 + $0x8] sm:$0xff]   ;;  %v285_v9 = vld [vmem:[%s383_s3] sm:$0xff]  }
   0x4   :  { %260 = vmatprep.subr.bf16.mxu0 %v290_v0  ;;  %268 = vmatprep.subr.bf16.mxu1 %v290_v0  ;;  %v238_v10 = vld [vmem:[%s384_s2] ss:$0 sm:$0xff] }
   0x5   :  { %v242_v20 = vld [vmem:[%s385_s4] ss:$0 sm:$0xff] }
   0x6   :  { %v248_v48 = vld [vmem:[%s386_s5] ss:$0 sm:$0xff] }
   0x7   :  { %261 = vmatpush3.bf16.msra.mxu0 %v281_v2  ;;  %269 = vmatpush3.bf16.msra.mxu1 %v283_v7  ;;  %v249_v50 = vld [vmem:[%s387_s6] ss:$0 sm:$0xff] }
   0x8   :  { %270 = vmatprep.subr.bf16.mxu1 %v290_v0 }
   0xa   :  { %263 = vmatmul.mubr.msk.bf16.vlgmr.msra.gmra.mxu0 %vm53_vm1, %v29_v6 }
   0xb   :  { %271 = vmatpush3.bf16.msra.mxu1 %v284_v8 }
   0xc   :  { %272 = vmatprep.subr.bf16.mxu1 %v290_v0 }
   0xf   :  { %273 = vmatpush3.bf16.msra.mxu1 %v285_v9 }
  0xca   :  { %v91_v11 = vpop.f32.mrf.mxu0 }
  0xcb   :  { %v92_v13 = vadd.f32 %v238_v10, %v91_v11 }
  0xcc   :  { %v264_v12 = vpop.f32.mrf.mxu0 }
  0xcd   :  { %v98_v17 = vmax.f32 %v92_v13, 0.0 }
  0xce   :  { %v94_v14 = vpop.f32.mrf.mxu0 }
  0xcf   :  { %v95_v15 = vadd.f32 %v238_v10, %v94_v14 }
  0xd0   :  { %v265_v16 = vpop.f32.mrf.mxu0 }
  0xd1   :  { %v99_v18 = vmax.f32 %v95_v15, 0.0 }
  0xd3   :  { %v100_v19 = vpack.c.bf16 %v99_v18, %v98_v17 }
  0xd5   :  { %275 = vmatmul.mubr.msk.bf16.vlgmr.msra.gmra.mxu1 %vm140_vm2, %v100_v19 }
 0x195   :  { %v178_v21 = vpop.f32.mrf.mxu1 }
 0x196   :  { %v179_v22 = vadd.f32 %v242_v20, %v178_v21 }
 0x197   :  { %v276_v23 = vpop.f32.mrf.mxu1 }
 0x198   :  { %v185_v24 = vadd.f32 %v179_v22, %v27_v3 }
 0x199   :  { %v181_v25 = vpop.f32.mrf.mxu1 }
 0x19a   :  { %v182_v26 = vadd.f32 %v242_v20, %v181_v25  ;;  %v189_v27 = vsel %vm53_vm1, %v185_v24, 0.0 }
 0x19b   :  { %190 = vadd.xlane.f32.xlu0 %v189_v27  ;;  %v277_v28 = vpop.f32.mrf.mxu1 }
 0x19c   :  { %v186_v29 = vadd.f32 %v182_v26, %v28_v4 }
 0x19e   :  { %v192_v30 = vsel %vm53_vm1, %v186_v29, 0.0 }
 0x19f   :  { %193 = vadd.xlane.f32.xlu0 %v192_v30 }
 0x224   :  { %v191_v31 = vpop.xlane.xlu0 %190 }
 0x225   :  { %v196_v32 = vmul.f32 0.03125, %v191_v31 }
 0x227   :  { %v198_v33 = vsub.f32 %v185_v24, %v196_v32 }
 0x228   :  { %v194_v34 = vpop.xlane.xlu0 %193 }
 0x229   :  { %v197_v35 = vmul.f32 0.03125, %v194_v34  ;;  %v200_v36 = vmul.f32 %v198_v33, %v198_v33 }
 0x22b   :  { %v199_v37 = vsub.f32 %v186_v29, %v197_v35  ;;  %v202_v38 = vsel %vm53_vm1, %v200_v36, 0.0 }
 0x22c   :  { %203 = vadd.xlane.f32.xlu1 %v202_v38 }
 0x22d   :  { %v201_v39 = vmul.f32 %v199_v37, %v199_v37 }
 0x22f   :  { %v205_v40 = vsel %vm53_vm1, %v201_v39, 0.0 }
 0x230   :  { %206 = vadd.xlane.f32.xlu1 %v205_v40 }
 0x2b5   :  { %v204_v41 = vpop.xlane.xlu1 %203 }
 0x2b6   :  { %v208_v42 = vmul.f32 0.03125, %v204_v41 }
 0x2b8   :  { %v210_v43 = vadd.f32 1e-05, %v208_v42 }
 0x2b9   :  { %v207_v44 = vpop.xlane.xlu1 %206 }
 0x2ba   :  { %286 = vrsqrt.f32 %v210_v43  ;;  %v209_v45 = vmul.f32 0.03125, %v207_v44 }
 0x2bc   :  { %v211_v46 = vadd.f32 1e-05, %v209_v45 }
 0x2be   :  { %288 = vrsqrt.f32 %v211_v46 }
 0x2c7   :  { %v287_v47 = vpop.eup %286 }
 0x2c8   :  { %v214_v49 = vmul.f32 %v287_v47, %v198_v33 }
 0x2ca   :  { %v222_v51 = vmul.f32 %v248_v48, %v214_v49 }
 0x2cb   :  { %v289_v52 = vpop.eup %288 }
 0x2cc   :  { %v230_v53 = vadd.f32 %v249_v50, %v222_v51  ;;  %v215_v54 = vmul.f32 %v289_v52, %v199_v37 }
 0x2ce   :  { %232 = vst.msk [vmem:[%s388_s7] sm:$0xff] %vm53_vm1, %v230_v53  ;;  %v223_v55 = vmul.f32 %v248_v48, %v215_v54 }
 0x2d0   :  { %v231_v56 = vadd.f32 %v249_v50, %v223_v55 }
 0x2d2   :  { %233 = vst.msk [vmem:[%s388_s7 + $0x8] sm:$0xff] %vm53_vm1, %v231_v56 }

// kernel: _decoder_forward.6
= control target key start
LH: loop header
LB: loop body
LE: loop exit
PB: predicated region body
PF: predicated region fallthrough
CT: control target
= control target key end

     0   :  { %s3312_s0 = inlined_call_operand.vmem [shape: f32[2,8,32], index: 0, kind: input, shape index: {}, may-alias: {0,1}]   ;;  %s3313_s1 = inlined_call_operand.vmem [shape: f32[2,8,32], index: 1, kind: input, shape index: {}, may-alias: {0,1}]   ;;  %s3314_s2 = inlined_call_operand.vmem [shape: f32[2,1,32], index: 2, kind: input, shape index: {}, may-alias: {2,3}]   ;;  %s3315_s3 = inlined_call_operand.vmem [shape: f32[2,1,32], index: 3, kind: input, shape index: {}, may-alias: {2,3}]   ;;  %s3316_s4 = inlined_call_operand.vmem [shape: f32[2,9,8], index: 4, kind: input, shape index: {}]   ;;  %s3317_s5 = inlined_call_operand.vmem [shape: f32[1,9,8], index: 5, kind: input, shape index: {}]   ;;  %s3318_s6 = inlined_call_operand.vmem [shape: bf16[32,96], index: 6, kind: input, shape index: {}]   ;;  %s3319_s7 = inlined_call_operand.vmem [shape: f32[1,96], index: 7, kind: input, shape index: {}]   ;;  %s3320_s8 = inlined_call_operand.vmem [shape: bf16[32,96], index: 8, kind: input, shape index: {}]   ;;  %s3321_s9 = inlined_call_operand.vmem [shape: f32[1,96], index: 9, kind: input, shape index: {}]   ;;  %s3322_s10 = inlined_call_operand.vmem [shape: bf16[32,96], index: 10, kind: input, shape index: {}]   ;;  %s3323_s11 = inlined_call_operand.vmem [shape: f32[1,96], index: 11, kind: input, shape index: {}]   ;;  %s3324_s12 = inlined_call_operand.vmem [shape: bf16[32,32], index: 12, kind: input, shape index: {}]   ;;  %s3325_s13 = inlined_call_operand.vmem [shape: f32[1,32], index: 13, kind: input, shape index: {}]   ;;  %s3326_s14 = inlined_call_operand.vmem [shape: bf16[32,32], index: 14, kind: input, shape index: {}]   ;;  %s3327_s15 = inlined_call_operand.vmem [shape: f32[1,32], index: 15, kind: input, shape index: {}]   ;;  %s3328_s16 = inlined_call_operand.vmem [shape: f32[1,32], index: 16, kind: input, shape index: {}]   ;;  %s3329_s17 = inlined_call_operand.vmem [shape: f32[1,32], index: 17, kind: input, shape index: {}]   ;;  %s3330_s18 = inlined_call_operand.vmem [shape: f32[1,32], index: 18, kind: input, shape index: {}]   ;;  %s3331_s19 = inlined_call_operand.vmem [shape: f32[1,32], index: 19, kind: input, shape index: {}]   ;;  %s3332_s20 = inlined_call_operand.vmem [shape: f32[2,8,32], index: 20, kind: output, shape index: {0}]   ;;  %s3333_s21 = inlined_call_operand.vmem [shape: f32[2,1,32], index: 21, kind: output, shape index: {1}]   ;;  %s3334_s22 = inlined_call_operand.hbm [shape: f32[2,8,128], index: 22, kind: output, shape index: {2}]  }
   0x1   :  { %3345 = sst [smem:[#allocation14_spill]] %s3312_s0 }
   0x2   :  { %3346 = sst [smem:[#allocation15_spill]] %s3313_s1 }
   0x3   :  { %3347 = sst [smem:[#allocation16_spill]] %s3314_s2 }
   0x4   :  { %3348 = sst [smem:[#allocation17_spill]] %s3315_s3 }
   0x5   :  { %3349 = sst [smem:[#allocation18_spill]] %s3316_s4 }
   0x6   :  { %3350 = sst [smem:[#allocation19_spill]] %s3317_s5 }
   0x7   :  { %3351 = sst [smem:[#allocation20_spill]] %s3318_s6 }
   0x8   :  { %3352 = sst [smem:[#allocation21_spill]] %s3320_s8 }
   0x9   :  { %3353 = sst [smem:[#allocation22_spill]] %s3331_s19 }
   0xa   :  { %3354 = sst [smem:[#allocation23_spill]] %s3333_s21 }
   0xb   :  { %28 = vsyncpa [#allocation6], 0 }
   0xc   :  { %30 = vsyncpa [#allocation6 + $0x1], 0  ;;  %s2842_s3 = smov 0   ;;  %s2844_s28 = smov 0  }
   0xd   :  { %s2846_s29 = smov 0   ;;  %s2848_s30 = smov 0  }
   0xe LB: > { %3355 = sst [smem:[#allocation8_spill]] %s2695_s3  ;;  %s2863_s4 = sadd.s32 4294967295, %s2707_s30   ;;  %s2707_s30 = sphi %s2848_s30, %s3376_s30   ;;  %s2703_s29 = sphi %s2846_s29, %s3378_s29   ;;  %s2699_s28 = sphi %s2844_s28, %s3380_s28   ;;  %s2695_s3 = sphi %s2842_s3, %s3379_s3  }
   0xf   : > { %3356 = sst [smem:[#allocation9_spill]] %s2703_s29  ;;  %s2317_s0 = sadd.s32 4294967294, %s2707_s30  }
  0x10   : > { %3357 = sst [smem:[#allocation10_spill]] %s2707_s30  ;;  %s2867_s23 = sadd.s32 1, %s2707_s30  }
  0x11   : > { %3358 = sst [smem:[#allocation11_spill]] %s2867_s23  ;;  %s540_s1 = sadd.s32 1, %s2703_s29 }
  0x12   : > { %s537_s5 = ssub.s32 %s2707_s30, %s2867_s23  ;;  %p550_p0 = scmp.ne.s32.totalorder %s2703_s29, %s2699_s28 }
  0x13   : > { %p538_p1 = scmp.eq.s32.totalorder %s537_s5, 0  ;;  %p551_p2 = scmp.eq.s32.totalorder %s2863_s4, 1 }
  0x14   : > { %p556_p3 = scmp.ne.s32.totalorder %s2699_s28, %s2695_s3  ;;  %p557_p4 = scmp.eq.s32.totalorder %s2317_s0, 1 }
  0x15   : > { %s2878_s24 = scalar_select %p538_p1, %s2703_s29, %s540_s1  }
  0x16   : > { %p2880_p5 = por %p551_p2, %p550_p0  ;;  %p2884_p6 = por %p557_p4, %p556_p3 }
  0x17   : > { %3359 = sst [smem:[#allocation12_spill]] %s2878_s24  ;;  %p2320_p7 = scmp.ge.s32.totalorder %s2707_s30, 1 }
  0x18   : > { %s3361_s25 = scalar_select %p2884_p6, 1, 0 }
  0x19   : > { %p654_p8 = scmp.lt.s32.totalorder %s2707_s30, 3 }
  0x1a   : > { %3362 = sst [smem:[#allocation13_spill]] %s3361_s25 }
  0x1b   : > { %p655_p9 = pnand %p2320_p7, %p654_p8 }
  0x1c   : > { %s3363_s27 = sld [smem:[#allocation20_spill]] (!%p655_p9)  ;;  %p737_p10 = scmp.lt.s32.totalorder (!%p655_p9), %s2863_s4, 1 }
  0x1d   : > { %658 = sbr.rel (%p655_p9) target bundleno = 3427 (0xd63), region = 100  ;;  %s3364_s8 = sld [smem:[#allocation21_spill]] (!%p655_p9) }
  0x1e   : > { %s3366_s25 = sld [smem:[#allocation15_spill]] (!%p655_p9)  ;;  %s2712_s2 = smov (!%p655_p9), 32  }
  0x1f   : > { %s3367_s5 = sld [smem:[#allocation16_spill]] (!%p655_p9)  ;;  %s2713_s0 = smov (!%p655_p9), 64  }
  0x20   : > { %s3368_s21 = sld [smem:[#allocation17_spill]] (!%p655_p9)  ;;  %s2715_s23 = smov (!%p655_p9), 88  }
  0x21   : > { %s3370_s1 = sld [smem:[#allocation19_spill]] (!%p655_p9) }
  0x22   : > { %v2583_v0 = vld [vmem:[%s3363_s27 + $0x8] sm:$0xff]   ;;  %v2709_v1 = vmov 0.0   ;;  %v2584_v2 = vld [vmem:[%s3363_s27] sm:$0xff]   ;;  %vm2710_vm0 = vmmov 0   ;;  %s2908_s26 = scalar_select %p737_p10, %s2863_s4, 1  ;;  %vm792_vm1 = vcmask 261120   ;;  %v1140_v23 = vlaneseq }
  0x23   : > { %2407 = vmatprep.subr.bf16.mxu0 %v2709_v1  ;;  %2415 = vmatprep.subr.bf16.mxu1 %v2709_v1  ;;  %v2585_v3 = vld [vmem:[%s3364_s8 + $0x8] sm:$0xff]   ;;  %v2587_v4 = vld [vmem:[%s3364_s8] sm:$0xff]   ;;  %s3365_s27 = sld [smem:[#allocation14_spill]]  ;;  %vm1008_vm2 = vcmask 785408   ;;  %vm1033_vm3 = vcmask 64512   ;;  %vm1010_vm4 = vcmask 253952  }
  0x24   : > { %2408 = vmatpush3.bf16.msra.mxu0 %v2583_v0  ;;  %2411 = vmatprep.mubr.msk.bf16.mxu0 %vm2710_vm0, %v2709_v1  ;;  %s2915_s24 = sshll.u32 %s2908_s26, 3  ;;  %v2586_v5 = vld [vmem:[%s3322_s10 + $0x8] sm:$0xff]   ;;  %v2588_v10 = vld [vmem:[%s3322_s10] sm:$0xff]   ;;  %v1141_v31 = vshrl.u32 %v1140_v23, 7  ;;  %vm1016_vm5 = vcmask 516352   ;;  %vm1021_vm6 = vcmask 778752  }
  0x25   : > { %2409 = vmatprep.subr.bf16.mxu0 %v2709_v1  ;;  %2419 = vmatprep.mubr.msk.bf16.mxu1 %vm2710_vm0, %v2709_v1  ;;  %s744_s3 = scalar_lea.vmem %s3366_s25, %s2915_s24  ;;  %s2937_s30 = scalar_lea.vmem %s3367_s5, %s2908_s26  ;;  %v2327_v15 = vld [vmem:[%s3319_s7] ss:$0 sm:$0xff]  ;;  %vm1161_vm7 = vcmask 57344   ;;  %vm1217_vm10 = vcmask 1043456   ;;  %vm2140_vm11 = vcmask 72768   ;;  %vm2142_vm12 = vcmask 1047624  }
  0x26   : > { %2416 = vmatpush3.bf16.msra.mxu1 %v2585_v3  ;;  %v765_v8 = vld [vmem:[%s744_s3] sm:$0xff]  ;;  %s750_s19 = scalar_lea.vmem %s3368_s21, %s2908_s26  ;;  %s2711_s5 = smov 96   ;;  %v1142_v37 = vsub.s32 0, %v1141_v31  ;;  %vm1490_vm13 = vcmask 130112   ;;  %vm1720_vm14 = vcmask 195712   ;;  %vm1492_vm15 = vcmask 122944  }
  0x27   : > { %2417 = vmatprep.subr.bf16.mxu1 %v2709_v1  ;;  %v836_v9 = vpack.c.bf16 %v765_v8, %v765_v8  ;;  %v766_v11 = vld [vmem:[%s2937_s30] sm:$0x1]  ;;  %s2364_s8 = sshll.u32 %s2908_s26, 4  ;;  %s3369_s21 = sld [smem:[#allocation18_spill]] }
  0x28   : > { %2410 = vmatpush3.bf16.msra.mxu0 %v2584_v2  ;;  %v767_v12 = vld [vmem:[%s750_s19] sm:$0x1]  ;;  %v903_v13 = vpack.c.bf16 %v766_v11, %v766_v11  ;;  %s2716_s19 = smov 56   ;;  %s2719_s25 = smov 48  }
  0x29   : > { %s2921_s29 = scalar_lea.vmem %s3365_s27, %s2915_s24  ;;  %2423 = vmatprep.subr.bf16.mxu0 %v2709_v1  ;;  %v964_v14 = vpack.c.bf16 %v767_v12, %v767_v12  ;;  %v2331_v16 = vld [vmem:[%s3321_s9] ss:$0 sm:$0xff]  ;;  %s2720_s27 = smov 104  }
  0x2a   : > { %v764_v6 = vld [vmem:[%s2921_s29] sm:$0xff]  ;;  %2418 = vmatpush3.bf16.msra.mxu1 %v2587_v4 }
  0x2b   : > { %v768_v7 = vpack.c.bf16 %v764_v6, %v764_v6  ;;  %2431 = vmatprep.subr.bf16.mxu1 %v2709_v1  ;;  %v908_v28 = vld [vmem:[%s3323_s11] sm:$0x1] }
  0x2c   : > { %v3021_v4 = vld [vmem:[%s3370_s1] sm:$0xff] }
  0x2d   : > { %2412 = vmatmul.mubr.msk.bf16.vlgmr.msra.gmra.mxu0 %vm792_vm1, %v768_v7  ;;  %2420 = vmatmul.mubr.msk.bf16.vlgmr.msra.gmra.mxu1 %vm792_vm1, %v836_v9  ;;  %s755_s3 = scalar_lea.vmem %s3369_s21, %s2364_s8  ;;  %s2714_s8 = smov 120  }
  0x2e   : > { %2424 = vmatpush3.bf16.msra.mxu0 %v2586_v5  ;;  %2427 = vmatprep.mubr.msk.bf16.mxu0 %vm2710_vm0, %v2709_v1  ;;  %v3011_v63 = vld [vmem:[%s755_s3] sm:$0xff]  ;;  %v3014_v0 = vld [vmem:[%s755_s3 + $0x8] sm:$0x1]  ;;  %s2717_s21 = smov 80   ;;  %s2718_s3 = smov 112  }
  0x2f   : > { %2425 = vmatprep.subr.bf16.mxu0 %v2709_v1  ;;  %2432 = vmatpush3.bf16.msra.mxu1 %v2586_v5  ;;  %vm1027_vm8 = vcmp.gt.f32.partialorder %v3011_v63, 0.5  ;;  %vm1028_vm9 = vcmp.gt.f32.partialorder %v3014_v0, 0.5 }
  0x30   : > { %2435 = vmatprep.mubr.msk.bf16.mxu1 %vm2710_vm0, %v2709_v1  ;;  %2433 = vmatprep.subr.bf16.mxu1 %v2709_v1 }
  0x32   : > { %2426 = vmatpush3.bf16.msra.mxu0 %v2588_v10 }
  0x33   : > { %2439 = vmatprep.subr.bf16.mxu0 %v2709_v1  ;;  %2434 = vmatpush3.bf16.msra.mxu1 %v2588_v10  ;;  %v3030_v10 = vld [vmem:[%s3370_s1 + $0x8] sm:$0x1] }
  0x34   : > { %2445 = vmatprep.subr.bf16.mxu1 %v2709_v1 }
  0x35   : > { %2428 = vmatmul.mubr.msk.bf16.vlgmr.msra.gmra.mxu0 %vm792_vm1, %v903_v13 }
  0x36   : > { %2441 = vmatprep.mubr.msk.bf16.mxu0 %vm2710_vm0, %v2709_v1  ;;  %2436 = vmatmul.mubr.msk.bf16.vlgmr.msra.gmra.mxu1 %vm792_vm1, %v964_v14 }
  0x37   : > { %2447 = vmatprep.mubr.msk.bf16.mxu1 %vm2710_vm0, %v2709_v1 }
  0xed   : > { %v830_v17 = vpop.f32.mrf.mxu0  ;;  %v897_v19 = vpop.f32.mrf.mxu1 }
  0xee   : > { %v831_v18 = vadd.f32 %v2327_v15, %v830_v17  ;;  %v898_v21 = vadd.f32 %v2331_v16, %v897_v19 }
  0xef   : > { %v2413_v20 = vpop.f32.mrf.mxu0  ;;  %v2421_v22 = vpop.f32.mrf.mxu1 }
  0xf0   : > { %1009 = vst.msk [vmem:[#allocation2] sm:$0xff] %vm1008_vm2, %v831_v18  ;;  %v2969_v25 = vpack.c.bf16 %v898_v21, %v898_v21  ;;  %vm1950_vm2 = vcmask 261312  }
  0xf1   : > { %v833_v24 = vpop.f32.mrf.mxu0  ;;  %v900_v26 = vpop.f32.mrf.mxu1 }
  0xf2   : > { %1085 = vrot.lane.b32.xlu1 %v2969_v25, %s2711_s5  ;;  %v1038_v29 = vsel %vm1033_vm3, %v2969_v25, 0 }
  0xf3   : > { %v2414_v27 = vpop.f32.mrf.mxu0  ;;  %v2422_v30 = vpop.f32.mrf.mxu1  ;;  %2440 = vmatpush3.bf16.xpose.msra.mxu0 %v1038_v29 }
  0xf4   : > { %2451 = vmatprep.subr.bf16.mxu0 %v2709_v1 }
  0xf5   : > { %v958_v32 = vpop.f32.mrf.mxu0 }
  0xf6   : > { %v959_v33 = vadd.f32 %v958_v32, %v908_v28  ;;  %v1002_v35 = vpop.f32.mrf.mxu1 }
  0xf7   : > { %v2429_v34 = vpop.f32.mrf.mxu0  ;;  %v1003_v36 = vadd.f32 %v1002_v35, %v908_v28  ;;  %v1023_v48 = vld [vmem:[#allocation2] sm:$0xff] }
  0xf8   : > { %1013 = vrot.lane.b32.xlu0 %v959_v33, %s2712_s2  ;;  %1011 = vst.msk [vmem:[#allocation2 + $0x8] sm:$0x1] %vm1010_vm4, %v959_v33  ;;  %v2437_v39 = vpop.f32.mrf.mxu1 }
  0xf9   : > { %v961_v38 = vpop.f32.mrf.mxu0  ;;  %v2980_v42 = vrot.slane %v1003_v36, %v1142_v37 }
  0xfa   : > { %v1005_v41 = vpop.f32.mrf.mxu1 }
  0xfb   : > { %v2430_v40 = vpop.f32.mrf.mxu0 }
  0xfc   : > { %1018 = vrot.lane.b32.xlu0 %v959_v33, %s2713_s0  ;;  %v2438_v43 = vpop.f32.mrf.mxu1 }
 0x100   : > { %1145 = vrot.lane.b32.xlu0 %v2980_v42, %s2712_s2  ;;  %s2722_s2 = smov 40  }
 0x164   : > { %v1086_v44 = vpop.permute.xlu1 %1085 }
 0x165   : > { %v1091_v45 = vsel %vm1033_vm3, %v1086_v44, 0 }
 0x166   : > { %2446 = vmatpush3.bf16.xpose.msra.mxu1 %v1091_v45 }
 0x167   : > { %2457 = vmatprep.subr.bf16.mxu1 %v2709_v1 }
 0x16a   : > { %v1014_v46 = vpop.permute.xlu0 %1013 }
 0x16b   : > { %1017 = vst.msk [vmem:[#allocation2 + $0x8] sm:$0x1] %vm1016_vm5, %v1014_v46 }
 0x16e   : > { %v1019_v47 = vpop.permute.xlu0 %1018 }
 0x16f   : > { %1022 = vst.msk [vmem:[#allocation2 + $0x8] sm:$0x1] %vm1021_vm6, %v1019_v47 }
 0x172   : > { %v1146_v49 = vpop.permute.xlu0 %1145 }
 0x173   : > { %v2996_v53 = vmul.f32 %v1146_v49, %v1023_v48 }
 0x176   : > { %v1024_v50 = vld [vmem:[#allocation2 + $0x8] sm:$0x1] }
 0x177   : > { %v2986_v51 = vpack.c.bf16 %v1024_v50, %v1023_v48  ;;  %v2988_v52 = vmul.f32 %v1146_v49, %v1024_v50 }
 0x179   : > { %1154 = vrot.lane.b32.xlu0 %v2988_v52, %s2713_s0  ;;  %1082 = vrot.lane.b32.xlu1 %v2986_v51, %s2711_s5  ;;  %s2721_s5 = smov 72  }
 0x17a   : > { %2442 = vmatmul.mubr.msk.bf16.vlgmr.msra.gmra.mxu0 %vm1033_vm3, %v2986_v51 }
 0x17b   : > { %2453 = vmatprep.mubr.msk.bf16.mxu0 %vm2710_vm0, %v2709_v1 }
 0x17d   : > { %1152 = vrot.lane.b32.xlu1 %v2996_v53, %s2713_s0 }
 0x1eb   : > { %v1155_v54 = vpop.permute.xlu0 %1154  ;;  %v1083_v55 = vpop.permute.xlu1 %1082 }
 0x1ec   : > { %2448 = vmatmul.mubr.msk.bf16.vlgmr.msra.gmra.mxu1 %vm1033_vm3, %v1083_v55  ;;  %v1162_v56 = vsel %vm1161_vm7, %v1155_v54, 0.0 }
 0x1ed   : > { %1163 = vadd.xlane.f32.xlu0 %v1162_v56  ;;  %2459 = vmatprep.mubr.msk.bf16.mxu1 %vm2710_vm0, %v2709_v1 }
 0x1ef   : > { %v1153_v57 = vpop.permute.xlu1 %1152 }
 0x1f0   : > { %v1158_v58 = vsel %vm1033_vm3, %v1153_v57, 0.0 }
 0x1f1   : > { %1159 = vadd.xlane.f32.xlu1 %v1158_v58 }
 0x23a   : > { %v1074_v59 = vpop.f32.mrf.mxu0 }
 0x23c   : > { %v2443_v60 = vpop.f32.mrf.mxu0 }
 0x23e   : > { %v1077_v61 = vpop.f32.mrf.mxu0 }
 0x240   : > { %v2444_v62 = vpop.f32.mrf.mxu0 }
 0x276   : > { %v1164_v16 = vpop.xlane.xlu0 %1163 }
 0x277   : > { %v1166_v21 = vmul.f32 0.35355338, %v1164_v16 }
 0x27a   : > { %v1160_v17 = vpop.xlane.xlu1 %1159 }
 0x27b   : > { %v1165_v18 = vmul.f32 0.35355338, %v1160_v17 }
 0x2ac   : > { %v1127_v2 = vpop.f32.mrf.mxu1 }
 0x2ad   : > { %v1134_v3 = vsel %vm1027_vm8, %v1074_v59, %v1127_v2 }
 0x2ae   : > { %v1136_v5 = vmul.f32 0.35355338, %v1134_v3  ;;  %v2449_v6 = vpop.f32.mrf.mxu1 }
 0x2b0   : > { %v1130_v7 = vpop.f32.mrf.mxu1  ;;  %v1138_v8 = vadd.f32 %v1136_v5, %v3021_v4 }
 0x2b1   : > { %v1135_v9 = vsel %vm1028_vm9, %v1077_v61, %v1130_v7 }
 0x2b2   : > { %v1137_v11 = vmul.f32 0.35355338, %v1135_v9  ;;  %v2450_v12 = vpop.f32.mrf.mxu1  ;;  %v1167_v13 = vsel %vm1033_vm3, %v1138_v8, -inf }
 0x2b3   : > { %1168 = vmax.xlane.f32.xlu0 %v1167_v13 }
 0x2b4   : > { %v1139_v14 = vadd.f32 %v1137_v11, %v3030_v10 }
 0x2b6   : > { %v1170_v15 = vsel %vm1161_vm7, %v1139_v14, -inf }
 0x2b7   : > { %1171 = vmax.xlane.f32.xlu1 %v1170_v15 }
 0x2c8   : > { %1268 = vrot.lane.b32.xlu1 %v2969_v25, %s2714_s8 }
 0x33c   : > { %v1169_v19 = vpop.xlane.xlu0 %1168 }
 0x33d   : > { %v1173_v20 = vmax.f32 %v1169_v19, %v1165_v18 }
 0x33f   : > { %v1175_v22 = vsub.f32 %v1138_v8, %v1173_v20  ;;  %v1181_v23 = vsub.f32 %v1165_v18, %v1173_v20 }
 0x340   : > { %v1172_v24 = vpop.xlane.xlu1 %1171 }
 0x341   : > { %v1177_v26 = vmul.f32 1.442695, %v1175_v22  ;;  %v1174_v27 = vmax.f32 %v1172_v24, %v1166_v21  ;;  %v1183_v37 = vmul.f32 1.442695, %v1181_v23 }
 0x343   : > { %2593 = vpow2.f32 %v1177_v26  ;;  %v1176_v28 = vsub.f32 %v1139_v14, %v1174_v27  ;;  %v1182_v29 = vsub.f32 %v1166_v21, %v1174_v27 }
 0x344   : > { %v1269_v30 = vpop.permute.xlu1 %1268 }
 0x345   : > { %v1179_v31 = vmul.f32 1.442695, %v1176_v28  ;;  %v1274_v32 = vsel %vm1033_vm3, %v1269_v30, 0  ;;  %v1185_v38 = vmul.f32 1.442695, %v1182_v29 }
 0x346   : > { %2458 = vmatpush3.bf16.xpose.msra.mxu1 %v1274_v32 }
 0x347   : > { %2595 = vpow2.f32 %v1179_v31  ;;  %2469 = vmatprep.subr.bf16.mxu1 %v2709_v1 }
 0x348   : > { %2597 = vpow2.f32 %v1183_v37 }
 0x349   : > { %2599 = vpow2.f32 %v1185_v38 }
 0x350   : > { %v2594_v33 = vpop.eup %2593 }
 0x351   : > { %v1187_v34 = vsel %vm1033_vm3, %v2594_v33, 0.0 }
 0x352   : > { %1188 = vadd.xlane.f32.xlu0 %v1187_v34 }
 0x354   : > { %v2596_v35 = vpop.eup %2595 }
 0x355   : > { %v1190_v36 = vsel %vm1161_vm7, %v2596_v35, 0.0  ;;  %v2598_v39 = vpop.eup %2597 }
 0x356   : > { %1191 = vadd.xlane.f32.xlu1 %v1190_v36  ;;  %v2600_v43 = vpop.eup %2599 }
 0x367   : > { %1319 = vrot.lane.b32.xlu1 %v2969_v25, %s2715_s23 }
 0x368   : > { %1204 = vrot.lane.b32.xlu0 %v2969_v25, %s2713_s0 }
 0x36b   : > { %1317 = vrot.lane.b32.xlu1 %v2986_v51, %s2715_s23  ;;  %s2724_s23 = smov 16  }
 0x36c   : > { %1266 = vrot.lane.b32.xlu0 %v2986_v51, %s2714_s8  ;;  %s2723_s8 = smov 8  }
 0x36f   : > { %1376 = vrot.lane.b32.xlu1 %v2988_v52, %s2716_s19 }
 0x370   : > { %1374 = vrot.lane.b32.xlu0 %v2996_v53, %s2716_s19 }
 0x3db   : > { %v1189_v40 = vpop.xlane.xlu0 %1188 }
 0x3dc   : > { %v1193_v41 = vadd.f32 %v2598_v39, %v1189_v40 }
 0x3de   : > { %2601 = vrcp.f32 %v1193_v41 }
 0x3df   : > { %v1205_v44 = vpop.permute.xlu0 %1204  ;;  %v1192_v45 = vpop.xlane.xlu1 %1191 }
 0x3e0   : > { %v1219_v46 = vsel %vm1217_vm10, %v1205_v44, 0  ;;  %v1194_v47 = vadd.f32 %v2600_v43, %v1192_v45 }
 0x3e1   : > { %2452 = vmatpush3.bf16.msra.mxu0 %v1219_v46 }
 0x3e2   : > { %2603 = vrcp.f32 %v1194_v47  ;;  %2463 = vmatprep.subr.bf16.mxu0 %v2709_v1 }
 0x3e3   : > { %v1267_v48 = vpop.permute.xlu0 %1266  ;;  %v1320_v49 = vpop.permute.xlu1 %1319 }
 0x3e4   : > { %2460 = vmatmul.mubr.msk.bf16.vlgmr.msra.gmra.mxu1 %vm1033_vm3, %v1267_v48  ;;  %v1325_v5 = vsel %vm1033_vm3, %v1320_v49, 0 }
 0x3e5   : > { %2471 = vmatprep.mubr.msk.bf16.mxu1 %vm2710_vm0, %v2709_v1 }
 0x3e7   : > { %v1375_v50 = vpop.permute.xlu0 %1374  ;;  %v1318_v54 = vpop.permute.xlu1 %1317 }
 0x3e8   : > { %v1380_v55 = vsel %vm1033_vm3, %v1375_v50, 0.0 }
 0x3e9   : > { %1381 = vadd.xlane.f32.xlu0 %v1380_v55 }
 0x3eb   : > { %v2602_v56 = vpop.eup %2601  ;;  %v1377_v57 = vpop.permute.xlu1 %1376 }
 0x3ec   : > { %v1383_v58 = vsel %vm1161_vm7, %v1377_v57, 0.0  ;;  %v3058_v59 = vmul.f32 %v2602_v56, %v2598_v39  ;;  %v3060_v61 = vmul.f32 %v2602_v56, %v2594_v33 }
 0x3ed   : > { %1384 = vadd.xlane.f32.xlu1 %v1383_v58 }
 0x3ef   : > { %v2604_v60 = vpop.eup %2603 }
 0x3f0   : > { %v1198_v62 = vmul.f32 %v2604_v60, %v2596_v35  ;;  %v3062_v2 = vmul.f32 %v2604_v60, %v2600_v43 }
 0x3f2   : > { %v1201_v3 = vpack.c.bf16 %v1198_v62, %v3060_v61 }
 0x3f4   : > { %2454 = vmatmul.mubr.msk.bf16.vlgmr.msra.gmra.mxu0 %vm1033_vm3, %v1201_v3 }
 0x3f5   : > { %2464 = vmatpush3.bf16.xpose.msra.mxu0 %v1325_v5  ;;  %2465 = vmatprep.mubr.msk.bf16.mxu0 %vm2710_vm0, %v2709_v1 }
 0x3f6   : > { %2475 = vmatprep.subr.bf16.mxu0 %v2709_v1 }
 0x3fc   : > { %2466 = vmatmul.mubr.msk.bf16.vlgmr.msra.gmra.mxu0 %vm1033_vm3, %v1318_v54 }
 0x3fd   : > { %2477 = vmatprep.mubr.msk.bf16.mxu0 %vm2710_vm0, %v2709_v1 }
 0x472   : > { %v1382_v28 = vpop.xlane.xlu0 %1381 }
 0x473   : > { %v1386_v29 = vmul.f32 0.35355338, %v1382_v28 }
 0x476   : > { %v1385_v30 = vpop.xlane.xlu1 %1384 }
 0x477   : > { %v1387_v33 = vmul.f32 0.35355338, %v1385_v30 }
 0x4a4   : > { %v1310_v6 = vpop.f32.mrf.mxu1 }
 0x4a6   : > { %v2461_v7 = vpop.f32.mrf.mxu1 }
 0x4a8   : > { %v1313_v8 = vpop.f32.mrf.mxu1 }
 0x4aa   : > { %v2462_v9 = vpop.f32.mrf.mxu1 }
 0x4b4   : > { %v3073_v11 = vpop.f32.mrf.mxu0 }
 0x4b6   : > { %v2455_v12 = vpop.f32.mrf.mxu0 }
 0x4b8   : > { %v3075_v13 = vpop.f32.mrf.mxu0 }
 0x4ba   : > { %v2456_v14 = vpop.f32.mrf.mxu0 }
 0x4bc   : > { %v1361_v15 = vpop.f32.mrf.mxu0 }
 0x4bd   : > { %v1368_v16 = vsel %vm1027_vm8, %v1310_v6, %v1361_v15 }
 0x4be   : > { %v1370_v17 = vmul.f32 0.35355338, %v1368_v16  ;;  %v2467_v18 = vpop.f32.mrf.mxu0 }
 0x4c0   : > { %v1364_v19 = vpop.f32.mrf.mxu0  ;;  %v1372_v20 = vadd.f32 %v1370_v17, %v3021_v4 }
 0x4c1   : > { %v1369_v21 = vsel %vm1028_vm9, %v1313_v8, %v1364_v19 }
 0x4c2   : > { %v1371_v22 = vmul.f32 0.35355338, %v1369_v21  ;;  %v2468_v23 = vpop.f32.mrf.mxu0  ;;  %v1388_v24 = vsel %vm1033_vm3, %v1372_v20, -inf }
 0x4c3   : > { %1389 = vmax.xlane.f32.xlu0 %v1388_v24 }
 0x4c4   : > { %v1373_v26 = vadd.f32 %v1371_v22, %v3030_v10 }
 0x4c6   : > { %v1391_v27 = vsel %vm1161_vm7, %v1373_v26, -inf }
 0x4c7   : > { %1392 = vmax.xlane.f32.xlu0 %v1391_v27 }
 0x54c   : > { %v1390_v31 = vpop.xlane.xlu0 %1389 }
 0x54d   : > { %v1394_v32 = vmax.f32 %v1390_v31, %v1386_v29 }
 0x54f   : > { %v1396_v34 = vsub.f32 %v1372_v20, %v1394_v32  ;;  %v1402_v35 = vsub.f32 %v1386_v29, %v1394_v32 }
 0x550   : > { %v1393_v36 = vpop.xlane.xlu0 %1392 }
 0x551   : > { %v1398_v37 = vmul.f32 1.442695, %v1396_v34  ;;  %v1395_v38 = vmax.f32 %v1393_v36, %v1387_v33  ;;  %v1404_v47 = vmul.f32 1.442695, %v1402_v35 }
 0x553   : > { %2605 = vpow2.f32 %v1398_v37  ;;  %v1397_v39 = vsub.f32 %v1373_v26, %v1395_v38  ;;  %v1403_v40 = vsub.f32 %v1387_v33, %v1395_v38 }
 0x555   : > { %v1400_v41 = vmul.f32 1.442695, %v1397_v39  ;;  %v1406_v48 = vmul.f32 1.442695, %v1403_v40 }
 0x557   : > { %2607 = vpow2.f32 %v1400_v41 }
 0x558   : > { %2609 = vpow2.f32 %v1404_v47 }
 0x559   : > { %2611 = vpow2.f32 %v1406_v48 }
 0x560   : > { %v2606_v43 = vpop.eup %2605 }
 0x561   : > { %v1408_v44 = vsel %vm1033_vm3, %v2606_v43, 0.0 }
 0x562   : > { %1409 = vadd.xlane.f32.xlu1 %v1408_v44 }
 0x564   : > { %v2608_v45 = vpop.eup %2607 }
 0x565   : > { %v1411_v46 = vsel %vm1161_vm7, %v2608_v45, 0.0  ;;  %v2610_v49 = vpop.eup %2609 }
 0x566   : > { %1412 = vadd.xlane.f32.xlu0 %v1411_v46  ;;  %v2612_v55 = vpop.eup %2611 }
 0x573   : > { %1425 = vrot.lane.b32.xlu1 %v2969_v25, %s2716_s19 }
 0x577   : > { %1549 = vrot.lane.b32.xlu1 %v2969_v25, %s2717_s21 }
 0x57b   : > { %1496 = vrot.lane.b32.xlu1 %v2986_v51, %s2718_s3 }
 0x57c   : > { %1498 = vrot.lane.b32.xlu0 %v2969_v25, %s2718_s3  ;;  %s2361_s3 = sshll.u32 %s2863_s4, 7 }
 0x57f   : > { %1604 = vrot.lane.b32.xlu1 %v2996_v53, %s2719_s25 }
 0x580   : > { %1547 = vrot.lane.b32.xlu0 %v2986_v51, %s2717_s21 }
 0x584   : > { %1606 = vrot.lane.b32.xlu0 %v2988_v52, %s2719_s25 }
 0x5eb   : > { %v1410_v50 = vpop.xlane.xlu1 %1409 }
 0x5ec   : > { %v1414_v54 = vadd.f32 %v2610_v49, %v1410_v50 }
 0x5ee   : > { %2613 = vrcp.f32 %v1414_v54 }
 0x5ef   : > { %v1426_v56 = vpop.permute.xlu1 %1425  ;;  %v1413_v57 = vpop.xlane.xlu0 %1412 }
 0x5f0   : > { %v1439_v58 = vsel %vm1217_vm10, %v1426_v56, 0  ;;  %v1415_v60 = vadd.f32 %v2612_v55, %v1413_v57 }
 0x5f1   : > { %2470 = vmatpush3.bf16.msra.mxu1 %v1439_v58 }
 0x5f2   : > { %2615 = vrcp.f32 %v1415_v60  ;;  %2481 = vmatprep.subr.bf16.mxu1 %v2709_v1 }
 0x5f3   : > { %v1550_v62 = vpop.permute.xlu1 %1549  ;;  %v1499_v3 = vpop.permute.xlu0 %1498 }
 0x5f4   : > { %v1504_v5 = vsel %vm1033_vm3, %v1499_v3, 0  ;;  %v1555_v23 = vsel %vm1033_vm3, %v1550_v62, 0 }
 0x5f5   : > { %2476 = vmatpush3.bf16.xpose.msra.mxu0 %v1504_v5 }
 0x5f6   : > { %2487 = vmatprep.subr.bf16.mxu0 %v2709_v1 }
 0x5f7   : > { %v1497_v6 = vpop.permute.xlu1 %1496  ;;  %v1548_v7 = vpop.permute.xlu0 %1547 }
 0x5fb   : > { %v2614_v8 = vpop.eup %2613  ;;  %v1605_v9 = vpop.permute.xlu1 %1604 }
 0x5fc   : > { %v1607_v12 = vpop.permute.xlu0 %1606  ;;  %2478 = vmatmul.mubr.msk.bf16.vlgmr.msra.gmra.mxu0 %vm1033_vm3, %v1497_v6  ;;  %v1610_v14 = vsel %vm1033_vm3, %v1605_v9, 0.0  ;;  %v3104_v16 = vmul.f32 %v2614_v8, %v2610_v49  ;;  %v3112_v19 = vmul.f32 %v2614_v8, %v2606_v43 }
 0x5fd   : > { %v1613_v15 = vsel %vm1161_vm7, %v1607_v12, 0.0  ;;  %1611 = vadd.xlane.f32.xlu1 %v1610_v14  ;;  %2489 = vmatprep.mubr.msk.bf16.mxu0 %vm2710_vm0, %v2709_v1 }
 0x5fe   : > { %1614 = vadd.xlane.f32.xlu0 %v1613_v15  ;;  %v3110_v17 = vadd.f32 %v3104_v16, %v3058_v59 }
 0x5ff   : > { %v2616_v18 = vpop.eup %2615 }
 0x600   : > { %v1419_v20 = vmul.f32 %v2616_v18, %v2608_v45  ;;  %v3114_v21 = vmul.f32 %v2616_v18, %v2612_v55 }
 0x602   : > { %v1422_v22 = vpack.c.bf16 %v1419_v20, %v3112_v19 }
 0x604   : > { %2472 = vmatmul.mubr.msk.bf16.vlgmr.msra.gmra.mxu1 %vm1033_vm3, %v1422_v22 }
 0x605   : > { %2482 = vmatpush3.bf16.xpose.msra.mxu1 %v1555_v23  ;;  %2483 = vmatprep.mubr.msk.bf16.mxu1 %vm2710_vm0, %v2709_v1 }
 0x606   : > { %2493 = vmatprep.subr.bf16.mxu1 %v2709_v1 }
 0x60c   : > { %2484 = vmatmul.mubr.msk.bf16.vlgmr.msra.gmra.mxu1 %vm1033_vm3, %v1548_v7 }
 0x60d   : > { %2495 = vmatprep.mubr.msk.bf16.mxu1 %vm2710_vm0, %v2709_v1 }
 0x686   : > { %v1612_v46 = vpop.xlane.xlu1 %1611 }
 0x687   : > { %v1615_v47 = vpop.xlane.xlu0 %1614  ;;  %v1616_v48 = vmul.f32 0.35355338, %v1612_v46 }
 0x688   : > { %v1617_v54 = vmul.f32 0.35355338, %v1615_v47 }
 0x6bc   : > { %v1540_v24 = vpop.f32.mrf.mxu0 }
 0x6be   : > { %v2479_v26 = vpop.f32.mrf.mxu0 }
 0x6c0   : > { %v1543_v27 = vpop.f32.mrf.mxu0 }
 0x6c2   : > { %v2480_v28 = vpop.f32.mrf.mxu0 }
 0x6c4   : > { %v3125_v29 = vpop.f32.mrf.mxu1 }
 0x6c6   : > { %v2473_v30 = vpop.f32.mrf.mxu1 }
 0x6c8   : > { %v3127_v31 = vpop.f32.mrf.mxu1 }
 0x6ca   : > { %v2474_v32 = vpop.f32.mrf.mxu1 }
 0x6cc   : > { %v1591_v33 = vpop.f32.mrf.mxu1 }
 0x6cd   : > { %v1598_v34 = vsel %vm1027_vm8, %v1540_v24, %v1591_v33 }
 0x6ce   : > { %v1600_v35 = vmul.f32 0.35355338, %v1598_v34  ;;  %v2485_v36 = vpop.f32.mrf.mxu1 }
 0x6cf   : > { %v1494_v36 = vadd.f32 %v3112_v19, %v3060_v61 }
 0x6d0   : > { %v1594_v37 = vpop.f32.mrf.mxu1  ;;  %v1602_v38 = vadd.f32 %v1600_v35, %v3021_v4 }
 0x6d1   : > { %v1599_v39 = vsel %vm1028_vm9, %v1543_v27, %v1594_v37 }
 0x6d2   : > { %v1601_v40 = vmul.f32 0.35355338, %v1599_v39  ;;  %v2486_v41 = vpop.f32.mrf.mxu1  ;;  %v1618_v43 = vsel %vm1033_vm3, %v1602_v38, -inf }
 0x6d3   : > { %1619 = vmax.xlane.f32.xlu0 %v1618_v43 }
 0x6d4   : > { %v1603_v44 = vadd.f32 %v1601_v40, %v3030_v10 }
 0x6d6   : > { %v1621_v45 = vsel %vm1161_vm7, %v1603_v44, -inf }
 0x6d7   : > { %1622 = vmax.xlane.f32.xlu1 %v1621_v45 }
 0x6e8   : > { %1728 = vrot.lane.b32.xlu1 %v2969_v25, %s2720_s27 }
 0x75c   : > { %v1620_v49 = vpop.xlane.xlu0 %1619 }
 0x75d   : > { %v1624_v50 = vmax.f32 %v1620_v49, %v1616_v48 }
 0x75f   : > { %v1626_v55 = vsub.f32 %v1602_v38, %v1624_v50  ;;  %v1632_v56 = vsub.f32 %v1616_v48, %v1624_v50 }
 0x760   : > { %v1623_v57 = vpop.xlane.xlu1 %1622 }
 0x761   : > { %v1628_v58 = vmul.f32 1.442695, %v1626_v55  ;;  %v1625_v60 = vmax.f32 %v1623_v57, %v1617_v54  ;;  %v1634_v15 = vmul.f32 1.442695, %v1632_v56 }
 0x763   : > { %2617 = vpow2.f32 %v1628_v58  ;;  %v1627_v62 = vsub.f32 %v1603_v44, %v1625_v60  ;;  %v1633_v3 = vsub.f32 %v1617_v54, %v1625_v60 }
 0x764   : > { %v1729_v5 = vpop.permute.xlu1 %1728 }
 0x765   : > { %v1630_v6 = vmul.f32 1.442695, %v1627_v62  ;;  %v1734_v7 = vsel %vm1033_vm3, %v1729_v5, 0  ;;  %v1636_v18 = vmul.f32 1.442695, %v1633_v3 }
 0x766   : > { %2494 = vmatpush3.bf16.xpose.msra.mxu1 %v1734_v7 }
 0x767   : > { %2619 = vpow2.f32 %v1630_v6  ;;  %2505 = vmatprep.subr.bf16.mxu1 %v2709_v1 }
 0x768   : > { %2621 = vpow2.f32 %v1634_v15 }
 0x769   : > { %2623 = vpow2.f32 %v1636_v18 }
 0x770   : > { %v2618_v8 = vpop.eup %2617 }
 0x771   : > { %v1638_v9 = vsel %vm1033_vm3, %v2618_v8, 0.0 }
 0x772   : > { %1639 = vadd.xlane.f32.xlu0 %v1638_v9 }
 0x774   : > { %v2620_v12 = vpop.eup %2619 }
 0x775   : > { %v1641_v14 = vsel %vm1161_vm7, %v2620_v12, 0.0  ;;  %v2622_v20 = vpop.eup %2621 }
 0x776   : > { %1642 = vadd.xlane.f32.xlu1 %v1641_v14  ;;  %v2624_v24 = vpop.eup %2623 }
 0x787   : > { %1779 = vrot.lane.b32.xlu1 %v2969_v25, %s2721_s5 }
 0x788   : > { %1655 = vrot.lane.b32.xlu0 %v2969_v25, %s2719_s25 }
 0x78b   : > { %1777 = vrot.lane.b32.xlu1 %v2986_v51, %s2721_s5 }
 0x78c   : > { %1726 = vrot.lane.b32.xlu0 %v2986_v51, %s2720_s27 }
 0x78f   : > { %1836 = vrot.lane.b32.xlu1 %v2988_v52, %s2722_s2 }
 0x790   : > { %1834 = vrot.lane.b32.xlu0 %v2996_v53, %s2722_s2 }
 0x7fb   : > { %v1640_v22 = vpop.xlane.xlu0 %1639 }
 0x7fc   : > { %v1644_v23 = vadd.f32 %v2622_v20, %v1640_v22 }
 0x7fe   : > { %2625 = vrcp.f32 %v1644_v23 }
 0x7ff   : > { %v1656_v26 = vpop.permute.xlu0 %1655  ;;  %v1643_v27 = vpop.xlane.xlu1 %1642 }
 0x800   : > { %v1669_v51 = vsel %vm1217_vm10, %v1656_v26, 0  ;;  %v1645_v28 = vadd.f32 %v2624_v24, %v1643_v27 }
 0x801   : > { %2488 = vmatpush3.bf16.msra.mxu0 %v1669_v51 }
 0x802   : > { %2627 = vrcp.f32 %v1645_v28  ;;  %2499 = vmatprep.subr.bf16.mxu0 %v2709_v1 }
 0x803   : > { %v1727_v52 = vpop.permute.xlu0 %1726  ;;  %v1780_v53 = vpop.permute.xlu1 %1779 }
 0x804   : > { %2496 = vmatmul.mubr.msk.bf16.vlgmr.msra.gmra.mxu1 %vm1033_vm3, %v1727_v52  ;;  %v1785_v47 = vsel %vm1033_vm3, %v1780_v53, 0 }
 0x805   : > { %2507 = vmatprep.mubr.msk.bf16.mxu1 %vm2710_vm0, %v2709_v1 }
 0x807   : > { %v1835_v30 = vpop.permute.xlu0 %1834  ;;  %v1778_v32 = vpop.permute.xlu1 %1777 }
 0x808   : > { %v1840_v33 = vsel %vm1033_vm3, %v1835_v30, 0.0 }
 0x809   : > { %1841 = vadd.xlane.f32.xlu0 %v1840_v33 }
 0x80b   : > { %v2626_v34 = vpop.eup %2625  ;;  %v1837_v35 = vpop.permute.xlu1 %1836 }
 0x80c   : > { %v1843_v37 = vsel %vm1161_vm7, %v1837_v35, 0.0  ;;  %v1648_v38 = vmul.f32 %v2626_v34, %v2618_v8  ;;  %v1650_v39 = vmul.f32 %v2626_v34, %v2622_v20  ;;  %v1423_v34 = vmul.f32 %v3104_v16, %v2980_v42 }
 0x80d   : > { %1844 = vadd.xlane.f32.xlu1 %v1843_v37 }
 0x80e   : > { %v3162_v40 = vadd.f32 %v1648_v38, %v1494_v36  ;;  %v3165_v41 = vadd.f32 %v1650_v39, %v3110_v17  ;;  %v1653_v33 = vmul.f32 %v1650_v39, %v2980_v42 }
 0x80f   : > { %v2628_v43 = vpop.eup %2627 }
 0x810   : > { %v1649_v44 = vmul.f32 %v2628_v43, %v2620_v12  ;;  %v1651_v45 = vmul.f32 %v2628_v43, %v2624_v24 }
 0x812   : > { %v1652_v46 = vpack.c.bf16 %v1649_v44, %v1648_v38  ;;  %v1654_v35 = vmul.f32 %v1651_v45, %v2980_v42 }
 0x814   : > { %2490 = vmatmul.mubr.msk.bf16.vlgmr.msra.gmra.mxu0 %vm1033_vm3, %v1652_v46 }
 0x815   : > { %2500 = vmatpush3.bf16.xpose.msra.mxu0 %v1785_v47  ;;  %2501 = vmatprep.mubr.msk.bf16.mxu0 %vm2710_vm0, %v2709_v1 }
 0x816   : > { %2511 = vmatprep.subr.bf16.mxu0 %v2709_v1 }
 0x81c   : > { %2502 = vmatmul.mubr.msk.bf16.vlgmr.msra.gmra.mxu0 %vm1033_vm3, %v1778_v32  ;;  %v1424_v32 = vmul.f32 %v3114_v21, %v2980_v42 }
 0x81d   : > { %2515 = vmatprep.mubr.msk.bf16.mxu0 %vm2710_vm0, %v2709_v1 }
 0x892   : > { %v1842_v63 = vpop.xlane.xlu0 %1841 }
 0x893   : > { %v1846_v14 = vmul.f32 0.35355338, %v1842_v63 }
 0x896   : > { %v1845_v15 = vpop.xlane.xlu1 %1844 }
 0x897   : > { %v1847_v22 = vmul.f32 0.35355338, %v1845_v15 }
 0x8c4   : > { %v1770_v61 = vpop.f32.mrf.mxu1 }
 0x8c6   : > { %v2497_v17 = vpop.f32.mrf.mxu1 }
 0x8c8   : > { %v1773_v19 = vpop.f32.mrf.mxu1 }
 0x8ca   : > { %v2498_v48 = vpop.f32.mrf.mxu1 }
 0x8d4   : > { %v3175_v49 = vpop.f32.mrf.mxu0 }
 0x8d6   : > { %v2491_v50 = vpop.f32.mrf.mxu0 }
 0x8d8   : > { %v3177_v54 = vpop.f32.mrf.mxu0 }
 0x8da   : > { %v2492_v55 = vpop.f32.mrf.mxu0 }
 0x8dc   : > { %v1821_v56 = vpop.f32.mrf.mxu0 }
 0x8dd   : > { %v1828_v57 = vsel %vm1027_vm8, %v1770_v61, %v1821_v56 }
 0x8de   : > { %v1830_v58 = vmul.f32 0.35355338, %v1828_v57  ;;  %v2503_v60 = vpop.f32.mrf.mxu0 }
 0x8e0   : > { %v1824_v62 = vpop.f32.mrf.mxu0  ;;  %v1832_v3 = vadd.f32 %v1830_v58, %v3021_v4 }
 0x8e1   : > { %v1829_v5 = vsel %vm1028_vm9, %v1773_v19, %v1824_v62  ;;  %v1202_v62 = vmul.f32 %v3058_v59, %v2980_v42 }
 0x8e2   : > { %v1831_v6 = vmul.f32 0.35355338, %v1829_v5  ;;  %v2504_v7 = vpop.f32.mrf.mxu0  ;;  %v1848_v8 = vsel %vm1033_vm3, %v1832_v3, -inf }
 0x8e3   : > { %1849 = vmax.xlane.f32.xlu0 %v1848_v8 }
 0x8e4   : > { %v1833_v9 = vadd.f32 %v1831_v6, %v3030_v10  ;;  %v1203_v6 = vmul.f32 %v3062_v2, %v2980_v42 }
 0x8e6   : > { %v1851_v12 = vsel %vm1161_vm7, %v1833_v9, -inf }
 0x8e7   : > { %1852 = vmax.xlane.f32.xlu0 %v1851_v12 }
 0x96c   : > { %v1850_v18 = vpop.xlane.xlu0 %1849 }
 0x96d   : > { %v1854_v20 = vmax.f32 %v1850_v18, %v1846_v14 }
 0x96f   : > { %v1856_v4 = vsub.f32 %v1832_v3, %v1854_v20  ;;  %v1862_v23 = vsub.f32 %v1846_v14, %v1854_v20  ;;  %v2591_v20 = vld [vmem:[%s3326_s14 + $0x8] sm:$0xff]  }
 0x970   : > { %v1853_v0 = vpop.xlane.xlu0 %1852 }
 0x971   : > { %v1858_v24 = vmul.f32 1.442695, %v1856_v4  ;;  %v1855_v26 = vmax.f32 %v1853_v0, %v1847_v22  ;;  %v1864_v36 = vmul.f32 1.442695, %v1862_v23 }
 0x973   : > { %2629 = vpow2.f32 %v1858_v24  ;;  %v1857_v27 = vsub.f32 %v1833_v9, %v1855_v26  ;;  %v1863_v51 = vsub.f32 %v1847_v22, %v1855_v26  ;;  %v2592_v22 = vld [vmem:[%s3326_s14] sm:$0xff]  }
 0x975   : > { %v1860_v28 = vmul.f32 1.442695, %v1857_v27 }
 0x977   : > { %2631 = vpow2.f32 %v1860_v28 }
 0x978   : > { %2633 = vpow2.f32 %v1864_v36  ;;  %v2645_v36 = vld [vmem:[%s2921_s29] sm:$0xff]  ;;  %s734_s29 = sand.u32 1, %s2699_s28  }
 0x980   : > { %v2630_v10 = vpop.eup %2629 }
 0x981   : > { %v1868_v52 = vsel %vm1033_vm3, %v2630_v10, 0.0 }
 0x982   : > { %1869 = vadd.xlane.f32.xlu1 %v1868_v52 }
 0x984   : > { %v2632_v53 = vpop.eup %2631 }
 0x985   : > { %v1871_v30 = vsel %vm1161_vm7, %v2632_v53, 0.0  ;;  %v2634_v21 = vpop.eup %2633 }
 0x986   : > { %1872 = vadd.xlane.f32.xlu0 %v1871_v30  ;;  %v2351_v30 = vld [vmem:[%s3325_s13] ss:$0 sm:$0xff] }
 0x993   : > { %1885 = vrot.lane.b32.xlu1 %v2969_v25, %s2722_s2  ;;  %v1866_v25 = vmul.f32 1.442695, %v1863_v51 }
 0x995   : > { %2635 = vpow2.f32 %v1866_v25 }
 0x997   : > { %1431 = vrot.lane.b32.xlu1 %v1424_v32, %s2716_s19 }
 0x99b   : > { %1659 = vrot.lane.b32.xlu1 %v1653_v33, %s2719_s25 }
 0x99c   : > { %1429 = vrot.lane.b32.xlu0 %v1423_v34, %s2716_s19  ;;  %s2726_s19 = smov [#allocation5]  }
 0x99d   : > { %s2651_s21 = sshll.u32 %s2726_s19, 4  ;;  %s2652_s21 = int_to_ptr.vmem [resolvable:$false] %s2651_s21 }
 0x99e   : > { %s2653_s1 = scalar_lea.vmem %s2652_s21, 256 }
 0x9a0   : > { %1661 = vrot.lane.b32.xlu0 %v1654_v35, %s2719_s25  ;;  %v2062_v35 = vld [vmem:[%s3327_s15] sm:$0x1] }
 0x9a2   : > { %v2636_v39 = vpop.eup %2635 }
 0xa0b   : > { %v1870_v37 = vpop.xlane.xlu1 %1869 }
 0xa0c   : > { %v1874_v38 = vadd.f32 %v2634_v21, %v1870_v37 }
 0xa0e   : > { %2637 = vrcp.f32 %v1874_v38 }
 0xa0f   : > { %v1886_v43 = vpop.permute.xlu1 %1885  ;;  %v1873_v44 = vpop.xlane.xlu0 %1872 }
 0xa10   : > { %v1899_v16 = vsel %vm1217_vm10, %v1886_v43, 0  ;;  %v1875_v46 = vadd.f32 %v2636_v39, %v1873_v44 }
 0xa11   : > { %2506 = vmatpush3.bf16.msra.mxu1 %v1899_v16  ;;  %v2646_v16 = vld [vmem:[%s2937_s30] sm:$0x1]  ;;  %s2321_s30 = sshll.u32 %s734_s29, 3 }
 0xa12   : > { %2639 = vrcp.f32 %v1875_v46  ;;  %2519 = vmatprep.subr.bf16.mxu1 %v2709_v1  ;;  %s736_s25 = scalar_lea.vmem [#allocation5], %s2321_s30 }
 0xa13   : > { %v1432_v60 = vpop.permute.xlu1 %1431  ;;  %v1430_v5 = vpop.permute.xlu0 %1429  ;;  %s2173_s27 = sshll.u32 %s736_s25, 4  ;;  %s2174_s27 = int_to_ptr.vmem [resolvable:$true] %s2173_s27 }
 0xa14   : > { %v1479_v7 = vadd.f32 %v3127_v31, %v1432_v60  ;;  %p2654_p0 = scmp.lt.s32.totalorder %s2174_s27, %s2652_s21 }
 0xa17   : > { %v1660_v59 = vpop.permute.xlu1 %1659  ;;  %v1662_v9 = vpop.permute.xlu0 %1661 }
 0xa18   : > { %v1706_v8 = vadd.f32 %v3175_v49, %v1660_v59 }
 0xa1b   : > { %v2638_v45 = vpop.eup %2637 }
 0xa1c   : > { %v1878_v47 = vmul.f32 %v2638_v45, %v2630_v10  ;;  %v1880_v61 = vmul.f32 %v2638_v45, %v2634_v21 }
 0xa1e   : > { %v1954_v17 = vadd.f32 %v1878_v47, %v3162_v40  ;;  %v1883_v19 = vmul.f32 %v1880_v61, %v2980_v42  ;;  %v1955_v48 = vadd.f32 %v1880_v61, %v3165_v41  ;;  %v1476_v41 = vadd.f32 %v3125_v29, %v1430_v5 }
 0xa1f   : > { %v2640_v50 = vpop.eup %2639  ;;  %v1709_v29 = vadd.f32 %v3177_v54, %v1662_v9 }
 0xa20   : > { %v2137_v55 = vmul.f32 0.25, %v1954_v17  ;;  %1889 = vrot.lane.b32.xlu1 %v1883_v19, %s2722_s2  ;;  %v2139_v56 = vmul.f32 0.25, %v1955_v48  ;;  %v1881_v57 = vmul.f32 %v2640_v50, %v2636_v39  ;;  %v1879_v58 = vmul.f32 %v2640_v50, %v2632_v53 }
 0xa22   : > { %2138 = vst.msk [vmem:[#allocation4] sm:$0xff] %vm1033_vm3, %v2137_v55  ;;  %v1884_v40 = vmul.f32 %v1881_v57, %v2980_v42  ;;  %v1882_v3 = vpack.c.bf16 %v1879_v58, %v1878_v47 }
 0xa23   : > { %2141 = vst.msk [vmem:[#allocation4] sm:$0xff] %vm2140_vm11, %v2139_v56 }
 0xa24   : > { %1208 = vrot.lane.b32.xlu1 %v1202_v62, %s2713_s0  ;;  %2143 = vst.msk [vmem:[#allocation4] sm:$0xff] %vm2142_vm12, %v2709_v1  ;;  %1891 = vrot.lane.b32.xlu0 %v1884_v40, %s2722_s2 }
 0xa25   : > { %2508 = vmatmul.mubr.msk.bf16.vlgmr.msra.gmra.mxu1 %vm1033_vm3, %v1882_v3 }
 0xa26   : > { %2523 = vmatprep.mubr.msk.bf16.mxu1 %vm2710_vm0, %v2709_v1  ;;  %vm1722_vm0 = vcmask 188544   ;;  %2520 = vmatpush3.bf16.msra.mxu1 %v2591_v20 }
 0xa27   : > { %2521 = vmatprep.subr.bf16.mxu1 %v2709_v1 }
 0xa28   : > { %1210 = vrot.lane.b32.xlu0 %v1203_v6, %s2713_s0  ;;  %1484 = vrot.lane.b32.xlu1 %v1476_v41, %s2723_s8  ;;  %s2647_s0 = scalar_lea.vmem %s2174_s27, 128 }
 0xa29   : > { %p2648_p11 = scmp.ne.s32.totalorder %s2174_s27, %s2647_s0  ;;  %p2655_p1 = scmp.lt.s32.totalorder %s2653_s1, %s2647_s0 }
 0xa2a   : > { %2522 = vmatpush3.bf16.msra.mxu1 %v2592_v22 }
 0xa2b   : > { %v2144_v40 = vld [vmem:[#allocation4] sm:$0xff]  ;;  %p2649_p12 = pnand %p2648_p11, %p2880_p5  ;;  %p2656_p2 = por %p2655_p1, %p2654_p0 }
 0xa2c   : > { %1486 = vrot.lane.b32.xlu0 %v1479_v7, %s2723_s8  ;;  %1714 = vrot.lane.b32.xlu1 %v1706_v8, %s2724_s23  ;;  %s2725_s8 = smov 24   ;;  %2145 = vst [vmem:[%s736_s25] sm:$0xff] %v2144_v40 }
 0xa2d   : > { %p2650_p13 = pneg %p2649_p12 }
 0xa2f   : > { %p2657_p3 = pnand %p2656_p2, %p2650_p13 }
 0xa30   : > { %1716 = vrot.lane.b32.xlu0 %v1709_v29, %s2724_s23  ;;  %s2154_s23 = scalar_lea.sflag [#allocation6], %s734_s29 }
 0xa92   : > { %v1890_v42 = vpop.permute.xlu1 %1889 }
 0xa96   : > { %v1209_v2 = vpop.permute.xlu1 %1208  ;;  %v1892_v12 = vpop.permute.xlu0 %1891 }
 0xa97   : > { %v1256_v63 = vadd.f32 %v3073_v11, %v1209_v2  ;;  %v2589_v11 = vld [vmem:[%s3324_s12 + $0x8] sm:$0xff]  }
 0xa98   : > { %2512 = vmatpush3.bf16.msra.mxu0 %v2589_v11 }
 0xa99   : > { %1262 = vst.msk [vmem:[#allocation3] sm:$0xff] %vm1033_vm3, %v1256_v63  ;;  %2513 = vmatprep.subr.bf16.mxu0 %v2709_v1  ;;  %vm1952_vm3 = vcmask 254144  }
 0xa9a   : > { %v1485_v14 = vpop.permute.xlu1 %1484  ;;  %v1211_v15 = vpop.permute.xlu0 %1210 }
 0xa9b   : > { %1491 = vst.msk [vmem:[#allocation3] sm:$0xff] %vm1490_vm13, %v1485_v14  ;;  %v1259_v31 = vadd.f32 %v3075_v13, %v1211_v15  ;;  %v2590_v13 = vld [vmem:[%s3324_s12] sm:$0xff]  }
 0xa9c   : > { %2514 = vmatpush3.bf16.msra.mxu0 %v2590_v13 }
 0xa9d   : > { %1263 = vst.msk [vmem:[#allocation3 + $0x8] sm:$0x1] %vm1161_vm7, %v1259_v31 }
 0xa9e   : > { %v1715_v49 = vpop.permute.xlu1 %1714  ;;  %v1487_v54 = vpop.permute.xlu0 %1486 }
 0xa9f   : > { %1721 = vst.msk [vmem:[#allocation3] sm:$0xff] %vm1720_vm14, %v1715_v49 }
 0xaa0   : > { %1493 = vst.msk [vmem:[#allocation3 + $0x8] sm:$0x1] %vm1492_vm15, %v1487_v54 }
 0xaa2   : > { %v1717_v18 = vpop.permute.xlu0 %1716 }
 0xaa3   : > { %1723 = vst.msk [vmem:[#allocation3 + $0x8] sm:$0x1] %vm1722_vm0, %v1717_v18 }
 0xae5   : > { %v1935_v4 = vpop.f32.mrf.mxu1 }
 0xae6   : > { %v1936_v23 = vadd.f32 %v1935_v4, %v1890_v42 }
 0xae7   : > { %v2509_v0 = vpop.f32.mrf.mxu1 }
 0xae8   : > { %1944 = vrot.lane.b32.xlu1 %v1936_v23, %s2725_s8 }
 0xae9   : > { %v1938_v24 = vpop.f32.mrf.mxu1 }
 0xaea   : > { %v1939_v26 = vadd.f32 %v1938_v24, %v1892_v12 }
 0xaeb   : > { %v2510_v27 = vpop.f32.mrf.mxu1 }
 0xaec   : > { %1946 = vrot.lane.b32.xlu0 %v1939_v26, %s2725_s8  ;;  %s2171_s8 = scalar_lea.hbm %s3334_s22, %s2361_s3 }
 0xb5a   : > { %v1945_v51 = vpop.permute.xlu1 %1944 }
 0xb5b   : > { %1951 = vst.msk [vmem:[#allocation3] sm:$0xff] %vm1950_vm2, %v1945_v51 }
 0xb5e   : > { %v1947_v1 = vpop.permute.xlu0 %1946 }
 0xb5f   : > { %1953 = vst.msk [vmem:[#allocation3 + $0x8] sm:$0x1] %vm1952_vm3, %v1947_v1 }
 0xb62   : > { %v1956_v28 = vld [vmem:[#allocation3] sm:$0xff] }
 0xb63   : > { %v1958_v10 = vpack.c.bf16 %v1956_v28, %v1956_v28 }
 0xb65   : > { %2516 = vmatmul.mubr.msk.bf16.vlgmr.msra.gmra.mxu0 %vm792_vm1, %v1958_v10 }
 0xb66   : > { %v1957_v52 = vld [vmem:[#allocation3 + $0x8] sm:$0x1] }
 0xb67   : > { %v2057_v53 = vpack.c.bf16 %v1957_v52, %v1957_v52 }
 0xb69   : > { %2524 = vmatmul.mubr.msk.bf16.vlgmr.msra.gmra.mxu1 %vm792_vm1, %v2057_v53 }
 0xc25   : > { %v2019_v32 = vpop.f32.mrf.mxu0 }
 0xc26   : > { %v2020_v33 = vadd.f32 %v2351_v30, %v2019_v32 }
 0xc27   : > { %v2517_v34 = vpop.f32.mrf.mxu0 }
 0xc28   : > { %v2025_v25 = vadd.f32 %v2645_v36, %v2020_v33 }
 0xc29   : > { %v2022_v21 = vpop.f32.mrf.mxu0  ;;  %v2112_v37 = vpop.f32.mrf.mxu1 }
 0xc2a   : > { %v2113_v38 = vadd.f32 %v2112_v37, %v2062_v35  ;;  %v2028_v39 = vsel %vm792_vm1, %v2025_v25, 0.0 }
 0xc2b   : > { %v2525_v43 = vpop.f32.mrf.mxu1  ;;  %2029 = vadd.xlane.f32.xlu1 %v2028_v39  ;;  %v2518_v44 = vpop.f32.mrf.mxu0 }
 0xc2c   : > { %v2118_v46 = vadd.f32 %v2646_v16, %v2113_v38 }
 0xc2d   : > { %v2115_v45 = vpop.f32.mrf.mxu1 }
 0xc2e   : > { %v2121_v47 = vsel %vm1010_vm4, %v2118_v46, 0.0 }
 0xc2f   : > { %2122 = vadd.xlane.f32.xlu0 %v2121_v47  ;;  %v2526_v61 = vpop.f32.mrf.mxu1 }
 0xcb4   : > { %v2030_v17 = vpop.xlane.xlu1 %2029 }
 0xcb5   : > { %v2032_v19 = vmul.f32 0.03125, %v2030_v17 }
 0xcb7   : > { %v2033_v48 = vsub.f32 %v2025_v25, %v2032_v19 }
 0xcb8   : > { %v2123_v50 = vpop.xlane.xlu0 %2122 }
 0xcb9   : > { %v2124_v55 = vmul.f32 0.03125, %v2123_v50  ;;  %v2034_v56 = vmul.f32 %v2033_v48, %v2033_v48 }
 0xcbb   : > { %v2125_v57 = vsub.f32 %v2118_v46, %v2124_v55  ;;  %v2035_v58 = vsel %vm792_vm1, %v2034_v56, 0.0 }
 0xcbc   : > { %2036 = vadd.xlane.f32.xlu0 %v2035_v58 }
 0xcbd   : > { %v2126_v60 = vmul.f32 %v2125_v57, %v2125_v57 }
 0xcbf   : > { %v2127_v62 = vsel %vm1010_vm4, %v2126_v60, 0.0 }
 0xcc0   : > { %2128 = vadd.xlane.f32.xlu1 %v2127_v62 }
 0xcc1   : > { %2660 = shalt.err (!%p2657_p3)
}
 0xcc2   : > { %s2661_s4 = scalar_lea.hbm %s2171_s8, 128  ;;  %s2665_s3 = scalar_lea.hbm %s3334_s22, 256 }
 0xcc3   : > { %p2662_p4 = scmp.ne.s32.totalorder %s2171_s8, %s2661_s4  ;;  %p2666_p9 = scmp.lt.s32.totalorder %s2171_s8, %s3334_s22 }
 0xcc4   : > { %p2667_p10 = scmp.lt.s32.totalorder %s2665_s3, %s2661_s4 }
 0xcc5   : > { %p2663_p7 = pnand %p2662_p4, %p2880_p5 }
 0xcc6   : > { %p2668_p11 = por %p2667_p10, %p2666_p9 }
 0xcc7   : > { %p2664_p8 = pneg %p2663_p7 }
 0xcc9   : > { %p2669_p12 = pnand %p2668_p11, %p2664_p8 }
 0xccb   : > { %2672 = shalt.err (!%p2669_p12)
}
 0xccc   : > { %2527 = dma.vmem_to_hbm [thread:$0]  (%p2880_p5), %s2174_s27, 128, %s2171_s8, %s2154_s23   ;;  %v2355_v9 = vld [vmem:[%s3328_s16] ss:$0 sm:$0xff] }
 0xccd   : > { %v2356_v42 = vld [vmem:[%s3329_s17] ss:$0 sm:$0xff]  ;;  %s759_s8 = scalar_lea.vmem %s3332_s20, %s2915_s24  ;;  %s3371_s30 = sld [smem:[#allocation22_spill]] }
 0xcce   : > { %v2119_v63 = vld [vmem:[%s3330_s18] sm:$0x1]  ;;  %s3372_s5 = sld [smem:[#allocation23_spill]] }
 0xcd3   : > { %v2120_v31 = vld [vmem:[%s3371_s30] sm:$0x1] }
 0xcd4   : > { %s762_s1 = scalar_lea.vmem %s3372_s5, %s2908_s26 }
 0xd45   : > { %v2037_v3 = vpop.xlane.xlu0 %2036 }
 0xd46   : > { %v2038_v5 = vmul.f32 0.03125, %v2037_v3 }
 0xd48   : > { %v2039_v41 = vadd.f32 1e-05, %v2038_v5 }
 0xd49   : > { %v2129_v6 = vpop.xlane.xlu1 %2128 }
 0xd4a   : > { %2641 = vrsqrt.f32 %v2039_v41  ;;  %v2130_v59 = vmul.f32 0.03125, %v2129_v6 }
 0xd4c   : > { %v2131_v7 = vadd.f32 1e-05, %v2130_v59 }
 0xd4e   : > { %2643 = vrsqrt.f32 %v2131_v7 }
 0xd57   : > { %v2642_v8 = vpop.eup %2641 }
 0xd58   : > { %v2041_v29 = vmul.f32 %v2642_v8, %v2033_v48 }
 0xd5a   : > { %v2048_v2 = vmul.f32 %v2355_v9, %v2041_v29 }
 0xd5b   : > { %v2644_v12 = vpop.eup %2643 }
 0xd5c   : > { %v2055_v14 = vadd.f32 %v2356_v42, %v2048_v2  ;;  %v2133_v15 = vmul.f32 %v2644_v12, %v2125_v57 }
 0xd5e   : > { %2056 = vst.msk [vmem:[%s759_s8] sm:$0xff] %vm792_vm1, %v2055_v14  ;;  %v2134_v49 = vmul.f32 %v2133_v15, %v2119_v63 }
 0xd60   : > { %v2135_v54 = vadd.f32 %v2134_v49, %v2120_v31 }
 0xd62   : > { %2136 = vst.msk [vmem:[%s762_s1] sm:$0x1] %vm1010_vm4, %v2135_v54 }
 0xd63 PF: > { %s3373_s24 = sld [smem:[#allocation10_spill]] }
 0xd64   : > { %s3374_s2 = sld [smem:[#allocation8_spill]] }
 0xd69   : > { %p2533_p5 = scmp.ge.s32.totalorder %s3373_s24, 2 }
 0xd6a   : > { %s2198_s19 = sand.u32 1, %s3374_s2  }
 0xd6b   : > { %p2530_p13 = pnand %p2533_p5, %p2884_p6  ;;  %s2199_s6 = scalar_lea.sflag [#allocation6], %s2198_s19 }
 0xd6d   : > { %p2531_p0 = pneg %p2530_p13 }
 0xd6f   : > { %2690 = dma.done.wait (%p2531_p0), %s2199_s6, 128  }
 0xd70   : > { %2692 = vsyncadd (%p2531_p0), %s2199_s6, 4294967168  ;;  %s3376_s30 = sld [smem:[#allocation11_spill]]  ;;  %s3379_s3 = smov %s2699_s28 }
 0xd71   : > { %s3377_s27 = sld [smem:[#allocation9_spill]] }
 0xd72   : > { %s3378_s29 = sld [smem:[#allocation12_spill]] }
 0xd76   : > { %p33_p1 = scmp.ge.s32.totalorder %s3376_s30, 4  }
 0xd77   : > { %s3380_s28 = smov %s3377_s27 }
 0xd78   :  { %35 = sbr.rel (!%p33_p1) target bundleno = 14 (0xe), region = 171 }
 0xd7d   :  { %2204 = vsyncpa [#allocation6], 1 }
 0xd7e   :  { %2206 = vsyncpa [#allocation6 + $0x1], 1 }

// kernel: _decoder_forward.7
= control target key start
LH: loop header
LB: loop body
LE: loop exit
PB: predicated region body
PF: predicated region fallthrough
CT: control target
= control target key end

     0   :  { %s3768_s0 = inlined_call_operand.vmem [shape: f32[2,8,32], index: 0, kind: input, shape index: {}]   ;;  %s3769_s1 = inlined_call_operand.vmem [shape: f32[2,12,32], index: 1, kind: input, shape index: {}]   ;;  %s3770_s2 = inlined_call_operand.vmem [shape: f32[2,1,32], index: 2, kind: input, shape index: {}]   ;;  %s3771_s3 = inlined_call_operand.vmem [shape: f32[2,1,32], index: 3, kind: input, shape index: {}]   ;;  %s3772_s4 = inlined_call_operand.vmem [shape: f32[2,9,12], index: 4, kind: input, shape index: {}]   ;;  %s3773_s5 = inlined_call_operand.vmem [shape: f32[1,9,12], index: 5, kind: input, shape index: {}]   ;;  %s3774_s6 = inlined_call_operand.vmem [shape: bf16[32,96], index: 6, kind: input, shape index: {}]   ;;  %s3775_s7 = inlined_call_operand.vmem [shape: f32[1,96], index: 7, kind: input, shape index: {}]   ;;  %s3776_s8 = inlined_call_operand.vmem [shape: bf16[32,96], index: 8, kind: input, shape index: {}]   ;;  %s3777_s9 = inlined_call_operand.vmem [shape: f32[1,96], index: 9, kind: input, shape index: {}]   ;;  %s3778_s10 = inlined_call_operand.vmem [shape: bf16[32,96], index: 10, kind: input, shape index: {}]   ;;  %s3779_s11 = inlined_call_operand.vmem [shape: f32[1,96], index: 11, kind: input, shape index: {}]   ;;  %s3780_s12 = inlined_call_operand.vmem [shape: bf16[32,32], index: 12, kind: input, shape index: {}]   ;;  %s3781_s13 = inlined_call_operand.vmem [shape: f32[1,32], index: 13, kind: input, shape index: {}]   ;;  %s3782_s14 = inlined_call_operand.vmem [shape: bf16[32,32], index: 14, kind: input, shape index: {}]   ;;  %s3783_s15 = inlined_call_operand.vmem [shape: f32[1,32], index: 15, kind: input, shape index: {}]   ;;  %s3784_s16 = inlined_call_operand.vmem [shape: f32[1,32], index: 16, kind: input, shape index: {}]   ;;  %s3785_s17 = inlined_call_operand.vmem [shape: f32[1,32], index: 17, kind: input, shape index: {}]   ;;  %s3786_s18 = inlined_call_operand.vmem [shape: f32[1,32], index: 18, kind: input, shape index: {}]   ;;  %s3787_s19 = inlined_call_operand.vmem [shape: f32[1,32], index: 19, kind: input, shape index: {}]   ;;  %s3788_s20 = inlined_call_operand.vmem [shape: bf16[32,64], index: 20, kind: input, shape index: {}]   ;;  %s3789_s21 = inlined_call_operand.vmem [shape: f32[1,64], index: 21, kind: input, shape index: {}]   ;;  %s3790_s22 = inlined_call_operand.vmem [shape: bf16[64,32], index: 22, kind: input, shape index: {}]   ;;  %s3791_s23 = inlined_call_operand.vmem [shape: f32[1,32], index: 23, kind: input, shape index: {}]   ;;  %s3792_s24 = inlined_call_operand.vmem [shape: f32[1,32], index: 24, kind: input, shape index: {}]   ;;  %s3793_s25 = inlined_call_operand.vmem [shape: f32[1,32], index: 25, kind: input, shape index: {}]   ;;  %s3794_s26 = inlined_call_operand.vmem [shape: f32[2,8,32], index: 26, kind: output, shape index: {0}]   ;;  %s3795_s27 = inlined_call_operand.vmem [shape: f32[2,1,32], index: 27, kind: output, shape index: {1}]   ;;  %s3796_s28 = inlined_call_operand.hbm [shape: f32[2,8,128], index: 28, kind: output, shape index: {2}]  }
   0x1   :  { %3815 = sst [smem:[#allocation15_spill]] %s3768_s0 }
   0x2   :  { %3816 = sst [smem:[#allocation16_spill]] %s3769_s1 }
   0x3   :  { %3817 = sst [smem:[#allocation17_spill]] %s3770_s2 }
   0x4   :  { %3818 = sst [smem:[#allocation18_spill]] %s3771_s3 }
   0x5   :  { %3819 = sst [smem:[#allocation19_spill]] %s3772_s4 }
   0x6   :  { %3820 = sst [smem:[#allocation20_spill]] %s3773_s5 }
   0x7   :  { %3821 = sst [smem:[#allocation21_spill]] %s3774_s6 }
   0x8   :  { %3822 = sst [smem:[#allocation22_spill]] %s3775_s7 }
   0x9   :  { %3823 = sst [smem:[#allocation23_spill]] %s3776_s8 }
   0xa   :  { %3824 = sst [smem:[#allocation24_spill]] %s3777_s9 }
   0xb   :  { %3825 = sst [smem:[#allocation25_spill]] %s3778_s10 }
   0xc   :  { %3826 = sst [smem:[#allocation26_spill]] %s3779_s11 }
   0xd   :  { %3827 = sst [smem:[#allocation27_spill]] %s3780_s12 }
   0xe   :  { %3828 = sst [smem:[#allocation28_spill]] %s3792_s24 }
   0xf   :  { %3829 = sst [smem:[#allocation29_spill]] %s3793_s25 }
  0x10   :  { %3830 = sst [smem:[#allocation30_spill]] %s3794_s26 }
  0x11   :  { %3831 = sst [smem:[#allocation31_spill]] %s3795_s27 }
  0x12   :  { %3832 = sst [smem:[#allocation32_spill]] %s3796_s28 }
  0x13   :  { %34 = vsyncpa [#allocation6], 0 }
  0x14   :  { %36 = vsyncpa [#allocation6 + $0x1], 0  ;;  %s3245_s8 = smov 0   ;;  %s3247_s5 = smov 0  }
  0x15   :  { %s3249_s9 = smov 0   ;;  %s3251_s30 = smov 0  }
  0x16 LB: > { %3833 = sst [smem:[#allocation8_spill]] %s3068_s8  ;;  %s3266_s3 = sadd.s32 4294967295, %s3080_s30   ;;  %s3080_s30 = sphi %s3251_s30, %s3866_s30   ;;  %s3076_s9 = sphi %s3249_s9, %s3868_s9   ;;  %s3072_s5 = sphi %s3247_s5, %s3870_s5   ;;  %s3068_s8 = sphi %s3245_s8, %s3869_s8  }
  0x17   : > { %3834 = sst [smem:[#allocation9_spill]] %s3076_s9  ;;  %s2644_s6 = sadd.s32 4294967294, %s3080_s30  }
  0x18   : > { %3835 = sst [smem:[#allocation10_spill]] %s3080_s30  ;;  %s3270_s10 = sadd.s32 1, %s3080_s30  }
  0x19   : > { %3836 = sst [smem:[#allocation11_spill]] %s3270_s10  ;;  %s672_s0 = sadd.s32 1, %s3076_s9 }
  0x1a   : > { %s669_s11 = ssub.s32 %s3080_s30, %s3270_s10  ;;  %p682_p0 = scmp.ne.s32.totalorder %s3076_s9, %s3072_s5 }
  0x1b   : > { %p670_p1 = scmp.eq.s32.totalorder %s669_s11, 0  ;;  %p683_p2 = scmp.eq.s32.totalorder %s3266_s3, 1 }
  0x1c   : > { %p688_p3 = scmp.ne.s32.totalorder %s3072_s5, %s3068_s8  ;;  %p689_p4 = scmp.eq.s32.totalorder %s2644_s6, 1 }
  0x1d   : > { %s3281_s29 = scalar_select %p670_p1, %s3076_s9, %s672_s0  }
  0x1e   : > { %p3283_p5 = por %p683_p2, %p682_p0  ;;  %p3287_p6 = por %p689_p4, %p688_p3 }
  0x1f   : > { %3837 = sst [smem:[#allocation12_spill]] %s3281_s29  ;;  %p2647_p7 = scmp.ge.s32.totalorder %s3080_s30, 1 }
  0x20   : > { %s3838_s2 = scalar_select %p3283_p5, 1, 0 }
  0x21   : > { %s3840_s7 = scalar_select %p3287_p6, 1, 0 }
  0x22   : > { %3839 = sst [smem:[#allocation13_spill]] %s3838_s2  ;;  %p805_p8 = scmp.lt.s32.totalorder %s3080_s30, 3 }
  0x23   : > { %3841 = sst [smem:[#allocation14_spill]] %s3840_s7 }
  0x24   : > { %p806_p9 = pnand %p2647_p7, %p805_p8 }
  0x25   : > { %s3842_s4 = sld [smem:[#allocation21_spill]] (!%p806_p9)  ;;  %p901_p10 = scmp.lt.s32.totalorder (!%p806_p9), %s3266_s3, 1 }
  0x26   : > { %809 = sbr.rel (%p806_p9) target bundleno = 4139 (0x102b), region = 124  ;;  %s3843_s12 = sld [smem:[#allocation23_spill]] (!%p806_p9) }
  0x27   : > { %s3844_s9 = sld [smem:[#allocation25_spill]] (!%p806_p9)  ;;  %s3085_s8 = smov (!%p806_p9), 32  }
  0x28   : > { %s3846_s6 = sld [smem:[#allocation15_spill]] (!%p806_p9)  ;;  %s3086_s30 = smov (!%p806_p9), 64  }
  0x29   : > { %s3847_s25 = sld [smem:[#allocation16_spill]] (!%p806_p9)  ;;  %s3095_s27 = smov (!%p806_p9), 40  }
  0x2a   : > { %s3848_s11 = sld [smem:[#allocation17_spill]] (!%p806_p9)  ;;  %s3096_s2 = smov (!%p806_p9), 16  }
  0x2b   : > { %v2948_v0 = vld [vmem:[%s3842_s4 + $0x8] sm:$0xff]   ;;  %v3082_v1 = vmov 0.0   ;;  %v2949_v2 = vld [vmem:[%s3842_s4] sm:$0xff]   ;;  %vm3083_vm0 = vmmov 0   ;;  %s3311_s1 = scalar_select %p901_p10, %s3266_s3, 1  ;;  %vm958_vm1 = vcmask 261120   ;;  %v1307_v23 = vlaneseq }
  0x2c   : > { %2752 = vmatprep.subr.bf16.mxu0 %v3082_v1  ;;  %2760 = vmatprep.subr.bf16.mxu1 %v3082_v1  ;;  %v2950_v3 = vld [vmem:[%s3843_s12 + $0x8] sm:$0xff]   ;;  %v2952_v4 = vld [vmem:[%s3843_s12] sm:$0xff]   ;;  %s3850_s26 = sld [smem:[#allocation22_spill]]  ;;  %vm1175_vm2 = vcmask 785408   ;;  %vm1200_vm3 = vcmask 64512   ;;  %vm1177_vm4 = vcmask 253952  }
  0x2d   : > { %2753 = vmatpush3.bf16.msra.mxu0 %v2948_v0  ;;  %2756 = vmatprep.mubr.msk.bf16.mxu0 %vm3083_vm0, %v3082_v1  ;;  %s3811_s29 = sshll.u32 %s3311_s1, 3  ;;  %s3845_s10 = smov %s3844_s9  ;;  %v2951_v5 = vld [vmem:[%s3844_s9 + $0x8] sm:$0xff]   ;;  %v1308_v31 = vshrl.u32 %v1307_v23, 7  ;;  %vm1183_vm5 = vcmask 516352   ;;  %vm1188_vm6 = vcmask 778752   ;;  %vm1328_vm7 = vcmask 57344  }
  0x2e   : > { %2754 = vmatprep.subr.bf16.mxu0 %v3082_v1  ;;  %2764 = vmatprep.mubr.msk.bf16.mxu1 %vm3083_vm0, %v3082_v1  ;;  %s2700_s7 = sshll.u32 %s3311_s1, 4  ;;  %s3327_s0 = scalar_lea.vmem %s3846_s6, %s3811_s29  ;;  %v2953_v10 = vld [vmem:[%s3845_s10] sm:$0xff]   ;;  %vm1334_vm10 = vcmask 97280   ;;  %vm1338_vm11 = vcmask 90112   ;;  %vm1386_vm12 = vcmask 1045504   ;;  %vm2467_vm13 = vcmask 105568  }
  0x2f   : > { %2761 = vmatpush3.bf16.msra.mxu1 %v2950_v3  ;;  %v929_v6 = vld [vmem:[%s3327_s0] sm:$0xff]  ;;  %s909_s24 = scalar_lea.vmem %s3847_s25, %s2700_s7  ;;  %s3849_s6 = sld [smem:[#allocation18_spill]]  ;;  %v1309_v39 = vsub.s32 0, %v1308_v31  ;;  %vm1661_vm14 = vcmask 122944   ;;  %vm1891_vm15 = vcmask 188544  }
  0x30   : > { %2762 = vmatprep.subr.bf16.mxu1 %v3082_v1  ;;  %s3340_s28 = scalar_lea.vmem %s3848_s11, %s3311_s1  ;;  %v934_v7 = vpack.c.bf16 %v929_v6, %v929_v6  ;;  %v930_v8 = vld [vmem:[%s909_s24] sm:$0xff]  ;;  %v931_v9 = vld [vmem:[%s909_s24 + $0x8] sm:$0xf]  ;;  %s3851_s12 = sld [smem:[#allocation24_spill]] }
  0x31   : > { %2755 = vmatpush3.bf16.msra.mxu0 %v2949_v2  ;;  %v1002_v11 = vpack.c.bf16 %v931_v9, %v930_v8  ;;  %v932_v12 = vld [vmem:[%s3340_s28] sm:$0x1]  ;;  %s3852_s9 = sld [smem:[#allocation26_spill]]  ;;  %s3084_s11 = smov 96  }
  0x32   : > { %2768 = vmatprep.subr.bf16.mxu0 %v3082_v1  ;;  %v1070_v14 = vpack.c.bf16 %v932_v12, %v932_v12  ;;  %v2655_v16 = vld [vmem:[%s3850_s26] ss:$0 sm:$0xff]  ;;  %s3853_s25 = sld [smem:[#allocation19_spill]]  ;;  %s3087_s4 = smov 120  }
  0x33   : > { %2763 = vmatpush3.bf16.msra.mxu1 %v2952_v4  ;;  %s3092_s24 = smov 48  }
  0x34   : > { %2776 = vmatprep.subr.bf16.mxu1 %v3082_v1  ;;  %2757 = vmatmul.mubr.msk.bf16.vlgmr.msra.gmra.mxu0 %vm958_vm1, %v934_v7 }
  0x35   : > { %s915_s29 = scalar_lea.vmem %s3849_s6, %s3311_s1  ;;  %2769 = vmatpush3.bf16.msra.mxu0 %v2951_v5  ;;  %2772 = vmatprep.mubr.msk.bf16.mxu0 %vm3083_vm0, %v3082_v1  ;;  %s3091_s6 = smov 112  }
  0x36   : > { %2765 = vmatmul.mubr.msk.bf16.vlgmr.msra.gmra.mxu1 %vm958_vm1, %v1002_v11  ;;  %v933_v13 = vld [vmem:[%s915_s29] sm:$0x1]  ;;  %2770 = vmatprep.subr.bf16.mxu0 %v3082_v1  ;;  %s3857_s29 = sld [smem:[#allocation30_spill]] }
  0x37   : > { %2777 = vmatpush3.bf16.msra.mxu1 %v2951_v5  ;;  %2780 = vmatprep.mubr.msk.bf16.mxu1 %vm3083_vm0, %v3082_v1  ;;  %v1131_v15 = vpack.c.bf16 %v933_v13, %v933_v13  ;;  %v2659_v19 = vld [vmem:[%s3851_s12] ss:$0 sm:$0xff]  ;;  %s3854_s12 = sld [smem:[#allocation20_spill]] }
  0x38   : > { %2778 = vmatprep.subr.bf16.mxu1 %v3082_v1  ;;  %v1075_v28 = vld [vmem:[%s3852_s9] sm:$0x1]  ;;  %s920_s26 = scalar_lea.vmem %s3853_s25, %s2700_s7  ;;  %s3088_s9 = smov 88  }
  0x39   : > { %2771 = vmatpush3.bf16.msra.mxu0 %v2953_v10  ;;  %v3416_v2 = vld [vmem:[%s920_s26] sm:$0xff]  ;;  %v3419_v3 = vld [vmem:[%s920_s26 + $0x8] sm:$0x1]  ;;  %s3093_s25 = smov 104   ;;  %s3094_s26 = smov 72  }
  0x3a   : > { %2784 = vmatprep.subr.bf16.mxu0 %v3082_v1  ;;  %vm1194_vm8 = vcmp.gt.f32.partialorder %v3416_v2, 0.5  ;;  %vm1195_vm9 = vcmp.gt.f32.partialorder %v3419_v3, 0.5  ;;  %s3097_s7 = smov 8  }
  0x3b   : > { %2779 = vmatpush3.bf16.msra.mxu1 %v2953_v10 }
  0x3c   : > { %2773 = vmatmul.mubr.msk.bf16.vlgmr.msra.gmra.mxu0 %vm958_vm1, %v1070_v14  ;;  %2790 = vmatprep.subr.bf16.mxu1 %v3082_v1 }
  0x3d   : > { %2786 = vmatprep.mubr.msk.bf16.mxu0 %vm3083_vm0, %v3082_v1  ;;  %v3426_v6 = vld [vmem:[%s3854_s12] sm:$0xff]  ;;  %v3435_v12 = vld [vmem:[%s3854_s12 + $0x8] sm:$0x1] }
  0x3e   : > { %2781 = vmatmul.mubr.msk.bf16.vlgmr.msra.gmra.mxu1 %vm958_vm1, %v1131_v15 }
  0x3f   : > { %2792 = vmatprep.mubr.msk.bf16.mxu1 %vm3083_vm0, %v3082_v1 }
  0xf4   : > { %v996_v17 = vpop.f32.mrf.mxu0 }
  0xf5   : > { %v997_v18 = vadd.f32 %v2655_v16, %v996_v17 }
  0xf6   : > { %v1063_v20 = vpop.f32.mrf.mxu1  ;;  %v2758_v21 = vpop.f32.mrf.mxu0 }
  0xf7   : > { %1176 = vst.msk [vmem:[#allocation2] sm:$0xff] %vm1175_vm2, %v997_v18  ;;  %v1064_v25 = vadd.f32 %v2659_v19, %v1063_v20  ;;  %vm2121_vm2 = vcmask 254144  }
  0xf8   : > { %v2766_v22 = vpop.f32.mrf.mxu1  ;;  %v999_v24 = vpop.f32.mrf.mxu0 }
  0xfa   : > { %v1066_v26 = vpop.f32.mrf.mxu1  ;;  %v2759_v27 = vpop.f32.mrf.mxu0 }
  0xfb   : > { %v1067_v29 = vadd.f32 %v2659_v19, %v1066_v26 }
  0xfc   : > { %v2767_v30 = vpop.f32.mrf.mxu1  ;;  %v1125_v32 = vpop.f32.mrf.mxu0 }
  0xfd   : > { %v3376_v33 = vpack.c.bf16 %v1067_v29, %v1064_v25  ;;  %v1126_v34 = vadd.f32 %v1125_v32, %v1075_v28 }
  0xfe   : > { %v2774_v35 = vpop.f32.mrf.mxu0  ;;  %v1169_v36 = vpop.f32.mrf.mxu1  ;;  %v1190_v50 = vld [vmem:[#allocation2] sm:$0xff] }
  0xff   : > { %1252 = vrot.lane.b32.xlu1 %v3376_v33, %s3084_s11  ;;  %v1205_v37 = vsel %vm1200_vm3, %v3376_v33, 0  ;;  %1180 = vrot.lane.b32.xlu0 %v1126_v34, %s3085_s8  ;;  %v1170_v38 = vadd.f32 %v1169_v36, %v1075_v28  ;;  %1178 = vst.msk [vmem:[#allocation2 + $0x8] sm:$0x1] %vm1177_vm4, %v1126_v34 }
 0x100   : > { %2785 = vmatpush3.bf16.xpose.msra.mxu0 %v1205_v37  ;;  %v1128_v40 = vpop.f32.mrf.mxu0  ;;  %v2782_v41 = vpop.f32.mrf.mxu1 }
 0x101   : > { %2796 = vmatprep.subr.bf16.mxu0 %v3082_v1  ;;  %v3384_v44 = vrot.slane %v1170_v38, %v1309_v39 }
 0x102   : > { %v2775_v42 = vpop.f32.mrf.mxu0  ;;  %v1172_v43 = vpop.f32.mrf.mxu1 }
 0x103   : > { %1185 = vrot.lane.b32.xlu0 %v1126_v34, %s3086_s30 }
 0x104   : > { %v2783_v45 = vpop.f32.mrf.mxu1 }
 0x107   : > { %1312 = vrot.lane.b32.xlu0 %v3384_v44, %s3085_s8  ;;  %s3090_s8 = smov 80  }
 0x171   : > { %v1253_v46 = vpop.permute.xlu1 %1252  ;;  %v1181_v47 = vpop.permute.xlu0 %1180 }
 0x172   : > { %v1258_v48 = vsel %vm1200_vm3, %v1253_v46, 0  ;;  %1184 = vst.msk [vmem:[#allocation2 + $0x8] sm:$0x1] %vm1183_vm5, %v1181_v47  ;;  %vm2469_vm5 = vcmask 1047656  }
 0x173   : > { %2791 = vmatpush3.bf16.xpose.msra.mxu1 %v1258_v48 }
 0x174   : > { %2802 = vmatprep.subr.bf16.mxu1 %v3082_v1 }
 0x175   : > { %v1186_v49 = vpop.permute.xlu0 %1185 }
 0x176   : > { %1189 = vst.msk [vmem:[#allocation2 + $0x8] sm:$0x1] %vm1188_vm6, %v1186_v49  ;;  %vm1889_vm6 = vcmask 195712  }
 0x179   : > { %v1313_v51 = vpop.permute.xlu0 %1312 }
 0x17a   : > { %v3400_v55 = vmul.f32 %v1313_v51, %v1190_v50 }
 0x17d   : > { %v1191_v52 = vld [vmem:[#allocation2 + $0x8] sm:$0x1] }
 0x17e   : > { %v3390_v53 = vpack.c.bf16 %v1191_v52, %v1190_v50  ;;  %v3392_v54 = vmul.f32 %v1313_v51, %v1191_v52 }
 0x180   : > { %1321 = vrot.lane.b32.xlu0 %v3392_v54, %s3086_s30  ;;  %1249 = vrot.lane.b32.xlu1 %v3390_v53, %s3084_s11  ;;  %s3089_s11 = smov 56  }
 0x181   : > { %2787 = vmatmul.mubr.msk.bf16.vlgmr.msra.gmra.mxu0 %vm1200_vm3, %v3390_v53 }
 0x182   : > { %2798 = vmatprep.mubr.msk.bf16.mxu0 %vm3083_vm0, %v3082_v1 }
 0x184   : > { %1319 = vrot.lane.b32.xlu1 %v3400_v55, %s3086_s30 }
 0x1f2   : > { %v1322_v56 = vpop.permute.xlu0 %1321  ;;  %v1250_v57 = vpop.permute.xlu1 %1249 }
 0x1f3   : > { %2793 = vmatmul.mubr.msk.bf16.vlgmr.msra.gmra.mxu1 %vm1200_vm3, %v1250_v57  ;;  %v1329_v58 = vsel %vm1328_vm7, %v1322_v56, 0.0 }
 0x1f4   : > { %1330 = vadd.xlane.f32.xlu0 %v1329_v58  ;;  %2804 = vmatprep.mubr.msk.bf16.mxu1 %vm3083_vm0, %v3082_v1 }
 0x1f6   : > { %v1320_v59 = vpop.permute.xlu1 %1319 }
 0x1f7   : > { %v1325_v60 = vsel %vm1200_vm3, %v1320_v59, 0.0 }
 0x1f8   : > { %1326 = vadd.xlane.f32.xlu1 %v1325_v60 }
 0x241   : > { %v1241_v61 = vpop.f32.mrf.mxu0 }
 0x243   : > { %v2788_v62 = vpop.f32.mrf.mxu0 }
 0x245   : > { %v1244_v63 = vpop.f32.mrf.mxu0 }
 0x247   : > { %v2789_v0 = vpop.f32.mrf.mxu0 }
 0x27d   : > { %v1331_v18 = vpop.xlane.xlu0 %1330 }
 0x27e   : > { %v1333_v23 = vmul.f32 0.35355338, %v1331_v18 }
 0x281   : > { %v1327_v19 = vpop.xlane.xlu1 %1326 }
 0x282   : > { %v1332_v20 = vmul.f32 0.35355338, %v1327_v19 }
 0x2b3   : > { %v1294_v4 = vpop.f32.mrf.mxu1 }
 0x2b4   : > { %v1301_v5 = vsel %vm1194_vm8, %v1241_v61, %v1294_v4 }
 0x2b5   : > { %v1303_v7 = vmul.f32 0.35355338, %v1301_v5  ;;  %v2794_v8 = vpop.f32.mrf.mxu1 }
 0x2b7   : > { %v1297_v9 = vpop.f32.mrf.mxu1  ;;  %v1305_v10 = vadd.f32 %v1303_v7, %v3426_v6 }
 0x2b8   : > { %v1302_v11 = vsel %vm1195_vm9, %v1244_v63, %v1297_v9 }
 0x2b9   : > { %v1304_v13 = vmul.f32 0.35355338, %v1302_v11  ;;  %v2795_v14 = vpop.f32.mrf.mxu1  ;;  %v1335_v15 = vsel %vm1334_vm10, %v1305_v10, -inf }
 0x2ba   : > { %1336 = vmax.xlane.f32.xlu0 %v1335_v15 }
 0x2bb   : > { %v1306_v16 = vadd.f32 %v1304_v13, %v3435_v12 }
 0x2bd   : > { %v1339_v17 = vsel %vm1338_vm11, %v1306_v16, -inf }
 0x2be   : > { %1340 = vmax.xlane.f32.xlu1 %v1339_v17 }
 0x2cf   : > { %1437 = vrot.lane.b32.xlu1 %v3376_v33, %s3087_s4 }
 0x343   : > { %v1337_v21 = vpop.xlane.xlu0 %1336 }
 0x344   : > { %v1342_v22 = vmax.f32 %v1337_v21, %v1332_v20 }
 0x346   : > { %v1344_v24 = vsub.f32 %v1305_v10, %v1342_v22  ;;  %v1350_v25 = vsub.f32 %v1332_v20, %v1342_v22 }
 0x347   : > { %v1341_v26 = vpop.xlane.xlu1 %1340 }
 0x348   : > { %v1346_v27 = vmul.f32 1.442695, %v1344_v24  ;;  %v1343_v28 = vmax.f32 %v1341_v26, %v1333_v23  ;;  %v1352_v39 = vmul.f32 1.442695, %v1350_v25 }
 0x34a   : > { %2964 = vpow2.f32 %v1346_v27  ;;  %v1345_v29 = vsub.f32 %v1306_v16, %v1343_v28  ;;  %v1351_v30 = vsub.f32 %v1333_v23, %v1343_v28 }
 0x34b   : > { %v1438_v31 = vpop.permute.xlu1 %1437 }
 0x34c   : > { %v1348_v32 = vmul.f32 1.442695, %v1345_v29  ;;  %v1443_v34 = vsel %vm1200_vm3, %v1438_v31, 0  ;;  %v1354_v40 = vmul.f32 1.442695, %v1351_v30 }
 0x34d   : > { %2803 = vmatpush3.bf16.xpose.msra.mxu1 %v1443_v34 }
 0x34e   : > { %2966 = vpow2.f32 %v1348_v32  ;;  %2814 = vmatprep.subr.bf16.mxu1 %v3082_v1 }
 0x34f   : > { %2968 = vpow2.f32 %v1352_v39 }
 0x350   : > { %2970 = vpow2.f32 %v1354_v40 }
 0x357   : > { %v2965_v35 = vpop.eup %2964 }
 0x358   : > { %v1356_v36 = vsel %vm1334_vm10, %v2965_v35, 0.0 }
 0x359   : > { %1357 = vadd.xlane.f32.xlu0 %v1356_v36 }
 0x35b   : > { %v2967_v37 = vpop.eup %2966 }
 0x35c   : > { %v1359_v38 = vsel %vm1338_vm11, %v2967_v37, 0.0  ;;  %v2969_v41 = vpop.eup %2968 }
 0x35d   : > { %1360 = vadd.xlane.f32.xlu1 %v1359_v38  ;;  %v2971_v45 = vpop.eup %2970 }
 0x36e   : > { %1488 = vrot.lane.b32.xlu1 %v3376_v33, %s3088_s9 }
 0x36f   : > { %1373 = vrot.lane.b32.xlu0 %v3376_v33, %s3086_s30 }
 0x372   : > { %1486 = vrot.lane.b32.xlu1 %v3390_v53, %s3088_s9 }
 0x373   : > { %1435 = vrot.lane.b32.xlu0 %v3390_v53, %s3087_s4 }
 0x376   : > { %1545 = vrot.lane.b32.xlu1 %v3392_v54, %s3089_s11 }
 0x377   : > { %1543 = vrot.lane.b32.xlu0 %v3400_v55, %s3089_s11 }
 0x3e2   : > { %v1358_v42 = vpop.xlane.xlu0 %1357 }
 0x3e3   : > { %v1362_v43 = vadd.f32 %v2969_v41, %v1358_v42 }
 0x3e5   : > { %2972 = vrcp.f32 %v1362_v43 }
 0x3e6   : > { %v1374_v46 = vpop.permute.xlu0 %1373  ;;  %v1361_v47 = vpop.xlane.xlu1 %1360 }
 0x3e7   : > { %v1388_v48 = vsel %vm1386_vm12, %v1374_v46, 0  ;;  %v1363_v49 = vadd.f32 %v2971_v45, %v1361_v47 }
 0x3e8   : > { %2797 = vmatpush3.bf16.msra.mxu0 %v1388_v48 }
 0x3e9   : > { %2974 = vrcp.f32 %v1363_v49  ;;  %2808 = vmatprep.subr.bf16.mxu0 %v3082_v1 }
 0x3ea   : > { %v1436_v50 = vpop.permute.xlu0 %1435  ;;  %v1489_v51 = vpop.permute.xlu1 %1488 }
 0x3eb   : > { %2805 = vmatmul.mubr.msk.bf16.vlgmr.msra.gmra.mxu1 %vm1200_vm3, %v1436_v50  ;;  %v1494_v7 = vsel %vm1200_vm3, %v1489_v51, 0 }
 0x3ec   : > { %2816 = vmatprep.mubr.msk.bf16.mxu1 %vm3083_vm0, %v3082_v1 }
 0x3ee   : > { %v1544_v52 = vpop.permute.xlu0 %1543  ;;  %v1487_v56 = vpop.permute.xlu1 %1486 }
 0x3ef   : > { %v1549_v57 = vsel %vm1200_vm3, %v1544_v52, 0.0 }
 0x3f0   : > { %1550 = vadd.xlane.f32.xlu0 %v1549_v57 }
 0x3f2   : > { %v2973_v58 = vpop.eup %2972  ;;  %v1546_v59 = vpop.permute.xlu1 %1545 }
 0x3f3   : > { %v1552_v60 = vsel %vm1328_vm7, %v1546_v59, 0.0  ;;  %v3463_v61 = vmul.f32 %v2973_v58, %v2969_v41  ;;  %v3465_v63 = vmul.f32 %v2973_v58, %v2965_v35 }
 0x3f4   : > { %1553 = vadd.xlane.f32.xlu1 %v1552_v60 }
 0x3f6   : > { %v2975_v62 = vpop.eup %2974 }
 0x3f7   : > { %v1367_v0 = vmul.f32 %v2975_v62, %v2967_v37  ;;  %v3467_v4 = vmul.f32 %v2975_v62, %v2971_v45 }
 0x3f9   : > { %v1370_v5 = vpack.c.bf16 %v1367_v0, %v3465_v63 }
 0x3fb   : > { %2799 = vmatmul.mubr.msk.bf16.vlgmr.msra.gmra.mxu0 %vm1334_vm10, %v1370_v5 }
 0x3fc   : > { %2809 = vmatpush3.bf16.xpose.msra.mxu0 %v1494_v7  ;;  %2810 = vmatprep.mubr.msk.bf16.mxu0 %vm3083_vm0, %v3082_v1 }
 0x3fd   : > { %2820 = vmatprep.subr.bf16.mxu0 %v3082_v1 }
 0x403   : > { %2811 = vmatmul.mubr.msk.bf16.vlgmr.msra.gmra.mxu0 %vm1200_vm3, %v1487_v56 }
 0x404   : > { %2822 = vmatprep.mubr.msk.bf16.mxu0 %vm3083_vm0, %v3082_v1 }
 0x479   : > { %v1551_v29 = vpop.xlane.xlu0 %1550 }
 0x47a   : > { %v1555_v30 = vmul.f32 0.35355338, %v1551_v29 }
 0x47d   : > { %v1554_v31 = vpop.xlane.xlu1 %1553 }
 0x47e   : > { %v1556_v35 = vmul.f32 0.35355338, %v1554_v31 }
 0x4ab   : > { %v1479_v8 = vpop.f32.mrf.mxu1 }
 0x4ad   : > { %v2806_v9 = vpop.f32.mrf.mxu1 }
 0x4af   : > { %v1482_v10 = vpop.f32.mrf.mxu1 }
 0x4b1   : > { %v2807_v11 = vpop.f32.mrf.mxu1 }
 0x4bb   : > { %v3478_v13 = vpop.f32.mrf.mxu0 }
 0x4bd   : > { %v2800_v14 = vpop.f32.mrf.mxu0 }
 0x4bf   : > { %v3480_v15 = vpop.f32.mrf.mxu0 }
 0x4c1   : > { %v2801_v16 = vpop.f32.mrf.mxu0 }
 0x4c3   : > { %v1530_v17 = vpop.f32.mrf.mxu0 }
 0x4c4   : > { %v1537_v18 = vsel %vm1194_vm8, %v1479_v8, %v1530_v17 }
 0x4c5   : > { %v1539_v19 = vmul.f32 0.35355338, %v1537_v18  ;;  %v2812_v20 = vpop.f32.mrf.mxu0 }
 0x4c7   : > { %v1533_v21 = vpop.f32.mrf.mxu0  ;;  %v1541_v22 = vadd.f32 %v1539_v19, %v3426_v6 }
 0x4c8   : > { %v1538_v23 = vsel %vm1195_vm9, %v1482_v10, %v1533_v21 }
 0x4c9   : > { %v1540_v24 = vmul.f32 0.35355338, %v1538_v23  ;;  %v2813_v25 = vpop.f32.mrf.mxu0  ;;  %v1557_v26 = vsel %vm1334_vm10, %v1541_v22, -inf }
 0x4ca   : > { %1558 = vmax.xlane.f32.xlu0 %v1557_v26 }
 0x4cb   : > { %v1542_v27 = vadd.f32 %v1540_v24, %v3435_v12 }
 0x4cd   : > { %v1560_v28 = vsel %vm1338_vm11, %v1542_v27, -inf }
 0x4ce   : > { %1561 = vmax.xlane.f32.xlu0 %v1560_v28 }
 0x553   : > { %v1559_v32 = vpop.xlane.xlu0 %1558 }
 0x554   : > { %v1563_v34 = vmax.f32 %v1559_v32, %v1555_v30 }
 0x556   : > { %v1565_v36 = vsub.f32 %v1541_v22, %v1563_v34  ;;  %v1571_v37 = vsub.f32 %v1555_v30, %v1563_v34 }
 0x557   : > { %v1562_v38 = vpop.xlane.xlu0 %1561 }
 0x558   : > { %v1567_v39 = vmul.f32 1.442695, %v1565_v36  ;;  %v1564_v40 = vmax.f32 %v1562_v38, %v1556_v35  ;;  %v1573_v49 = vmul.f32 1.442695, %v1571_v37 }
 0x55a   : > { %2976 = vpow2.f32 %v1567_v39  ;;  %v1566_v41 = vsub.f32 %v1542_v27, %v1564_v40  ;;  %v1572_v42 = vsub.f32 %v1556_v35, %v1564_v40 }
 0x55c   : > { %v1569_v43 = vmul.f32 1.442695, %v1566_v41  ;;  %v1575_v50 = vmul.f32 1.442695, %v1572_v42 }
 0x55e   : > { %2978 = vpow2.f32 %v1569_v43 }
 0x55f   : > { %2980 = vpow2.f32 %v1573_v49 }
 0x560   : > { %2982 = vpow2.f32 %v1575_v50 }
 0x567   : > { %v2977_v45 = vpop.eup %2976 }
 0x568   : > { %v1577_v46 = vsel %vm1334_vm10, %v2977_v45, 0.0 }
 0x569   : > { %1578 = vadd.xlane.f32.xlu1 %v1577_v46 }
 0x56b   : > { %v2979_v47 = vpop.eup %2978 }
 0x56c   : > { %v1580_v48 = vsel %vm1338_vm11, %v2979_v47, 0.0  ;;  %v2981_v51 = vpop.eup %2980 }
 0x56d   : > { %1581 = vadd.xlane.f32.xlu0 %v1580_v48  ;;  %v2983_v57 = vpop.eup %2982 }
 0x57a   : > { %1594 = vrot.lane.b32.xlu1 %v3376_v33, %s3089_s11 }
 0x57e   : > { %1718 = vrot.lane.b32.xlu1 %v3376_v33, %s3090_s8 }
 0x582   : > { %1665 = vrot.lane.b32.xlu1 %v3390_v53, %s3091_s6 }
 0x583   : > { %1667 = vrot.lane.b32.xlu0 %v3376_v33, %s3091_s6  ;;  %s3098_s6 = smov 24  }
 0x586   : > { %1773 = vrot.lane.b32.xlu1 %v3400_v55, %s3092_s24 }
 0x587   : > { %1716 = vrot.lane.b32.xlu0 %v3390_v53, %s3090_s8  ;;  %s898_s8 = sand.u32 1, %s3072_s5  }
 0x58b   : > { %1775 = vrot.lane.b32.xlu0 %v3392_v54, %s3092_s24 }
 0x5f2   : > { %v1579_v52 = vpop.xlane.xlu1 %1578 }
 0x5f3   : > { %v1583_v56 = vadd.f32 %v2981_v51, %v1579_v52 }
 0x5f5   : > { %2984 = vrcp.f32 %v1583_v56 }
 0x5f6   : > { %v1595_v58 = vpop.permute.xlu1 %1594  ;;  %v1582_v59 = vpop.xlane.xlu0 %1581 }
 0x5f7   : > { %v1608_v60 = vsel %vm1386_vm12, %v1595_v58, 0  ;;  %v1584_v62 = vadd.f32 %v2983_v57, %v1582_v59 }
 0x5f8   : > { %2815 = vmatpush3.bf16.msra.mxu1 %v1608_v60 }
 0x5f9   : > { %2986 = vrcp.f32 %v1584_v62  ;;  %2826 = vmatprep.subr.bf16.mxu1 %v3082_v1 }
 0x5fa   : > { %v1719_v0 = vpop.permute.xlu1 %1718  ;;  %v1668_v5 = vpop.permute.xlu0 %1667 }
 0x5fb   : > { %v1673_v7 = vsel %vm1200_vm3, %v1668_v5, 0  ;;  %v1724_v24 = vsel %vm1200_vm3, %v1719_v0, 0 }
 0x5fc   : > { %2821 = vmatpush3.bf16.xpose.msra.mxu0 %v1673_v7 }
 0x5fd   : > { %2832 = vmatprep.subr.bf16.mxu0 %v3082_v1 }
 0x5fe   : > { %v1666_v8 = vpop.permute.xlu1 %1665  ;;  %v1717_v9 = vpop.permute.xlu0 %1716 }
 0x602   : > { %v2985_v10 = vpop.eup %2984  ;;  %v1774_v11 = vpop.permute.xlu1 %1773 }
 0x603   : > { %v1776_v14 = vpop.permute.xlu0 %1775  ;;  %2823 = vmatmul.mubr.msk.bf16.vlgmr.msra.gmra.mxu0 %vm1200_vm3, %v1666_v8  ;;  %v1779_v16 = vsel %vm1200_vm3, %v1774_v11, 0.0  ;;  %v3509_v18 = vmul.f32 %v2985_v10, %v2981_v51  ;;  %v3513_v20 = vmul.f32 %v2985_v10, %v2977_v45 }
 0x604   : > { %v1782_v17 = vsel %vm1328_vm7, %v1776_v14, 0.0  ;;  %1780 = vadd.xlane.f32.xlu1 %v1779_v16  ;;  %2834 = vmatprep.mubr.msk.bf16.mxu0 %vm3083_vm0, %v3082_v1 }
 0x605   : > { %1783 = vadd.xlane.f32.xlu0 %v1782_v17 }
 0x606   : > { %v2987_v19 = vpop.eup %2986 }
 0x607   : > { %v1588_v21 = vmul.f32 %v2987_v19, %v2979_v47  ;;  %v3515_v22 = vmul.f32 %v2987_v19, %v2983_v57 }
 0x609   : > { %v1591_v23 = vpack.c.bf16 %v1588_v21, %v3513_v20 }
 0x60b   : > { %2817 = vmatmul.mubr.msk.bf16.vlgmr.msra.gmra.mxu1 %vm1334_vm10, %v1591_v23 }
 0x60c   : > { %2827 = vmatpush3.bf16.xpose.msra.mxu1 %v1724_v24  ;;  %2828 = vmatprep.mubr.msk.bf16.mxu1 %vm3083_vm0, %v3082_v1 }
 0x60d   : > { %2838 = vmatprep.subr.bf16.mxu1 %v3082_v1 }
 0x613   : > { %2829 = vmatmul.mubr.msk.bf16.vlgmr.msra.gmra.mxu1 %vm1200_vm3, %v1717_v9 }
 0x614   : > { %2840 = vmatprep.mubr.msk.bf16.mxu1 %vm3083_vm0, %v3082_v1 }
 0x68d   : > { %v1781_v47 = vpop.xlane.xlu1 %1780 }
 0x68e   : > { %v1784_v48 = vpop.xlane.xlu0 %1783  ;;  %v1785_v49 = vmul.f32 0.35355338, %v1781_v47 }
 0x68f   : > { %v1786_v52 = vmul.f32 0.35355338, %v1784_v48 }
 0x6c3   : > { %v1709_v25 = vpop.f32.mrf.mxu0 }
 0x6c5   : > { %v2824_v26 = vpop.f32.mrf.mxu0 }
 0x6c7   : > { %v1712_v27 = vpop.f32.mrf.mxu0 }
 0x6c9   : > { %v2825_v28 = vpop.f32.mrf.mxu0 }
 0x6cb   : > { %v3526_v29 = vpop.f32.mrf.mxu1 }
 0x6cd   : > { %v2818_v30 = vpop.f32.mrf.mxu1 }
 0x6cf   : > { %v3528_v31 = vpop.f32.mrf.mxu1 }
 0x6d1   : > { %v2819_v32 = vpop.f32.mrf.mxu1 }
 0x6d3   : > { %v1760_v34 = vpop.f32.mrf.mxu1 }
 0x6d4   : > { %v1767_v35 = vsel %vm1194_vm8, %v1709_v25, %v1760_v34 }
 0x6d5   : > { %v1769_v36 = vmul.f32 0.35355338, %v1767_v35  ;;  %v2830_v37 = vpop.f32.mrf.mxu1  ;;  %v1663_v35 = vadd.f32 %v3513_v20, %v3465_v63 }
 0x6d7   : > { %v1763_v38 = vpop.f32.mrf.mxu1  ;;  %v1771_v39 = vadd.f32 %v1769_v36, %v3426_v6 }
 0x6d8   : > { %v1768_v40 = vsel %vm1195_vm9, %v1712_v27, %v1763_v38 }
 0x6d9   : > { %v1770_v41 = vmul.f32 0.35355338, %v1768_v40  ;;  %v2831_v42 = vpop.f32.mrf.mxu1  ;;  %v1787_v43 = vsel %vm1334_vm10, %v1771_v39, -inf  ;;  %v1664_v40 = vadd.f32 %v3509_v18, %v3463_v61 }
 0x6da   : > { %1788 = vmax.xlane.f32.xlu0 %v1787_v43 }
 0x6db   : > { %v1772_v45 = vadd.f32 %v1770_v41, %v3435_v12 }
 0x6dd   : > { %v1790_v46 = vsel %vm1338_vm11, %v1772_v45, -inf }
 0x6de   : > { %1791 = vmax.xlane.f32.xlu1 %v1790_v46 }
 0x6ef   : > { %1897 = vrot.lane.b32.xlu1 %v3376_v33, %s3093_s25 }
 0x763   : > { %v1789_v50 = vpop.xlane.xlu0 %1788 }
 0x764   : > { %v1793_v51 = vmax.f32 %v1789_v50, %v1785_v49 }
 0x766   : > { %v1795_v56 = vsub.f32 %v1771_v39, %v1793_v51  ;;  %v1801_v57 = vsub.f32 %v1785_v49, %v1793_v51 }
 0x767   : > { %v1792_v58 = vpop.xlane.xlu1 %1791 }
 0x768   : > { %v1797_v59 = vmul.f32 1.442695, %v1795_v56  ;;  %v1794_v60 = vmax.f32 %v1792_v58, %v1786_v52  ;;  %v1803_v16 = vmul.f32 1.442695, %v1801_v57 }
 0x76a   : > { %2988 = vpow2.f32 %v1797_v59  ;;  %v1796_v62 = vsub.f32 %v1772_v45, %v1794_v60  ;;  %v1802_v0 = vsub.f32 %v1786_v52, %v1794_v60 }
 0x76b   : > { %v1898_v5 = vpop.permute.xlu1 %1897 }
 0x76c   : > { %v1799_v7 = vmul.f32 1.442695, %v1796_v62  ;;  %v1903_v8 = vsel %vm1200_vm3, %v1898_v5, 0  ;;  %v1805_v17 = vmul.f32 1.442695, %v1802_v0 }
 0x76d   : > { %2839 = vmatpush3.bf16.xpose.msra.mxu1 %v1903_v8 }
 0x76e   : > { %2990 = vpow2.f32 %v1799_v7  ;;  %2850 = vmatprep.subr.bf16.mxu1 %v3082_v1 }
 0x76f   : > { %2992 = vpow2.f32 %v1803_v16 }
 0x770   : > { %2994 = vpow2.f32 %v1805_v17 }
 0x777   : > { %v2989_v9 = vpop.eup %2988 }
 0x778   : > { %v1807_v10 = vsel %vm1334_vm10, %v2989_v9, 0.0 }
 0x779   : > { %1808 = vadd.xlane.f32.xlu0 %v1807_v10 }
 0x77b   : > { %v2991_v11 = vpop.eup %2990 }
 0x77c   : > { %v1810_v14 = vsel %vm1338_vm11, %v2991_v11, 0.0  ;;  %v2993_v19 = vpop.eup %2992 }
 0x77d   : > { %1811 = vadd.xlane.f32.xlu1 %v1810_v14  ;;  %v2995_v24 = vpop.eup %2994 }
 0x78e   : > { %1948 = vrot.lane.b32.xlu1 %v3376_v33, %s3094_s26 }
 0x78f   : > { %1824 = vrot.lane.b32.xlu0 %v3376_v33, %s3092_s24 }
 0x792   : > { %1946 = vrot.lane.b32.xlu1 %v3390_v53, %s3094_s26  ;;  %s3859_s26 = sld [smem:[#allocation32_spill]] }
 0x793   : > { %1895 = vrot.lane.b32.xlu0 %v3390_v53, %s3093_s25  ;;  %s3855_s25 = sld [smem:[#allocation27_spill]] }
 0x796   : > { %2005 = vrot.lane.b32.xlu1 %v3392_v54, %s3095_s27 }
 0x797   : > { %2003 = vrot.lane.b32.xlu0 %v3400_v55, %s3095_s27 }
 0x802   : > { %v1809_v21 = vpop.xlane.xlu0 %1808 }
 0x803   : > { %v1813_v23 = vadd.f32 %v2993_v19, %v1809_v21 }
 0x805   : > { %2996 = vrcp.f32 %v1813_v23 }
 0x806   : > { %v1825_v25 = vpop.permute.xlu0 %1824  ;;  %v1812_v26 = vpop.xlane.xlu1 %1811 }
 0x807   : > { %v1838_v53 = vsel %vm1386_vm12, %v1825_v25, 0  ;;  %v1814_v27 = vadd.f32 %v2995_v24, %v1812_v26 }
 0x808   : > { %2833 = vmatpush3.bf16.msra.mxu0 %v1838_v53 }
 0x809   : > { %2998 = vrcp.f32 %v1814_v27  ;;  %2844 = vmatprep.subr.bf16.mxu0 %v3082_v1 }
 0x80a   : > { %v1896_v54 = vpop.permute.xlu0 %1895  ;;  %v1949_v55 = vpop.permute.xlu1 %1948 }
 0x80b   : > { %2841 = vmatmul.mubr.msk.bf16.vlgmr.msra.gmra.mxu1 %vm1200_vm3, %v1896_v54  ;;  %v1954_v63 = vsel %vm1200_vm3, %v1949_v55, 0 }
 0x80c   : > { %2852 = vmatprep.mubr.msk.bf16.mxu1 %vm3083_vm0, %v3082_v1 }
 0x80e   : > { %v2004_v28 = vpop.permute.xlu0 %2003  ;;  %v1947_v30 = vpop.permute.xlu1 %1946 }
 0x80f   : > { %v2009_v32 = vsel %vm1200_vm3, %v2004_v28, 0.0 }
 0x810   : > { %2010 = vadd.xlane.f32.xlu0 %v2009_v32 }
 0x812   : > { %v2997_v34 = vpop.eup %2996  ;;  %v2006_v36 = vpop.permute.xlu1 %2005 }
 0x813   : > { %v2012_v37 = vsel %vm1328_vm7, %v2006_v36, 0.0  ;;  %v1817_v38 = vmul.f32 %v2997_v34, %v2989_v9  ;;  %v3563_v39 = vmul.f32 %v2997_v34, %v2993_v19  ;;  %v1593_v34 = vmul.f32 %v3515_v22, %v3384_v44 }
 0x814   : > { %2013 = vadd.xlane.f32.xlu1 %v2012_v37 }
 0x815   : > { %v3567_v41 = vadd.f32 %v1817_v38, %v1663_v35  ;;  %v3570_v42 = vadd.f32 %v3563_v39, %v1664_v40  ;;  %v1372_v35 = vmul.f32 %v3467_v4, %v3384_v44 }
 0x816   : > { %v2999_v43 = vpop.eup %2998 }
 0x817   : > { %v1818_v45 = vmul.f32 %v2999_v43, %v2991_v11  ;;  %v1820_v46 = vmul.f32 %v2999_v43, %v2995_v24 }
 0x819   : > { %v1821_v47 = vpack.c.bf16 %v1818_v45, %v1817_v38  ;;  %v1823_v32 = vmul.f32 %v1820_v46, %v3384_v44 }
 0x81b   : > { %2835 = vmatmul.mubr.msk.bf16.vlgmr.msra.gmra.mxu0 %vm1334_vm10, %v1821_v47 }
 0x81c   : > { %2845 = vmatpush3.bf16.xpose.msra.mxu0 %v1954_v63  ;;  %2846 = vmatprep.mubr.msk.bf16.mxu0 %vm3083_vm0, %v3082_v1 }
 0x81d   : > { %2856 = vmatprep.subr.bf16.mxu0 %v3082_v1 }
 0x823   : > { %2847 = vmatmul.mubr.msk.bf16.vlgmr.msra.gmra.mxu0 %vm1200_vm3, %v1947_v30 }
 0x824   : > { %2860 = vmatprep.mubr.msk.bf16.mxu0 %vm3083_vm0, %v3082_v1 }
 0x899   : > { %v2011_v2 = vpop.xlane.xlu0 %2010 }
 0x89a   : > { %v2015_v16 = vmul.f32 0.35355338, %v2011_v2 }
 0x89d   : > { %v2014_v17 = vpop.xlane.xlu1 %2013 }
 0x89e   : > { %v2016_v23 = vmul.f32 0.35355338, %v2014_v17 }
 0x8cb   : > { %v1939_v20 = vpop.f32.mrf.mxu1 }
 0x8cd   : > { %v2842_v48 = vpop.f32.mrf.mxu1 }
 0x8cf   : > { %v1942_v49 = vpop.f32.mrf.mxu1 }
 0x8d1   : > { %v2843_v50 = vpop.f32.mrf.mxu1 }
 0x8db   : > { %v3580_v51 = vpop.f32.mrf.mxu0 }
 0x8dd   : > { %v2836_v52 = vpop.f32.mrf.mxu0 }
 0x8df   : > { %v3582_v56 = vpop.f32.mrf.mxu0 }
 0x8e1   : > { %v2837_v57 = vpop.f32.mrf.mxu0 }
 0x8e3   : > { %v1990_v58 = vpop.f32.mrf.mxu0 }
 0x8e4   : > { %v1997_v59 = vsel %vm1194_vm8, %v1939_v20, %v1990_v58 }
 0x8e5   : > { %v1999_v60 = vmul.f32 0.35355338, %v1997_v59  ;;  %v2848_v62 = vpop.f32.mrf.mxu0 }
 0x8e7   : > { %v1993_v0 = vpop.f32.mrf.mxu0  ;;  %v2001_v5 = vadd.f32 %v1999_v60, %v3426_v6 }
 0x8e8   : > { %v1998_v7 = vsel %vm1195_vm9, %v1942_v49, %v1993_v0 }
 0x8e9   : > { %v2000_v8 = vmul.f32 0.35355338, %v1998_v7  ;;  %v2849_v9 = vpop.f32.mrf.mxu0  ;;  %v2017_v10 = vsel %vm1334_vm10, %v2001_v5, -inf }
 0x8ea   : > { %2018 = vmax.xlane.f32.xlu0 %v2017_v10  ;;  %v2954_v10 = vld [vmem:[%s3782_s14 + $0x8] sm:$0xff]  }
 0x8eb   : > { %v2002_v11 = vadd.f32 %v2000_v8, %v3435_v12 }
 0x8ed   : > { %v2020_v14 = vsel %vm1338_vm11, %v2002_v11, -inf }
 0x8ee   : > { %2021 = vmax.xlane.f32.xlu0 %v2020_v14 }
 0x973   : > { %v2019_v19 = vpop.xlane.xlu0 %2018 }
 0x974   : > { %v2023_v21 = vmax.f32 %v2019_v19, %v2015_v16  ;;  %v1592_v19 = vmul.f32 %v3509_v18, %v3384_v44  ;;  %v2231_v18 = vld [vmem:[%s3783_s15] sm:$0x1] }
 0x976   : > { %v2025_v6 = vsub.f32 %v2001_v5, %v2023_v21  ;;  %v2031_v24 = vsub.f32 %v2015_v16, %v2023_v21  ;;  %v1822_v21 = vmul.f32 %v3563_v39, %v3384_v44 }
 0x977   : > { %v2022_v3 = vpop.xlane.xlu0 %2021 }
 0x978   : > { %v2027_v25 = vmul.f32 1.442695, %v2025_v6  ;;  %v2024_v26 = vmax.f32 %v2022_v3, %v2016_v23  ;;  %v2033_v36 = vmul.f32 1.442695, %v2031_v24 }
 0x97a   : > { %3000 = vpow2.f32 %v2027_v25  ;;  %v2026_v53 = vsub.f32 %v2002_v11, %v2024_v26  ;;  %v2032_v27 = vsub.f32 %v2016_v23, %v2024_v26 }
 0x97c   : > { %v2029_v54 = vmul.f32 1.442695, %v2026_v53  ;;  %v2035_v37 = vmul.f32 1.442695, %v2032_v27  ;;  %v3018_v53 = vld [vmem:[%s3340_s28] sm:$0x1] }
 0x97e   : > { %3002 = vpow2.f32 %v2029_v54 }
 0x97f   : > { %3004 = vpow2.f32 %v2033_v36 }
 0x980   : > { %3006 = vpow2.f32 %v2035_v37 }
 0x987   : > { %v3001_v12 = vpop.eup %3000 }
 0x988   : > { %v2037_v55 = vsel %vm1334_vm10, %v3001_v12, 0.0 }
 0x989   : > { %2038 = vadd.xlane.f32.xlu1 %v2037_v55 }
 0x98b   : > { %v3003_v28 = vpop.eup %3002 }
 0x98c   : > { %v2040_v30 = vsel %vm1338_vm11, %v3003_v28, 0.0  ;;  %v3005_v38 = vpop.eup %3004 }
 0x98d   : > { %2041 = vadd.xlane.f32.xlu0 %v2040_v30  ;;  %v3007_v43 = vpop.eup %3006 }
 0x99a   : > { %2054 = vrot.lane.b32.xlu1 %v3376_v33, %s3095_s27 }
 0x99e   : > { %1830 = vrot.lane.b32.xlu1 %v1823_v32, %s3092_s24  ;;  %v1371_v32 = vmul.f32 %v3463_v61, %v3384_v44 }
 0x9a3   : > { %1600 = vrot.lane.b32.xlu0 %v1593_v34, %s3089_s11 }
 0x9a7   : > { %1379 = vrot.lane.b32.xlu0 %v1372_v35, %s3086_s30 }
 0xa12   : > { %v2039_v33 = vpop.xlane.xlu1 %2038 }
 0xa13   : > { %v2043_v40 = vadd.f32 %v3005_v38, %v2039_v33 }
 0xa15   : > { %3008 = vrcp.f32 %v2043_v40 }
 0xa16   : > { %v2055_v45 = vpop.permute.xlu1 %2054  ;;  %v2042_v46 = vpop.xlane.xlu0 %2041 }
 0xa17   : > { %v2068_v22 = vsel %vm1386_vm12, %v2055_v45, 0  ;;  %v2044_v47 = vadd.f32 %v3007_v43, %v2042_v46 }
 0xa18   : > { %2851 = vmatpush3.bf16.msra.mxu1 %v2068_v22 }
 0xa19   : > { %3010 = vrcp.f32 %v2044_v47  ;;  %2864 = vmatprep.subr.bf16.mxu1 %v3082_v1 }
 0xa1a   : > { %v1831_v4 = vpop.permute.xlu1 %1830  ;;  %v1601_v63 = vpop.permute.xlu0 %1600 }
 0xa1b   : > { %v1878_v20 = vadd.f32 %v3582_v56, %v1831_v4 }
 0xa1d   : > { %1885 = vrot.lane.b32.xlu0 %v1878_v20, %s3096_s2 }
 0xa1e   : > { %v1380_v48 = vpop.permute.xlu0 %1379 }
 0xa1f   : > { %v1428_v49 = vadd.f32 %v3480_v15, %v1380_v48  ;;  %v1648_v15 = vadd.f32 %v3528_v31, %v1601_v63  ;;  %v2955_v31 = vld [vmem:[%s3782_s14] sm:$0xff]   ;;  %v2958_v48 = vld [vmem:[%s3788_s20 + $0x8] sm:$0xff]  }
 0xa21   : > { %1432 = vst.msk [vmem:[#allocation3 + $0x8] sm:$0x1] %vm1328_vm7, %v1428_v49  ;;  %vm2119_vm7 = vcmask 261312  }
 0xa22   : > { %v3009_v50 = vpop.eup %3008 }
 0xa23   : > { %v2047_v52 = vmul.f32 %v3009_v50, %v3001_v12  ;;  %v2049_v57 = vmul.f32 %v3009_v50, %v3005_v38 }
 0xa25   : > { %v2123_v58 = vadd.f32 %v2047_v52, %v3567_v41  ;;  %v2124_v59 = vadd.f32 %v2049_v57, %v3570_v42  ;;  %v2052_v23 = vmul.f32 %v2049_v57, %v3384_v44  ;;  %v2288_v57 = vld [vmem:[%s3786_s18] sm:$0x1] }
 0xa26   : > { %v3011_v60 = vpop.eup %3010 }
 0xa27   : > { %v2050_v62 = vmul.f32 %v3011_v60, %v3007_v43  ;;  %v2048_v0 = vmul.f32 %v3011_v60, %v3003_v28  ;;  %v2464_v56 = vmul.f32 0.25, %v2123_v58  ;;  %v2466_v5 = vmul.f32 0.25, %v2124_v59  ;;  %v2289_v59 = vld [vmem:[%s3787_s19] sm:$0x1] }
 0xa29   : > { %v2053_v7 = vmul.f32 %v2050_v62, %v3384_v44  ;;  %v2051_v8 = vpack.c.bf16 %v2048_v0, %v2047_v52  ;;  %2465 = vst.msk [vmem:[#allocation4] sm:$0xff] %vm1334_vm10, %v2464_v56  ;;  %v2959_v52 = vld [vmem:[%s3788_s20] sm:$0xff]   ;;  %v2960_v56 = vld [vmem:[%s3790_s22 + $0x18] sm:$0xff]  }
 0xa2a   : > { %2468 = vst.msk [vmem:[#allocation4] sm:$0xff] %vm2467_vm13, %v2466_v5  ;;  %v2961_v5 = vld [vmem:[%s3790_s22 + $0x10] sm:$0xff]  }
 0xa2b   : > { %2060 = vrot.lane.b32.xlu1 %v2053_v7, %s3095_s27  ;;  %2853 = vmatmul.mubr.msk.bf16.vlgmr.msra.gmra.mxu1 %vm1334_vm10, %v2051_v8  ;;  %2470 = vst.msk [vmem:[#allocation4] sm:$0xff] %vm2469_vm5, %v3082_v1  ;;  %v2962_v7 = vld [vmem:[%s3790_s22 + $0x8] sm:$0xff]   ;;  %v2963_v8 = vld [vmem:[%s3790_s22] sm:$0xff]  }
 0xa2c   : > { %2868 = vmatprep.mubr.msk.bf16.mxu1 %vm3083_vm0, %v3082_v1  ;;  %2865 = vmatpush3.bf16.msra.mxu1 %v2954_v10  ;;  %v3019_v10 = vld [vmem:[%s3327_s0] sm:$0xff]  ;;  %s2697_s0 = sshll.u32 %s3266_s3, 7 }
 0xa2d   : > { %2866 = vmatprep.subr.bf16.mxu1 %v3082_v1 }
 0xa2f   : > { %1655 = vrot.lane.b32.xlu1 %v1648_v15, %s3097_s7  ;;  %v2679_v15 = vld [vmem:[%s3781_s13] ss:$0 sm:$0xff] }
 0xa30   : > { %2867 = vmatpush3.bf16.msra.mxu1 %v2955_v31 }
 0xa31   : > { %2880 = vmatprep.subr.bf16.mxu1 %v3082_v1 }
 0xa8f   : > { %v1886_v9 = vpop.permute.xlu0 %1885 }
 0xa9d   : > { %v2061_v41 = vpop.permute.xlu1 %2060 }
 0xaa1   : > { %v1656_v42 = vpop.permute.xlu1 %1655 }
 0xaa2   : > { %1662 = vst.msk [vmem:[#allocation3 + $0x8] sm:$0x1] %vm1661_vm14, %v1656_v42 }
 0xaa3   : > { %1892 = vst.msk [vmem:[#allocation3 + $0x8] sm:$0x1] %vm1891_vm15, %v1886_v9 }
 0xaeb   : > { %v2104_v11 = vpop.f32.mrf.mxu1 }
 0xaed   : > { %v2854_v14 = vpop.f32.mrf.mxu1 }
 0xaef   : > { %v2107_v2 = vpop.f32.mrf.mxu1 }
 0xaf0   : > { %v2108_v16 = vadd.f32 %v2107_v2, %v2061_v41 }
 0xaf1   : > { %v2855_v17 = vpop.f32.mrf.mxu1 }
 0xaf2   : > { %2115 = vrot.lane.b32.xlu1 %v2108_v16, %s3098_s6 }
 0xaf6   : > { %1598 = vrot.lane.b32.xlu1 %v1592_v19, %s3089_s11 }
 0xafa   : > { %1828 = vrot.lane.b32.xlu1 %v1822_v21, %s3092_s24 }
 0xafe   : > { %2058 = vrot.lane.b32.xlu1 %v2052_v23, %s3095_s27  ;;  %s3856_s27 = sshll.u32 %s3311_s1, 3 }
 0xaff   : > { %s924_s4 = scalar_lea.vmem %s3857_s29, %s3856_s27  ;;  %s2498_s27 = scalar_lea.hbm %s3859_s26, %s2697_s0 }
 0xb00   : > { %s3099_s29 = smov [#allocation5]  }
 0xb64   : > { %v2116_v6 = vpop.permute.xlu1 %2115 }
 0xb65   : > { %2122 = vst.msk [vmem:[#allocation3 + $0x8] sm:$0x1] %vm2121_vm2, %v2116_v6 }
 0xb68   : > { %v1599_v28 = vpop.permute.xlu1 %1598 }
 0xb69   : > { %v1645_v61 = vadd.f32 %v3526_v29, %v1599_v28 }
 0xb6c   : > { %v2126_v24 = vld [vmem:[#allocation3 + $0x8] sm:$0x1]  ;;  %v1829_v30 = vpop.permute.xlu1 %1828 }
 0xb6d   : > { %v2226_v3 = vpack.c.bf16 %v2126_v24, %v2126_v24  ;;  %v1875_v34 = vadd.f32 %v3580_v51, %v1829_v30  ;;  %v2956_v51 = vld [vmem:[%s3855_s25 + $0x8] sm:$0xff]  }
 0xb6e   : > { %2857 = vmatpush3.bf16.msra.mxu0 %v2956_v51 }
 0xb6f   : > { %2869 = vmatmul.mubr.msk.bf16.vlgmr.msra.gmra.mxu1 %vm958_vm1, %v2226_v3  ;;  %2858 = vmatprep.subr.bf16.mxu0 %v3082_v1 }
 0xb70   : > { %2888 = vmatprep.mubr.msk.bf16.mxu1 %vm3083_vm0, %v3082_v1  ;;  %v2059_v35 = vpop.permute.xlu1 %2058  ;;  %2881 = vmatpush3.bf16.msra.mxu1 %v2960_v56 }
 0xb71   : > { %v2105_v36 = vadd.f32 %v2104_v11, %v2059_v35  ;;  %2882 = vmatprep.subr.bf16.mxu1 %v3082_v1 }
 0xb74   : > { %2883 = vmatpush3.bf16.msra.mxu1 %v2961_v5 }
 0xb75   : > { %2884 = vmatprep.subr.bf16.mxu1 %v3082_v1 }
 0xb78   : > { %2885 = vmatpush3.bf16.msra.mxu1 %v2962_v7 }
 0xb79   : > { %2886 = vmatprep.subr.bf16.mxu1 %v3082_v1 }
 0xb7c   : > { %2887 = vmatpush3.bf16.msra.mxu1 %v2963_v8 }
 0xc2f   : > { %v2281_v39 = vpop.f32.mrf.mxu1 }
 0xc30   : > { %v2282_v25 = vadd.f32 %v2281_v39, %v2231_v18 }
 0xc31   : > { %v2870_v26 = vpop.f32.mrf.mxu1 }
 0xc32   : > { %v2287_v27 = vadd.f32 %v3018_v53, %v2282_v25  ;;  %v2376_v53 = vld [vmem:[%s3791_s23] sm:$0x1] }
 0xc33   : > { %v2284_v54 = vpop.f32.mrf.mxu1 }
 0xc34   : > { %v2290_v12 = vsel %vm1177_vm4, %v2287_v27, 0.0 }
 0xc35   : > { %2291 = vadd.xlane.f32.xlu0 %v2290_v12  ;;  %v2871_v55 = vpop.f32.mrf.mxu1 }
 0xc4b   : > { %1377 = vrot.lane.b32.xlu0 %v1371_v32, %s3086_s30 }
 0xc4f   : > { %1883 = vrot.lane.b32.xlu0 %v1875_v34, %s3096_s2  ;;  %s2481_s2 = scalar_lea.sflag [#allocation6], %s898_s8 }
 0xc53   : > { %2113 = vrot.lane.b32.xlu0 %v2105_v36, %s3098_s6  ;;  %s2648_s6 = sshll.u32 %s898_s8, 3 }
 0xc54   : > { %s900_s11 = scalar_lea.vmem [#allocation5], %s2648_s6 }
 0xc55   : > { %s2500_s24 = sshll.u32 %s900_s11, 4  ;;  %s2501_s24 = int_to_ptr.vmem [resolvable:$true] %s2500_s24 }
 0xcbe   : > { %v2292_v37 = vpop.xlane.xlu0 %2291 }
 0xcbf   : > { %v2293_v38 = vmul.f32 0.03125, %v2292_v37 }
 0xcc1   : > { %v2294_v33 = vsub.f32 %v2287_v27, %v2293_v38  ;;  %v2683_v38 = vld [vmem:[%s3784_s16] ss:$0 sm:$0xff] }
 0xcc2   : > { %v1378_v40 = vpop.permute.xlu0 %1377 }
 0xcc3   : > { %v1425_v43 = vadd.f32 %v3478_v13, %v1378_v40  ;;  %v2295_v45 = vmul.f32 %v2294_v33, %v2294_v33  ;;  %v2957_v13 = vld [vmem:[%s3855_s25] sm:$0xff]  }
 0xcc4   : > { %2859 = vmatpush3.bf16.msra.mxu0 %v2957_v13  ;;  %v2684_v40 = vld [vmem:[%s3785_s17] ss:$0 sm:$0xff] }
 0xcc5   : > { %1431 = vst.msk [vmem:[#allocation3] sm:$0xff] %vm1200_vm3, %v1425_v43  ;;  %v2296_v44 = vsel %vm1177_vm4, %v2295_v45, 0.0  ;;  %2872 = vmatprep.subr.bf16.mxu0 %v3082_v1  ;;  %vm1659_vm3 = vcmask 130112  }
 0xcc6   : > { %2297 = vadd.xlane.f32.xlu1 %v2296_v44  ;;  %v1884_v46 = vpop.permute.xlu0 %1883 }
 0xcca   : > { %v2114_v63 = vpop.permute.xlu0 %2113 }
 0xcd7   : > { %1653 = vrot.lane.b32.xlu1 %v1645_v61, %s3097_s7  ;;  %s3020_s7 = scalar_lea.vmem %s2501_s24, 128 }
 0xcd8   : > { %p3021_p11 = scmp.ne.s32.totalorder %s2501_s24, %s3020_s7 }
 0xcda   : > { %p3022_p12 = pnand %p3021_p11, %p3283_p5 }
 0xcdc   : > { %p3023_p13 = pneg %p3022_p12 }
 0xd4f   : > { %v2298_v22 = vpop.xlane.xlu1 %2297 }
 0xd50   : > { %v2299_v47 = vmul.f32 0.03125, %v2298_v22  ;;  %v2471_v22 = vld [vmem:[#allocation4] sm:$0xff] }
 0xd51   : > { %2472 = vst [vmem:[%s900_s11] sm:$0xff] %v2471_v22 }
 0xd52   : > { %v2300_v29 = vadd.f32 1e-05, %v2299_v47 }
 0xd53   : > { %v1654_v4 = vpop.permute.xlu1 %1653 }
 0xd54   : > { %3012 = vrsqrt.f32 %v2300_v29  ;;  %1660 = vst.msk [vmem:[#allocation3] sm:$0xff] %vm1659_vm3, %v1654_v4 }
 0xd55   : > { %1890 = vst.msk [vmem:[#allocation3] sm:$0xff] %vm1889_vm6, %v1884_v46 }
 0xd56   : > { %2120 = vst.msk [vmem:[#allocation3] sm:$0xff] %vm2119_vm7, %v2114_v63 }
 0xd5d   : > { %v2125_v20 = vld [vmem:[#allocation3] sm:$0xff] }
 0xd5e   : > { %v2127_v49 = vpack.c.bf16 %v2125_v20, %v2125_v20 }
 0xd60   : > { %2861 = vmatmul.mubr.msk.bf16.vlgmr.msra.gmra.mxu0 %vm958_vm1, %v2127_v49 }
 0xd61   : > { %v3013_v50 = vpop.eup %3012  ;;  %2873 = vmatpush3.bf16.msra.mxu0 %v2958_v48  ;;  %2876 = vmatprep.mubr.msk.bf16.mxu0 %vm3083_vm0, %v3082_v1  ;;  %vm2401_vm0 = vcmask 523264  }
 0xd62   : > { %v2302_v58 = vmul.f32 %v3013_v50, %v2294_v33  ;;  %2874 = vmatprep.subr.bf16.mxu0 %v3082_v1  ;;  %v2310_v1 = vld [vmem:[%s3789_s21] sm:$0x1] }
 0xd64   : > { %v2303_v60 = vmul.f32 %v2302_v58, %v2288_v57 }
 0xd65   : > { %2875 = vmatpush3.bf16.msra.mxu0 %v2959_v52 }
 0xd66   : > { %v2304_v62 = vadd.f32 %v2303_v60, %v2289_v59 }
 0xd68   : > { %v2305_v0 = vpack.c.bf16 %v2304_v62, %v2304_v62 }
 0xd6a   : > { %2877 = vmatmul.mubr.msk.bf16.vlgmr.msra.gmra.mxu0 %vm958_vm1, %v2305_v0 }
 0xe20   : > { %v2188_v41 = vpop.f32.mrf.mxu0 }
 0xe21   : > { %v2189_v42 = vadd.f32 %v2679_v15, %v2188_v41 }
 0xe22   : > { %v2862_v9 = vpop.f32.mrf.mxu0 }
 0xe23   : > { %v2194_v31 = vadd.f32 %v3019_v10, %v2189_v42 }
 0xe24   : > { %v2191_v11 = vpop.f32.mrf.mxu0 }
 0xe25   : > { %v2197_v14 = vsel %vm958_vm1, %v2194_v31, 0.0 }
 0xe26   : > { %2198 = vadd.xlane.f32.xlu0 %v2197_v14  ;;  %v2863_v2 = vpop.f32.mrf.mxu0 }
 0xe2a   : > { %v2360_v16 = vpop.f32.mrf.mxu0 }
 0xe2b   : > { %v2361_v17 = vadd.f32 %v2360_v16, %v2310_v1 }
 0xe2c   : > { %v2878_v19 = vpop.f32.mrf.mxu0 }
 0xe2d   : > { %v2366_v21 = vmax.f32 %v2361_v17, 0.0 }
 0xe2e   : > { %v2363_v23 = vpop.f32.mrf.mxu0 }
 0xe2f   : > { %v2367_v6 = vpack.c.bf16 %v2366_v21, %v2366_v21 }
 0xe30   : > { %v2879_v24 = vpop.f32.mrf.mxu0 }
 0xe31   : > { %2889 = vmatmul.mubr.msk.bf16.vlgmr.msra.gmra.mxu1 %vm2401_vm0, %v2367_v6 }
 0xeaf   : > { %v2199_v3 = vpop.xlane.xlu0 %2198 }
 0xeb0   : > { %v2201_v18 = vmul.f32 0.03125, %v2199_v3 }
 0xeb2   : > { %v2202_v39 = vsub.f32 %v2194_v31, %v2201_v18 }
 0xeb4   : > { %v2203_v25 = vmul.f32 %v2202_v39, %v2202_v39 }
 0xeb6   : > { %v2204_v26 = vsel %vm958_vm1, %v2203_v25, 0.0 }
 0xeb7   : > { %2205 = vadd.xlane.f32.xlu0 %v2204_v26 }
 0xef1   : > { %v2439_v27 = vpop.f32.mrf.mxu1 }
 0xef2   : > { %v2440_v54 = vadd.f32 %v2439_v27, %v2376_v53 }
 0xef3   : > { %v2890_v12 = vpop.f32.mrf.mxu1 }
 0xef4   : > { %v2445_v55 = vadd.f32 %v2440_v54, %v2304_v62 }
 0xef5   : > { %v2442_v28 = vpop.f32.mrf.mxu1 }
 0xef6   : > { %v2448_v30 = vsel %vm1177_vm4, %v2445_v55, 0.0 }
 0xef7   : > { %2449 = vadd.xlane.f32.xlu1 %v2448_v30  ;;  %v2891_v32 = vpop.f32.mrf.mxu1 }
 0xf40   : > { %v2206_v34 = vpop.xlane.xlu0 %2205 }
 0xf41   : > { %v2207_v35 = vmul.f32 0.03125, %v2206_v34 }
 0xf43   : > { %v2208_v36 = vadd.f32 1e-05, %v2207_v35 }
 0xf45   : > { %3014 = vrsqrt.f32 %v2208_v36 }
 0xf52   : > { %v3015_v37 = vpop.eup %3014 }
 0xf53   : > { %v2210_v33 = vmul.f32 %v3015_v37, %v2202_v39 }
 0xf55   : > { %v2217_v43 = vmul.f32 %v2683_v38, %v2210_v33 }
 0xf57   : > { %v2224_v45 = vadd.f32 %v2684_v40, %v2217_v43 }
 0xf59   : > { %2225 = vst.msk [vmem:[%s924_s4] sm:$0xff] %vm958_vm1, %v2224_v45  ;;  %s3024_s4 = sshll.u32 %s3099_s29, 4  ;;  %s3025_s4 = int_to_ptr.vmem [resolvable:$false] %s3024_s4 }
 0xf5a   : > { %s3026_s10 = scalar_lea.vmem %s3025_s4, 256  ;;  %p3027_p0 = scmp.lt.s32.totalorder %s2501_s24, %s3025_s4 }
 0xf5b   : > { %p3028_p1 = scmp.lt.s32.totalorder %s3026_s10, %s3020_s7 }
 0xf5d   : > { %p3029_p2 = por %p3028_p1, %p3027_p0 }
 0xf5f   : > { %p3030_p3 = pnand %p3029_p2, %p3023_p13 }
 0xf80   : > { %v2450_v44 = vpop.xlane.xlu1 %2449 }
 0xf81   : > { %v2451_v61 = vmul.f32 0.03125, %v2450_v44 }
 0xf83   : > { %v2452_v51 = vsub.f32 %v2445_v55, %v2451_v61 }
 0xf85   : > { %v2453_v13 = vmul.f32 %v2452_v51, %v2452_v51 }
 0xf87   : > { %v2454_v46 = vsel %vm1177_vm4, %v2453_v13, 0.0 }
 0xf88   : > { %2455 = vadd.xlane.f32.xlu0 %v2454_v46 }
 0xf89   : > { %3033 = shalt.err (!%p3030_p3)
}
 0xf8a   : > { %s3034_s3 = scalar_lea.hbm %s2498_s27, 128  ;;  %s3038_s0 = scalar_lea.hbm %s3859_s26, 256 }
 0xf8b   : > { %p3035_p4 = scmp.ne.s32.totalorder %s2498_s27, %s3034_s3  ;;  %p3039_p9 = scmp.lt.s32.totalorder %s2498_s27, %s3859_s26 }
 0xf8c   : > { %p3040_p10 = scmp.lt.s32.totalorder %s3038_s0, %s3034_s3 }
 0xf8d   : > { %p3036_p7 = pnand %p3035_p4, %p3283_p5 }
 0xf8e   : > { %p3041_p11 = por %p3040_p10, %p3039_p9 }
 0xf8f   : > { %p3037_p8 = pneg %p3036_p7 }
 0xf91   : > { %p3042_p12 = pnand %p3041_p11, %p3037_p8 }
 0xf93   : > { %3045 = shalt.err (!%p3042_p12)
}
 0xf94   : > { %2892 = dma.vmem_to_hbm [thread:$0]  (%p3283_p5), %s2501_s24, 128, %s2498_s27, %s2481_s2  }
 0xf95   : > { %s3860_s7 = sld [smem:[#allocation28_spill]] }
 0xf96   : > { %s3861_s3 = sld [smem:[#allocation29_spill]] }
 0xf97   : > { %s3862_s9 = sld [smem:[#allocation31_spill]] }
 0xf9b   : > { %v2446_v20 = vld [vmem:[%s3860_s7] sm:$0x1] }
 0xf9c   : > { %v2447_v49 = vld [vmem:[%s3861_s3] sm:$0x1] }
 0xf9d   : > { %s927_s0 = scalar_lea.vmem %s3862_s9, %s3311_s1 }
0x1011   : > { %v2456_v47 = vpop.xlane.xlu0 %2455 }
0x1012   : > { %v2457_v29 = vmul.f32 0.03125, %v2456_v47 }
0x1014   : > { %v2458_v4 = vadd.f32 1e-05, %v2457_v29 }
0x1016   : > { %3016 = vrsqrt.f32 %v2458_v4 }
0x1023   : > { %v3017_v63 = vpop.eup %3016 }
0x1024   : > { %v2460_v48 = vmul.f32 %v3017_v63, %v2452_v51 }
0x1026   : > { %v2461_v50 = vmul.f32 %v2460_v48, %v2446_v20 }
0x1028   : > { %v2462_v52 = vadd.f32 %v2461_v50, %v2447_v49 }
0x102a   : > { %2463 = vst.msk [vmem:[%s927_s0] sm:$0x1] %vm1177_vm4, %v2462_v52 }
0x102b PF: > { %s3863_s24 = sld [smem:[#allocation10_spill]] }
0x102c   : > { %s3864_s27 = sld [smem:[#allocation8_spill]] }
0x1031   : > { %p2898_p5 = scmp.ge.s32.totalorder %s3863_s24, 2 }
0x1032   : > { %s2525_s11 = sand.u32 1, %s3864_s27  }
0x1033   : > { %p2895_p13 = pnand %p2898_p5, %p3287_p6  ;;  %s2526_s28 = scalar_lea.sflag [#allocation6], %s2525_s11 }
0x1035   : > { %p2896_p0 = pneg %p2895_p13 }
0x1037   : > { %3063 = dma.done.wait (%p2896_p0), %s2526_s28, 128  }
0x1038   : > { %3065 = vsyncadd (%p2896_p0), %s2526_s28, 4294967168  ;;  %s3866_s30 = sld [smem:[#allocation11_spill]]  ;;  %s3869_s8 = smov %s3072_s5 }
0x1039   : > { %s3867_s10 = sld [smem:[#allocation9_spill]] }
0x103a   : > { %s3868_s9 = sld [smem:[#allocation12_spill]] }
0x103e   : > { %p39_p1 = scmp.ge.s32.totalorder %s3866_s30, 4  }
0x103f   : > { %s3870_s5 = smov %s3867_s10 }
0x1040   :  { %41 = sbr.rel (!%p39_p1) target bundleno = 22 (0x16), region = 195 }
0x1045   :  { %2531 = vsyncpa [#allocation6], 1 }
0x1046   :  { %2533 = vsyncpa [#allocation6 + $0x1], 1 }

// kernel: _decoder_forward.10
= control target key start
LH: loop header
LB: loop body
LE: loop exit
PB: predicated region body
PF: predicated region fallthrough
CT: control target
= control target key end

     0   :  { %s3859_s0 = inlined_call_operand.vmem [shape: f32[2,8,32], index: 0, kind: input, shape index: {}]   ;;  %s3860_s1 = inlined_call_operand.vmem [shape: f32[2,12,32], index: 1, kind: input, shape index: {}]   ;;  %s3861_s2 = inlined_call_operand.vmem [shape: f32[2,1,32], index: 2, kind: input, shape index: {}]   ;;  %s3862_s3 = inlined_call_operand.vmem [shape: f32[2,1,32], index: 3, kind: input, shape index: {}]   ;;  %s3863_s4 = inlined_call_operand.vmem [shape: f32[2,9,12], index: 4, kind: input, shape index: {}]   ;;  %s3864_s5 = inlined_call_operand.vmem [shape: f32[1,9,12], index: 5, kind: input, shape index: {}]   ;;  %s3865_s6 = inlined_call_operand.vmem [shape: bf16[32,96], index: 6, kind: input, shape index: {}]   ;;  %s3866_s7 = inlined_call_operand.vmem [shape: f32[1,96], index: 7, kind: input, shape index: {}]   ;;  %s3867_s8 = inlined_call_operand.vmem [shape: bf16[32,96], index: 8, kind: input, shape index: {}]   ;;  %s3868_s9 = inlined_call_operand.vmem [shape: f32[1,96], index: 9, kind: input, shape index: {}]   ;;  %s3869_s10 = inlined_call_operand.vmem [shape: bf16[32,96], index: 10, kind: input, shape index: {}]   ;;  %s3870_s11 = inlined_call_operand.vmem [shape: f32[1,96], index: 11, kind: input, shape index: {}]   ;;  %s3871_s12 = inlined_call_operand.vmem [shape: bf16[32,32], index: 12, kind: input, shape index: {}]   ;;  %s3872_s13 = inlined_call_operand.vmem [shape: f32[1,32], index: 13, kind: input, shape index: {}]   ;;  %s3873_s14 = inlined_call_operand.vmem [shape: bf16[32,32], index: 14, kind: input, shape index: {}]   ;;  %s3874_s15 = inlined_call_operand.vmem [shape: f32[1,32], index: 15, kind: input, shape index: {}]   ;;  %s3875_s16 = inlined_call_operand.vmem [shape: f32[1,32], index: 16, kind: input, shape index: {}]   ;;  %s3876_s17 = inlined_call_operand.vmem [shape: f32[1,32], index: 17, kind: input, shape index: {}]   ;;  %s3877_s18 = inlined_call_operand.vmem [shape: f32[1,32], index: 18, kind: input, shape index: {}]   ;;  %s3878_s19 = inlined_call_operand.vmem [shape: f32[1,32], index: 19, kind: input, shape index: {}]   ;;  %s3879_s20 = inlined_call_operand.vmem [shape: bf16[32,64], index: 20, kind: input, shape index: {}]   ;;  %s3880_s21 = inlined_call_operand.vmem [shape: f32[1,64], index: 21, kind: input, shape index: {}]   ;;  %s3881_s22 = inlined_call_operand.vmem [shape: bf16[64,32], index: 22, kind: input, shape index: {}]   ;;  %s3882_s23 = inlined_call_operand.vmem [shape: f32[1,32], index: 23, kind: input, shape index: {}]   ;;  %s3883_s24 = inlined_call_operand.vmem [shape: f32[1,32], index: 24, kind: input, shape index: {}]   ;;  %s3884_s25 = inlined_call_operand.vmem [shape: f32[1,32], index: 25, kind: input, shape index: {}]   ;;  %s3885_s26 = inlined_call_operand.vmem [shape: f32[2,8,32], index: 26, kind: output, shape index: {0}]   ;;  %s3886_s27 = inlined_call_operand.hbm [shape: f32[2,1,32], index: 27, kind: output, shape index: {1}]   ;;  %s3887_s28 = inlined_call_operand.hbm [shape: f32[2,8,128], index: 28, kind: output, shape index: {2}]  }
   0x1   :  { %3905 = sst [smem:[#allocation17_spill]] %s3859_s0 }
   0x2   :  { %3906 = sst [smem:[#allocation18_spill]] %s3860_s1 }
   0x3   :  { %3907 = sst [smem:[#allocation19_spill]] %s3861_s2 }
   0x4   :  { %3908 = sst [smem:[#allocation20_spill]] %s3862_s3 }
   0x5   :  { %3909 = sst [smem:[#allocation21_spill]] %s3863_s4 }
   0x6   :  { %3910 = sst [smem:[#allocation22_spill]] %s3864_s5 }
   0x7   :  { %3911 = sst [smem:[#allocation23_spill]] %s3865_s6 }
   0x8   :  { %3912 = sst [smem:[#allocation24_spill]] %s3866_s7 }
   0x9   :  { %3913 = sst [smem:[#allocation25_spill]] %s3867_s8 }
   0xa   :  { %3914 = sst [smem:[#allocation26_spill]] %s3868_s9 }
   0xb   :  { %3915 = sst [smem:[#allocation27_spill]] %s3869_s10 }
   0xc   :  { %3916 = sst [smem:[#allocation28_spill]] %s3870_s11 }
   0xd   :  { %3917 = sst [smem:[#allocation29_spill]] %s3871_s12 }
   0xe   :  { %3918 = sst [smem:[#allocation30_spill]] %s3875_s16 }
   0xf   :  { %3919 = sst [smem:[#allocation31_spill]] %s3876_s17 }
  0x10   :  { %3920 = sst [smem:[#allocation32_spill]] %s3883_s24 }
  0x11   :  { %3921 = sst [smem:[#allocation33_spill]] %s3884_s25 }
  0x12   :  { %3922 = sst [smem:[#allocation34_spill]] %s3885_s26 }
  0x13   :  { %3923 = sst [smem:[#allocation35_spill]] %s3886_s27 }
  0x14   :  { %34 = vsyncpa [#allocation6], 0 }
  0x15   :  { %36 = vsyncpa [#allocation6 + $0x1], 0 }
  0x16   :  { %37 = vsyncpa [#allocation8], 0 }
  0x17   :  { %39 = vsyncpa [#allocation8 + $0x1], 0  ;;  %s3303_s8 = smov 0   ;;  %s3305_s5 = smov 0  }
  0x18   :  { %s3307_s9 = smov 0   ;;  %s3309_s30 = smov 0  }
  0x19 LB: > { %3924 = sst [smem:[#allocation11_spill]] %s3125_s8  ;;  %s3324_s3 = sadd.s32 4294967295, %s3137_s30   ;;  %s3137_s30 = sphi %s3309_s30, %s3957_s30   ;;  %s3133_s9 = sphi %s3307_s9, %s3959_s9   ;;  %s3129_s5 = sphi %s3305_s5, %s3961_s5   ;;  %s3125_s8 = sphi %s3303_s8, %s3960_s8  }
  0x1a   : > { %3925 = sst [smem:[#allocation12_spill]] %s3133_s9  ;;  %s2665_s6 = sadd.s32 4294967294, %s3137_s30  }
  0x1b   : > { %3926 = sst [smem:[#allocation13_spill]] %s3137_s30  ;;  %s3328_s10 = sadd.s32 1, %s3137_s30  }
  0x1c   : > { %3927 = sst [smem:[#allocation14_spill]] %s3328_s10  ;;  %s649_s0 = sadd.s32 1, %s3133_s9 }
  0x1d   : > { %s646_s11 = ssub.s32 %s3137_s30, %s3328_s10  ;;  %p659_p0 = scmp.ne.s32.totalorder %s3133_s9, %s3129_s5 }
  0x1e   : > { %p647_p1 = scmp.eq.s32.totalorder %s646_s11, 0  ;;  %p660_p2 = scmp.eq.s32.totalorder %s3324_s3, 1 }
  0x1f   : > { %p665_p3 = scmp.ne.s32.totalorder %s3129_s5, %s3125_s8  ;;  %p666_p4 = scmp.eq.s32.totalorder %s2665_s6, 1 }
  0x20   : > { %s3339_s29 = scalar_select %p647_p1, %s3133_s9, %s649_s0  }
  0x21   : > { %p3341_p5 = por %p660_p2, %p659_p0  ;;  %p3345_p6 = por %p666_p4, %p665_p3 }
  0x22   : > { %3928 = sst [smem:[#allocation15_spill]] %s3339_s29  ;;  %p2668_p7 = scmp.ge.s32.totalorder %s3137_s30, 1 }
  0x23   : > { %s3930_s7 = scalar_select %p3345_p6, 1, 0 }
  0x24   : > { %p808_p8 = scmp.lt.s32.totalorder %s3137_s30, 3 }
  0x25   : > { %3931 = sst [smem:[#allocation16_spill]] %s3930_s7 }
  0x26   : > { %p809_p9 = pnand %p2668_p7, %p808_p8 }
  0x27   : > { %s3932_s4 = sld [smem:[#allocation23_spill]] (!%p809_p9)  ;;  %p905_p10 = scmp.lt.s32.totalorder (!%p809_p9), %s3324_s3, 1 }
  0x28   : > { %812 = sbr.rel (%p809_p9) target bundleno = 4155 (0x103b), region = 124  ;;  %s3933_s12 = sld [smem:[#allocation25_spill]] (!%p809_p9) }
  0x29   : > { %s3934_s9 = sld [smem:[#allocation27_spill]] (!%p809_p9)  ;;  %s3142_s8 = smov (!%p809_p9), 32  }
  0x2a   : > { %s3936_s6 = sld [smem:[#allocation17_spill]] (!%p809_p9)  ;;  %s3143_s30 = smov (!%p809_p9), 64  }
  0x2b   : > { %s3937_s17 = sld [smem:[#allocation18_spill]] (!%p809_p9)  ;;  %s3152_s26 = smov (!%p809_p9), 40  }
  0x2c   : > { %s3938_s11 = sld [smem:[#allocation19_spill]] (!%p809_p9) }
  0x2d   : > { %v2975_v0 = vld [vmem:[%s3932_s4 + $0x8] sm:$0xff]   ;;  %v3139_v1 = vmov 0.0   ;;  %v2976_v2 = vld [vmem:[%s3932_s4] sm:$0xff]   ;;  %vm3140_vm0 = vmmov 0   ;;  %s3369_s1 = scalar_select %p905_p10, %s3324_s3, 1  ;;  %vm959_vm1 = vcmask 261120   ;;  %v1308_v23 = vlaneseq }
  0x2e   : > { %2774 = vmatprep.subr.bf16.mxu0 %v3139_v1  ;;  %2782 = vmatprep.subr.bf16.mxu1 %v3139_v1  ;;  %v2977_v3 = vld [vmem:[%s3933_s12 + $0x8] sm:$0xff]   ;;  %v2979_v4 = vld [vmem:[%s3933_s12] sm:$0xff]   ;;  %s3940_s25 = sld [smem:[#allocation24_spill]]  ;;  %vm1176_vm2 = vcmask 785408   ;;  %vm1201_vm3 = vcmask 64512   ;;  %vm1178_vm4 = vcmask 253952  }
  0x2f   : > { %2775 = vmatpush3.bf16.msra.mxu0 %v2975_v0  ;;  %2778 = vmatprep.mubr.msk.bf16.mxu0 %vm3140_vm0, %v3139_v1  ;;  %s3902_s29 = sshll.u32 %s3369_s1, 3  ;;  %s3935_s10 = smov %s3934_s9  ;;  %v2978_v5 = vld [vmem:[%s3934_s9 + $0x8] sm:$0xff]   ;;  %v1309_v31 = vshrl.u32 %v1308_v23, 7  ;;  %vm1184_vm5 = vcmask 516352   ;;  %vm1189_vm6 = vcmask 778752   ;;  %vm1329_vm7 = vcmask 57344  }
  0x30   : > { %2776 = vmatprep.subr.bf16.mxu0 %v3139_v1  ;;  %2786 = vmatprep.mubr.msk.bf16.mxu1 %vm3140_vm0, %v3139_v1  ;;  %s2722_s7 = sshll.u32 %s3369_s1, 4  ;;  %s3385_s0 = scalar_lea.vmem %s3936_s6, %s3902_s29  ;;  %v2980_v10 = vld [vmem:[%s3935_s10] sm:$0xff]   ;;  %vm1335_vm10 = vcmask 97280   ;;  %vm1339_vm11 = vcmask 90112   ;;  %vm1387_vm12 = vcmask 1045504   ;;  %vm2468_vm13 = vcmask 105568  }
  0x31   : > { %2783 = vmatpush3.bf16.msra.mxu1 %v2977_v3  ;;  %v930_v6 = vld [vmem:[%s3385_s0] sm:$0xff]  ;;  %s913_s27 = scalar_lea.vmem %s3937_s17, %s2722_s7  ;;  %s3939_s6 = sld [smem:[#allocation20_spill]]  ;;  %v1310_v39 = vsub.s32 0, %v1309_v31  ;;  %vm1662_vm14 = vcmask 122944   ;;  %vm1892_vm15 = vcmask 188544  }
  0x32   : > { %2784 = vmatprep.subr.bf16.mxu1 %v3139_v1  ;;  %s3398_s16 = scalar_lea.vmem %s3938_s11, %s3369_s1  ;;  %v935_v7 = vpack.c.bf16 %v930_v6, %v930_v6  ;;  %v931_v8 = vld [vmem:[%s913_s27] sm:$0xff]  ;;  %v932_v9 = vld [vmem:[%s913_s27 + $0x8] sm:$0xf]  ;;  %s3941_s12 = sld [smem:[#allocation26_spill]] }
  0x33   : > { %2777 = vmatpush3.bf16.msra.mxu0 %v2976_v2  ;;  %v1003_v11 = vpack.c.bf16 %v932_v9, %v931_v8  ;;  %v933_v12 = vld [vmem:[%s3398_s16] sm:$0x1]  ;;  %s3942_s9 = sld [smem:[#allocation28_spill]]  ;;  %s3141_s11 = smov 96  }
  0x34   : > { %2790 = vmatprep.subr.bf16.mxu0 %v3139_v1  ;;  %v1071_v14 = vpack.c.bf16 %v933_v12, %v933_v12  ;;  %v2676_v16 = vld [vmem:[%s3940_s25] ss:$0 sm:$0xff]  ;;  %s3943_s24 = sld [smem:[#allocation21_spill]]  ;;  %s3144_s4 = smov 120  }
  0x35   : > { %2785 = vmatpush3.bf16.msra.mxu1 %v2979_v4  ;;  %s3149_s17 = smov 48   ;;  %s3153_s27 = smov 16  }
  0x36   : > { %2798 = vmatprep.subr.bf16.mxu1 %v3139_v1  ;;  %2779 = vmatmul.mubr.msk.bf16.vlgmr.msra.gmra.mxu0 %vm959_vm1, %v935_v7 }
  0x37   : > { %s919_s29 = scalar_lea.vmem %s3939_s6, %s3369_s1  ;;  %2791 = vmatpush3.bf16.msra.mxu0 %v2978_v5  ;;  %2794 = vmatprep.mubr.msk.bf16.mxu0 %vm3140_vm0, %v3139_v1  ;;  %s3148_s6 = smov 112  }
  0x38   : > { %2787 = vmatmul.mubr.msk.bf16.vlgmr.msra.gmra.mxu1 %vm959_vm1, %v1003_v11  ;;  %v934_v13 = vld [vmem:[%s919_s29] sm:$0x1]  ;;  %2792 = vmatprep.subr.bf16.mxu0 %v3139_v1 }
  0x39   : > { %2799 = vmatpush3.bf16.msra.mxu1 %v2978_v5  ;;  %2802 = vmatprep.mubr.msk.bf16.mxu1 %vm3140_vm0, %v3139_v1  ;;  %v1132_v15 = vpack.c.bf16 %v934_v13, %v934_v13  ;;  %v2680_v19 = vld [vmem:[%s3941_s12] ss:$0 sm:$0xff]  ;;  %s3944_s12 = sld [smem:[#allocation22_spill]] }
  0x3a   : > { %2800 = vmatprep.subr.bf16.mxu1 %v3139_v1  ;;  %v1076_v28 = vld [vmem:[%s3942_s9] sm:$0x1]  ;;  %s924_s25 = scalar_lea.vmem %s3943_s24, %s2722_s7  ;;  %s3145_s9 = smov 88  }
  0x3b   : > { %2793 = vmatpush3.bf16.msra.mxu0 %v2980_v10  ;;  %v3474_v2 = vld [vmem:[%s924_s25] sm:$0xff]  ;;  %v3477_v3 = vld [vmem:[%s924_s25 + $0x8] sm:$0x1]  ;;  %s3150_s24 = smov 104   ;;  %s3151_s25 = smov 72  }
  0x3c   : > { %2806 = vmatprep.subr.bf16.mxu0 %v3139_v1  ;;  %vm1195_vm8 = vcmp.gt.f32.partialorder %v3474_v2, 0.5  ;;  %vm1196_vm9 = vcmp.gt.f32.partialorder %v3477_v3, 0.5  ;;  %s3154_s7 = smov 8  }
  0x3d   : > { %2801 = vmatpush3.bf16.msra.mxu1 %v2980_v10 }
  0x3e   : > { %2795 = vmatmul.mubr.msk.bf16.vlgmr.msra.gmra.mxu0 %vm959_vm1, %v1071_v14  ;;  %2812 = vmatprep.subr.bf16.mxu1 %v3139_v1 }
  0x3f   : > { %2808 = vmatprep.mubr.msk.bf16.mxu0 %vm3140_vm0, %v3139_v1  ;;  %v3484_v6 = vld [vmem:[%s3944_s12] sm:$0xff]  ;;  %v3493_v12 = vld [vmem:[%s3944_s12 + $0x8] sm:$0x1] }
  0x40   : > { %2803 = vmatmul.mubr.msk.bf16.vlgmr.msra.gmra.mxu1 %vm959_vm1, %v1132_v15 }
  0x41   : > { %2814 = vmatprep.mubr.msk.bf16.mxu1 %vm3140_vm0, %v3139_v1 }
  0xf6   : > { %v997_v17 = vpop.f32.mrf.mxu0 }
  0xf7   : > { %v998_v18 = vadd.f32 %v2676_v16, %v997_v17 }
  0xf8   : > { %v1064_v20 = vpop.f32.mrf.mxu1  ;;  %v2780_v21 = vpop.f32.mrf.mxu0 }
  0xf9   : > { %1177 = vst.msk [vmem:[#allocation2] sm:$0xff] %vm1176_vm2, %v998_v18  ;;  %v1065_v25 = vadd.f32 %v2680_v19, %v1064_v20  ;;  %vm2122_vm2 = vcmask 254144  }
  0xfa   : > { %v2788_v22 = vpop.f32.mrf.mxu1  ;;  %v1000_v24 = vpop.f32.mrf.mxu0 }
  0xfc   : > { %v1067_v26 = vpop.f32.mrf.mxu1  ;;  %v2781_v27 = vpop.f32.mrf.mxu0 }
  0xfd   : > { %v1068_v29 = vadd.f32 %v2680_v19, %v1067_v26 }
  0xfe   : > { %v2789_v30 = vpop.f32.mrf.mxu1  ;;  %v1126_v32 = vpop.f32.mrf.mxu0 }
  0xff   : > { %v3434_v33 = vpack.c.bf16 %v1068_v29, %v1065_v25  ;;  %v1127_v34 = vadd.f32 %v1126_v32, %v1076_v28 }
 0x100   : > { %v2796_v35 = vpop.f32.mrf.mxu0  ;;  %v1170_v36 = vpop.f32.mrf.mxu1  ;;  %v1191_v50 = vld [vmem:[#allocation2] sm:$0xff] }
 0x101   : > { %1253 = vrot.lane.b32.xlu1 %v3434_v33, %s3141_s11  ;;  %v1206_v37 = vsel %vm1201_vm3, %v3434_v33, 0  ;;  %1181 = vrot.lane.b32.xlu0 %v1127_v34, %s3142_s8  ;;  %v1171_v38 = vadd.f32 %v1170_v36, %v1076_v28  ;;  %1179 = vst.msk [vmem:[#allocation2 + $0x8] sm:$0x1] %vm1178_vm4, %v1127_v34 }
 0x102   : > { %2807 = vmatpush3.bf16.xpose.msra.mxu0 %v1206_v37  ;;  %v1129_v40 = vpop.f32.mrf.mxu0  ;;  %v2804_v41 = vpop.f32.mrf.mxu1 }
 0x103   : > { %2818 = vmatprep.subr.bf16.mxu0 %v3139_v1  ;;  %v3442_v44 = vrot.slane %v1171_v38, %v1310_v39 }
 0x104   : > { %v2797_v42 = vpop.f32.mrf.mxu0  ;;  %v1173_v43 = vpop.f32.mrf.mxu1 }
 0x105   : > { %1186 = vrot.lane.b32.xlu0 %v1127_v34, %s3143_s30 }
 0x106   : > { %v2805_v45 = vpop.f32.mrf.mxu1 }
 0x109   : > { %1313 = vrot.lane.b32.xlu0 %v3442_v44, %s3142_s8  ;;  %s3147_s8 = smov 80  }
 0x173   : > { %v1254_v46 = vpop.permute.xlu1 %1253  ;;  %v1182_v47 = vpop.permute.xlu0 %1181 }
 0x174   : > { %v1259_v48 = vsel %vm1201_vm3, %v1254_v46, 0  ;;  %1185 = vst.msk [vmem:[#allocation2 + $0x8] sm:$0x1] %vm1184_vm5, %v1182_v47  ;;  %vm2470_vm5 = vcmask 1047656  }
 0x175   : > { %2813 = vmatpush3.bf16.xpose.msra.mxu1 %v1259_v48 }
 0x176   : > { %2824 = vmatprep.subr.bf16.mxu1 %v3139_v1 }
 0x177   : > { %v1187_v49 = vpop.permute.xlu0 %1186 }
 0x178   : > { %1190 = vst.msk [vmem:[#allocation2 + $0x8] sm:$0x1] %vm1189_vm6, %v1187_v49  ;;  %vm1890_vm6 = vcmask 195712  }
 0x17b   : > { %v1314_v51 = vpop.permute.xlu0 %1313 }
 0x17c   : > { %v3458_v55 = vmul.f32 %v1314_v51, %v1191_v50 }
 0x17f   : > { %v1192_v52 = vld [vmem:[#allocation2 + $0x8] sm:$0x1] }
 0x180   : > { %v3448_v53 = vpack.c.bf16 %v1192_v52, %v1191_v50  ;;  %v3450_v54 = vmul.f32 %v1314_v51, %v1192_v52 }
 0x182   : > { %1322 = vrot.lane.b32.xlu0 %v3450_v54, %s3143_s30  ;;  %1250 = vrot.lane.b32.xlu1 %v3448_v53, %s3141_s11  ;;  %s3146_s11 = smov 56  }
 0x183   : > { %2809 = vmatmul.mubr.msk.bf16.vlgmr.msra.gmra.mxu0 %vm1201_vm3, %v3448_v53 }
 0x184   : > { %2820 = vmatprep.mubr.msk.bf16.mxu0 %vm3140_vm0, %v3139_v1 }
 0x186   : > { %1320 = vrot.lane.b32.xlu1 %v3458_v55, %s3143_s30 }
 0x1f4   : > { %v1323_v56 = vpop.permute.xlu0 %1322  ;;  %v1251_v57 = vpop.permute.xlu1 %1250 }
 0x1f5   : > { %2815 = vmatmul.mubr.msk.bf16.vlgmr.msra.gmra.mxu1 %vm1201_vm3, %v1251_v57  ;;  %v1330_v58 = vsel %vm1329_vm7, %v1323_v56, 0.0 }
 0x1f6   : > { %1331 = vadd.xlane.f32.xlu0 %v1330_v58  ;;  %2826 = vmatprep.mubr.msk.bf16.mxu1 %vm3140_vm0, %v3139_v1 }
 0x1f8   : > { %v1321_v59 = vpop.permute.xlu1 %1320 }
 0x1f9   : > { %v1326_v60 = vsel %vm1201_vm3, %v1321_v59, 0.0 }
 0x1fa   : > { %1327 = vadd.xlane.f32.xlu1 %v1326_v60 }
 0x243   : > { %v1242_v61 = vpop.f32.mrf.mxu0 }
 0x245   : > { %v2810_v62 = vpop.f32.mrf.mxu0 }
 0x247   : > { %v1245_v63 = vpop.f32.mrf.mxu0 }
 0x249   : > { %v2811_v0 = vpop.f32.mrf.mxu0 }
 0x27f   : > { %v1332_v18 = vpop.xlane.xlu0 %1331 }
 0x280   : > { %v1334_v23 = vmul.f32 0.35355338, %v1332_v18 }
 0x283   : > { %v1328_v19 = vpop.xlane.xlu1 %1327 }
 0x284   : > { %v1333_v20 = vmul.f32 0.35355338, %v1328_v19 }
 0x2b5   : > { %v1295_v4 = vpop.f32.mrf.mxu1 }
 0x2b6   : > { %v1302_v5 = vsel %vm1195_vm8, %v1242_v61, %v1295_v4 }
 0x2b7   : > { %v1304_v7 = vmul.f32 0.35355338, %v1302_v5  ;;  %v2816_v8 = vpop.f32.mrf.mxu1 }
 0x2b9   : > { %v1298_v9 = vpop.f32.mrf.mxu1  ;;  %v1306_v10 = vadd.f32 %v1304_v7, %v3484_v6 }
 0x2ba   : > { %v1303_v11 = vsel %vm1196_vm9, %v1245_v63, %v1298_v9 }
 0x2bb   : > { %v1305_v13 = vmul.f32 0.35355338, %v1303_v11  ;;  %v2817_v14 = vpop.f32.mrf.mxu1  ;;  %v1336_v15 = vsel %vm1335_vm10, %v1306_v10, -inf }
 0x2bc   : > { %1337 = vmax.xlane.f32.xlu0 %v1336_v15 }
 0x2bd   : > { %v1307_v16 = vadd.f32 %v1305_v13, %v3493_v12 }
 0x2bf   : > { %v1340_v17 = vsel %vm1339_vm11, %v1307_v16, -inf }
 0x2c0   : > { %1341 = vmax.xlane.f32.xlu1 %v1340_v17 }
 0x2d1   : > { %1438 = vrot.lane.b32.xlu1 %v3434_v33, %s3144_s4 }
 0x345   : > { %v1338_v21 = vpop.xlane.xlu0 %1337 }
 0x346   : > { %v1343_v22 = vmax.f32 %v1338_v21, %v1333_v20 }
 0x348   : > { %v1345_v24 = vsub.f32 %v1306_v10, %v1343_v22  ;;  %v1351_v25 = vsub.f32 %v1333_v20, %v1343_v22 }
 0x349   : > { %v1342_v26 = vpop.xlane.xlu1 %1341 }
 0x34a   : > { %v1347_v27 = vmul.f32 1.442695, %v1345_v24  ;;  %v1344_v28 = vmax.f32 %v1342_v26, %v1334_v23  ;;  %v1353_v39 = vmul.f32 1.442695, %v1351_v25 }
 0x34c   : > { %2991 = vpow2.f32 %v1347_v27  ;;  %v1346_v29 = vsub.f32 %v1307_v16, %v1344_v28  ;;  %v1352_v30 = vsub.f32 %v1334_v23, %v1344_v28 }
 0x34d   : > { %v1439_v31 = vpop.permute.xlu1 %1438 }
 0x34e   : > { %v1349_v32 = vmul.f32 1.442695, %v1346_v29  ;;  %v1444_v34 = vsel %vm1201_vm3, %v1439_v31, 0  ;;  %v1355_v40 = vmul.f32 1.442695, %v1352_v30 }
 0x34f   : > { %2825 = vmatpush3.bf16.xpose.msra.mxu1 %v1444_v34 }
 0x350   : > { %2993 = vpow2.f32 %v1349_v32  ;;  %2836 = vmatprep.subr.bf16.mxu1 %v3139_v1 }
 0x351   : > { %2995 = vpow2.f32 %v1353_v39 }
 0x352   : > { %2997 = vpow2.f32 %v1355_v40 }
 0x359   : > { %v2992_v35 = vpop.eup %2991 }
 0x35a   : > { %v1357_v36 = vsel %vm1335_vm10, %v2992_v35, 0.0 }
 0x35b   : > { %1358 = vadd.xlane.f32.xlu0 %v1357_v36 }
 0x35d   : > { %v2994_v37 = vpop.eup %2993 }
 0x35e   : > { %v1360_v38 = vsel %vm1339_vm11, %v2994_v37, 0.0  ;;  %v2996_v41 = vpop.eup %2995 }
 0x35f   : > { %1361 = vadd.xlane.f32.xlu1 %v1360_v38  ;;  %v2998_v45 = vpop.eup %2997 }
 0x370   : > { %1489 = vrot.lane.b32.xlu1 %v3434_v33, %s3145_s9 }
 0x371   : > { %1374 = vrot.lane.b32.xlu0 %v3434_v33, %s3143_s30 }
 0x374   : > { %1487 = vrot.lane.b32.xlu1 %v3448_v53, %s3145_s9 }
 0x375   : > { %1436 = vrot.lane.b32.xlu0 %v3448_v53, %s3144_s4 }
 0x378   : > { %1546 = vrot.lane.b32.xlu1 %v3450_v54, %s3146_s11 }
 0x379   : > { %1544 = vrot.lane.b32.xlu0 %v3458_v55, %s3146_s11 }
 0x3e4   : > { %v1359_v42 = vpop.xlane.xlu0 %1358 }
 0x3e5   : > { %v1363_v43 = vadd.f32 %v2996_v41, %v1359_v42 }
 0x3e7   : > { %2999 = vrcp.f32 %v1363_v43 }
 0x3e8   : > { %v1375_v46 = vpop.permute.xlu0 %1374  ;;  %v1362_v47 = vpop.xlane.xlu1 %1361 }
 0x3e9   : > { %v1389_v48 = vsel %vm1387_vm12, %v1375_v46, 0  ;;  %v1364_v49 = vadd.f32 %v2998_v45, %v1362_v47 }
 0x3ea   : > { %2819 = vmatpush3.bf16.msra.mxu0 %v1389_v48 }
 0x3eb   : > { %3001 = vrcp.f32 %v1364_v49  ;;  %2830 = vmatprep.subr.bf16.mxu0 %v3139_v1 }
 0x3ec   : > { %v1437_v50 = vpop.permute.xlu0 %1436  ;;  %v1490_v51 = vpop.permute.xlu1 %1489 }
 0x3ed   : > { %2827 = vmatmul.mubr.msk.bf16.vlgmr.msra.gmra.mxu1 %vm1201_vm3, %v1437_v50  ;;  %v1495_v7 = vsel %vm1201_vm3, %v1490_v51, 0 }
 0x3ee   : > { %2838 = vmatprep.mubr.msk.bf16.mxu1 %vm3140_vm0, %v3139_v1 }
 0x3f0   : > { %v1545_v52 = vpop.permute.xlu0 %1544  ;;  %v1488_v56 = vpop.permute.xlu1 %1487 }
 0x3f1   : > { %v1550_v57 = vsel %vm1201_vm3, %v1545_v52, 0.0 }
 0x3f2   : > { %1551 = vadd.xlane.f32.xlu0 %v1550_v57 }
 0x3f4   : > { %v3000_v58 = vpop.eup %2999  ;;  %v1547_v59 = vpop.permute.xlu1 %1546 }
 0x3f5   : > { %v1553_v60 = vsel %vm1329_vm7, %v1547_v59, 0.0  ;;  %v3521_v61 = vmul.f32 %v3000_v58, %v2996_v41  ;;  %v3523_v63 = vmul.f32 %v3000_v58, %v2992_v35 }
 0x3f6   : > { %1554 = vadd.xlane.f32.xlu1 %v1553_v60 }
 0x3f8   : > { %v3002_v62 = vpop.eup %3001 }
 0x3f9   : > { %v1368_v0 = vmul.f32 %v3002_v62, %v2994_v37  ;;  %v3525_v4 = vmul.f32 %v3002_v62, %v2998_v45 }
 0x3fb   : > { %v1371_v5 = vpack.c.bf16 %v1368_v0, %v3523_v63 }
 0x3fd   : > { %2821 = vmatmul.mubr.msk.bf16.vlgmr.msra.gmra.mxu0 %vm1335_vm10, %v1371_v5 }
 0x3fe   : > { %2831 = vmatpush3.bf16.xpose.msra.mxu0 %v1495_v7  ;;  %2832 = vmatprep.mubr.msk.bf16.mxu0 %vm3140_vm0, %v3139_v1 }
 0x3ff   : > { %2842 = vmatprep.subr.bf16.mxu0 %v3139_v1 }
 0x405   : > { %2833 = vmatmul.mubr.msk.bf16.vlgmr.msra.gmra.mxu0 %vm1201_vm3, %v1488_v56 }
 0x406   : > { %2844 = vmatprep.mubr.msk.bf16.mxu0 %vm3140_vm0, %v3139_v1 }
 0x47b   : > { %v1552_v29 = vpop.xlane.xlu0 %1551 }
 0x47c   : > { %v1556_v30 = vmul.f32 0.35355338, %v1552_v29 }
 0x47f   : > { %v1555_v31 = vpop.xlane.xlu1 %1554 }
 0x480   : > { %v1557_v35 = vmul.f32 0.35355338, %v1555_v31 }
 0x4ad   : > { %v1480_v8 = vpop.f32.mrf.mxu1 }
 0x4af   : > { %v2828_v9 = vpop.f32.mrf.mxu1 }
 0x4b1   : > { %v1483_v10 = vpop.f32.mrf.mxu1 }
 0x4b3   : > { %v2829_v11 = vpop.f32.mrf.mxu1 }
 0x4bd   : > { %v3536_v13 = vpop.f32.mrf.mxu0 }
 0x4bf   : > { %v2822_v14 = vpop.f32.mrf.mxu0 }
 0x4c1   : > { %v3538_v15 = vpop.f32.mrf.mxu0 }
 0x4c3   : > { %v2823_v16 = vpop.f32.mrf.mxu0 }
 0x4c5   : > { %v1531_v17 = vpop.f32.mrf.mxu0 }
 0x4c6   : > { %v1538_v18 = vsel %vm1195_vm8, %v1480_v8, %v1531_v17 }
 0x4c7   : > { %v1540_v19 = vmul.f32 0.35355338, %v1538_v18  ;;  %v2834_v20 = vpop.f32.mrf.mxu0 }
 0x4c9   : > { %v1534_v21 = vpop.f32.mrf.mxu0  ;;  %v1542_v22 = vadd.f32 %v1540_v19, %v3484_v6 }
 0x4ca   : > { %v1539_v23 = vsel %vm1196_vm9, %v1483_v10, %v1534_v21 }
 0x4cb   : > { %v1541_v24 = vmul.f32 0.35355338, %v1539_v23  ;;  %v2835_v25 = vpop.f32.mrf.mxu0  ;;  %v1558_v26 = vsel %vm1335_vm10, %v1542_v22, -inf }
 0x4cc   : > { %1559 = vmax.xlane.f32.xlu0 %v1558_v26 }
 0x4cd   : > { %v1543_v27 = vadd.f32 %v1541_v24, %v3493_v12 }
 0x4cf   : > { %v1561_v28 = vsel %vm1339_vm11, %v1543_v27, -inf }
 0x4d0   : > { %1562 = vmax.xlane.f32.xlu0 %v1561_v28 }
 0x555   : > { %v1560_v32 = vpop.xlane.xlu0 %1559 }
 0x556   : > { %v1564_v34 = vmax.f32 %v1560_v32, %v1556_v30 }
 0x558   : > { %v1566_v36 = vsub.f32 %v1542_v22, %v1564_v34  ;;  %v1572_v37 = vsub.f32 %v1556_v30, %v1564_v34 }
 0x559   : > { %v1563_v38 = vpop.xlane.xlu0 %1562 }
 0x55a   : > { %v1568_v39 = vmul.f32 1.442695, %v1566_v36  ;;  %v1565_v40 = vmax.f32 %v1563_v38, %v1557_v35  ;;  %v1574_v49 = vmul.f32 1.442695, %v1572_v37 }
 0x55c   : > { %3003 = vpow2.f32 %v1568_v39  ;;  %v1567_v41 = vsub.f32 %v1543_v27, %v1565_v40  ;;  %v1573_v42 = vsub.f32 %v1557_v35, %v1565_v40 }
 0x55e   : > { %v1570_v43 = vmul.f32 1.442695, %v1567_v41  ;;  %v1576_v50 = vmul.f32 1.442695, %v1573_v42 }
 0x560   : > { %3005 = vpow2.f32 %v1570_v43 }
 0x561   : > { %3007 = vpow2.f32 %v1574_v49 }
 0x562   : > { %3009 = vpow2.f32 %v1576_v50 }
 0x569   : > { %v3004_v45 = vpop.eup %3003 }
 0x56a   : > { %v1578_v46 = vsel %vm1335_vm10, %v3004_v45, 0.0 }
 0x56b   : > { %1579 = vadd.xlane.f32.xlu1 %v1578_v46 }
 0x56d   : > { %v3006_v47 = vpop.eup %3005 }
 0x56e   : > { %v1581_v48 = vsel %vm1339_vm11, %v3006_v47, 0.0  ;;  %v3008_v51 = vpop.eup %3007 }
 0x56f   : > { %1582 = vadd.xlane.f32.xlu0 %v1581_v48  ;;  %v3010_v57 = vpop.eup %3009 }
 0x57c   : > { %1595 = vrot.lane.b32.xlu1 %v3434_v33, %s3146_s11 }
 0x580   : > { %1719 = vrot.lane.b32.xlu1 %v3434_v33, %s3147_s8 }
 0x584   : > { %1666 = vrot.lane.b32.xlu1 %v3448_v53, %s3148_s6 }
 0x585   : > { %1668 = vrot.lane.b32.xlu0 %v3434_v33, %s3148_s6  ;;  %s3155_s6 = smov 24  }
 0x588   : > { %1774 = vrot.lane.b32.xlu1 %v3458_v55, %s3149_s17 }
 0x589   : > { %1717 = vrot.lane.b32.xlu0 %v3448_v53, %s3147_s8  ;;  %s3156_s8 = smov [#allocation7]  }
 0x58d   : > { %1776 = vrot.lane.b32.xlu0 %v3450_v54, %s3149_s17 }
 0x5f4   : > { %v1580_v52 = vpop.xlane.xlu1 %1579 }
 0x5f5   : > { %v1584_v56 = vadd.f32 %v3008_v51, %v1580_v52 }
 0x5f7   : > { %3011 = vrcp.f32 %v1584_v56 }
 0x5f8   : > { %v1596_v58 = vpop.permute.xlu1 %1595  ;;  %v1583_v59 = vpop.xlane.xlu0 %1582 }
 0x5f9   : > { %v1609_v60 = vsel %vm1387_vm12, %v1596_v58, 0  ;;  %v1585_v62 = vadd.f32 %v3010_v57, %v1583_v59 }
 0x5fa   : > { %2837 = vmatpush3.bf16.msra.mxu1 %v1609_v60 }
 0x5fb   : > { %3013 = vrcp.f32 %v1585_v62  ;;  %2848 = vmatprep.subr.bf16.mxu1 %v3139_v1 }
 0x5fc   : > { %v1720_v0 = vpop.permute.xlu1 %1719  ;;  %v1669_v5 = vpop.permute.xlu0 %1668 }
 0x5fd   : > { %v1674_v7 = vsel %vm1201_vm3, %v1669_v5, 0  ;;  %v1725_v24 = vsel %vm1201_vm3, %v1720_v0, 0 }
 0x5fe   : > { %2843 = vmatpush3.bf16.xpose.msra.mxu0 %v1674_v7 }
 0x5ff   : > { %2854 = vmatprep.subr.bf16.mxu0 %v3139_v1 }
 0x600   : > { %v1667_v8 = vpop.permute.xlu1 %1666  ;;  %v1718_v9 = vpop.permute.xlu0 %1717 }
 0x604   : > { %v3012_v10 = vpop.eup %3011  ;;  %v1775_v11 = vpop.permute.xlu1 %1774 }
 0x605   : > { %v1777_v14 = vpop.permute.xlu0 %1776  ;;  %2845 = vmatmul.mubr.msk.bf16.vlgmr.msra.gmra.mxu0 %vm1201_vm3, %v1667_v8  ;;  %v1780_v16 = vsel %vm1201_vm3, %v1775_v11, 0.0  ;;  %v3567_v18 = vmul.f32 %v3012_v10, %v3008_v51  ;;  %v3571_v20 = vmul.f32 %v3012_v10, %v3004_v45 }
 0x606   : > { %v1783_v17 = vsel %vm1329_vm7, %v1777_v14, 0.0  ;;  %1781 = vadd.xlane.f32.xlu1 %v1780_v16  ;;  %2856 = vmatprep.mubr.msk.bf16.mxu0 %vm3140_vm0, %v3139_v1 }
 0x607   : > { %1784 = vadd.xlane.f32.xlu0 %v1783_v17 }
 0x608   : > { %v3014_v19 = vpop.eup %3013 }
 0x609   : > { %v1589_v21 = vmul.f32 %v3014_v19, %v3006_v47  ;;  %v3573_v22 = vmul.f32 %v3014_v19, %v3010_v57 }
 0x60b   : > { %v1592_v23 = vpack.c.bf16 %v1589_v21, %v3571_v20 }
 0x60d   : > { %2839 = vmatmul.mubr.msk.bf16.vlgmr.msra.gmra.mxu1 %vm1335_vm10, %v1592_v23 }
 0x60e   : > { %2849 = vmatpush3.bf16.xpose.msra.mxu1 %v1725_v24  ;;  %2850 = vmatprep.mubr.msk.bf16.mxu1 %vm3140_vm0, %v3139_v1 }
 0x60f   : > { %2860 = vmatprep.subr.bf16.mxu1 %v3139_v1 }
 0x615   : > { %2851 = vmatmul.mubr.msk.bf16.vlgmr.msra.gmra.mxu1 %vm1201_vm3, %v1718_v9 }
 0x616   : > { %2862 = vmatprep.mubr.msk.bf16.mxu1 %vm3140_vm0, %v3139_v1 }
 0x68f   : > { %v1782_v47 = vpop.xlane.xlu1 %1781 }
 0x690   : > { %v1785_v48 = vpop.xlane.xlu0 %1784  ;;  %v1786_v49 = vmul.f32 0.35355338, %v1782_v47 }
 0x691   : > { %v1787_v52 = vmul.f32 0.35355338, %v1785_v48 }
 0x6c5   : > { %v1710_v25 = vpop.f32.mrf.mxu0 }
 0x6c7   : > { %v2846_v26 = vpop.f32.mrf.mxu0 }
 0x6c9   : > { %v1713_v27 = vpop.f32.mrf.mxu0 }
 0x6cb   : > { %v2847_v28 = vpop.f32.mrf.mxu0 }
 0x6cd   : > { %v3584_v29 = vpop.f32.mrf.mxu1 }
 0x6cf   : > { %v2840_v30 = vpop.f32.mrf.mxu1 }
 0x6d1   : > { %v3586_v31 = vpop.f32.mrf.mxu1 }
 0x6d3   : > { %v2841_v32 = vpop.f32.mrf.mxu1 }
 0x6d5   : > { %v1761_v34 = vpop.f32.mrf.mxu1 }
 0x6d6   : > { %v1768_v35 = vsel %vm1195_vm8, %v1710_v25, %v1761_v34 }
 0x6d7   : > { %v1770_v36 = vmul.f32 0.35355338, %v1768_v35  ;;  %v2852_v37 = vpop.f32.mrf.mxu1  ;;  %v1664_v35 = vadd.f32 %v3571_v20, %v3523_v63 }
 0x6d9   : > { %v1764_v38 = vpop.f32.mrf.mxu1  ;;  %v1772_v39 = vadd.f32 %v1770_v36, %v3484_v6 }
 0x6da   : > { %v1769_v40 = vsel %vm1196_vm9, %v1713_v27, %v1764_v38 }
 0x6db   : > { %v1771_v41 = vmul.f32 0.35355338, %v1769_v40  ;;  %v2853_v42 = vpop.f32.mrf.mxu1  ;;  %v1788_v43 = vsel %vm1335_vm10, %v1772_v39, -inf  ;;  %v1665_v40 = vadd.f32 %v3567_v18, %v3521_v61 }
 0x6dc   : > { %1789 = vmax.xlane.f32.xlu0 %v1788_v43 }
 0x6dd   : > { %v1773_v45 = vadd.f32 %v1771_v41, %v3493_v12 }
 0x6df   : > { %v1791_v46 = vsel %vm1339_vm11, %v1773_v45, -inf }
 0x6e0   : > { %1792 = vmax.xlane.f32.xlu1 %v1791_v46 }
 0x6f1   : > { %1898 = vrot.lane.b32.xlu1 %v3434_v33, %s3150_s24 }
 0x765   : > { %v1790_v50 = vpop.xlane.xlu0 %1789 }
 0x766   : > { %v1794_v51 = vmax.f32 %v1790_v50, %v1786_v49 }
 0x768   : > { %v1796_v56 = vsub.f32 %v1772_v39, %v1794_v51  ;;  %v1802_v57 = vsub.f32 %v1786_v49, %v1794_v51 }
 0x769   : > { %v1793_v58 = vpop.xlane.xlu1 %1792 }
 0x76a   : > { %v1798_v59 = vmul.f32 1.442695, %v1796_v56  ;;  %v1795_v60 = vmax.f32 %v1793_v58, %v1787_v52  ;;  %v1804_v16 = vmul.f32 1.442695, %v1802_v57 }
 0x76c   : > { %3015 = vpow2.f32 %v1798_v59  ;;  %v1797_v62 = vsub.f32 %v1773_v45, %v1795_v60  ;;  %v1803_v0 = vsub.f32 %v1787_v52, %v1795_v60 }
 0x76d   : > { %v1899_v5 = vpop.permute.xlu1 %1898 }
 0x76e   : > { %v1800_v7 = vmul.f32 1.442695, %v1797_v62  ;;  %v1904_v8 = vsel %vm1201_vm3, %v1899_v5, 0  ;;  %v1806_v17 = vmul.f32 1.442695, %v1803_v0 }
 0x76f   : > { %2861 = vmatpush3.bf16.xpose.msra.mxu1 %v1904_v8 }
 0x770   : > { %3017 = vpow2.f32 %v1800_v7  ;;  %2872 = vmatprep.subr.bf16.mxu1 %v3139_v1 }
 0x771   : > { %3019 = vpow2.f32 %v1804_v16 }
 0x772   : > { %3021 = vpow2.f32 %v1806_v17 }
 0x779   : > { %v3016_v9 = vpop.eup %3015 }
 0x77a   : > { %v1808_v10 = vsel %vm1335_vm10, %v3016_v9, 0.0 }
 0x77b   : > { %1809 = vadd.xlane.f32.xlu0 %v1808_v10 }
 0x77d   : > { %v3018_v11 = vpop.eup %3017 }
 0x77e   : > { %v1811_v14 = vsel %vm1339_vm11, %v3018_v11, 0.0  ;;  %v3020_v19 = vpop.eup %3019 }
 0x77f   : > { %1812 = vadd.xlane.f32.xlu1 %v1811_v14  ;;  %v3022_v24 = vpop.eup %3021 }
 0x790   : > { %1949 = vrot.lane.b32.xlu1 %v3434_v33, %s3151_s25 }
 0x791   : > { %1825 = vrot.lane.b32.xlu0 %v3434_v33, %s3149_s17 }
 0x794   : > { %1947 = vrot.lane.b32.xlu1 %v3448_v53, %s3151_s25  ;;  %s2719_s25 = sshll.u32 %s3324_s3, 7 }
 0x795   : > { %1896 = vrot.lane.b32.xlu0 %v3448_v53, %s3150_s24  ;;  %s3945_s24 = sld [smem:[#allocation29_spill]]  ;;  %s2510_s29 = scalar_lea.hbm %s3887_s28, %s2719_s25 }
 0x798   : > { %2006 = vrot.lane.b32.xlu1 %v3450_v54, %s3152_s26 }
 0x799   : > { %2004 = vrot.lane.b32.xlu0 %v3458_v55, %s3152_s26 }
 0x804   : > { %v1810_v21 = vpop.xlane.xlu0 %1809 }
 0x805   : > { %v1814_v23 = vadd.f32 %v3020_v19, %v1810_v21 }
 0x807   : > { %3023 = vrcp.f32 %v1814_v23 }
 0x808   : > { %v1826_v25 = vpop.permute.xlu0 %1825  ;;  %v1813_v26 = vpop.xlane.xlu1 %1812 }
 0x809   : > { %v1839_v53 = vsel %vm1387_vm12, %v1826_v25, 0  ;;  %v1815_v27 = vadd.f32 %v3022_v24, %v1813_v26 }
 0x80a   : > { %2855 = vmatpush3.bf16.msra.mxu0 %v1839_v53 }
 0x80b   : > { %3025 = vrcp.f32 %v1815_v27  ;;  %2866 = vmatprep.subr.bf16.mxu0 %v3139_v1 }
 0x80c   : > { %v1897_v54 = vpop.permute.xlu0 %1896  ;;  %v1950_v55 = vpop.permute.xlu1 %1949 }
 0x80d   : > { %2863 = vmatmul.mubr.msk.bf16.vlgmr.msra.gmra.mxu1 %vm1201_vm3, %v1897_v54  ;;  %v1955_v63 = vsel %vm1201_vm3, %v1950_v55, 0 }
 0x80e   : > { %2874 = vmatprep.mubr.msk.bf16.mxu1 %vm3140_vm0, %v3139_v1 }
 0x810   : > { %v2005_v28 = vpop.permute.xlu0 %2004  ;;  %v1948_v30 = vpop.permute.xlu1 %1947 }
 0x811   : > { %v2010_v32 = vsel %vm1201_vm3, %v2005_v28, 0.0 }
 0x812   : > { %2011 = vadd.xlane.f32.xlu0 %v2010_v32 }
 0x814   : > { %v3024_v34 = vpop.eup %3023  ;;  %v2007_v36 = vpop.permute.xlu1 %2006 }
 0x815   : > { %v2013_v37 = vsel %vm1329_vm7, %v2007_v36, 0.0  ;;  %v1818_v38 = vmul.f32 %v3024_v34, %v3016_v9  ;;  %v3621_v39 = vmul.f32 %v3024_v34, %v3020_v19  ;;  %v1594_v34 = vmul.f32 %v3573_v22, %v3442_v44 }
 0x816   : > { %2014 = vadd.xlane.f32.xlu1 %v2013_v37 }
 0x817   : > { %v3625_v41 = vadd.f32 %v1818_v38, %v1664_v35  ;;  %v3628_v42 = vadd.f32 %v3621_v39, %v1665_v40  ;;  %v1373_v35 = vmul.f32 %v3525_v4, %v3442_v44 }
 0x818   : > { %v3026_v43 = vpop.eup %3025 }
 0x819   : > { %v1819_v45 = vmul.f32 %v3026_v43, %v3018_v11  ;;  %v1821_v46 = vmul.f32 %v3026_v43, %v3022_v24 }
 0x81b   : > { %v1822_v47 = vpack.c.bf16 %v1819_v45, %v1818_v38  ;;  %v1824_v32 = vmul.f32 %v1821_v46, %v3442_v44 }
 0x81d   : > { %2857 = vmatmul.mubr.msk.bf16.vlgmr.msra.gmra.mxu0 %vm1335_vm10, %v1822_v47 }
 0x81e   : > { %2867 = vmatpush3.bf16.xpose.msra.mxu0 %v1955_v63  ;;  %2868 = vmatprep.mubr.msk.bf16.mxu0 %vm3140_vm0, %v3139_v1 }
 0x81f   : > { %2878 = vmatprep.subr.bf16.mxu0 %v3139_v1 }
 0x825   : > { %2869 = vmatmul.mubr.msk.bf16.vlgmr.msra.gmra.mxu0 %vm1201_vm3, %v1948_v30 }
 0x826   : > { %2882 = vmatprep.mubr.msk.bf16.mxu0 %vm3140_vm0, %v3139_v1 }
 0x89b   : > { %v2012_v2 = vpop.xlane.xlu0 %2011 }
 0x89c   : > { %v2016_v16 = vmul.f32 0.35355338, %v2012_v2 }
 0x89f   : > { %v2015_v17 = vpop.xlane.xlu1 %2014 }
 0x8a0   : > { %v2017_v23 = vmul.f32 0.35355338, %v2015_v17 }
 0x8cd   : > { %v1940_v20 = vpop.f32.mrf.mxu1 }
 0x8cf   : > { %v2864_v48 = vpop.f32.mrf.mxu1 }
 0x8d1   : > { %v1943_v49 = vpop.f32.mrf.mxu1 }
 0x8d3   : > { %v2865_v50 = vpop.f32.mrf.mxu1 }
 0x8dd   : > { %v3638_v51 = vpop.f32.mrf.mxu0 }
 0x8df   : > { %v2858_v52 = vpop.f32.mrf.mxu0 }
 0x8e1   : > { %v3640_v56 = vpop.f32.mrf.mxu0 }
 0x8e3   : > { %v2859_v57 = vpop.f32.mrf.mxu0 }
 0x8e5   : > { %v1991_v58 = vpop.f32.mrf.mxu0 }
 0x8e6   : > { %v1998_v59 = vsel %vm1195_vm8, %v1940_v20, %v1991_v58 }
 0x8e7   : > { %v2000_v60 = vmul.f32 0.35355338, %v1998_v59  ;;  %v2870_v62 = vpop.f32.mrf.mxu0 }
 0x8e9   : > { %v1994_v0 = vpop.f32.mrf.mxu0  ;;  %v2002_v5 = vadd.f32 %v2000_v60, %v3484_v6 }
 0x8ea   : > { %v1999_v7 = vsel %vm1196_vm9, %v1943_v49, %v1994_v0 }
 0x8eb   : > { %v2001_v8 = vmul.f32 0.35355338, %v1999_v7  ;;  %v2871_v9 = vpop.f32.mrf.mxu0  ;;  %v2018_v10 = vsel %vm1335_vm10, %v2002_v5, -inf }
 0x8ec   : > { %2019 = vmax.xlane.f32.xlu0 %v2018_v10  ;;  %v2981_v10 = vld [vmem:[%s3873_s14 + $0x8] sm:$0xff]  }
 0x8ed   : > { %v2003_v11 = vadd.f32 %v2001_v8, %v3493_v12 }
 0x8ef   : > { %v2021_v14 = vsel %vm1339_vm11, %v2003_v11, -inf }
 0x8f0   : > { %2022 = vmax.xlane.f32.xlu0 %v2021_v14 }
 0x975   : > { %v2020_v19 = vpop.xlane.xlu0 %2019 }
 0x976   : > { %v2024_v21 = vmax.f32 %v2020_v19, %v2016_v16  ;;  %v1593_v19 = vmul.f32 %v3567_v18, %v3442_v44  ;;  %v2232_v18 = vld [vmem:[%s3874_s15] sm:$0x1] }
 0x978   : > { %v2026_v6 = vsub.f32 %v2002_v5, %v2024_v21  ;;  %v2032_v24 = vsub.f32 %v2016_v16, %v2024_v21  ;;  %v1823_v21 = vmul.f32 %v3621_v39, %v3442_v44 }
 0x979   : > { %v2023_v3 = vpop.xlane.xlu0 %2022 }
 0x97a   : > { %v2028_v25 = vmul.f32 1.442695, %v2026_v6  ;;  %v2025_v26 = vmax.f32 %v2023_v3, %v2017_v23  ;;  %v2034_v36 = vmul.f32 1.442695, %v2032_v24 }
 0x97c   : > { %3027 = vpow2.f32 %v2028_v25  ;;  %v2027_v53 = vsub.f32 %v2003_v11, %v2025_v26  ;;  %v2033_v27 = vsub.f32 %v2017_v23, %v2025_v26 }
 0x97e   : > { %v2030_v54 = vmul.f32 1.442695, %v2027_v53  ;;  %v2036_v37 = vmul.f32 1.442695, %v2033_v27  ;;  %v3045_v53 = vld [vmem:[%s3398_s16] sm:$0x1] }
 0x980   : > { %3029 = vpow2.f32 %v2030_v54 }
 0x981   : > { %3031 = vpow2.f32 %v2034_v36 }
 0x982   : > { %3033 = vpow2.f32 %v2036_v37 }
 0x989   : > { %v3028_v12 = vpop.eup %3027 }
 0x98a   : > { %v2038_v55 = vsel %vm1335_vm10, %v3028_v12, 0.0 }
 0x98b   : > { %2039 = vadd.xlane.f32.xlu1 %v2038_v55 }
 0x98d   : > { %v3030_v28 = vpop.eup %3029 }
 0x98e   : > { %v2041_v30 = vsel %vm1339_vm11, %v3030_v28, 0.0  ;;  %v3032_v38 = vpop.eup %3031 }
 0x98f   : > { %2042 = vadd.xlane.f32.xlu0 %v2041_v30  ;;  %v3034_v43 = vpop.eup %3033 }
 0x99c   : > { %2055 = vrot.lane.b32.xlu1 %v3434_v33, %s3152_s26 }
 0x9a0   : > { %1831 = vrot.lane.b32.xlu1 %v1824_v32, %s3149_s17  ;;  %v1372_v32 = vmul.f32 %v3521_v61, %v3442_v44 }
 0x9a5   : > { %1601 = vrot.lane.b32.xlu0 %v1594_v34, %s3146_s11 }
 0x9a9   : > { %1380 = vrot.lane.b32.xlu0 %v1373_v35, %s3143_s30 }
 0xa14   : > { %v2040_v33 = vpop.xlane.xlu1 %2039 }
 0xa15   : > { %v2044_v40 = vadd.f32 %v3032_v38, %v2040_v33 }
 0xa17   : > { %3035 = vrcp.f32 %v2044_v40 }
 0xa18   : > { %v2056_v45 = vpop.permute.xlu1 %2055  ;;  %v2043_v46 = vpop.xlane.xlu0 %2042 }
 0xa19   : > { %v2069_v22 = vsel %vm1387_vm12, %v2056_v45, 0  ;;  %v2045_v47 = vadd.f32 %v3034_v43, %v2043_v46 }
 0xa1a   : > { %2873 = vmatpush3.bf16.msra.mxu1 %v2069_v22 }
 0xa1b   : > { %3037 = vrcp.f32 %v2045_v47  ;;  %2886 = vmatprep.subr.bf16.mxu1 %v3139_v1 }
 0xa1c   : > { %v1832_v4 = vpop.permute.xlu1 %1831  ;;  %v1602_v63 = vpop.permute.xlu0 %1601 }
 0xa1d   : > { %v1879_v20 = vadd.f32 %v3640_v56, %v1832_v4 }
 0xa1f   : > { %1886 = vrot.lane.b32.xlu0 %v1879_v20, %s3153_s27 }
 0xa20   : > { %v1381_v48 = vpop.permute.xlu0 %1380 }
 0xa21   : > { %v1429_v49 = vadd.f32 %v3538_v15, %v1381_v48  ;;  %v1649_v15 = vadd.f32 %v3586_v31, %v1602_v63  ;;  %v2982_v31 = vld [vmem:[%s3873_s14] sm:$0xff]   ;;  %v2985_v48 = vld [vmem:[%s3879_s20 + $0x8] sm:$0xff]  }
 0xa23   : > { %1433 = vst.msk [vmem:[#allocation3 + $0x8] sm:$0x1] %vm1329_vm7, %v1429_v49  ;;  %vm2120_vm7 = vcmask 261312  }
 0xa24   : > { %v3036_v50 = vpop.eup %3035 }
 0xa25   : > { %v2048_v52 = vmul.f32 %v3036_v50, %v3028_v12  ;;  %v2050_v57 = vmul.f32 %v3036_v50, %v3032_v38 }
 0xa27   : > { %v2124_v58 = vadd.f32 %v2048_v52, %v3625_v41  ;;  %v2125_v59 = vadd.f32 %v2050_v57, %v3628_v42  ;;  %v2053_v23 = vmul.f32 %v2050_v57, %v3442_v44  ;;  %v2289_v57 = vld [vmem:[%s3877_s18] sm:$0x1] }
 0xa28   : > { %v3038_v60 = vpop.eup %3037 }
 0xa29   : > { %v2051_v62 = vmul.f32 %v3038_v60, %v3034_v43  ;;  %v2049_v0 = vmul.f32 %v3038_v60, %v3030_v28  ;;  %v2465_v56 = vmul.f32 0.25, %v2124_v58  ;;  %v2467_v5 = vmul.f32 0.25, %v2125_v59  ;;  %v2290_v59 = vld [vmem:[%s3878_s19] sm:$0x1] }
 0xa2b   : > { %v2054_v7 = vmul.f32 %v2051_v62, %v3442_v44  ;;  %v2052_v8 = vpack.c.bf16 %v2049_v0, %v2048_v52  ;;  %2466 = vst.msk [vmem:[#allocation4] sm:$0xff] %vm1335_vm10, %v2465_v56  ;;  %v2986_v52 = vld [vmem:[%s3879_s20] sm:$0xff]   ;;  %v2987_v56 = vld [vmem:[%s3881_s22 + $0x18] sm:$0xff]  }
 0xa2c   : > { %2469 = vst.msk [vmem:[#allocation4] sm:$0xff] %vm2468_vm13, %v2467_v5  ;;  %v2988_v5 = vld [vmem:[%s3881_s22 + $0x10] sm:$0xff]  }
 0xa2d   : > { %2061 = vrot.lane.b32.xlu1 %v2054_v7, %s3152_s26  ;;  %2875 = vmatmul.mubr.msk.bf16.vlgmr.msra.gmra.mxu1 %vm1335_vm10, %v2052_v8  ;;  %2471 = vst.msk [vmem:[#allocation4] sm:$0xff] %vm2470_vm5, %v3139_v1  ;;  %v2989_v7 = vld [vmem:[%s3881_s22 + $0x8] sm:$0xff]   ;;  %v2990_v8 = vld [vmem:[%s3881_s22] sm:$0xff]  }
 0xa2e   : > { %2890 = vmatprep.mubr.msk.bf16.mxu1 %vm3140_vm0, %v3139_v1  ;;  %2887 = vmatpush3.bf16.msra.mxu1 %v2981_v10  ;;  %v3046_v10 = vld [vmem:[%s3385_s0] sm:$0xff] }
 0xa2f   : > { %2888 = vmatprep.subr.bf16.mxu1 %v3139_v1 }
 0xa31   : > { %1656 = vrot.lane.b32.xlu1 %v1649_v15, %s3154_s7  ;;  %v2700_v15 = vld [vmem:[%s3872_s13] ss:$0 sm:$0xff] }
 0xa32   : > { %2889 = vmatpush3.bf16.msra.mxu1 %v2982_v31 }
 0xa33   : > { %2902 = vmatprep.subr.bf16.mxu1 %v3139_v1 }
 0xa91   : > { %v1887_v9 = vpop.permute.xlu0 %1886 }
 0xa9f   : > { %v2062_v41 = vpop.permute.xlu1 %2061 }
 0xaa3   : > { %v1657_v42 = vpop.permute.xlu1 %1656 }
 0xaa4   : > { %1663 = vst.msk [vmem:[#allocation3 + $0x8] sm:$0x1] %vm1662_vm14, %v1657_v42 }
 0xaa5   : > { %1893 = vst.msk [vmem:[#allocation3 + $0x8] sm:$0x1] %vm1892_vm15, %v1887_v9 }
 0xaed   : > { %v2105_v11 = vpop.f32.mrf.mxu1 }
 0xaef   : > { %v2876_v14 = vpop.f32.mrf.mxu1 }
 0xaf1   : > { %v2108_v2 = vpop.f32.mrf.mxu1 }
 0xaf2   : > { %v2109_v16 = vadd.f32 %v2108_v2, %v2062_v41 }
 0xaf3   : > { %v2877_v17 = vpop.f32.mrf.mxu1 }
 0xaf4   : > { %2116 = vrot.lane.b32.xlu1 %v2109_v16, %s3155_s6 }
 0xaf8   : > { %1599 = vrot.lane.b32.xlu1 %v1593_v19, %s3146_s11 }
 0xafc   : > { %1829 = vrot.lane.b32.xlu1 %v1823_v21, %s3149_s17  ;;  %s3770_s17 = sand.u32 1, %s3129_s5  }
 0xafd   : > { %s2669_s16 = sshll.u32 %s3770_s17, 3  ;;  %s2483_s4 = scalar_lea.sflag [#allocation8], %s3770_s17 }
 0xb00   : > { %2059 = vrot.lane.b32.xlu1 %v2053_v23, %s3152_s26 }
 0xb66   : > { %v2117_v6 = vpop.permute.xlu1 %2116 }
 0xb67   : > { %2123 = vst.msk [vmem:[#allocation3 + $0x8] sm:$0x1] %vm2122_vm2, %v2117_v6 }
 0xb6a   : > { %v1600_v28 = vpop.permute.xlu1 %1599 }
 0xb6b   : > { %v1646_v61 = vadd.f32 %v3584_v29, %v1600_v28 }
 0xb6e   : > { %v2127_v24 = vld [vmem:[#allocation3 + $0x8] sm:$0x1]  ;;  %v1830_v30 = vpop.permute.xlu1 %1829 }
 0xb6f   : > { %v2227_v3 = vpack.c.bf16 %v2127_v24, %v2127_v24  ;;  %v1876_v34 = vadd.f32 %v3638_v51, %v1830_v30  ;;  %v2983_v51 = vld [vmem:[%s3945_s24 + $0x8] sm:$0xff]  }
 0xb70   : > { %2879 = vmatpush3.bf16.msra.mxu0 %v2983_v51 }
 0xb71   : > { %2891 = vmatmul.mubr.msk.bf16.vlgmr.msra.gmra.mxu1 %vm959_vm1, %v2227_v3  ;;  %2880 = vmatprep.subr.bf16.mxu0 %v3139_v1  ;;  %v2377_v3 = vld [vmem:[%s3882_s23] sm:$0x1] }
 0xb72   : > { %2910 = vmatprep.mubr.msk.bf16.mxu1 %vm3140_vm0, %v3139_v1  ;;  %v2060_v35 = vpop.permute.xlu1 %2059  ;;  %2903 = vmatpush3.bf16.msra.mxu1 %v2987_v56 }
 0xb73   : > { %v2106_v36 = vadd.f32 %v2105_v11, %v2060_v35  ;;  %2904 = vmatprep.subr.bf16.mxu1 %v3139_v1 }
 0xb76   : > { %2905 = vmatpush3.bf16.msra.mxu1 %v2988_v5 }
 0xb77   : > { %2906 = vmatprep.subr.bf16.mxu1 %v3139_v1 }
 0xb7a   : > { %2907 = vmatpush3.bf16.msra.mxu1 %v2989_v7 }
 0xb7b   : > { %2908 = vmatprep.subr.bf16.mxu1 %v3139_v1 }
 0xb7e   : > { %2909 = vmatpush3.bf16.msra.mxu1 %v2990_v8 }
 0xc31   : > { %v2282_v39 = vpop.f32.mrf.mxu1 }
 0xc32   : > { %v2283_v25 = vadd.f32 %v2282_v39, %v2232_v18 }
 0xc33   : > { %v2892_v26 = vpop.f32.mrf.mxu1 }
 0xc34   : > { %v2288_v27 = vadd.f32 %v3045_v53, %v2283_v25 }
 0xc35   : > { %v2285_v54 = vpop.f32.mrf.mxu1 }
 0xc36   : > { %v2291_v12 = vsel %vm1178_vm4, %v2288_v27, 0.0 }
 0xc37   : > { %2292 = vadd.xlane.f32.xlu0 %v2291_v12  ;;  %v2893_v55 = vpop.f32.mrf.mxu1 }
 0xc4d   : > { %1378 = vrot.lane.b32.xlu0 %v1372_v32, %s3143_s30  ;;  %s904_s30 = scalar_lea.vmem [#allocation7], %s2669_s16 }
 0xc4e   : > { %s2512_s26 = sshll.u32 %s904_s30, 4  ;;  %s2513_s26 = int_to_ptr.vmem [resolvable:$true] %s2512_s26 }
 0xc4f   : > { %s3047_s9 = scalar_lea.vmem %s2513_s26, 128 }
 0xc50   : > { %p3048_p11 = scmp.ne.s32.totalorder %s2513_s26, %s3047_s9 }
 0xc51   : > { %1884 = vrot.lane.b32.xlu0 %v1876_v34, %s3153_s27 }
 0xc52   : > { %p3049_p12 = pnand %p3048_p11, %p3341_p5 }
 0xc54   : > { %p3050_p13 = pneg %p3049_p12 }
 0xc55   : > { %2114 = vrot.lane.b32.xlu0 %v2106_v36, %s3155_s6  ;;  %s3051_s6 = sshll.u32 %s3156_s8, 4  ;;  %s3052_s6 = int_to_ptr.vmem [resolvable:$false] %s3051_s6 }
 0xc56   : > { %s3053_s0 = scalar_lea.vmem %s3052_s6, 256  ;;  %p3054_p0 = scmp.lt.s32.totalorder %s2513_s26, %s3052_s6 }
 0xc57   : > { %p3055_p1 = scmp.lt.s32.totalorder %s3053_s0, %s3047_s9 }
 0xc59   : > { %p3056_p2 = por %p3055_p1, %p3054_p0 }
 0xc5b   : > { %p3057_p3 = pnand %p3056_p2, %p3050_p13 }
 0xcc0   : > { %v2293_v37 = vpop.xlane.xlu0 %2292 }
 0xcc1   : > { %v2294_v38 = vmul.f32 0.03125, %v2293_v37 }
 0xcc3   : > { %v2295_v33 = vsub.f32 %v2288_v27, %v2294_v38 }
 0xcc4   : > { %v1379_v40 = vpop.permute.xlu0 %1378 }
 0xcc5   : > { %v1426_v43 = vadd.f32 %v3536_v13, %v1379_v40  ;;  %v2296_v45 = vmul.f32 %v2295_v33, %v2295_v33  ;;  %v2984_v13 = vld [vmem:[%s3945_s24] sm:$0xff]  }
 0xcc6   : > { %2881 = vmatpush3.bf16.msra.mxu0 %v2984_v13 }
 0xcc7   : > { %1432 = vst.msk [vmem:[#allocation3] sm:$0xff] %vm1201_vm3, %v1426_v43  ;;  %v2297_v44 = vsel %vm1178_vm4, %v2296_v45, 0.0  ;;  %2894 = vmatprep.subr.bf16.mxu0 %v3139_v1  ;;  %vm1660_vm3 = vcmask 130112  }
 0xcc8   : > { %2298 = vadd.xlane.f32.xlu1 %v2297_v44  ;;  %v1885_v46 = vpop.permute.xlu0 %1884 }
 0xccc   : > { %v2115_v63 = vpop.permute.xlu0 %2114 }
 0xcd9   : > { %1654 = vrot.lane.b32.xlu1 %v1646_v61, %s3154_s7 }
 0xd51   : > { %v2299_v22 = vpop.xlane.xlu1 %2298 }
 0xd52   : > { %v2300_v47 = vmul.f32 0.03125, %v2299_v22 }
 0xd54   : > { %v2301_v29 = vadd.f32 1e-05, %v2300_v47 }
 0xd55   : > { %v1655_v4 = vpop.permute.xlu1 %1654 }
 0xd56   : > { %3039 = vrsqrt.f32 %v2301_v29  ;;  %1661 = vst.msk [vmem:[#allocation3] sm:$0xff] %vm1660_vm3, %v1655_v4 }
 0xd57   : > { %1891 = vst.msk [vmem:[#allocation3] sm:$0xff] %vm1890_vm6, %v1885_v46 }
 0xd58   : > { %2121 = vst.msk [vmem:[#allocation3] sm:$0xff] %vm2120_vm7, %v2115_v63 }
 0xd5f   : > { %v2126_v20 = vld [vmem:[#allocation3] sm:$0xff] }
 0xd60   : > { %v2128_v49 = vpack.c.bf16 %v2126_v20, %v2126_v20 }
 0xd62   : > { %2883 = vmatmul.mubr.msk.bf16.vlgmr.msra.gmra.mxu0 %vm959_vm1, %v2128_v49 }
 0xd63   : > { %v3040_v50 = vpop.eup %3039  ;;  %2895 = vmatpush3.bf16.msra.mxu0 %v2985_v48  ;;  %2898 = vmatprep.mubr.msk.bf16.mxu0 %vm3140_vm0, %v3139_v1  ;;  %vm2402_vm0 = vcmask 523264  }
 0xd64   : > { %v2303_v58 = vmul.f32 %v3040_v50, %v2295_v33  ;;  %2896 = vmatprep.subr.bf16.mxu0 %v3139_v1  ;;  %v2311_v1 = vld [vmem:[%s3880_s21] sm:$0x1] }
 0xd65   : > { %v2472_v33 = vld [vmem:[#allocation4] sm:$0xff] }
 0xd66   : > { %v2304_v60 = vmul.f32 %v2303_v58, %v2289_v57  ;;  %2473 = vst [vmem:[%s904_s30] sm:$0xff] %v2472_v33 }
 0xd67   : > { %2897 = vmatpush3.bf16.msra.mxu0 %v2986_v52 }
 0xd68   : > { %v2305_v62 = vadd.f32 %v2304_v60, %v2290_v59 }
 0xd6a   : > { %v2306_v0 = vpack.c.bf16 %v2305_v62, %v2305_v62 }
 0xd6c   : > { %2899 = vmatmul.mubr.msk.bf16.vlgmr.msra.gmra.mxu0 %vm959_vm1, %v2306_v0 }
 0xe22   : > { %v2189_v41 = vpop.f32.mrf.mxu0 }
 0xe23   : > { %v2190_v42 = vadd.f32 %v2700_v15, %v2189_v41 }
 0xe24   : > { %v2884_v9 = vpop.f32.mrf.mxu0 }
 0xe25   : > { %v2195_v31 = vadd.f32 %v3046_v10, %v2190_v42 }
 0xe26   : > { %v2192_v11 = vpop.f32.mrf.mxu0 }
 0xe27   : > { %v2198_v14 = vsel %vm959_vm1, %v2195_v31, 0.0 }
 0xe28   : > { %2199 = vadd.xlane.f32.xlu1 %v2198_v14  ;;  %v2885_v2 = vpop.f32.mrf.mxu0 }
 0xe2c   : > { %v2361_v16 = vpop.f32.mrf.mxu0 }
 0xe2d   : > { %v2362_v17 = vadd.f32 %v2361_v16, %v2311_v1 }
 0xe2e   : > { %v2900_v19 = vpop.f32.mrf.mxu0 }
 0xe2f   : > { %v2367_v21 = vmax.f32 %v2362_v17, 0.0 }
 0xe30   : > { %v2364_v23 = vpop.f32.mrf.mxu0 }
 0xe31   : > { %v2368_v6 = vpack.c.bf16 %v2367_v21, %v2367_v21 }
 0xe32   : > { %v2901_v24 = vpop.f32.mrf.mxu0 }
 0xe33   : > { %2911 = vmatmul.mubr.msk.bf16.vlgmr.msra.gmra.mxu1 %vm2402_vm0, %v2368_v6 }
 0xeb1   : > { %v2200_v12 = vpop.xlane.xlu1 %2199 }
 0xeb2   : > { %v2202_v55 = vmul.f32 0.03125, %v2200_v12 }
 0xeb4   : > { %v2203_v32 = vsub.f32 %v2195_v31, %v2202_v55 }
 0xeb6   : > { %v2204_v37 = vmul.f32 %v2203_v32, %v2203_v32 }
 0xeb8   : > { %v2205_v38 = vsel %vm959_vm1, %v2204_v37, 0.0 }
 0xef3   : > { %v2440_v18 = vpop.f32.mrf.mxu1 }
 0xef4   : > { %v2441_v39 = vadd.f32 %v2440_v18, %v2377_v3 }
 0xef5   : > { %v2912_v25 = vpop.f32.mrf.mxu1 }
 0xef6   : > { %v2446_v26 = vadd.f32 %v2441_v39, %v2305_v62 }
 0xef7   : > { %v2443_v53 = vpop.f32.mrf.mxu1 }
 0xef8   : > { %v2449_v27 = vsel %vm1178_vm4, %v2446_v26, 0.0 }
 0xef9   : > { %2450 = vadd.xlane.f32.xlu0 %v2449_v27  ;;  %v2913_v54 = vpop.f32.mrf.mxu1 }
 0xf82   : > { %v2451_v28 = vpop.xlane.xlu0 %2450 }
 0xf83   : > { %v2452_v30 = vmul.f32 0.03125, %v2451_v28 }
 0xf85   : > { %v2453_v34 = vsub.f32 %v2446_v26, %v2452_v30 }
 0xf87   : > { %v2454_v35 = vmul.f32 %v2453_v34, %v2453_v34 }
 0xf89   : > { %v2455_v36 = vsel %vm1178_vm4, %v2454_v35, 0.0 }
 0xf8a   : > { %2456 = vadd.xlane.f32.xlu0 %v2455_v36 }
 0xf8e   : > { %2206 = vadd.xlane.f32.xlu0 %v2205_v38 }
 0xf8f   : > { %3060 = shalt.err (!%p3057_p3)
}
 0xf90   : > { %s3061_s11 = scalar_lea.hbm %s2510_s29, 128  ;;  %s3065_s25 = scalar_lea.hbm %s3887_s28, 256 }
 0xf91   : > { %p3062_p4 = scmp.ne.s32.totalorder %s2510_s29, %s3061_s11  ;;  %p3066_p9 = scmp.lt.s32.totalorder %s2510_s29, %s3887_s28 }
 0xf92   : > { %p3067_p10 = scmp.lt.s32.totalorder %s3065_s25, %s3061_s11 }
 0xf93   : > { %p3063_p7 = pnand %p3062_p4, %p3341_p5 }
 0xf94   : > { %p3068_p11 = por %p3067_p10, %p3066_p9 }
 0xf95   : > { %p3064_p8 = pneg %p3063_p7 }
 0xf97   : > { %p3069_p12 = pnand %p3068_p11, %p3064_p8 }
 0xf99   : > { %3072 = shalt.err (!%p3069_p12)
}
 0xf9a   : > { %2915 = dma.vmem_to_hbm [thread:$0]  (%p3341_p5), %s2513_s26, 128, %s2510_s29, %s2483_s4  }
 0xf9b   : > { %s3946_s6 = sld [smem:[#allocation32_spill]]  ;;  %s2718_s26 = sshll.u32 %s3324_s3, 4 }
 0xf9c   : > { %s3947_s16 = sld [smem:[#allocation33_spill]]  ;;  %s897_s29 = scalar_lea.vmem [#allocation5], %s3770_s17 }
 0xf9d   : > { %s2499_s4 = sshll.u32 %s897_s29, 4  ;;  %s3948_s27 = sld [smem:[#allocation30_spill]]  ;;  %s3806_s4 = int_to_ptr.vmem [resolvable:$true] %s2499_s4 }
 0xf9e   : > { %s3949_s8 = sld [smem:[#allocation35_spill]]  ;;  %s3073_s7 = scalar_lea.vmem %s3806_s4, 16 }
 0xf9f   : > { %s3951_s11 = sld [smem:[#allocation31_spill]]  ;;  %p3074_p13 = scmp.ne.s32.totalorder %s3806_s4, %s3073_s7 }
 0xfa0   : > { %s3953_s25 = sld [smem:[#allocation34_spill]]  ;;  %s3157_s9 = smov [#allocation5]  }
 0xfa1   : > { %v2447_v46 = vld [vmem:[%s3946_s6] sm:$0x1]  ;;  %p3075_p0 = pnand %p3074_p13, %p3341_p5 }
 0xfa2   : > { %v2448_v47 = vld [vmem:[%s3947_s16] sm:$0x1]  ;;  %s3952_s16 = sshll.u32 %s3369_s1, 3 }
 0xfa3   : > { %v2704_v63 = vld [vmem:[%s3948_s27] ss:$0 sm:$0xff]  ;;  %p3076_p1 = pneg %p3075_p0 }
 0xfa4   : > { %s3950_s6 = smov %s3949_s8  ;;  %s3804_s10 = scalar_lea.hbm %s3949_s8, %s2718_s26 }
 0xfa5   : > { %v2705_v49 = vld [vmem:[%s3951_s11] ss:$0 sm:$0xff]  ;;  %s2479_s26 = scalar_lea.sflag [#allocation6], %s3770_s17  ;;  %s3077_s8 = sshll.u32 %s3157_s9, 4  ;;  %s3078_s8 = int_to_ptr.vmem [resolvable:$false] %s3077_s8 }
 0xfa6   : > { %s3816_s27 = scalar_lea.vmem %s3953_s25, %s3952_s16  ;;  %s3079_s0 = scalar_lea.vmem %s3078_s8, 32 }
 0xfa7   : > { %p3080_p2 = scmp.lt.s32.totalorder %s3806_s4, %s3078_s8  ;;  %p3081_p3 = scmp.lt.s32.totalorder %s3079_s0, %s3073_s7 }
 0xfa9   : > { %p3082_p4 = por %p3081_p3, %p3080_p2 }
 0xfab   : > { %p3083_p7 = pnand %p3082_p4, %p3076_p1 }
0x1013   : > { %v2457_v40 = vpop.xlane.xlu0 %2456 }
0x1014   : > { %v2458_v43 = vmul.f32 0.03125, %v2457_v40 }
0x1016   : > { %v2459_v45 = vadd.f32 1e-05, %v2458_v43 }
0x1017   : > { %v2207_v44 = vpop.xlane.xlu0 %2206 }
0x1018   : > { %3041 = vrsqrt.f32 %v2459_v45  ;;  %v2208_v61 = vmul.f32 0.03125, %v2207_v44 }
0x101a   : > { %v2209_v51 = vadd.f32 1e-05, %v2208_v61 }
0x101c   : > { %3043 = vrsqrt.f32 %v2209_v51 }
0x1025   : > { %v3042_v13 = vpop.eup %3041 }
0x1026   : > { %v2461_v22 = vmul.f32 %v3042_v13, %v2453_v34 }
0x1028   : > { %v2462_v29 = vmul.f32 %v2461_v22, %v2447_v46 }
0x1029   : > { %v3044_v4 = vpop.eup %3043 }
0x102a   : > { %v2211_v20 = vmul.f32 %v3044_v4, %v2203_v32  ;;  %v2463_v48 = vadd.f32 %v2462_v29, %v2448_v47 }
0x102c   : > { %v2218_v50 = vmul.f32 %v2704_v63, %v2211_v20  ;;  %2464 = vst.msk [vmem:[%s897_s29] sm:$0x1] %vm1178_vm4, %v2463_v48 }
0x102d   : > { %3086 = shalt.err (!%p3083_p7)
}
0x102e   : > { %s3087_s1 = scalar_lea.hbm %s3804_s10, 16  ;;  %s3091_s29 = scalar_lea.hbm %s3950_s6, 32 }
0x102f   : > { %p3088_p8 = scmp.ne.s32.totalorder %s3804_s10, %s3087_s1  ;;  %p3092_p11 = scmp.lt.s32.totalorder %s3804_s10, %s3950_s6 }
0x1030   : > { %p3093_p12 = scmp.lt.s32.totalorder %s3091_s29, %s3087_s1 }
0x1031   : > { %p3089_p9 = pnand %p3088_p8, %p3341_p5 }
0x1032   : > { %p3094_p13 = por %p3093_p12, %p3092_p11 }
0x1033   : > { %p3090_p10 = pneg %p3089_p9 }
0x1035   : > { %p3095_p0 = pnand %p3094_p13, %p3090_p10 }
0x1037   : > { %3098 = shalt.err (!%p3095_p0)
}
0x1038   : > { %2914 = dma.vmem_to_hbm [thread:$0]  (%p3341_p5), %s3806_s4, 16, %s3804_s10, %s2479_s26   ;;  %v2225_v52 = vadd.f32 %v2705_v49, %v2218_v50 }
0x103a   : > { %2226 = vst.msk [vmem:[%s3816_s27] sm:$0xff] %vm959_vm1, %v2225_v52 }
0x103b PF: > { %s3954_s16 = sld [smem:[#allocation13_spill]] }
0x103c   : > { %s3955_s30 = sld [smem:[#allocation11_spill]] }
0x1041   : > { %p2925_p1 = scmp.ge.s32.totalorder %s3954_s16, 2 }
0x1042   : > { %s2531_s7 = sand.u32 1, %s3955_s30  }
0x1043   : > { %p2919_p2 = pnand %p2925_p1, %p3345_p6  ;;  %s2532_s9 = scalar_lea.sflag [#allocation6], %s2531_s7 }
0x1045   : > { %p2920_p3 = pneg %p2919_p2 }
0x1047   : > { %3116 = dma.done.wait (%p2920_p3), %s2532_s9, 16  }
0x1048   : > { %3118 = vsyncadd (%p2920_p3), %s2532_s9, 4294967280  ;;  %s2540_s2 = scalar_lea.sflag [#allocation8], %s2531_s7 }
0x1049   : > { %3120 = dma.done.wait (%p2920_p3), %s2540_s2, 128  }
0x104a   : > { %3122 = vsyncadd (%p2920_p3), %s2540_s2, 4294967168  ;;  %s3957_s30 = sld [smem:[#allocation14_spill]]  ;;  %s3960_s8 = smov %s3129_s5 }
0x104b   : > { %s3958_s10 = sld [smem:[#allocation12_spill]] }
0x104c   : > { %s3959_s9 = sld [smem:[#allocation15_spill]] }
0x1050   : > { %p42_p5 = scmp.ge.s32.totalorder %s3957_s30, 4  }
0x1051   : > { %s3961_s5 = smov %s3958_s10 }
0x1052   :  { %44 = sbr.rel (!%p42_p5) target bundleno = 25 (0x19), region = 200 }
0x1057   :  { %2545 = vsyncpa [#allocation6], 1 }
0x1058   :  { %2547 = vsyncpa [#allocation6 + $0x1], 1 }
0x1059   :  { %2548 = vsyncpa [#allocation8], 1 }
0x105a   :  { %2550 = vsyncpa [#allocation8 + $0x1], 1 }

</bundles_post_ra>
